<compile_context>
chip_gen: v5e
topology: v5e:2x2
jax: 0.10.0
libtpu: 0.0.40
codegen_flags: <defaults>
</compile_context>

<pallas_src>
import jax
import jax.numpy as jnp
from jax import lax
from jax.experimental import pallas as pl
from jax.experimental.pallas import tpu as pltpu

IMG_SIZE = 16   # small stand-in for the original 50 (keeps shapes tiny)


# ---------------------------------------------------------------------------
# In-kernel helpers (operate on VMEM values, one image at a time).
# ---------------------------------------------------------------------------
def _pad_hw(x, top, bottom, left, right):
    """Zero-pad a (H, W, C) value along H/W via in-kernel concatenates."""
    H, W, C = x.shape
    parts = []
    if left:
        parts.append(jnp.zeros((H, left, C), x.dtype))
    parts.append(x)
    if right:
        parts.append(jnp.zeros((H, right, C), x.dtype))
    x = jnp.concatenate(parts, axis=1) if len(parts) > 1 else x
    W = W + left + right
    parts = []
    if top:
        parts.append(jnp.zeros((top, W, C), x.dtype))
    parts.append(x)
    if bottom:
        parts.append(jnp.zeros((bottom, W, C), x.dtype))
    return jnp.concatenate(parts, axis=0) if len(parts) > 1 else x


def _conv3x3_relu_pool(a, w, b):
    """Conv2d(3x3, s=1, p=1) + ReLU + MaxPool2d(3, s=2, p=1) for one image.

    a: (H, W, Cin) f32    w: (9*Cin, Cout) f32 (3x3 taps flattened, HWIO order)
    b: (1, Cout) f32      returns (ceil(H/2), ceil(W/2), Cout) f32
    """
    H, W, Cin = a.shape
    Cout = w.shape[-1]
    Ho = (H - 1) // 2 + 1                 # PyTorch: floor((H + 2 - 3)/2) + 1
    Wo = (W - 1) // 2 + 1

    # --- conv as ONE im2col matmul: (H*W, 9*Cin) x (9*Cin, Cout) on the MXU.
    xz = _pad_hw(a, 1, 1, 1, 1)                               # (H+2, W+2, Cin)
    cols = [xz[ky:ky + H, kx:kx + W, :]
            for ky in range(3) for kx in range(3)]            # 9 x (H, W, Cin)
    patch = jnp.concatenate(cols, axis=-1).reshape(H * W, 9 * Cin)
    y = jnp.dot(patch, w, preferred_element_type=jnp.float32) + b
    y = jnp.maximum(y, 0.0).reshape(H, W, Cout)               # fused ReLU

    # --- maxpool 3x3 / stride 2 / pad 1.  ReLU output >= 0, so zero padding is
    # equivalent to the -inf padding of the PyTorch op.
    yp = _pad_hw(y, 1, 2 * Ho + 2 - H - 1, 1, 2 * Wo + 2 - W - 1)
    ph = yp.reshape(Ho + 1, 2, 2 * Wo + 2, Cout)              # H split: free
    hv = jnp.maximum(jnp.maximum(ph[:-1, 0], ph[:-1, 1]), ph[1:, 0])
    pw = hv.reshape(Ho, Wo + 1, 2, Cout)
    return jnp.maximum(jnp.maximum(pw[:, :-1, 0], pw[:, :-1, 1]), pw[:, 1:, 0])


# ---------------------------------------------------------------------------
# Fused full-network kernel: one grid step == one image (B steps, parallel).
# ---------------------------------------------------------------------------
def _convnet_kernel(x_ref, w1, b1, w2, b2, w3, b3, wf1, bf1, wf2, bf2, o_ref):
    # x_ref: (1, H, W, 3) NHWC image        o_ref: (1, 1, 2) logits
    a = x_ref[0]
    a = _conv3x3_relu_pool(a, w1[...], b1[...])       # (H/2,  W/2,  32)
    a = _conv3x3_relu_pool(a, w2[...], b2[...])       # (H/4,  W/4,  64)
    a = _conv3x3_relu_pool(a, w3[...], b3[...])       # (H/8,  W/8, 128)

    # fc1 over the NHWC-flattened features.  Keep the activation as
    # (S, C) = (Ho*Wo, 128) (leading-dim collapse only) and accumulate one
    # (1, C) x (C, 1024) matmul per spatial position -- avoids a lane-widening
    # reshape while keeping K=128 MXU contractions.
    f2 = a.reshape(a.shape[0] * a.shape[1], a.shape[2])       # (S, C)
    S, C = f2.shape
    wf1v = wf1[...]                                           # (S*C, 1024)
    h = bf1[...]                                              # (1, 1024)
    for j in range(S):
        h = h + jnp.dot(f2[j:j + 1, :], wf1v[j * C:(j + 1) * C, :],
                        preferred_element_type=jnp.float32)
    h = jnp.maximum(h, 0.0)
    # TODO(synk): dropout(p=0.2) is identity in eval mode.
    o_ref[0] = jnp.dot(h, wf2[...], preferred_element_type=jnp.float32) + bf2[...]


@jax.jit
def convnet_forward(x_nchw, params):
    x = jnp.transpose(x_nchw, (0, 2, 3, 1))           # NCHW -> NHWC, once
    B, H, W, Cin = x.shape

    weights = (params["w1"], params["b1"], params["w2"], params["b2"],
               params["w3"], params["b3"], params["wf1"], params["bf1"],
               params["wf2"], params["bf2"])

    def _resident(shape):
        # Full-array block with a constant index map: DMA'd once, stays in VMEM.
        return pl.BlockSpec(shape, lambda i, _n=len(shape): (0,) * _n)

    out = pl.pallas_call(
        _convnet_kernel,
        out_shape=jax.ShapeDtypeStruct((B, 1, 2), jnp.float32),
        grid_spec=pltpu.PrefetchScalarGridSpec(
            num_scalar_prefetch=0,
            grid=(B,),
            in_specs=[pl.BlockSpec((1, H, W, Cin), lambda i: (i, 0, 0, 0))]
                     + [_resident(w.shape) for w in weights],
            out_specs=pl.BlockSpec((1, 1, 2), lambda i: (i, 0, 0)),
        ),
        compiler_params=pltpu.CompilerParams(
            dimension_semantics=("parallel",)),   # B=2 -> both v7x TCs busy
    )(x, *weights)
    return out.reshape(B, 2)


# ---------------------------------------------------------------------------
# Params & pure-JAX reference.
# ---------------------------------------------------------------------------
def init_params(key, img_size):
    # Deterministic synthetic init (fan-in scaled normals).  Conv weights are
    # stored as (9*Cin, Cout) (3x3 taps flattened, HWIO/row-major order);
    # biases as (1, C); fc1 sized from the actual conv-stack output.
    s = img_size
    for _ in range(3):
        s = (s - 1) // 2 + 1
    feat = 128 * s * s

    ks = jax.random.split(key, 10)

    def wn(k, shape, fan_in):
        return jax.random.normal(k, shape, jnp.float32) / jnp.sqrt(fan_in)

    return {
        "w1": wn(ks[0], (27, 32), 27),        "b1": wn(ks[1], (1, 32), 27),
        "w2": wn(ks[2], (288, 64), 288),      "b2": wn(ks[3], (1, 64), 288),
        "w3": wn(ks[4], (576, 128), 576),     "b3": wn(ks[5], (1, 128), 576),
        "wf1": wn(ks[6], (feat, 1024), feat), "bf1": wn(ks[7], (1, 1024), feat),
        "wf2": wn(ks[8], (1024, 2), 1024),    "bf2": wn(ks[9], (1, 2), 1024),
    }


def reference_forward(x_nchw, params):
    # Pure-JAX reference (same layout / flatten order).
    x = jnp.transpose(x_nchw, (0, 2, 3, 1))

    def conv(x, w, b):
        cin = x.shape[-1]
        w_hwio = w.reshape(3, 3, cin, -1)
        y = lax.conv_general_dilated(
            x, w_hwio, window_strides=(1, 1), padding=((1, 1), (1, 1)),
            dimension_numbers=("NHWC", "HWIO", "NHWC"))
        return jnp.maximum(y + b, 0.0)

    def pool(x):
        return lax.reduce_window(
            x, -jnp.inf, lax.max, (1, 3, 3, 1), (1, 2, 2, 1),
            ((0, 0), (1, 1), (1, 1), (0, 0)))

    x = pool(conv(x, params["w1"], params["b1"]))
    x = pool(conv(x, params["w2"], params["b2"]))
    x = pool(conv(x, params["w3"], params["b3"]))
    x = x.reshape(x.shape[0], -1)
    x = jnp.maximum(x @ params["wf1"] + params["bf1"], 0.0)
    return x @ params["wf2"] + params["bf2"]


if __name__ == "__main__":
    key = jax.random.PRNGKey(0)
    k_x, k_p = jax.random.split(key)

    B = 2
    x = jax.random.normal(k_x, (B, 3, IMG_SIZE, IMG_SIZE), jnp.float32)
    params = init_params(k_p, IMG_SIZE)

    out = jax.block_until_ready(convnet_forward(x, params))
    ref = jax.block_until_ready(reference_forward(x, params))

    assert out.shape == (B, 2), out.shape
    assert jnp.allclose(out, ref, atol=1e-3, rtol=1e-3), (out, ref)
    print("KERNEL_OK")
</pallas_src>

<mosaic_0001>
module attributes {stable_mosaic.version = 11 : i64} {
  func.func @_convnet_kernel(%arg0: i32, %arg1: memref<1x16x16x3xf32, #tpu.memory_space<vmem>>, %arg2: memref<27x32xf32, #tpu.memory_space<vmem>>, %arg3: memref<1x32xf32, #tpu.memory_space<vmem>>, %arg4: memref<288x64xf32, #tpu.memory_space<vmem>>, %arg5: memref<1x64xf32, #tpu.memory_space<vmem>>, %arg6: memref<576x128xf32, #tpu.memory_space<vmem>>, %arg7: memref<1x128xf32, #tpu.memory_space<vmem>>, %arg8: memref<512x1024xf32, #tpu.memory_space<vmem>>, %arg9: memref<1x1024xf32, #tpu.memory_space<vmem>>, %arg10: memref<1024x2xf32, #tpu.memory_space<vmem>>, %arg11: memref<1x2xf32, #tpu.memory_space<vmem>>, %arg12: memref<1x1x2xf32, #tpu.memory_space<vmem>>) attributes {dimension_semantics = [#tpu.dimension_semantics<parallel>], iteration_bounds = array<i64: 2>, scalar_prefetch = 0 : i64, scratch_operands = 0 : i64, tpu.core_type = #tpu.core_type<tc>, window_params = [{transform_indices = @transform_0, window_bounds = array<i64: 1, 16, 16, 3>}, {pipeline_mode = #tpu.pipeline_mode<synchronous>, transform_indices = @transform_1, window_bounds = array<i64: 27, 32>}, {pipeline_mode = #tpu.pipeline_mode<synchronous>, transform_indices = @transform_2, window_bounds = array<i64: 1, 32>}, {pipeline_mode = #tpu.pipeline_mode<synchronous>, transform_indices = @transform_3, window_bounds = array<i64: 288, 64>}, {pipeline_mode = #tpu.pipeline_mode<synchronous>, transform_indices = @transform_4, window_bounds = array<i64: 1, 64>}, {pipeline_mode = #tpu.pipeline_mode<synchronous>, transform_indices = @transform_5, window_bounds = array<i64: 576, 128>}, {pipeline_mode = #tpu.pipeline_mode<synchronous>, transform_indices = @transform_6, window_bounds = array<i64: 1, 128>}, {pipeline_mode = #tpu.pipeline_mode<synchronous>, transform_indices = @transform_7, window_bounds = array<i64: 512, 1024>}, {pipeline_mode = #tpu.pipeline_mode<synchronous>, transform_indices = @transform_8, window_bounds = array<i64: 1, 1024>}, {pipeline_mode = #tpu.pipeline_mode<synchronous>, transform_indices = @transform_9, window_bounds = array<i64: 1024, 2>}, {pipeline_mode = #tpu.pipeline_mode<synchronous>, transform_indices = @transform_10, window_bounds = array<i64: 1, 2>}, {transform_indices = @transform_11, window_bounds = array<i64: 1, 1, 2>}]} {
    %c0 = arith.constant 0 : index
    %c0_0 = arith.constant 0 : index
    %c0_1 = arith.constant 0 : index
    %c0_2 = arith.constant 0 : index
    %0 = vector.load %arg1[%c0, %c0_0, %c0_1, %c0_2] : memref<1x16x16x3xf32, #tpu.memory_space<vmem>>, vector<1x16x16x3xf32>
    %1 = vector.shape_cast %0 : vector<1x16x16x3xf32> to vector<16x16x3xf32>
    %c0_3 = arith.constant 0 : index
    %c0_4 = arith.constant 0 : index
    %2 = vector.load %arg2[%c0_3, %c0_4] : memref<27x32xf32, #tpu.memory_space<vmem>>, vector<27x32xf32>
    %c0_5 = arith.constant 0 : index
    %c0_6 = arith.constant 0 : index
    %3 = vector.load %arg3[%c0_5, %c0_6] : memref<1x32xf32, #tpu.memory_space<vmem>>, vector<1x32xf32>
    %cst = arith.constant 0.000000e+00 : f32
    %4 = vector.broadcast %cst : f32 to vector<16x1x3xf32>
    %cst_7 = arith.constant 0.000000e+00 : f32
    %5 = vector.broadcast %cst_7 : f32 to vector<16x1x3xf32>
    %6 = tpu.concatenate %4, %1, %5 in 1 : vector<16x1x3xf32>, vector<16x16x3xf32>, vector<16x1x3xf32> -> vector<16x18x3xf32>
    %cst_8 = arith.constant 0.000000e+00 : f32
    %7 = vector.broadcast %cst_8 : f32 to vector<1x18x3xf32>
    %cst_9 = arith.constant 0.000000e+00 : f32
    %8 = vector.broadcast %cst_9 : f32 to vector<1x18x3xf32>
    %9 = tpu.concatenate %7, %6, %8 in 0 : vector<1x18x3xf32>, vector<16x18x3xf32>, vector<1x18x3xf32> -> vector<18x18x3xf32>
    %10 = vector.extract_strided_slice %9 {offsets = [0, 0, 0], sizes = [16, 16, 3], strides = [1, 1, 1]} : vector<18x18x3xf32> to vector<16x16x3xf32>
    %11 = vector.extract_strided_slice %9 {offsets = [0, 1, 0], sizes = [16, 16, 3], strides = [1, 1, 1]} : vector<18x18x3xf32> to vector<16x16x3xf32>
    %12 = vector.extract_strided_slice %9 {offsets = [0, 2, 0], sizes = [16, 16, 3], strides = [1, 1, 1]} : vector<18x18x3xf32> to vector<16x16x3xf32>
    %13 = vector.extract_strided_slice %9 {offsets = [1, 0, 0], sizes = [16, 16, 3], strides = [1, 1, 1]} : vector<18x18x3xf32> to vector<16x16x3xf32>
    %14 = vector.extract_strided_slice %9 {offsets = [1, 1, 0], sizes = [16, 16, 3], strides = [1, 1, 1]} : vector<18x18x3xf32> to vector<16x16x3xf32>
    %15 = vector.extract_strided_slice %9 {offsets = [1, 2, 0], sizes = [16, 16, 3], strides = [1, 1, 1]} : vector<18x18x3xf32> to vector<16x16x3xf32>
    %16 = vector.extract_strided_slice %9 {offsets = [2, 0, 0], sizes = [16, 16, 3], strides = [1, 1, 1]} : vector<18x18x3xf32> to vector<16x16x3xf32>
    %17 = vector.extract_strided_slice %9 {offsets = [2, 1, 0], sizes = [16, 16, 3], strides = [1, 1, 1]} : vector<18x18x3xf32> to vector<16x16x3xf32>
    %18 = vector.extract_strided_slice %9 {offsets = [2, 2, 0], sizes = [16, 16, 3], strides = [1, 1, 1]} : vector<18x18x3xf32> to vector<16x16x3xf32>
    %19 = tpu.concatenate %10, %11, %12, %13, %14, %15, %16, %17, %18 in 2 : vector<16x16x3xf32>, vector<16x16x3xf32>, vector<16x16x3xf32>, vector<16x16x3xf32>, vector<16x16x3xf32>, vector<16x16x3xf32>, vector<16x16x3xf32>, vector<16x16x3xf32>, vector<16x16x3xf32> -> vector<16x16x27xf32>
    %20 = vector.shape_cast %19 : vector<16x16x27xf32> to vector<256x27xf32>
    %cst_10 = arith.constant dense<0.000000e+00> : vector<256x32xf32>
    %21 = tpu.matmul %20, %2, %cst_10 {dimension_numbers = #tpu.dot_dimension_numbers<[1], [0], [0], [1], [0, 0, 1, 1], [], []>} : vector<256x27xf32>, vector<27x32xf32>, vector<256x32xf32> -> vector<256x32xf32>
    %22 = vector.broadcast %3 : vector<1x32xf32> to vector<256x32xf32>
    %23 = arith.addf %21, %22 : vector<256x32xf32>
    %cst_11 = arith.constant 0.000000e+00 : f32
    %24 = vector.broadcast %cst_11 : f32 to vector<256x32xf32>
    %25 = arith.maximumf %23, %24 : vector<256x32xf32>
    %26 = vector.shape_cast %25 : vector<256x32xf32> to vector<16x16x32xf32>
    %cst_12 = arith.constant 0.000000e+00 : f32
    %27 = vector.broadcast %cst_12 : f32 to vector<16x1x32xf32>
    %cst_13 = arith.constant 0.000000e+00 : f32
    %28 = vector.broadcast %cst_13 : f32 to vector<16x1x32xf32>
    %29 = tpu.concatenate %27, %26, %28 in 1 : vector<16x1x32xf32>, vector<16x16x32xf32>, vector<16x1x32xf32> -> vector<16x18x32xf32>
    %cst_14 = arith.constant 0.000000e+00 : f32
    %30 = vector.broadcast %cst_14 : f32 to vector<1x18x32xf32>
    %cst_15 = arith.constant 0.000000e+00 : f32
    %31 = vector.broadcast %cst_15 : f32 to vector<1x18x32xf32>
    %32 = tpu.concatenate %30, %29, %31 in 0 : vector<1x18x32xf32>, vector<16x18x32xf32>, vector<1x18x32xf32> -> vector<18x18x32xf32>
    %33 = vector.shape_cast %32 : vector<18x18x32xf32> to vector<9x2x18x32xf32>
    %34 = vector.extract_strided_slice %33 {offsets = [0, 0, 0, 0], sizes = [8, 1, 18, 32], strides = [1, 1, 1, 1]} : vector<9x2x18x32xf32> to vector<8x1x18x32xf32>
    %35 = vector.shape_cast %34 : vector<8x1x18x32xf32> to vector<8x18x32xf32>
    %36 = vector.extract_strided_slice %33 {offsets = [0, 1, 0, 0], sizes = [8, 1, 18, 32], strides = [1, 1, 1, 1]} : vector<9x2x18x32xf32> to vector<8x1x18x32xf32>
    %37 = vector.shape_cast %36 : vector<8x1x18x32xf32> to vector<8x18x32xf32>
    %38 = arith.maximumf %35, %37 : vector<8x18x32xf32>
    %39 = vector.extract_strided_slice %33 {offsets = [1, 0, 0, 0], sizes = [8, 1, 18, 32], strides = [1, 1, 1, 1]} : vector<9x2x18x32xf32> to vector<8x1x18x32xf32>
    %40 = vector.shape_cast %39 : vector<8x1x18x32xf32> to vector<8x18x32xf32>
    %41 = arith.maximumf %38, %40 : vector<8x18x32xf32>
    %42 = vector.shape_cast %41 : vector<8x18x32xf32> to vector<8x9x2x32xf32>
    %43 = vector.extract_strided_slice %42 {offsets = [0, 0, 0, 0], sizes = [8, 8, 1, 32], strides = [1, 1, 1, 1]} : vector<8x9x2x32xf32> to vector<8x8x1x32xf32>
    %44 = vector.shape_cast %43 : vector<8x8x1x32xf32> to vector<8x8x32xf32>
    %45 = vector.extract_strided_slice %42 {offsets = [0, 0, 1, 0], sizes = [8, 8, 1, 32], strides = [1, 1, 1, 1]} : vector<8x9x2x32xf32> to vector<8x8x1x32xf32>
    %46 = vector.shape_cast %45 : vector<8x8x1x32xf32> to vector<8x8x32xf32>
    %47 = arith.maximumf %44, %46 : vector<8x8x32xf32>
    %48 = vector.extract_strided_slice %42 {offsets = [0, 1, 0, 0], sizes = [8, 8, 1, 32], strides = [1, 1, 1, 1]} : vector<8x9x2x32xf32> to vector<8x8x1x32xf32>
    %49 = vector.shape_cast %48 : vector<8x8x1x32xf32> to vector<8x8x32xf32>
    %50 = arith.maximumf %47, %49 : vector<8x8x32xf32>
    %c0_16 = arith.constant 0 : index
    %c0_17 = arith.constant 0 : index
    %51 = vector.load %arg4[%c0_16, %c0_17] : memref<288x64xf32, #tpu.memory_space<vmem>>, vector<288x64xf32>
    %c0_18 = arith.constant 0 : index
    %c0_19 = arith.constant 0 : index
    %52 = vector.load %arg5[%c0_18, %c0_19] : memref<1x64xf32, #tpu.memory_space<vmem>>, vector<1x64xf32>
    %cst_20 = arith.constant 0.000000e+00 : f32
    %53 = vector.broadcast %cst_20 : f32 to vector<8x1x32xf32>
    %cst_21 = arith.constant 0.000000e+00 : f32
    %54 = vector.broadcast %cst_21 : f32 to vector<8x1x32xf32>
    %55 = tpu.concatenate %53, %50, %54 in 1 : vector<8x1x32xf32>, vector<8x8x32xf32>, vector<8x1x32xf32> -> vector<8x10x32xf32>
    %cst_22 = arith.constant 0.000000e+00 : f32
    %56 = vector.broadcast %cst_22 : f32 to vector<1x10x32xf32>
    %cst_23 = arith.constant 0.000000e+00 : f32
    %57 = vector.broadcast %cst_23 : f32 to vector<1x10x32xf32>
    %58 = tpu.concatenate %56, %55, %57 in 0 : vector<1x10x32xf32>, vector<8x10x32xf32>, vector<1x10x32xf32> -> vector<10x10x32xf32>
    %59 = vector.extract_strided_slice %58 {offsets = [0, 0, 0], sizes = [8, 8, 32], strides = [1, 1, 1]} : vector<10x10x32xf32> to vector<8x8x32xf32>
    %60 = vector.extract_strided_slice %58 {offsets = [0, 1, 0], sizes = [8, 8, 32], strides = [1, 1, 1]} : vector<10x10x32xf32> to vector<8x8x32xf32>
    %61 = vector.extract_strided_slice %58 {offsets = [0, 2, 0], sizes = [8, 8, 32], strides = [1, 1, 1]} : vector<10x10x32xf32> to vector<8x8x32xf32>
    %62 = vector.extract_strided_slice %58 {offsets = [1, 0, 0], sizes = [8, 8, 32], strides = [1, 1, 1]} : vector<10x10x32xf32> to vector<8x8x32xf32>
    %63 = vector.extract_strided_slice %58 {offsets = [1, 1, 0], sizes = [8, 8, 32], strides = [1, 1, 1]} : vector<10x10x32xf32> to vector<8x8x32xf32>
    %64 = vector.extract_strided_slice %58 {offsets = [1, 2, 0], sizes = [8, 8, 32], strides = [1, 1, 1]} : vector<10x10x32xf32> to vector<8x8x32xf32>
    %65 = vector.extract_strided_slice %58 {offsets = [2, 0, 0], sizes = [8, 8, 32], strides = [1, 1, 1]} : vector<10x10x32xf32> to vector<8x8x32xf32>
    %66 = vector.extract_strided_slice %58 {offsets = [2, 1, 0], sizes = [8, 8, 32], strides = [1, 1, 1]} : vector<10x10x32xf32> to vector<8x8x32xf32>
    %67 = vector.extract_strided_slice %58 {offsets = [2, 2, 0], sizes = [8, 8, 32], strides = [1, 1, 1]} : vector<10x10x32xf32> to vector<8x8x32xf32>
    %68 = tpu.concatenate %59, %60, %61, %62, %63, %64, %65, %66, %67 in 2 : vector<8x8x32xf32>, vector<8x8x32xf32>, vector<8x8x32xf32>, vector<8x8x32xf32>, vector<8x8x32xf32>, vector<8x8x32xf32>, vector<8x8x32xf32>, vector<8x8x32xf32>, vector<8x8x32xf32> -> vector<8x8x288xf32>
    %69 = vector.shape_cast %68 : vector<8x8x288xf32> to vector<64x288xf32>
    %cst_24 = arith.constant dense<0.000000e+00> : vector<64x64xf32>
    %70 = tpu.matmul %69, %51, %cst_24 {dimension_numbers = #tpu.dot_dimension_numbers<[1], [0], [0], [1], [0, 0, 1, 1], [], []>} : vector<64x288xf32>, vector<288x64xf32>, vector<64x64xf32> -> vector<64x64xf32>
    %71 = vector.broadcast %52 : vector<1x64xf32> to vector<64x64xf32>
    %72 = arith.addf %70, %71 : vector<64x64xf32>
    %cst_25 = arith.constant 0.000000e+00 : f32
    %73 = vector.broadcast %cst_25 : f32 to vector<64x64xf32>
    %74 = arith.maximumf %72, %73 : vector<64x64xf32>
    %75 = vector.shape_cast %74 : vector<64x64xf32> to vector<8x8x64xf32>
    %cst_26 = arith.constant 0.000000e+00 : f32
    %76 = vector.broadcast %cst_26 : f32 to vector<8x1x64xf32>
    %cst_27 = arith.constant 0.000000e+00 : f32
    %77 = vector.broadcast %cst_27 : f32 to vector<8x1x64xf32>
    %78 = tpu.concatenate %76, %75, %77 in 1 : vector<8x1x64xf32>, vector<8x8x64xf32>, vector<8x1x64xf32> -> vector<8x10x64xf32>
    %cst_28 = arith.constant 0.000000e+00 : f32
    %79 = vector.broadcast %cst_28 : f32 to vector<1x10x64xf32>
    %cst_29 = arith.constant 0.000000e+00 : f32
    %80 = vector.broadcast %cst_29 : f32 to vector<1x10x64xf32>
    %81 = tpu.concatenate %79, %78, %80 in 0 : vector<1x10x64xf32>, vector<8x10x64xf32>, vector<1x10x64xf32> -> vector<10x10x64xf32>
    %82 = vector.shape_cast %81 : vector<10x10x64xf32> to vector<5x2x10x64xf32>
    %83 = vector.extract_strided_slice %82 {offsets = [0, 0, 0, 0], sizes = [4, 1, 10, 64], strides = [1, 1, 1, 1]} : vector<5x2x10x64xf32> to vector<4x1x10x64xf32>
    %84 = vector.shape_cast %83 : vector<4x1x10x64xf32> to vector<4x10x64xf32>
    %85 = vector.extract_strided_slice %82 {offsets = [0, 1, 0, 0], sizes = [4, 1, 10, 64], strides = [1, 1, 1, 1]} : vector<5x2x10x64xf32> to vector<4x1x10x64xf32>
    %86 = vector.shape_cast %85 : vector<4x1x10x64xf32> to vector<4x10x64xf32>
    %87 = arith.maximumf %84, %86 : vector<4x10x64xf32>
    %88 = vector.extract_strided_slice %82 {offsets = [1, 0, 0, 0], sizes = [4, 1, 10, 64], strides = [1, 1, 1, 1]} : vector<5x2x10x64xf32> to vector<4x1x10x64xf32>
    %89 = vector.shape_cast %88 : vector<4x1x10x64xf32> to vector<4x10x64xf32>
    %90 = arith.maximumf %87, %89 : vector<4x10x64xf32>
    %91 = vector.shape_cast %90 : vector<4x10x64xf32> to vector<4x5x2x64xf32>
    %92 = vector.extract_strided_slice %91 {offsets = [0, 0, 0, 0], sizes = [4, 4, 1, 64], strides = [1, 1, 1, 1]} : vector<4x5x2x64xf32> to vector<4x4x1x64xf32>
    %93 = vector.shape_cast %92 : vector<4x4x1x64xf32> to vector<4x4x64xf32>
    %94 = vector.extract_strided_slice %91 {offsets = [0, 0, 1, 0], sizes = [4, 4, 1, 64], strides = [1, 1, 1, 1]} : vector<4x5x2x64xf32> to vector<4x4x1x64xf32>
    %95 = vector.shape_cast %94 : vector<4x4x1x64xf32> to vector<4x4x64xf32>
    %96 = arith.maximumf %93, %95 : vector<4x4x64xf32>
    %97 = vector.extract_strided_slice %91 {offsets = [0, 1, 0, 0], sizes = [4, 4, 1, 64], strides = [1, 1, 1, 1]} : vector<4x5x2x64xf32> to vector<4x4x1x64xf32>
    %98 = vector.shape_cast %97 : vector<4x4x1x64xf32> to vector<4x4x64xf32>
    %99 = arith.maximumf %96, %98 : vector<4x4x64xf32>
    %c0_30 = arith.constant 0 : index
    %c0_31 = arith.constant 0 : index
    %100 = vector.load %arg6[%c0_30, %c0_31] : memref<576x128xf32, #tpu.memory_space<vmem>>, vector<576x128xf32>
    %c0_32 = arith.constant 0 : index
    %c0_33 = arith.constant 0 : index
    %101 = vector.load %arg7[%c0_32, %c0_33] : memref<1x128xf32, #tpu.memory_space<vmem>>, vector<1x128xf32>
    %cst_34 = arith.constant 0.000000e+00 : f32
    %102 = vector.broadcast %cst_34 : f32 to vector<4x1x64xf32>
    %cst_35 = arith.constant 0.000000e+00 : f32
    %103 = vector.broadcast %cst_35 : f32 to vector<4x1x64xf32>
    %104 = tpu.concatenate %102, %99, %103 in 1 : vector<4x1x64xf32>, vector<4x4x64xf32>, vector<4x1x64xf32> -> vector<4x6x64xf32>
    %cst_36 = arith.constant 0.000000e+00 : f32
    %105 = vector.broadcast %cst_36 : f32 to vector<1x6x64xf32>
    %cst_37 = arith.constant 0.000000e+00 : f32
    %106 = vector.broadcast %cst_37 : f32 to vector<1x6x64xf32>
    %107 = tpu.concatenate %105, %104, %106 in 0 : vector<1x6x64xf32>, vector<4x6x64xf32>, vector<1x6x64xf32> -> vector<6x6x64xf32>
    %108 = vector.extract_strided_slice %107 {offsets = [0, 0, 0], sizes = [4, 4, 64], strides = [1, 1, 1]} : vector<6x6x64xf32> to vector<4x4x64xf32>
    %109 = vector.extract_strided_slice %107 {offsets = [0, 1, 0], sizes = [4, 4, 64], strides = [1, 1, 1]} : vector<6x6x64xf32> to vector<4x4x64xf32>
    %110 = vector.extract_strided_slice %107 {offsets = [0, 2, 0], sizes = [4, 4, 64], strides = [1, 1, 1]} : vector<6x6x64xf32> to vector<4x4x64xf32>
    %111 = vector.extract_strided_slice %107 {offsets = [1, 0, 0], sizes = [4, 4, 64], strides = [1, 1, 1]} : vector<6x6x64xf32> to vector<4x4x64xf32>
    %112 = vector.extract_strided_slice %107 {offsets = [1, 1, 0], sizes = [4, 4, 64], strides = [1, 1, 1]} : vector<6x6x64xf32> to vector<4x4x64xf32>
    %113 = vector.extract_strided_slice %107 {offsets = [1, 2, 0], sizes = [4, 4, 64], strides = [1, 1, 1]} : vector<6x6x64xf32> to vector<4x4x64xf32>
    %114 = vector.extract_strided_slice %107 {offsets = [2, 0, 0], sizes = [4, 4, 64], strides = [1, 1, 1]} : vector<6x6x64xf32> to vector<4x4x64xf32>
    %115 = vector.extract_strided_slice %107 {offsets = [2, 1, 0], sizes = [4, 4, 64], strides = [1, 1, 1]} : vector<6x6x64xf32> to vector<4x4x64xf32>
    %116 = vector.extract_strided_slice %107 {offsets = [2, 2, 0], sizes = [4, 4, 64], strides = [1, 1, 1]} : vector<6x6x64xf32> to vector<4x4x64xf32>
    %117 = tpu.concatenate %108, %109, %110, %111, %112, %113, %114, %115, %116 in 2 : vector<4x4x64xf32>, vector<4x4x64xf32>, vector<4x4x64xf32>, vector<4x4x64xf32>, vector<4x4x64xf32>, vector<4x4x64xf32>, vector<4x4x64xf32>, vector<4x4x64xf32>, vector<4x4x64xf32> -> vector<4x4x576xf32>
    %118 = vector.shape_cast %117 : vector<4x4x576xf32> to vector<16x576xf32>
    %cst_38 = arith.constant dense<0.000000e+00> : vector<16x128xf32>
    %119 = tpu.matmul %118, %100, %cst_38 {dimension_numbers = #tpu.dot_dimension_numbers<[1], [0], [0], [1], [0, 0, 1, 1], [], []>} : vector<16x576xf32>, vector<576x128xf32>, vector<16x128xf32> -> vector<16x128xf32>
    %120 = vector.broadcast %101 : vector<1x128xf32> to vector<16x128xf32>
    %121 = arith.addf %119, %120 : vector<16x128xf32>
    %cst_39 = arith.constant 0.000000e+00 : f32
    %122 = vector.broadcast %cst_39 : f32 to vector<16x128xf32>
    %123 = arith.maximumf %121, %122 : vector<16x128xf32>
    %124 = vector.shape_cast %123 : vector<16x128xf32> to vector<4x4x128xf32>
    %cst_40 = arith.constant 0.000000e+00 : f32
    %125 = vector.broadcast %cst_40 : f32 to vector<4x1x128xf32>
    %cst_41 = arith.constant 0.000000e+00 : f32
    %126 = vector.broadcast %cst_41 : f32 to vector<4x1x128xf32>
    %127 = tpu.concatenate %125, %124, %126 in 1 : vector<4x1x128xf32>, vector<4x4x128xf32>, vector<4x1x128xf32> -> vector<4x6x128xf32>
    %cst_42 = arith.constant 0.000000e+00 : f32
    %128 = vector.broadcast %cst_42 : f32 to vector<1x6x128xf32>
    %cst_43 = arith.constant 0.000000e+00 : f32
    %129 = vector.broadcast %cst_43 : f32 to vector<1x6x128xf32>
    %130 = tpu.concatenate %128, %127, %129 in 0 : vector<1x6x128xf32>, vector<4x6x128xf32>, vector<1x6x128xf32> -> vector<6x6x128xf32>
    %131 = vector.shape_cast %130 : vector<6x6x128xf32> to vector<3x2x6x128xf32>
    %132 = vector.extract_strided_slice %131 {offsets = [0, 0, 0, 0], sizes = [2, 1, 6, 128], strides = [1, 1, 1, 1]} : vector<3x2x6x128xf32> to vector<2x1x6x128xf32>
    %133 = vector.shape_cast %132 : vector<2x1x6x128xf32> to vector<2x6x128xf32>
    %134 = vector.extract_strided_slice %131 {offsets = [0, 1, 0, 0], sizes = [2, 1, 6, 128], strides = [1, 1, 1, 1]} : vector<3x2x6x128xf32> to vector<2x1x6x128xf32>
    %135 = vector.shape_cast %134 : vector<2x1x6x128xf32> to vector<2x6x128xf32>
    %136 = arith.maximumf %133, %135 : vector<2x6x128xf32>
    %137 = vector.extract_strided_slice %131 {offsets = [1, 0, 0, 0], sizes = [2, 1, 6, 128], strides = [1, 1, 1, 1]} : vector<3x2x6x128xf32> to vector<2x1x6x128xf32>
    %138 = vector.shape_cast %137 : vector<2x1x6x128xf32> to vector<2x6x128xf32>
    %139 = arith.maximumf %136, %138 : vector<2x6x128xf32>
    %140 = vector.shape_cast %139 : vector<2x6x128xf32> to vector<2x3x2x128xf32>
    %141 = vector.extract_strided_slice %140 {offsets = [0, 0, 0, 0], sizes = [2, 2, 1, 128], strides = [1, 1, 1, 1]} : vector<2x3x2x128xf32> to vector<2x2x1x128xf32>
    %142 = vector.shape_cast %141 : vector<2x2x1x128xf32> to vector<2x2x128xf32>
    %143 = vector.extract_strided_slice %140 {offsets = [0, 0, 1, 0], sizes = [2, 2, 1, 128], strides = [1, 1, 1, 1]} : vector<2x3x2x128xf32> to vector<2x2x1x128xf32>
    %144 = vector.shape_cast %143 : vector<2x2x1x128xf32> to vector<2x2x128xf32>
    %145 = arith.maximumf %142, %144 : vector<2x2x128xf32>
    %146 = vector.extract_strided_slice %140 {offsets = [0, 1, 0, 0], sizes = [2, 2, 1, 128], strides = [1, 1, 1, 1]} : vector<2x3x2x128xf32> to vector<2x2x1x128xf32>
    %147 = vector.shape_cast %146 : vector<2x2x1x128xf32> to vector<2x2x128xf32>
    %148 = arith.maximumf %145, %147 : vector<2x2x128xf32>
    %149 = vector.shape_cast %148 : vector<2x2x128xf32> to vector<4x128xf32>
    %c0_44 = arith.constant 0 : index
    %c0_45 = arith.constant 0 : index
    %150 = vector.load %arg8[%c0_44, %c0_45] : memref<512x1024xf32, #tpu.memory_space<vmem>>, vector<512x1024xf32>
    %c0_46 = arith.constant 0 : index
    %c0_47 = arith.constant 0 : index
    %151 = vector.load %arg9[%c0_46, %c0_47] : memref<1x1024xf32, #tpu.memory_space<vmem>>, vector<1x1024xf32>
    %152 = vector.extract_strided_slice %149 {offsets = [0, 0], sizes = [1, 128], strides = [1, 1]} : vector<4x128xf32> to vector<1x128xf32>
    %153 = vector.extract_strided_slice %150 {offsets = [0, 0], sizes = [128, 1024], strides = [1, 1]} : vector<512x1024xf32> to vector<128x1024xf32>
    %cst_48 = arith.constant dense<0.000000e+00> : vector<1x1024xf32>
    %154 = tpu.matmul %152, %153, %cst_48 {dimension_numbers = #tpu.dot_dimension_numbers<[1], [0], [0], [1], [0, 0, 1, 1], [], []>} : vector<1x128xf32>, vector<128x1024xf32>, vector<1x1024xf32> -> vector<1x1024xf32>
    %155 = arith.addf %151, %154 : vector<1x1024xf32>
    %156 = vector.extract_strided_slice %149 {offsets = [1, 0], sizes = [1, 128], strides = [1, 1]} : vector<4x128xf32> to vector<1x128xf32>
    %157 = vector.extract_strided_slice %150 {offsets = [128, 0], sizes = [128, 1024], strides = [1, 1]} : vector<512x1024xf32> to vector<128x1024xf32>
    %cst_49 = arith.constant dense<0.000000e+00> : vector<1x1024xf32>
    %158 = tpu.matmul %156, %157, %cst_49 {dimension_numbers = #tpu.dot_dimension_numbers<[1], [0], [0], [1], [0, 0, 1, 1], [], []>} : vector<1x128xf32>, vector<128x1024xf32>, vector<1x1024xf32> -> vector<1x1024xf32>
    %159 = arith.addf %155, %158 : vector<1x1024xf32>
    %160 = vector.extract_strided_slice %149 {offsets = [2, 0], sizes = [1, 128], strides = [1, 1]} : vector<4x128xf32> to vector<1x128xf32>
    %161 = vector.extract_strided_slice %150 {offsets = [256, 0], sizes = [128, 1024], strides = [1, 1]} : vector<512x1024xf32> to vector<128x1024xf32>
    %cst_50 = arith.constant dense<0.000000e+00> : vector<1x1024xf32>
    %162 = tpu.matmul %160, %161, %cst_50 {dimension_numbers = #tpu.dot_dimension_numbers<[1], [0], [0], [1], [0, 0, 1, 1], [], []>} : vector<1x128xf32>, vector<128x1024xf32>, vector<1x1024xf32> -> vector<1x1024xf32>
    %163 = arith.addf %159, %162 : vector<1x1024xf32>
    %164 = vector.extract_strided_slice %149 {offsets = [3, 0], sizes = [1, 128], strides = [1, 1]} : vector<4x128xf32> to vector<1x128xf32>
    %165 = vector.extract_strided_slice %150 {offsets = [384, 0], sizes = [128, 1024], strides = [1, 1]} : vector<512x1024xf32> to vector<128x1024xf32>
    %cst_51 = arith.constant dense<0.000000e+00> : vector<1x1024xf32>
    %166 = tpu.matmul %164, %165, %cst_51 {dimension_numbers = #tpu.dot_dimension_numbers<[1], [0], [0], [1], [0, 0, 1, 1], [], []>} : vector<1x128xf32>, vector<128x1024xf32>, vector<1x1024xf32> -> vector<1x1024xf32>
    %167 = arith.addf %163, %166 : vector<1x1024xf32>
    %cst_52 = arith.constant 0.000000e+00 : f32
    %168 = vector.broadcast %cst_52 : f32 to vector<1x1024xf32>
    %169 = arith.maximumf %167, %168 : vector<1x1024xf32>
    %c0_53 = arith.constant 0 : index
    %c0_54 = arith.constant 0 : index
    %170 = vector.load %arg10[%c0_53, %c0_54] : memref<1024x2xf32, #tpu.memory_space<vmem>>, vector<1024x2xf32>
    %cst_55 = arith.constant dense<0.000000e+00> : vector<1x2xf32>
    %171 = tpu.matmul %169, %170, %cst_55 {dimension_numbers = #tpu.dot_dimension_numbers<[1], [0], [0], [1], [0, 0, 1, 1], [], []>} : vector<1x1024xf32>, vector<1024x2xf32>, vector<1x2xf32> -> vector<1x2xf32>
    %c0_56 = arith.constant 0 : index
    %c0_57 = arith.constant 0 : index
    %172 = vector.load %arg11[%c0_56, %c0_57] : memref<1x2xf32, #tpu.memory_space<vmem>>, vector<1x2xf32>
    %173 = arith.addf %171, %172 : vector<1x2xf32>
    %c0_58 = arith.constant 0 : index
    %c0_59 = arith.constant 0 : index
    %c0_60 = arith.constant 0 : index
    %174 = vector.load %arg12[%c0_58, %c0_59, %c0_60] : memref<1x1x2xf32, #tpu.memory_space<vmem>>, vector<1x1x2xf32>
    %175 = vector.shape_cast %174 : vector<1x1x2xf32> to vector<1x2xf32>
    %176 = vector.shape_cast %173 : vector<1x2xf32> to vector<1x1x2xf32>
    tpu.vector_store %arg12[%c0_58, %c0_59, %c0_60], %176 {strides = array<i32>} : memref<1x1x2xf32, #tpu.memory_space<vmem>>, vector<1x1x2xf32>,
    return
  }
  func.func @transform_0(%arg0: i32) -> (i32, i32, i32, i32) {
    %c0_i32 = arith.constant 0 : i32
    %c0_i32_0 = arith.constant 0 : i32
    %c0_i32_1 = arith.constant 0 : i32
    %c0_i32_2 = arith.constant 0 : i32
    return %arg0, %c0_i32, %c0_i32_0, %c0_i32_1 : i32, i32, i32, i32
  }
  func.func @transform_1(%arg0: i32) -> (i32, i32) {
    %c0_i32 = arith.constant 0 : i32
    %c0_i32_0 = arith.constant 0 : i32
    %c0_i32_1 = arith.constant 0 : i32
    return %c0_i32, %c0_i32_0 : i32, i32
  }
  func.func @transform_2(%arg0: i32) -> (i32, i32) {
    %c0_i32 = arith.constant 0 : i32
    %c0_i32_0 = arith.constant 0 : i32
    %c0_i32_1 = arith.constant 0 : i32
    return %c0_i32, %c0_i32_0 : i32, i32
  }
  func.func @transform_3(%arg0: i32) -> (i32, i32) {
    %c0_i32 = arith.constant 0 : i32
    %c0_i32_0 = arith.constant 0 : i32
    %c0_i32_1 = arith.constant 0 : i32
    return %c0_i32, %c0_i32_0 : i32, i32
  }
  func.func @transform_4(%arg0: i32) -> (i32, i32) {
    %c0_i32 = arith.constant 0 : i32
    %c0_i32_0 = arith.constant 0 : i32
    %c0_i32_1 = arith.constant 0 : i32
    return %c0_i32, %c0_i32_0 : i32, i32
  }
  func.func @transform_5(%arg0: i32) -> (i32, i32) {
    %c0_i32 = arith.constant 0 : i32
    %c0_i32_0 = arith.constant 0 : i32
    %c0_i32_1 = arith.constant 0 : i32
    return %c0_i32, %c0_i32_0 : i32, i32
  }
  func.func @transform_6(%arg0: i32) -> (i32, i32) {
    %c0_i32 = arith.constant 0 : i32
    %c0_i32_0 = arith.constant 0 : i32
    %c0_i32_1 = arith.constant 0 : i32
    return %c0_i32, %c0_i32_0 : i32, i32
  }
  func.func @transform_7(%arg0: i32) -> (i32, i32) {
    %c0_i32 = arith.constant 0 : i32
    %c0_i32_0 = arith.constant 0 : i32
    %c0_i32_1 = arith.constant 0 : i32
    return %c0_i32, %c0_i32_0 : i32, i32
  }
  func.func @transform_8(%arg0: i32) -> (i32, i32) {
    %c0_i32 = arith.constant 0 : i32
    %c0_i32_0 = arith.constant 0 : i32
    %c0_i32_1 = arith.constant 0 : i32
    return %c0_i32, %c0_i32_0 : i32, i32
  }
  func.func @transform_9(%arg0: i32) -> (i32, i32) {
    %c0_i32 = arith.constant 0 : i32
    %c0_i32_0 = arith.constant 0 : i32
    %c0_i32_1 = arith.constant 0 : i32
    return %c0_i32, %c0_i32_0 : i32, i32
  }
  func.func @transform_10(%arg0: i32) -> (i32, i32) {
    %c0_i32 = arith.constant 0 : i32
    %c0_i32_0 = arith.constant 0 : i32
    %c0_i32_1 = arith.constant 0 : i32
    return %c0_i32, %c0_i32_0 : i32, i32
  }
  func.func @transform_11(%arg0: i32) -> (i32, i32, i32) {
    %c0_i32 = arith.constant 0 : i32
    %c0_i32_0 = arith.constant 0 : i32
    %c0_i32_1 = arith.constant 0 : i32
    return %arg0, %c0_i32, %c0_i32_0 : i32, i32, i32
  }
}

</mosaic_0001>

<bundles_post_ra>
// kernel: convnet_forward.1
= control target key start
LH: loop header
LB: loop body
LE: loop exit
PB: predicated region body
PF: predicated region fallthrough
CT: control target
= control target key end

     0   :  { %s9467_s0 = inlined_call_operand.vmem [shape: f32[2,16,16,3], index: 0, kind: input, shape index: {}]   ;;  %s9468_s1 = inlined_call_operand.hbm [shape: f32[27,32], index: 1, kind: input, shape index: {}]   ;;  %s9469_s2 = inlined_call_operand.hbm [shape: f32[1,32], index: 2, kind: input, shape index: {}]   ;;  %s9470_s3 = inlined_call_operand.vmem [shape: f32[288,64], index: 3, kind: input, shape index: {}]   ;;  %s9471_s4 = inlined_call_operand.hbm [shape: f32[1,64], index: 4, kind: input, shape index: {}]   ;;  %s9472_s5 = inlined_call_operand.hbm [shape: f32[576,128], index: 5, kind: input, shape index: {}]   ;;  %s9473_s6 = inlined_call_operand.hbm [shape: f32[1,128], index: 6, kind: input, shape index: {}]   ;;  %s9474_s7 = inlined_call_operand.hbm [shape: f32[512,1024], index: 7, kind: input, shape index: {}]   ;;  %s9475_s8 = inlined_call_operand.hbm [shape: f32[1,1024], index: 8, kind: input, shape index: {}]   ;;  %s9476_s9 = inlined_call_operand.vmem [shape: f32[1024,2], index: 9, kind: input, shape index: {}]   ;;  %s9477_s10 = inlined_call_operand.hbm [shape: f32[1,2], index: 10, kind: input, shape index: {}]   ;;  %s9478_s11 = inlined_call_operand.hbm [shape: f32[2,1,2], index: 11, kind: output, shape index: {}]  }
   0x1   :  { %9492 = sst [smem:[#allocation28_spill]] %s9468_s1 }
   0x2   :  { %9493 = sst [smem:[#allocation29_spill]] %s9469_s2 }
   0x3   :  { %9494 = sst [smem:[#allocation30_spill]] %s9472_s5 }
   0x4   :  { %9495 = sst [smem:[#allocation31_spill]] %s9474_s7 }
   0x5   :  { %16 = vsyncpa [#allocation3], 0 }
   0x6   :  { %17 = vsyncpa [#allocation6], 0 }
   0x7   :  { %18 = vsyncpa [#allocation9], 0 }
   0x8   :  { %19 = vsyncpa [#allocation12], 0 }
   0x9   :  { %20 = vsyncpa [#allocation15], 0 }
   0xa   :  { %21 = vsyncpa [#allocation4], 0 }
   0xb   :  { %23 = vsyncpa [#allocation4 + $0x1], 0  ;;  %s6620_s17 = smov 0   ;;  %s6622_s18 = smov 0  }
   0xc   :  { %s6624_s19 = smov 0   ;;  %s6626_s20 = smov 0  }
   0xd LB: > { %9496 = sst [smem:[#allocation23_spill]] %s6522_s17  ;;  %s6641_s21 = sadd.s32 4294967295, %s6534_s20   ;;  %s6534_s20 = sphi %s6626_s20, %s9586_s20   ;;  %s6530_s19 = sphi %s6624_s19, %s9588_s19   ;;  %s6526_s18 = sphi %s6622_s18, %s9590_s18   ;;  %s6522_s17 = sphi %s6620_s17, %s9589_s17  }
   0xe   : > { %9497 = sst [smem:[#allocation24_spill]] %s6530_s19  ;;  %s5804_s22 = sadd.s32 4294967294, %s6534_s20  }
   0xf   : > { %s6645_s23 = sadd.s32 1, %s6534_s20   ;;  %s272_s24 = sadd.s32 1, %s6530_s19 }
  0x10   : > { %9498 = sst [smem:[#allocation25_spill]] %s6645_s23  ;;  %s269_s25 = ssub.s32 %s6534_s20, %s6645_s23 }
  0x11   : > { %p282_p0 = scmp.ne.s32.totalorder %s6530_s19, %s6526_s18  ;;  %p270_p1 = scmp.eq.s32.totalorder %s269_s25, 0 }
  0x12   : > { %p283_p2 = scmp.eq.s32.totalorder %s6641_s21, 1  ;;  %p288_p3 = scmp.ne.s32.totalorder %s6526_s18, %s6522_s17 }
  0x13   : > { %p289_p4 = scmp.eq.s32.totalorder %s5804_s22, 1  ;;  %p5805_p7 = scmp.ge.s32.totalorder %s6534_s20, 1 }
  0x14   : > { %s6656_s26 = scalar_select %p270_p1, %s6530_s19, %s272_s24  }
  0x15   : > { %p6658_p5 = por %p283_p2, %p282_p0  ;;  %p6662_p6 = por %p289_p4, %p288_p3 }
  0x16   : > { %9499 = sst [smem:[#allocation26_spill]] %s6656_s26  ;;  %p296_p8 = scmp.lt.s32.totalorder %s6534_s20, 3 }
  0x17   : > { %s9501_s28 = scalar_select %p6662_p6, 1, 0 }
  0x18   : > { %p6019_p9 = scmp.eq.s32.totalorder %s6641_s21, 0  ;;  %p6669_p10 = pnand %p5805_p7, %p296_p8 }
  0x19   : > { %9502 = sst [smem:[#allocation27_spill]] %s9501_s28  ;;  %s6536_s14 = smov [#allocation5]  }
  0x1a   : > { %s9504_s2 = sld [smem:[#allocation29_spill]]  ;;  %p5990_p11 = pneg %p6669_p10 }
  0x1b   : > { %s324_s15 = sshll.u32 %s6536_s14, 4  ;;  %s9506_s5 = sld [smem:[#allocation30_spill]]  ;;  %s325_s15 = int_to_ptr.vmem [resolvable:$true] %s324_s15 }
  0x1c   : > { %p6680_p12 = pnand %p6019_p9, %p5990_p11  ;;  %s6537_s30 = smov [#allocation8]  }
  0x1d   : > { %s350_s12 = sshll.u32 %s6537_s30, 4  ;;  %s9507_s7 = sld [smem:[#allocation31_spill]]  ;;  %s351_s12 = int_to_ptr.vmem [resolvable:$true] %s350_s12 }
  0x1e   : > { %s6538_s19 = smov 128   ;;  %s6539_s23 = smov 8  }
  0x1f   : > { %s6540_s22 = smov [#allocation11]   ;;  %s9508_s1 = sld [smem:[#allocation28_spill]] }
  0x20   : > { %s322_s13 = sshll.u32 %s9504_s2, 4  ;;  %s376_s24 = sshll.u32 %s6540_s22, 4  ;;  %s323_s13 = int_to_ptr.hbm [resolvable:$true] %s322_s13  ;;  %s377_s24 = int_to_ptr.vmem [resolvable:$true] %s376_s24 }
  0x21   : > { %s348_s25 = sshll.u32 %s9506_s5, 4  ;;  %s6542_s30 = smov 64   ;;  %s349_s25 = int_to_ptr.hbm [resolvable:$true] %s348_s25 }
  0x22   : > { %5996 = dma.hbm_to_vmem [thread:$0]  (!%p6680_p12), %s323_s13, 16, %s325_s15, [#allocation6]  }
  0x23   : > { %s374_s26 = sshll.u32 %s9507_s7, 4  ;;  %s6541_s15 = smov 1024   ;;  %s375_s26 = int_to_ptr.hbm [resolvable:$true] %s374_s26 }
  0x24   : > { %6002 = dma.hbm_to_vmem [thread:$0]  (!%p6680_p12), %s349_s25, 9216, %s351_s12, [#allocation9], %s6538_s19, %s6538_s19, %s6539_s23  }
  0x25   : > { %s307_s13 = sshll.u32 %s9508_s1, 4  ;;  %s6543_s2 = smov [#allocation2]   ;;  %s308_s13 = int_to_ptr.hbm [resolvable:$true] %s307_s13 }
  0x26   : > { %6008 = dma.hbm_to_vmem [thread:$0]  (!%p6680_p12), %s375_s26, 65536, %s377_s24, [#allocation12], %s6541_s15, %s6541_s15, %s6542_s30  }
  0x27   : > { %s309_s14 = sshll.u32 %s6543_s2, 4  ;;  %s337_s25 = sshll.u32 %s9471_s4, 4  ;;  %s310_s14 = int_to_ptr.vmem [resolvable:$true] %s309_s14  ;;  %s338_s25 = int_to_ptr.hbm [resolvable:$true] %s337_s25 }
  0x28   : > { %5993 = dma.hbm_to_vmem [thread:$0]  (!%p6680_p12), %s308_s13, 512, %s310_s14, [#allocation3], %s6538_s19, %s6538_s19, %s6539_s23  }
  0x29   : > { %s363_s28 = sshll.u32 %s9473_s6, 4  ;;  %s6544_s22 = smov [#allocation7]   ;;  %s364_s28 = int_to_ptr.hbm [resolvable:$true] %s363_s28 }
  0x2a   : > { %s339_s1 = sshll.u32 %s6544_s22, 4  ;;  %s6545_s26 = smov [#allocation10]   ;;  %s340_s1 = int_to_ptr.vmem [resolvable:$true] %s339_s1 }
  0x2b   : > { %5999 = dma.hbm_to_vmem [thread:$0]  (!%p6680_p12), %s338_s25, 16, %s340_s1, [#allocation6]  }
  0x2c   : > { %s365_s7 = sshll.u32 %s6545_s26, 4  ;;  %s389_s15 = sshll.u32 %s9475_s8, 4  ;;  %s366_s7 = int_to_ptr.vmem [resolvable:$true] %s365_s7  ;;  %s390_s15 = int_to_ptr.hbm [resolvable:$true] %s389_s15 }
  0x2d   : > { %6005 = dma.hbm_to_vmem [thread:$0]  (!%p6680_p12), %s364_s28, 16, %s366_s7, [#allocation9]  }
  0x2e   : > { %s404_s13 = sshll.u32 %s9477_s10, 4  ;;  %s6546_s30 = smov [#allocation13]   ;;  %s405_s13 = int_to_ptr.hbm [resolvable:$true] %s404_s13 }
  0x2f   : > { %s391_s2 = sshll.u32 %s6546_s30, 4  ;;  %s6547_s1 = smov [#allocation14]   ;;  %s392_s2 = int_to_ptr.vmem [resolvable:$true] %s391_s2 }
  0x30   : > { %6011 = dma.hbm_to_vmem [thread:$0]  (!%p6680_p12), %s390_s15, 128, %s392_s2, [#allocation12]  }
  0x31   : > { %s406_s14 = sshll.u32 %s6547_s1, 4  ;;  %427 = sbr.rel (%p6669_p10) target bundleno = 2096 (0x830), region = 64  ;;  %s407_s14 = int_to_ptr.vmem [resolvable:$true] %s406_s14 }
  0x32   : > { %6014 = dma.hbm_to_vmem [thread:$0]  (!%p6680_p12), %s405_s13, 16, %s407_s14, [#allocation15]  }
  0x36   : > { %6497 = dma.done.wait (%p6019_p9), [#allocation3], 512  }
  0x37   : > { %6499 = vsyncadd (%p6019_p9), [#allocation3], 4294966784 }
  0x38   : > { %6501 = dma.done.wait (%p6019_p9), [#allocation6], 32  }
  0x39   : > { %6503 = vsyncadd (%p6019_p9), [#allocation6], 4294967264 }
  0x3a   : > { %6505 = dma.done.wait (%p6019_p9), [#allocation9], 9232  }
  0x3b   : > { %6507 = vsyncadd (%p6019_p9), [#allocation9], 4294958064 }
  0x3c   : > { %6509 = dma.done.wait (%p6019_p9), [#allocation12], 65664  }
  0x3d   : > { %6511 = vsyncadd (%p6019_p9), [#allocation12], 4294901632 }
  0x3e   : > { %6513 = dma.done.wait (%p6019_p9), [#allocation15], 16  }
  0x3f   : > { %6515 = vsyncadd (%p6019_p9), [#allocation15], 4294967280  ;;  %v9489_v0 = vmov 0.0   ;;  %p502_p13 = scmp.lt.s32.totalorder %s6641_s21, 1  ;;  %s6549_s29 = smov 3   ;;  %vm576_vm0 = vcmask 1040384  }
  0x40   : > { %v6744_v1 = vrot.slane %v9489_v0, 1  ;;  %v6756_v2 = vrot.slane %v9489_v0, 2  ;;  %s6550_s22 = smov 6   ;;  %s6551_s26 = smov 18   ;;  %vm9488_vm1 = vcmask 1046528   ;;  %vm9491_vm2 = vcmask 1045504  }
  0x41   : > { %s503_s16 = scalar_select %p502_p13, %s6641_s21, 1  ;;  %vm2018_vm3 = vcmask 1042432   ;;  %vm1656_vm4 = vcmask 23552   ;;  %vm1688_vm5 = vcmask 48128   ;;  %vm9486_vm6 = vcmask 72704  }
  0x42   : > { %813 = vrot.lane.b32.xlu0 %v6744_v1, %s6549_s29  ;;  %s6552_s7 = smov 9   ;;  %s6553_s17 = smov 21   ;;  %vm1753_vm7 = vcmask 97280   ;;  %vm1786_vm8 = vcmask 121856   ;;  %vm1819_vm9 = vcmask 146432   ;;  %vm1852_vm10 = vcmask 171008  }
  0x43   : > { %s5955_s25 = sshll.u32 %s503_s16, 8  ;;  %s6554_s24 = smov 15   ;;  %vm1885_vm11 = vcmask 195584   ;;  %vm1921_vm12 = vcmask 220160   ;;  %vm9485_vm13 = vcmask 1042434   ;;  %vm9484_vm14 = vcmask 1043459  }
  0x44   : > { %s6753_s28 = scalar_lea.vmem %s9467_s0, %s5955_s25  ;;  %s6555_s15 = smov 12   ;;  %vm2976_vm15 = vcmask 1044484  }
  0x45   : > { %v509_v3 = vld [vmem:[%s6753_s28 + $0x10] sm:$0xff]  ;;  %v510_v4 = vld [vmem:[%s6753_s28 + $0x18] sm:$0xff]  ;;  %v507_v5 = vld [vmem:[%s6753_s28] sm:$0xff]  ;;  %s6556_s19 = smov 24   ;;  %s6558_s12 = smov 32  }
  0x46   : > { %v580_v6 = vrot.slane %v509_v3, 7  ;;  %v581_v7 = vrot.slane %v510_v4, 7  ;;  %v508_v8 = vld [vmem:[%s6753_s28 + $0x8] sm:$0xff]  ;;  %v577_v9 = vrot.slane %v507_v5, 7  ;;  %v511_v37 = vld [vmem:[%s6753_s28 + $0x20] sm:$0xff]  ;;  %v513_v54 = vld [vmem:[%s6753_s28 + $0x30] sm:$0xff]  ;;  %s5666_s13 = scalar_lea.hbm %s9478_s11, %s6641_s21 }
  0x47   : > { %v578_v10 = vrot.slane %v508_v8, 7  ;;  %v512_v38 = vld [vmem:[%s6753_s28 + $0x28] sm:$0xff]  ;;  %v583_v39 = vrot.slane %v511_v37, 7  ;;  %v514_v55 = vld [vmem:[%s6753_s28 + $0x38] sm:$0xff]  ;;  %v586_v56 = vrot.slane %v513_v54, 7  ;;  %v540_v8 = vld [vmem:[#allocation2 + $0x8] sm:$0xff] }
  0x48   : > { %v6763_v11 = vsel %vm576_vm0, 0.0, %v580_v6  ;;  %v6766_v12 = vsel %vm576_vm0, %v580_v6, %v581_v7  ;;  %v6769_v13 = vsel %vm576_vm0, 0.0, %v577_v9  ;;  %v689_v30 = vsel %vm576_vm0, %v581_v7, 0.0  ;;  %v542_v5 = vld [vmem:[#allocation2 + $0x18] sm:$0x7]  ;;  %v541_v7 = vld [vmem:[#allocation2 + $0x10] sm:$0xff] }
  0x49   : > { %1377 = vrot.lane.b32.xlu2 %v6763_v11, %s6551_s26  ;;  %v6776_v14 = vsel %vm576_vm0, %v577_v9, %v578_v10  ;;  %1078 = vrot.lane.b32.xlu1 %v6769_v13, %s6552_s7  ;;  %v743_v15 = vrot.slane %v6763_v11, 1  ;;  %v744_v16 = vrot.slane %v6766_v12, 1  ;;  %v909_v17 = vrot.slane %v6769_v13, 2  ;;  %s6559_s5 = smov 96   ;;  %s5670_s1 = sshll.u32 %s5666_s13, 4  ;;  %s5671_s1 = int_to_ptr.hbm [resolvable:$true] %s5670_s1 }
  0x4a   : > { %984 = vrot.lane.b32.xlu0 %v6756_v2, %s6550_s22  ;;  %v910_v18 = vrot.slane %v6776_v14, 2  ;;  %v738_v19 = vrot.slane %v6769_v13, 1  ;;  %v739_v20 = vrot.slane %v6776_v14, 1  ;;  %v688_v24 = vsel %vm576_vm0, %v578_v10, 0.0  ;;  %5826 = vmatpush.msk.msra.mxu0 %vm2018_vm3, %v542_v5  ;;  %v539_v10 = vld [vmem:[#allocation2] sm:$0xff]  ;;  %s6466_s16 = sshra.s32 %s5671_s1, 4  ;;  %s6467_s16 = int_to_ptr.hbm [resolvable:$true] %s6466_s16 }
  0x4b   : > { %v745_v21 = vsel %vm9488_vm1, %v743_v15, %v744_v16  ;;  %v741_v25 = vrot.slane %v688_v24, 1  ;;  %v914_v26 = vrot.slane %v6763_v11, 2  ;;  %v915_v27 = vrot.slane %v6766_v12, 2  ;;  %s6468_s25 = scalar_lea.hbm %s6467_s16, 1  ;;  %p6473_p3 = scmp.lt.s32.totalorder %s6467_s16, %s9478_s11 }
  0x4c   : > { %v911_v22 = vsel %vm9491_vm2, %v909_v17, %v910_v18  ;;  %v740_v23 = vsel %vm9488_vm1, %v738_v19, %v739_v20  ;;  %v746_v31 = vrot.slane %v689_v30, 1  ;;  %v912_v32 = vrot.slane %v688_v24, 2  ;;  %2035 = vmatpush.msra.mxu0 %v541_v7  ;;  %p6469_p0 = scmp.ne.s32.totalorder %s6467_s16, %s6468_s25 }
  0x4d   : > { %v742_v28 = vsel %vm9488_vm1, %v739_v20, %v741_v25  ;;  %v916_v29 = vsel %vm9491_vm2, %v914_v26, %v915_v27  ;;  %v917_v35 = vrot.slane %v689_v30, 2  ;;  %v584_v40 = vrot.slane %v512_v38, 7  ;;  %v515_v26 = vld [vmem:[%s6753_s28 + $0x40] sm:$0xff] }
  0x4e   : > { %v6803_v33 = vsel %vm9488_vm1, %v744_v16, %v746_v31  ;;  %v913_v34 = vsel %vm9491_vm2, %v910_v18, %v912_v32  ;;  %v6821_v42 = vsel %vm576_vm0, 0.0, %v583_v39  ;;  %v587_v57 = vrot.slane %v514_v55, 7  ;;  %2036 = vmatpush.msra.mxu0 %v540_v8  ;;  %p6470_p1 = pnand %p6469_p0, %p6658_p5 }
  0x4f   : > { %v918_v36 = vsel %vm9491_vm2, %v915_v27, %v917_v35  ;;  %v6818_v41 = vsel %vm576_vm0, %v583_v39, %v584_v40  ;;  %v919_v43 = vrot.slane %v6821_v42, 2  ;;  %v748_v45 = vrot.slane %v6821_v42, 1  ;;  %v516_v27 = vld [vmem:[%s6753_s28 + $0x48] sm:$0xff] }
  0x50   : > { %v920_v44 = vrot.slane %v6818_v41, 2  ;;  %v749_v46 = vrot.slane %v6818_v41, 1  ;;  %v690_v49 = vsel %vm576_vm0, %v584_v40, 0.0  ;;  %v6867_v58 = vsel %vm576_vm0, %v586_v56, %v587_v57  ;;  %2037 = vmatpush.msra.mxu0 %v539_v10  ;;  %p6471_p2 = pneg %p6470_p1 }
  0x51   : > { %1281 = vrot.lane.b32.xlu2 %v911_v22, %s6554_s24  ;;  %1180 = vrot.lane.b32.xlu1 %v740_v23, %s6555_s15  ;;  %v922_v50 = vrot.slane %v690_v49, 2  ;;  %v751_v51 = vrot.slane %v690_v49, 1  ;;  %v6870_v59 = vsel %vm576_vm0, 0.0, %v586_v56  ;;  %v754_v61 = vrot.slane %v6867_v58, 1 }
  0x52   : > { %1470 = vrot.lane.b32.xlu0 %v745_v21, %s6553_s17  ;;  %v6832_v47 = vsel %vm9491_vm2, %v919_v43, %v920_v44  ;;  %v6835_v48 = vsel %vm9488_vm1, %v748_v45, %v749_v46  ;;  %v753_v60 = vrot.slane %v6870_v59, 1  ;;  %v924_v3 = vrot.slane %v6870_v59, 2 }
  0x53   : > { %v6854_v52 = vsel %vm9491_vm2, %v920_v44, %v922_v50  ;;  %v6857_v53 = vsel %vm9488_vm1, %v749_v46, %v751_v51  ;;  %v925_v4 = vrot.slane %v6867_v58, 2  ;;  %v691_v15 = vsel %vm576_vm0, %v587_v57, 0.0 }
  0x54   : > { %v6880_v62 = vsel %vm9488_vm1, %v753_v60, %v754_v61  ;;  %v927_v16 = vrot.slane %v691_v15, 2  ;;  %v756_v17 = vrot.slane %v691_v15, 1  ;;  %v590_v32 = vrot.slane %v516_v27, 7 }
  0x55   : > { %v6891_v6 = vsel %vm9491_vm2, %v924_v3, %v925_v4  ;;  %vm2978_vm3 = vcmask 1045509  }
  0x56   : > { %v6906_v20 = vsel %vm9491_vm2, %v925_v4, %v927_v16  ;;  %v692_v3 = vsel %vm576_vm0, %v590_v32, 0.0 }
  0x59   : > { %1080 = vrot.lane.b32.xlu2 %v6776_v14, %s6552_s7  ;;  %1563 = vrot.lane.b32.xlu1 %v916_v29, %s6556_s19 }
  0x5a   : > { %1182 = vrot.lane.b32.xlu0 %v742_v28, %s6555_s15 }
  0x61   : > { %1379 = vrot.lane.b32.xlu2 %v6766_v12, %s6551_s26  ;;  %1283 = vrot.lane.b32.xlu1 %v913_v34, %s6554_s24 }
  0x62   : > { %1472 = vrot.lane.b32.xlu0 %v6803_v33, %s6553_s17 }
  0x69   : > { %815 = vrot.lane.b32.xlu2 %v740_v23, %s6549_s29  ;;  %1565 = vrot.lane.b32.xlu1 %v918_v36, %s6556_s19 }
  0x6a   : > { %986 = vrot.lane.b32.xlu0 %v911_v22, %s6550_s22 }
  0x71   : > { %1184 = vrot.lane.b32.xlu2 %v745_v21, %s6555_s15  ;;  %1082 = vrot.lane.b32.xlu1 %v6763_v11, %s6552_s7 }
  0x72   : > { %1285 = vrot.lane.b32.xlu0 %v916_v29, %s6554_s24 }
  0x79   : > { %1474 = vrot.lane.b32.xlu2 %v6835_v48, %s6553_s17  ;;  %1381 = vrot.lane.b32.xlu1 %v6821_v42, %s6551_s26 }
  0x7a   : > { %1567 = vrot.lane.b32.xlu0 %v6832_v47, %s6556_s19 }
  0x81   : > { %988 = vrot.lane.b32.xlu2 %v913_v34, %s6550_s22  ;;  %817 = vrot.lane.b32.xlu1 %v742_v28, %s6549_s29 }
  0x82   : > { %1084 = vrot.lane.b32.xlu0 %v6766_v12, %s6552_s7 }
  0x89   : > { %1287 = vrot.lane.b32.xlu2 %v918_v36, %s6554_s24  ;;  %1186 = vrot.lane.b32.xlu1 %v6803_v33, %s6555_s15 }
  0x8a   : > { %1383 = vrot.lane.b32.xlu0 %v6818_v41, %s6551_s26 }
  0x91   : > { %1569 = vrot.lane.b32.xlu2 %v6854_v52, %s6556_s19  ;;  %1476 = vrot.lane.b32.xlu1 %v6857_v53, %s6553_s17 }
  0x92   : > { %819 = vrot.lane.b32.xlu0 %v745_v21, %s6549_s29  ;;  %v6909_v21 = vsel %vm9488_vm1, %v754_v61, %v756_v17 }
  0x99   : > { %1086 = vrot.lane.b32.xlu2 %v6821_v42, %s6552_s7  ;;  %990 = vrot.lane.b32.xlu1 %v916_v29, %s6550_s22  ;;  %v589_v29 = vrot.slane %v515_v26, 7 }
  0x9a   : > { %1188 = vrot.lane.b32.xlu0 %v6835_v48, %s6555_s15 }
  0x9b   : > { %v6931_v37 = vsel %vm576_vm0, 0.0, %v589_v29  ;;  %v6934_v38 = vsel %vm576_vm0, %v589_v29, %v590_v32 }
  0x9c   : > { %v929_v40 = vrot.slane %v6931_v37, 2  ;;  %v930_v43 = vrot.slane %v6934_v38, 2  ;;  %v758_v46 = vrot.slane %v6931_v37, 1 }
  0x9e   : > { %v6951_v51 = vsel %vm9491_vm2, %v929_v40, %v930_v43 }
  0xa1   : > { %1385 = vrot.lane.b32.xlu2 %v6870_v59, %s6551_s26  ;;  %1289 = vrot.lane.b32.xlu1 %v6832_v47, %s6554_s24 }
  0xa2   : > { %1478 = vrot.lane.b32.xlu0 %v6880_v62, %s6553_s17 }
  0xa3   : > { %v1378_v63 = vpop.permute.xlu2 %1377 }
  0xa9   : > { %821 = vrot.lane.b32.xlu2 %v6803_v33, %s6549_s29  ;;  %1571 = vrot.lane.b32.xlu1 %v6891_v6, %s6556_s19 }
  0xaa   : > { %992 = vrot.lane.b32.xlu0 %v918_v36, %s6550_s22 }
  0xab   : > { %v1282_v9 = vpop.permute.xlu2 %1281 }
  0xb1   : > { %1190 = vrot.lane.b32.xlu2 %v6857_v53, %s6555_s15  ;;  %1088 = vrot.lane.b32.xlu1 %v6818_v41, %s6552_s7 }
  0xb2   : > { %1291 = vrot.lane.b32.xlu0 %v6854_v52, %s6554_s24 }
  0xb3   : > { %v1081_v19 = vpop.permute.xlu2 %1080 }
  0xb4   : > { %v814_v18 = vpop.permute.xlu0 %813 }
  0xb5   : > { %v1657_v25 = vsel %vm1656_vm4, 0.0, %v814_v18 }
  0xb9   : > { %1480 = vrot.lane.b32.xlu2 %v6909_v21, %s6553_s17  ;;  %1387 = vrot.lane.b32.xlu1 %v6867_v58, %s6551_s26 }
  0xba   : > { %1573 = vrot.lane.b32.xlu0 %v6906_v20, %s6556_s19 }
  0xbb   : > { %v1380_v23 = vpop.permute.xlu2 %1379  ;;  %v1079_v24 = vpop.permute.xlu1 %1078 }
  0xbc   : > { %v985_v22 = vpop.permute.xlu0 %984 }
  0xbd   : > { %v1689_v28 = vsel %vm1688_vm5, %v1657_v25, %v985_v22  ;;  %v518_v25 = vld [vmem:[%s6753_s28 + $0x58] sm:$0xff] }
  0xbe   : > { %v1721_v33 = vsel %vm9486_vm6, %v1689_v28, %v1079_v24  ;;  %v1722_v57 = vsel %vm9486_vm6, %v1689_v28, %v1081_v19  ;;  %v932_v19 = vrot.slane %v692_v3, 2 }
  0xc0   : > { %v6990_v24 = vsel %vm9491_vm2, %v930_v43, %v932_v19 }
  0xc1   : > { %994 = vrot.lane.b32.xlu2 %v6832_v47, %s6550_s22  ;;  %823 = vrot.lane.b32.xlu1 %v6835_v48, %s6549_s29  ;;  %v759_v47 = vrot.slane %v6934_v38, 1 }
  0xc2   : > { %1090 = vrot.lane.b32.xlu0 %v6870_v59, %s6552_s7 }
  0xc3   : > { %v816_v31 = vpop.permute.xlu2 %815  ;;  %v1181_v34 = vpop.permute.xlu1 %1180  ;;  %v6954_v54 = vsel %vm9488_vm1, %v758_v46, %v759_v47 }
  0xc4   : > { %v1471_v30 = vpop.permute.xlu0 %1470  ;;  %v1754_v35 = vsel %vm1753_vm7, %v1721_v33, %v1181_v34  ;;  %v1658_v16 = vsel %vm1656_vm4, %v6769_v13, %v816_v31  ;;  %v517_v13 = vld [vmem:[%s6753_s28 + $0x50] sm:$0xff] }
  0xc5   : > { %v1787_v36 = vsel %vm1786_vm8, %v1754_v35, %v1282_v9  ;;  %v592_v29 = vrot.slane %v517_v13, 7 }
  0xc6   : > { %v1820_v39 = vsel %vm1819_vm9, %v1787_v36, %v1378_v63 }
  0xc7   : > { %v1853_v49 = vsel %vm1852_vm10, %v1820_v39, %v1471_v30  ;;  %v593_v30 = vrot.slane %v518_v25, 7 }
  0xc9   : > { %1293 = vrot.lane.b32.xlu2 %v6891_v6, %s6554_s24  ;;  %1192 = vrot.lane.b32.xlu1 %v6880_v62, %s6555_s15 }
  0xca   : > { %1389 = vrot.lane.b32.xlu0 %v6931_v37, %s6551_s26 }
  0xcb   : > { %v1185_v45 = vpop.permute.xlu2 %1184  ;;  %v1564_v48 = vpop.permute.xlu1 %1563 }
  0xcc   : > { %v1183_v44 = vpop.permute.xlu0 %1182  ;;  %v1886_v50 = vsel %vm1885_vm11, %v1853_v49, %v1564_v48 }
  0xcd   : > { %5827 = vmatmul.msk.f32.vlgmr.msra.gmra.mxu0 %vm1921_vm12, %v1886_v50  ;;  %v1755_v61 = vsel %vm1753_vm7, %v1722_v57, %v1183_v44 }
  0xd1   : > { %1575 = vrot.lane.b32.xlu2 %v6951_v51, %s6556_s19  ;;  %1482 = vrot.lane.b32.xlu1 %v6954_v54, %s6553_s17 }
  0xd2   : > { %825 = vrot.lane.b32.xlu0 %v6857_v53, %s6549_s29  ;;  %v761_v53 = vrot.slane %v692_v3, 1 }
  0xd3   : > { %v1475_v56 = vpop.permute.xlu2 %1474  ;;  %v1284_v60 = vpop.permute.xlu1 %1283 }
  0xd4   : > { %v1473_v55 = vpop.permute.xlu0 %1472  ;;  %v1788_v63 = vsel %vm1786_vm8, %v1755_v61, %v1284_v60  ;;  %v6977_v15 = vsel %vm9488_vm1, %v759_v47, %v761_v53 }
  0xd5   : > { %v1821_v4 = vsel %vm1819_vm9, %v1788_v63, %v1380_v23 }
  0xd6   : > { %v1854_v9 = vsel %vm1852_vm10, %v1821_v4, %v1473_v55 }
  0xd9   : > { %1092 = vrot.lane.b32.xlu2 %v6867_v58, %s6552_s7  ;;  %996 = vrot.lane.b32.xlu1 %v6854_v52, %s6550_s22 }
  0xda   : > { %1194 = vrot.lane.b32.xlu0 %v6909_v21, %s6555_s15 }
  0xdb   : > { %v989_v7 = vpop.permute.xlu2 %988  ;;  %v1566_v8 = vpop.permute.xlu1 %1565 }
  0xdc   : > { %v987_v5 = vpop.permute.xlu0 %986  ;;  %v1887_v10 = vsel %vm1885_vm11, %v1854_v9, %v1566_v8  ;;  %v693_v8 = vsel %vm576_vm0, %v593_v30, 0.0 }
  0xdd   : > { %5828 = vmatmul.msk.f32.gmra.mxu0 %vm1921_vm12, %v1887_v10  ;;  %v1690_v52 = vsel %vm1688_vm5, %v1658_v16, %v987_v5  ;;  %v766_v10 = vrot.slane %v693_v8, 1 }
  0xe1   : > { %1391 = vrot.lane.b32.xlu2 %v6934_v38, %s6551_s26  ;;  %1295 = vrot.lane.b32.xlu1 %v6906_v20, %s6554_s24 }
  0xe2   : > { %1484 = vrot.lane.b32.xlu0 %v6977_v15, %s6553_s17 }
  0xe3   : > { %v1288_v18 = vpop.permute.xlu2 %1287  ;;  %v1083_v22 = vpop.permute.xlu1 %1082 }
  0xe4   : > { %v1286_v17 = vpop.permute.xlu0 %1285  ;;  %v1723_v23 = vsel %vm9486_vm6, %v1690_v52, %v1083_v22  ;;  %v519_v22 = vld [vmem:[%s6753_s28 + $0x60] sm:$0xff] }
  0xe5   : > { %v1756_v26 = vsel %vm1753_vm7, %v1723_v23, %v1185_v45  ;;  %v520_v23 = vld [vmem:[%s6753_s28 + $0x68] sm:$0xff] }
  0xe6   : > { %v1789_v31 = vsel %vm1786_vm8, %v1756_v26, %v1286_v17  ;;  %v595_v26 = vrot.slane %v519_v22, 7 }
  0xe9   : > { %827 = vrot.lane.b32.xlu2 %v6880_v62, %s6549_s29  ;;  %1577 = vrot.lane.b32.xlu1 %v6990_v24, %s6556_s19  ;;  %v7009_v62 = vsel %vm576_vm0, 0.0, %v592_v29 }
  0xea   : > { %998 = vrot.lane.b32.xlu0 %v6891_v6, %s6550_s22  ;;  %v7006_v6 = vsel %vm576_vm0, %v592_v29, %v593_v30  ;;  %v934_v36 = vrot.slane %v7009_v62, 2  ;;  %v763_v40 = vrot.slane %v7009_v62, 1 }
  0xeb   : > { %v1570_v28 = vpop.permute.xlu2 %1569  ;;  %v1382_v32 = vpop.permute.xlu1 %1381  ;;  %v935_v39 = vrot.slane %v7006_v6, 2  ;;  %v764_v43 = vrot.slane %v7006_v6, 1 }
  0xec   : > { %v1568_v27 = vpop.permute.xlu0 %1567  ;;  %v1822_v33 = vsel %vm1819_vm9, %v1789_v31, %v1382_v32 }
  0xed   : > { %v1855_v34 = vsel %vm1852_vm10, %v1822_v33, %v1475_v56  ;;  %v7023_v47 = vsel %vm9491_vm2, %v934_v36, %v935_v39  ;;  %v7026_v48 = vsel %vm9488_vm1, %v763_v40, %v764_v43  ;;  %v7064_v19 = vsel %vm9488_vm1, %v764_v43, %v766_v10 }
  0xee   : > { %v1888_v35 = vsel %vm1885_vm11, %v1855_v34, %v1568_v27  ;;  %v596_v27 = vrot.slane %v520_v23, 7 }
  0xef   : > { %5829 = vmatmul.msk.f32.gmra.mxu0 %vm1921_vm12, %v1888_v35 }
  0xf0   : > { %v7078_v31 = vsel %vm576_vm0, %v595_v26, %v596_v27 }
  0xf1   : > { %1196 = vrot.lane.b32.xlu2 %v6954_v54, %s6555_s15  ;;  %1094 = vrot.lane.b32.xlu1 %v6931_v37, %s6552_s7  ;;  %v769_v34 = vrot.slane %v7078_v31, 1 }
  0xf2   : > { %1297 = vrot.lane.b32.xlu0 %v6951_v51, %s6554_s24 }
  0xf3   : > { %v1087_v45 = vpop.permute.xlu2 %1086  ;;  %v818_v46 = vpop.permute.xlu1 %817 }
  0xf4   : > { %v1085_v44 = vpop.permute.xlu0 %1084  ;;  %v1659_v49 = vsel %vm1656_vm4, %v6776_v14, %v818_v46 }
  0xf5   : > { %v1691_v50 = vsel %vm1688_vm5, %v1659_v49, %v989_v7 }
  0xf6   : > { %v1724_v60 = vsel %vm9486_vm6, %v1691_v50, %v1085_v44 }
  0xf9   : > { %1486 = vrot.lane.b32.xlu2 %v7026_v48, %s6553_s17  ;;  %1393 = vrot.lane.b32.xlu1 %v7009_v62, %s6551_s26 }
  0xfa   : > { %1579 = vrot.lane.b32.xlu0 %v7023_v47, %s6556_s19 }
  0xfb   : > { %v1386_v56 = vpop.permute.xlu2 %1385  ;;  %v1187_v57 = vpop.permute.xlu1 %1186 }
  0xfc   : > { %v1384_v55 = vpop.permute.xlu0 %1383  ;;  %v1757_v61 = vsel %vm1753_vm7, %v1724_v60, %v1187_v57 }
  0xfd   : > { %v1790_v14 = vsel %vm1786_vm8, %v1757_v61, %v1288_v18 }
  0xfe   : > { %v1823_v4 = vsel %vm1819_vm9, %v1790_v14, %v1384_v55  ;;  %v940_v55 = vrot.slane %v7078_v31, 2 }
 0x101   : > { %1000 = vrot.lane.b32.xlu2 %v6906_v20, %s6550_s22  ;;  %829 = vrot.lane.b32.xlu1 %v6909_v21, %s6549_s29  ;;  %v937_v20 = vrot.slane %v693_v8, 2 }
 0x102   : > { %1096 = vrot.lane.b32.xlu0 %v6934_v38, %s6552_s7 }
 0x103   : > { %v822_v3 = vpop.permute.xlu2 %821  ;;  %v1477_v53 = vpop.permute.xlu1 %1476  ;;  %v7060_v17 = vsel %vm9491_vm2, %v935_v39, %v937_v20 }
 0x104   : > { %v820_v63 = vpop.permute.xlu0 %819  ;;  %v1856_v5 = vsel %vm1852_vm10, %v1823_v4, %v1477_v53 }
 0x105   : > { %v1889_v7 = vsel %vm1885_vm11, %v1856_v5, %v1570_v28  ;;  %v1660_v16 = vsel %vm1656_vm4, %v6763_v11, %v820_v63 }
 0x106   : > { %5830 = vmatmul.msk.f32.gmra.mxu0 %vm1921_vm12, %v1889_v7  ;;  %v694_v7 = vsel %vm576_vm0, %v596_v27, 0.0 }
 0x109   : > { %1299 = vrot.lane.b32.xlu2 %v6990_v24, %s6554_s24  ;;  %1198 = vrot.lane.b32.xlu1 %v6977_v15, %s6555_s15 }
 0x10a   : > { %1395 = vrot.lane.b32.xlu0 %v7006_v6, %s6551_s26 }
 0x10b   : > { %v1191_v9 = vpop.permute.xlu2 %1190  ;;  %v991_v52 = vpop.permute.xlu1 %990 }
 0x10c   : > { %v1189_v21 = vpop.permute.xlu0 %1188  ;;  %v1692_v18 = vsel %vm1688_vm5, %v1660_v16, %v991_v52 }
 0x10d   : > { %v1725_v13 = vsel %vm9486_vm6, %v1692_v18, %v1087_v45  ;;  %v1661_v45 = vsel %vm1656_vm4, %v6766_v12, %v822_v3 }
 0x10e   : > { %v1758_v29 = vsel %vm1753_vm7, %v1725_v13, %v1189_v21 }
 0x111   : > { %1581 = vrot.lane.b32.xlu2 %v7060_v17, %s6556_s19  ;;  %1488 = vrot.lane.b32.xlu1 %v7064_v19, %s6553_s17 }
 0x112   : > { %831 = vrot.lane.b32.xlu0 %v6954_v54, %s6549_s29  ;;  %v7081_v54 = vsel %vm576_vm0, 0.0, %v595_v26 }
 0x113   : > { %v1481_v25 = vpop.permute.xlu2 %1480  ;;  %v1290_v28 = vpop.permute.xlu1 %1289  ;;  %v768_v33 = vrot.slane %v7081_v54, 1  ;;  %v939_v50 = vrot.slane %v7081_v54, 2 }
 0x114   : > { %v1479_v11 = vpop.permute.xlu0 %1478  ;;  %v1791_v30 = vsel %vm1786_vm8, %v1758_v29, %v1290_v28 }
 0x115   : > { %v1824_v32 = vsel %vm1819_vm9, %v1791_v30, %v1386_v56  ;;  %v7096_v44 = vsel %vm9488_vm1, %v768_v33, %v769_v34  ;;  %v7111_v57 = vsel %vm9491_vm2, %v939_v50, %v940_v55 }
 0x116   : > { %v1857_v40 = vsel %vm1852_vm10, %v1824_v32, %v1479_v11 }
 0x119   : > { %1098 = vrot.lane.b32.xlu2 %v7009_v62, %s6552_s7  ;;  %1002 = vrot.lane.b32.xlu1 %v6951_v51, %s6550_s22 }
 0x11a   : > { %1200 = vrot.lane.b32.xlu0 %v7026_v48, %s6555_s15 }
 0x11b   : > { %v995_v36 = vpop.permute.xlu2 %994  ;;  %v1572_v39 = vpop.permute.xlu1 %1571 }
 0x11c   : > { %v993_v35 = vpop.permute.xlu0 %992  ;;  %v1890_v43 = vsel %vm1885_vm11, %v1857_v40, %v1572_v39 }
 0x11d   : > { %5831 = vmatmul.msk.f32.gmra.mxu0 %vm1921_vm12, %v1890_v43  ;;  %v1693_v51 = vsel %vm1688_vm5, %v1661_v45, %v993_v35 }
 0x121   : > { %1397 = vrot.lane.b32.xlu2 %v7081_v54, %s6551_s26  ;;  %1301 = vrot.lane.b32.xlu1 %v7023_v47, %s6554_s24 }
 0x122   : > { %1490 = vrot.lane.b32.xlu0 %v7096_v44, %s6553_s17 }
 0x123   : > { %v1294_v49 = vpop.permute.xlu2 %1293  ;;  %v1089_v56 = vpop.permute.xlu1 %1088 }
 0x124   : > { %v1292_v46 = vpop.permute.xlu0 %1291  ;;  %v1726_v12 = vsel %vm9486_vm6, %v1693_v51, %v1089_v56 }
 0x125   : > { %v1759_v60 = vsel %vm1753_vm7, %v1726_v12, %v1191_v9 }
 0x126   : > { %v1792_v63 = vsel %vm1786_vm8, %v1759_v60, %v1292_v46 }
 0x129   : > { %833 = vrot.lane.b32.xlu2 %v6977_v15, %s6549_s29  ;;  %1583 = vrot.lane.b32.xlu1 %v7111_v57, %s6556_s19  ;;  %v942_v15 = vrot.slane %v694_v7, 2 }
 0x12a   : > { %1004 = vrot.lane.b32.xlu0 %v6990_v24, %s6550_s22  ;;  %v771_v24 = vrot.slane %v694_v7, 1 }
 0x12b   : > { %v1576_v14 = vpop.permute.xlu2 %1575  ;;  %v1388_v3 = vpop.permute.xlu1 %1387  ;;  %v7133_v9 = vsel %vm9491_vm2, %v940_v55, %v942_v15 }
 0x12c   : > { %v1574_v61 = vpop.permute.xlu0 %1573  ;;  %v1825_v4 = vsel %vm1819_vm9, %v1792_v63, %v1388_v3  ;;  %v7136_v10 = vsel %vm9488_vm1, %v769_v34, %v771_v24 }
 0x12d   : > { %v1858_v53 = vsel %vm1852_vm10, %v1825_v4, %v1481_v25  ;;  %v521_v25 = vld [vmem:[%s6753_s28 + $0x70] sm:$0xff] }
 0x12e   : > { %v1891_v5 = vsel %vm1885_vm11, %v1858_v53, %v1574_v61  ;;  %v598_v27 = vrot.slane %v521_v25, 7 }
 0x12f   : > { %5832 = vmatmul.msk.f32.gmra.mxu0 %vm1921_vm12, %v1891_v5 }
 0x131   : > { %1202 = vrot.lane.b32.xlu2 %v7064_v19, %s6555_s15  ;;  %1100 = vrot.lane.b32.xlu1 %v7006_v6, %s6552_s7 }
 0x132   : > { %1303 = vrot.lane.b32.xlu0 %v7060_v17, %s6554_s24 }
 0x133   : > { %v1093_v20 = vpop.permute.xlu2 %1092  ;;  %v824_v21 = vpop.permute.xlu1 %823 }
 0x134   : > { %v1091_v8 = vpop.permute.xlu0 %1090  ;;  %v1662_v16 = vsel %vm1656_vm4, %v6821_v42, %v824_v21  ;;  %v522_v42 = vld [vmem:[%s6753_s28 + $0x78] sm:$0xff] }
 0x135   : > { %v1694_v52 = vsel %vm1688_vm5, %v1662_v16, %v995_v36  ;;  %v599_v30 = vrot.slane %v522_v42, 7  ;;  %v7162_v36 = vsel %vm576_vm0, 0.0, %v598_v27  ;;  %v523_v42 = vld [vmem:[%s6753_s28 + $0x80] sm:$0xff] }
 0x136   : > { %v1727_v13 = vsel %vm9486_vm6, %v1694_v52, %v1091_v8  ;;  %v773_v43 = vrot.slane %v7162_v36, 1 }
 0x137   : > { %v695_v3 = vsel %vm576_vm0, %v599_v30, 0.0 }
 0x139   : > { %1492 = vrot.lane.b32.xlu2 %v7136_v10, %s6553_s17  ;;  %1399 = vrot.lane.b32.xlu1 %v7078_v31, %s6551_s26 }
 0x13a   : > { %1585 = vrot.lane.b32.xlu0 %v7133_v9, %s6556_s19 }
 0x13b   : > { %v1392_v22 = vpop.permute.xlu2 %1391  ;;  %v1193_v23 = vpop.permute.xlu1 %1192 }
 0x13c   : > { %v1390_v18 = vpop.permute.xlu0 %1389  ;;  %v1760_v11 = vsel %vm1753_vm7, %v1727_v13, %v1193_v23 }
 0x13d   : > { %v1793_v26 = vsel %vm1786_vm8, %v1760_v11, %v1294_v49 }
 0x13e   : > { %v1826_v32 = vsel %vm1819_vm9, %v1793_v26, %v1390_v18  ;;  %v947_v18 = vrot.slane %v695_v3, 2 }
 0x141   : > { %1006 = vrot.lane.b32.xlu2 %v7023_v47, %s6550_s22  ;;  %835 = vrot.lane.b32.xlu1 %v7026_v48, %s6549_s29  ;;  %v7166_v47 = vsel %vm576_vm0, %v598_v27, %v599_v30  ;;  %v944_v48 = vrot.slane %v7162_v36, 2  ;;  %v7232_v27 = vld [vmem:[%s6753_s28 + $0x88] sm:$0xff] }
 0x142   : > { %1102 = vrot.lane.b32.xlu0 %v7081_v54, %s6552_s7  ;;  %v945_v39 = vrot.slane %v7166_v47, 2  ;;  %v774_v45 = vrot.slane %v7166_v47, 1 }
 0x143   : > { %v828_v29 = vpop.permute.xlu2 %827  ;;  %v1483_v33 = vpop.permute.xlu1 %1482 }
 0x144   : > { %v826_v28 = vpop.permute.xlu0 %825  ;;  %v1859_v34 = vsel %vm1852_vm10, %v1826_v32, %v1483_v33  ;;  %v7181_v50 = vsel %vm9491_vm2, %v944_v48, %v945_v39  ;;  %v7185_v56 = vsel %vm9488_vm1, %v773_v43, %v774_v45  ;;  %v1664_v21 = vsel %vm1656_vm4, %v6870_v59, %v828_v29 }
 0x145   : > { %v1892_v35 = vsel %vm1885_vm11, %v1859_v34, %v1576_v14  ;;  %v1663_v51 = vsel %vm1656_vm4, %v6818_v41, %v826_v28  ;;  %v7228_v25 = vsel %vm9491_vm2, %v945_v39, %v947_v18  ;;  %v601_v29 = vrot.slane %v523_v42, 7 }
 0x146   : > { %5833 = vmatmul.msk.f32.gmra.mxu0 %vm1921_vm12, %v1892_v35  ;;  %v602_v32 = vrot.slane %v7232_v27, 7 }
 0x147   : > { %v7251_v43 = vsel %vm576_vm0, 0.0, %v601_v29 }
 0x149   : > { %1305 = vrot.lane.b32.xlu2 %v7111_v57, %s6554_s24  ;;  %1204 = vrot.lane.b32.xlu1 %v7096_v44, %s6555_s15 }
 0x14a   : > { %1401 = vrot.lane.b32.xlu0 %v7162_v36, %s6551_s26  ;;  %v2039_v24 = vpop.f32.mrf.mxu0 }
 0x14b   : > { %v1197_v46 = vpop.permute.xlu2 %1196  ;;  %v997_v49 = vpop.permute.xlu1 %996 }
 0x14c   : > { %v1195_v40 = vpop.permute.xlu0 %1194  ;;  %v1695_v55 = vsel %vm1688_vm5, %v1663_v51, %v997_v49  ;;  %v7255_v51 = vsel %vm576_vm0, %v601_v29, %v602_v32 }
 0x14d   : > { %v1728_v12 = vsel %vm9486_vm6, %v1695_v55, %v1093_v20  ;;  %v949_v55 = vrot.slane %v7251_v43, 2 }
 0x14e   : > { %v1761_v14 = vsel %vm1753_vm7, %v1728_v12, %v1195_v40 }
 0x151   : > { %1587 = vrot.lane.b32.xlu2 %v7181_v50, %s6556_s19  ;;  %1494 = vrot.lane.b32.xlu1 %v7185_v56, %s6553_s17 }
 0x152   : > { %837 = vrot.lane.b32.xlu0 %v7064_v19, %s6549_s29  ;;  %v776_v19 = vrot.slane %v695_v3, 1 }
 0x153   : > { %v1487_v60 = vpop.permute.xlu2 %1486  ;;  %v1296_v61 = vpop.permute.xlu1 %1295 }
 0x154   : > { %v1485_v41 = vpop.permute.xlu0 %1484  ;;  %v1794_v63 = vsel %vm1786_vm8, %v1761_v14, %v1296_v61  ;;  %v7210_v20 = vsel %vm9488_vm1, %v774_v45, %v776_v19  ;;  %v779_v61 = vrot.slane %v7255_v51, 1 }
 0x155   : > { %v1827_v4 = vsel %vm1819_vm9, %v1794_v63, %v1392_v22 }
 0x156   : > { %v1860_v15 = vsel %vm1852_vm10, %v1827_v4, %v1485_v41  ;;  %v950_v41 = vrot.slane %v7255_v51, 2 }
 0x159   : > { %1104 = vrot.lane.b32.xlu2 %v7078_v31, %s6552_s7  ;;  %1008 = vrot.lane.b32.xlu1 %v7060_v17, %s6550_s22  ;;  %v7214_v17 = vld [vmem:[#allocation5] ss:$0 sm:$0xff] }
 0x15a   : > { %1206 = vrot.lane.b32.xlu0 %v7136_v10, %s6555_s15  ;;  %v2040_v22 = vadd.f32 %v7214_v17, %v2039_v24  ;;  %v2042_v13 = vpop.f32.mrf.mxu0 }
 0x15b   : > { %v7204_v5 = vpop.permute.xlu2 %1000  ;;  %v1578_v7 = vpop.permute.xlu1 %1577 }
 0x15c   : > { %v999_v53 = vpop.permute.xlu0 %998  ;;  %v1893_v8 = vsel %vm1885_vm11, %v1860_v15, %v1578_v7  ;;  %v2135_v26 = vmax.f32 %v2040_v22, 0.0  ;;  %v7282_v7 = vsel %vm9491_vm2, %v949_v55, %v950_v41 }
 0x15d   : > { %5834 = vmatmul.msk.f32.gmra.mxu0 %vm1921_vm12, %v1893_v8  ;;  %v1696_v16 = vsel %vm1688_vm5, %v1664_v21, %v999_v53  ;;  %v2043_v21 = vadd.f32 %v7214_v17, %v2042_v13 }
 0x15e   : > { %v7242_v33 = vrot.slane %v2135_v26, 7 }
 0x15f   : > { %v2136_v42 = vmax.f32 %v2043_v21, 0.0 }
 0x161   : > { %1403 = vrot.lane.b32.xlu2 %v7166_v47, %s6551_s26  ;;  %1307 = vrot.lane.b32.xlu1 %v7133_v9, %s6554_s24  ;;  %v2200_v13 = vrot.slane %v2136_v42, 7 }
 0x162   : > { %1496 = vrot.lane.b32.xlu0 %v7210_v20, %s6553_s17 }
 0x163   : > { %v7224_v23 = vpop.permute.xlu2 %1299  ;;  %v1095_v59 = vpop.permute.xlu1 %1094 }
 0x164   : > { %v1298_v52 = vpop.permute.xlu0 %1297  ;;  %v1729_v11 = vsel %vm9486_vm6, %v1696_v16, %v1095_v59 }
 0x165   : > { %v1762_v28 = vsel %vm1753_vm7, %v1729_v11, %v1197_v46  ;;  %v2295_v46 = vsel %vm576_vm0, 0.0, %v7242_v33 }
 0x166   : > { %v1795_v35 = vsel %vm1786_vm8, %v1762_v28, %v1298_v52  ;;  %v2327_v14 = vmax.f32 %v2295_v46, 0.0 }
 0x169   : > { %839 = vrot.lane.b32.xlu2 %v7096_v44, %s6549_s29  ;;  %1589 = vrot.lane.b32.xlu1 %v7228_v25, %s6556_s19 }
 0x16a   : > { %1010 = vrot.lane.b32.xlu0 %v7111_v57, %s6550_s22 }
 0x16b   : > { %v7244_v34 = vpop.permute.xlu2 %1581  ;;  %v1394_v48 = vpop.permute.xlu1 %1393 }
 0x16c   : > { %v1580_v30 = vpop.permute.xlu0 %1579  ;;  %v1828_v39 = vsel %vm1819_vm9, %v1795_v35, %v1394_v48  ;;  %v2045_v57 = vpop.f32.mrf.mxu0 }
 0x16d   : > { %v2046_v40 = vadd.f32 %v7214_v17, %v2045_v57  ;;  %v1861_v44 = vsel %vm1852_vm10, %v1828_v39, %v1487_v60  ;;  %v778_v60 = vrot.slane %v7251_v43, 1 }
 0x16e   : > { %v1894_v45 = vsel %vm1885_vm11, %v1861_v44, %v1580_v30 }
 0x16f   : > { %v2137_v49 = vmax.f32 %v2046_v40, 0.0  ;;  %5835 = vmatmul.msk.f32.gmra.mxu0 %vm1921_vm12, %v1894_v45  ;;  %v7287_v15 = vsel %vm9488_vm1, %v778_v60, %v779_v61  ;;  %v696_v40 = vsel %vm576_vm0, %v602_v32, 0.0 }
 0x170   : > { %v952_v32 = vrot.slane %v696_v40, 2 }
 0x171   : > { %1208 = vrot.lane.b32.xlu2 %v7185_v56, %s6555_s15  ;;  %v7265_v12 = vrot.slane %v2137_v49, 7  ;;  %1106 = vrot.lane.b32.xlu1 %v7162_v36, %s6552_s7 }
 0x172   : > { %1309 = vrot.lane.b32.xlu0 %v7181_v50, %s6554_s24 }
 0x173   : > { %v7274_v3 = vsel %vm576_vm0, 0.0, %v7265_v12  ;;  %v7276_v4 = vpop.permute.xlu2 %1098  ;;  %v830_v19 = vpop.permute.xlu1 %829 }
 0x174   : > { %v1097_v63 = vpop.permute.xlu0 %1096  ;;  %v2351_v53 = vmax.f32 %v2327_v14, %v7274_v3  ;;  %v1665_v24 = vsel %vm1656_vm4, %v6867_v58, %v830_v19 }
 0x175   : > { %v1697_v16 = vsel %vm1688_vm5, %v1665_v24, %v7204_v5 }
 0x176   : > { %v2391_v8 = vrot.slane %v2351_v53, 2  ;;  %v2392_v58 = vrot.slane %v2351_v53, 4  ;;  %v1730_v11 = vsel %vm9486_vm6, %v1697_v16, %v1097_v63  ;;  %v5859_v26 = vrot.slane %v2351_v53, 9 }
 0x177   : > { %v2393_v48 = vrot.slane %v2351_v53, 6  ;;  %v2311_v63 = vsel %vm576_vm0, %v2200_v13, 0.0 }
 0x178   : > { %v5860_v59 = vrot.slane %v2391_v8, 9  ;;  %v5861_v28 = vrot.slane %v2392_v58, 9  ;;  %v2679_v30 = vmax.f32 %v2351_v53, %v5859_v26 }
 0x179   : > { %1498 = vrot.lane.b32.xlu2 %v7287_v15, %s6553_s17  ;;  %1405 = vrot.lane.b32.xlu1 %v7251_v43, %s6551_s26  ;;  %v5862_v19 = vrot.slane %v2393_v48, 9 }
 0x17a   : > { %1591 = vrot.lane.b32.xlu0 %v7282_v7, %s6556_s19  ;;  %v2680_v29 = vmax.f32 %v2391_v8, %v5860_v59  ;;  %v2681_v44 = vmax.f32 %v2392_v58, %v5861_v28  ;;  %v2743_v55 = vmax.f32 %v2679_v30, %v2391_v8 }
 0x17b   : > { %v7300_v18 = vpop.permute.xlu2 %1397  ;;  %v1199_v22 = vpop.permute.xlu1 %1198  ;;  %v2682_v42 = vmax.f32 %v2393_v48, %v5862_v19 }
 0x17c   : > { %v1396_v52 = vpop.permute.xlu0 %1395  ;;  %v1763_v27 = vsel %vm1753_vm7, %v1730_v11, %v1199_v22  ;;  %v2744_v45 = vmax.f32 %v2680_v29, %v2392_v58  ;;  %v2745_v53 = vmax.f32 %v2681_v44, %v2393_v48  ;;  %v2329_v22 = vmax.f32 %v2311_v63, 0.0 }
 0x17d   : > { %v1796_v5 = vsel %vm1786_vm8, %v1763_v27, %v7224_v23  ;;  %v7340_v11 = vsel %vm9491_vm2, %v950_v41, %v952_v32 }
 0x17e   : > { %v2909_v24 = vperm.slane %v2744_v45, 0  ;;  %v2910_v26 = vperm.slane %v2745_v53, 0 }
 0x181   : > { %1012 = vrot.lane.b32.xlu2 %v7133_v9, %s6550_s22  ;;  %841 = vrot.lane.b32.xlu1 %v7136_v10, %s6549_s29  ;;  %v1829_v9 = vsel %vm1819_vm9, %v1796_v5, %v1396_v52  ;;  %v2201_v10 = vsel %vm576_vm0, %v7242_v33, %v2200_v13  ;;  %v781_v52 = vrot.slane %v696_v40, 1 }
 0x182   : > { %1108 = vrot.lane.b32.xlu0 %v7166_v47, %s6552_s7  ;;  %v2328_v33 = vmax.f32 %v2201_v10, 0.0 }
 0x183   : > { %v7312_v39 = vpop.permute.xlu2 %833  ;;  %v2048_v57 = vpop.f32.mrf.mxu0  ;;  %v7352_v41 = vsel %vm9488_vm1, %v779_v61, %v781_v52 }
 0x184   : > { %v832_v35 = vpop.permute.xlu0 %831  ;;  %v2049_v46 = vadd.f32 %v7214_v17, %v2048_v57  ;;  %v1489_v49 = vpop.permute.xlu1 %1488  ;;  %v525_v57 = vld [vmem:[%s6753_s28 + $0x90] sm:$0xff] }
 0x185   : > { %v1862_v23 = vsel %vm1852_vm10, %v1829_v9, %v1489_v49  ;;  %v1666_v27 = vsel %vm1656_vm4, %v6931_v37, %v832_v35  ;;  %v7356_v35 = vld [vmem:[%s6753_s28 + $0x98] sm:$0xff]  ;;  %v604_v9 = vrot.slane %v525_v57, 7 }
 0x186   : > { %v2138_v60 = vmax.f32 %v2049_v46, 0.0  ;;  %v1895_v14 = vsel %vm1885_vm11, %v1862_v23, %v7244_v34  ;;  %v2908_v34 = vperm.slane %v2743_v55, 0  ;;  %v605_v32 = vrot.slane %v7356_v35, 7 }
 0x187   : > { %5836 = vmatmul.msk.f32.gmra.mxu0 %vm1921_vm12, %v1895_v14 }
 0x188   : > { %v2203_v21 = vrot.slane %v2138_v60, 7 }
 0x189   : > { %1311 = vrot.lane.b32.xlu2 %v7228_v25, %s6554_s24  ;;  %1210 = vrot.lane.b32.xlu1 %v7210_v20, %s6555_s15 }
 0x18a   : > { %1407 = vrot.lane.b32.xlu0 %v7255_v51, %s6551_s26  ;;  %v7332_v8 = vsel %vm576_vm0, %v7265_v12, %v2203_v21  ;;  %v2973_v12 = vsel %vm9485_vm13, %v2909_v24, %v2908_v34  ;;  %v7347_v40 = vsel %vm576_vm0, %v2203_v21, 0.0  ;;  %vm2982_vm13 = vcmask 1047559  }
 0x18b   : > { %v2352_v58 = vmax.f32 %v2328_v33, %v7332_v8  ;;  %v7335_v59 = vpop.permute.xlu2 %1202  ;;  %v2975_v61 = vsel %vm9484_vm14, %v2910_v26, %v2973_v12  ;;  %v7364_v10 = vmax.f32 %v2329_v22, %v7347_v40  ;;  %vm2980_vm14 = vcmask 1046534  }
 0x18c   : > { %v1201_v16 = vpop.permute.xlu0 %1200  ;;  %v1003_v28 = vpop.permute.xlu1 %1002  ;;  %v7379_v12 = vsel %vm576_vm0, %v604_v9, %v605_v32 }
 0x18d   : > { %v2394_v29 = vrot.slane %v2352_v58, 2  ;;  %v2395_v5 = vrot.slane %v2352_v58, 4  ;;  %v2396_v13 = vrot.slane %v2352_v58, 6  ;;  %v5863_v30 = vrot.slane %v2352_v58, 9 }
 0x18e   : > { %v2746_v48 = vmax.f32 %v2682_v42, %v2352_v58  ;;  %v1698_v37 = vsel %vm1688_vm5, %v1666_v27, %v1003_v28  ;;  %v7382_v27 = vsel %vm576_vm0, 0.0, %v604_v9  ;;  %v955_v9 = vrot.slane %v7379_v12, 2 }
 0x18f   : > { %v5865_v44 = vrot.slane %v2395_v5, 9  ;;  %v5866_v45 = vrot.slane %v2396_v13, 9  ;;  %v5864_v46 = vrot.slane %v2394_v29, 9  ;;  %v2683_v49 = vmax.f32 %v2352_v58, %v5863_v30 }
 0x190   : > { %v2911_v23 = vperm.slane %v2746_v48, 0  ;;  %v784_v30 = vrot.slane %v7379_v12, 1 }
 0x191   : > { %1593 = vrot.lane.b32.xlu2 %v7340_v11, %s6556_s19  ;;  %v2685_v55 = vmax.f32 %v2395_v5, %v5865_v44  ;;  %v7366_v60 = vmax.f32 %v2396_v13, %v5866_v45  ;;  %1500 = vrot.lane.b32.xlu1 %v7352_v41, %s6553_s17  ;;  %v2684_v14 = vmax.f32 %v2394_v29, %v5864_v46  ;;  %v954_v46 = vrot.slane %v7382_v27, 2 }
 0x192   : > { %843 = vrot.lane.b32.xlu0 %v7185_v56, %s6549_s29  ;;  %v1731_v56 = vsel %vm9486_vm6, %v1698_v37, %v7276_v4  ;;  %v2747_v19 = vmax.f32 %v2683_v49, %v2394_v29  ;;  %v2977_v53 = vsel %vm2976_vm15, %v2911_v23, %v2975_v61 }
 0x193   : > { %v2749_v24 = vmax.f32 %v2685_v55, %v2396_v13  ;;  %v1493_v33 = vpop.permute.xlu2 %1492  ;;  %v2748_v34 = vmax.f32 %v2684_v14, %v2395_v5  ;;  %v1764_v58 = vsel %vm1753_vm7, %v1731_v56, %v1201_v16  ;;  %v783_v13 = vrot.slane %v7382_v27, 1 }
 0x194   : > { %v1491_v63 = vpop.permute.xlu0 %1490  ;;  %v1302_v52 = vpop.permute.xlu1 %1301  ;;  %v2912_v22 = vperm.slane %v2747_v19, 0 }
 0x195   : > { %v2913_v42 = vperm.slane %v2748_v34, 0  ;;  %v2914_v4 = vperm.slane %v2749_v24, 0  ;;  %v1797_v26 = vsel %vm1786_vm8, %v1764_v58, %v1302_v52  ;;  %v7402_v35 = vsel %vm9488_vm1, %v783_v13, %v784_v30 }
 0x196   : > { %v2979_v28 = vsel %vm2978_vm3, %v2912_v22, %v2977_v53  ;;  %v1830_v5 = vsel %vm1819_vm9, %v1797_v26, %v7300_v18 }
 0x197   : > { %v2981_v29 = vsel %vm2980_vm14, %v2913_v42, %v2979_v28  ;;  %v1863_v45 = vsel %vm1852_vm10, %v1830_v5, %v1491_v63 }
 0x198   : > { %v7391_v16 = vsel %vm2982_vm13, %v2914_v4, %v2981_v29 }
 0x199   : > { %1110 = vrot.lane.b32.xlu2 %v7251_v43, %s6552_s7  ;;  %1014 = vrot.lane.b32.xlu1 %v7181_v50, %s6550_s22  ;;  %v1667_v50 = vsel %vm1656_vm4, %v6934_v38, %v7312_v39  ;;  %v7419_v39 = vsel %vm9491_vm2, %v954_v46, %v955_v9 }
 0x19a   : > { %1212 = vrot.lane.b32.xlu0 %v7287_v15, %s6555_s15  ;;  %v2051_v22 = vpop.f32.mrf.mxu0 }
 0x19b   : > { %v1007_v48 = vpop.permute.xlu2 %1006 }
 0x19c   : > { %v1005_v57 = vpop.permute.xlu0 %1004  ;;  %v1584_v44 = vpop.permute.xlu1 %1583 }
 0x19d   : > { %v1896_v37 = vsel %vm1885_vm11, %v1863_v45, %v1584_v44  ;;  %v1699_v49 = vsel %vm1688_vm5, %v1667_v50, %v1005_v57  ;;  %v527_v44 = vld [vmem:[%s6753_s28 + $0xa0] sm:$0xff]  ;;  %v528_v45 = vld [vmem:[%s6753_s28 + $0xa8] sm:$0xff] }
 0x19e   : > { %5837 = vmatmul.msk.f32.gmra.mxu0 %vm1921_vm12, %v1896_v37 }
 0x1a1   : > { %1409 = vrot.lane.b32.xlu2 %v7382_v27, %s6551_s26  ;;  %1313 = vrot.lane.b32.xlu1 %v7282_v7, %s6554_s24 }
 0x1a2   : > { %1502 = vrot.lane.b32.xlu0 %v7402_v35, %s6553_s17 }
 0x1a3   : > { %v1306_v23 = vpop.permute.xlu2 %1305 }
 0x1a4   : > { %v1304_v18 = vpop.permute.xlu0 %1303  ;;  %v1101_v61 = vpop.permute.xlu1 %1100 }
 0x1a5   : > { %v1732_v38 = vsel %vm9486_vm6, %v1699_v49, %v1101_v61  ;;  %v608_v49 = vrot.slane %v528_v45, 7 }
 0x1a6   : > { %v1765_v55 = vsel %vm1753_vm7, %v1732_v38, %v7335_v59 }
 0x1a7   : > { %v1798_v63 = vsel %vm1786_vm8, %v1765_v55, %v1304_v18 }
 0x1a9   : > { %845 = vrot.lane.b32.xlu2 %v7210_v20, %s6549_s29  ;;  %1595 = vrot.lane.b32.xlu1 %v7419_v39, %s6556_s19 }
 0x1aa   : > { %1016 = vrot.lane.b32.xlu0 %v7228_v25, %s6550_s22  ;;  %v697_v25 = vsel %vm576_vm0, %v605_v32, 0.0 }
 0x1ab   : > { %v1588_v56 = vpop.permute.xlu2 %1587  ;;  %v957_v20 = vrot.slane %v697_v25, 2  ;;  %v786_v52 = vrot.slane %v697_v25, 1 }
 0x1ac   : > { %v1586_v14 = vpop.permute.xlu0 %1585  ;;  %v1400_v19 = vpop.permute.xlu1 %1399 }
 0x1ad   : > { %v1831_v53 = vsel %vm1819_vm9, %v1798_v63, %v1400_v19  ;;  %v7442_v58 = vsel %vm9491_vm2, %v955_v9, %v957_v20  ;;  %v7445_v42 = vsel %vm9488_vm1, %v784_v30, %v786_v52  ;;  %v2054_v29 = vpop.f32.mrf.mxu0 }
 0x1ae   : > { %v1864_v24 = vsel %vm1852_vm10, %v1831_v53, %v1493_v33 }
 0x1af   : > { %v1897_v34 = vsel %vm1885_vm11, %v1864_v24, %v1586_v14 }
 0x1b0   : > { %5838 = vmatmul.msk.f32.gmra.mxu0 %vm1921_vm12, %v1897_v34 }
 0x1b1   : > { %1214 = vrot.lane.b32.xlu2 %v7352_v41, %s6555_s15  ;;  %1112 = vrot.lane.b32.xlu1 %v7255_v51, %s6552_s7 }
 0x1b2   : > { %1315 = vrot.lane.b32.xlu0 %v7340_v11, %s6554_s24 }
 0x1b3   : > { %v1105_v33 = vpop.permute.xlu2 %1104 }
 0x1b4   : > { %v1103_v59 = vpop.permute.xlu0 %1102  ;;  %v836_v32 = vpop.permute.xlu1 %835 }
 0x1b5   : > { %v1668_v4 = vsel %vm1656_vm4, %v7009_v62, %v836_v32  ;;  %v2052_v62 = vadd.f32 %v7214_v17, %v2051_v22 }
 0x1b6   : > { %v1700_v26 = vsel %vm1688_vm5, %v1668_v4, %v1007_v48  ;;  %v607_v48 = vrot.slane %v527_v44, 7 }
 0x1b7   : > { %v1733_v30 = vsel %vm9486_vm6, %v1700_v26, %v1103_v59  ;;  %v2139_v50 = vmax.f32 %v2052_v62, 0.0 }
 0x1b8   : > { %v7476_v14 = vsel %vm576_vm0, 0.0, %v607_v48  ;;  %v7481_v19 = vsel %vm576_vm0, %v607_v48, %v608_v49 }
 0x1b9   : > { %1504 = vrot.lane.b32.xlu2 %v7445_v42, %s6553_s17  ;;  %1411 = vrot.lane.b32.xlu1 %v7379_v12, %s6551_s26  ;;  %v960_v34 = vrot.slane %v7481_v19, 2  ;;  %v788_v59 = vrot.slane %v7476_v14, 1  ;;  %v789_v52 = vrot.slane %v7481_v19, 1 }
 0x1ba   : > { %1597 = vrot.lane.b32.xlu0 %v7442_v58, %s6556_s19 }
 0x1bb   : > { %v7456_v5 = vpop.permute.xlu2 %1403  ;;  %v7513_v62 = vsel %vm9488_vm1, %v788_v59, %v789_v52 }
 0x1bc   : > { %v1402_v28 = vpop.permute.xlu0 %1401  ;;  %v1205_v13 = vpop.permute.xlu1 %1204 }
 0x1bd   : > { %v1766_v57 = vsel %vm1753_vm7, %v1733_v30, %v1205_v13 }
 0x1be   : > { %v1799_v37 = vsel %vm1786_vm8, %v1766_v57, %v1306_v23 }
 0x1bf   : > { %v1832_v38 = vsel %vm1819_vm9, %v1799_v37, %v1402_v28 }
 0x1c1   : > { %1018 = vrot.lane.b32.xlu2 %v7282_v7, %s6550_s22  ;;  %847 = vrot.lane.b32.xlu1 %v7287_v15, %s6549_s29  ;;  %v2205_v7 = vrot.slane %v2139_v50, 7 }
 0x1c2   : > { %1114 = vrot.lane.b32.xlu0 %v7382_v27, %s6552_s7 }
 0x1c3   : > { %v7470_v46 = vpop.permute.xlu2 %839  ;;  %v2057_v9 = vpop.f32.mrf.mxu0  ;;  %v2297_v24 = vsel %vm576_vm0, 0.0, %v2205_v7 }
 0x1c4   : > { %v838_v18 = vpop.permute.xlu0 %837  ;;  %v2058_v61 = vadd.f32 %v7214_v17, %v2057_v9  ;;  %v1495_v55 = vpop.permute.xlu1 %1494  ;;  %v2330_v26 = vmax.f32 %v7274_v3, %v2297_v24  ;;  %v2842_v3 = vld [vmem:[%s9470_s3 + $0x118] sm:$0xff] }
 0x1c5   : > { %v1865_v23 = vsel %vm1852_vm10, %v1832_v38, %v1495_v55  ;;  %v1669_v22 = vsel %vm1656_vm4, %v7006_v6, %v838_v18  ;;  %v2055_v6 = vadd.f32 %v7214_v17, %v2054_v29  ;;  %3438 = vmatpush.msra.mxu3 %v2842_v3  ;;  %v2841_v29 = vld [vmem:[%s9470_s3 + $0x110] sm:$0xff]  ;;  %v2839_v18 = vld [vmem:[%s9470_s3 + $0x100] sm:$0xff]  ;;  %v698_v38 = vsel %vm576_vm0, %v608_v49, 0.0 }
 0x1c6   : > { %v2141_v63 = vmax.f32 %v2058_v61, 0.0  ;;  %v1898_v15 = vsel %vm1885_vm11, %v1865_v23, %v1588_v56  ;;  %v959_v56 = vrot.slane %v7476_v14, 2  ;;  %v791_v24 = vrot.slane %v698_v38, 1 }
 0x1c7   : > { %5839 = vmatmul.msk.f32.gmra.mxu0 %vm1921_vm12, %v1898_v15  ;;  %v2140_v37 = vmax.f32 %v2055_v6, 0.0  ;;  %3439 = vmatpush.msra.mxu3 %v2841_v29 }
 0x1c8   : > { %v7483_v53 = vrot.slane %v2141_v63, 7  ;;  %v7508_v28 = vsel %vm9491_vm2, %v959_v56, %v960_v34 }
 0x1c9   : > { %1317 = vrot.lane.b32.xlu2 %v7419_v39, %s6554_s24  ;;  %1216 = vrot.lane.b32.xlu1 %v7402_v35, %s6555_s15  ;;  %v2206_v23 = vrot.slane %v2140_v37, 7 }
 0x1ca   : > { %1413 = vrot.lane.b32.xlu0 %v7476_v14, %s6551_s26  ;;  %v7502_v32 = vsel %vm576_vm0, 0.0, %v7483_v53 }
 0x1cb   : > { %v7494_v20 = vpop.permute.xlu2 %1208  ;;  %v2354_v13 = vmax.f32 %v2330_v26, %v7502_v32 }
 0x1cc   : > { %v1207_v25 = vpop.permute.xlu0 %1206  ;;  %v1009_v4 = vpop.permute.xlu1 %1008 }
 0x1cd   : > { %v1701_v30 = vsel %vm1688_vm5, %v1669_v22, %v1009_v4  ;;  %v7529_v45 = vrot.slane %v2354_v13, 2  ;;  %v2398_v9 = vrot.slane %v2354_v13, 4  ;;  %v5867_v63 = vrot.slane %v2354_v13, 9 }
 0x1ce   : > { %v1734_v57 = vsel %vm9486_vm6, %v1701_v30, %v1105_v33  ;;  %v2840_v33 = vld [vmem:[%s9470_s3 + $0x108] sm:$0xff]  ;;  %v2399_v59 = vrot.slane %v2354_v13, 6  ;;  %v2207_v30 = vsel %vm576_vm0, %v2205_v7, %v2206_v23 }
 0x1cf   : > { %v1767_v50 = vsel %vm1753_vm7, %v1734_v57, %v1207_v25  ;;  %3440 = vmatpush.msra.mxu3 %v2840_v33  ;;  %v5868_v55 = vrot.slane %v7529_v45, 9  ;;  %v5869_v25 = vrot.slane %v2398_v9, 9  ;;  %v2687_v3 = vmax.f32 %v2354_v13, %v5867_v63 }
 0x1d0   : > { %v5870_v33 = vrot.slane %v2399_v59, 9  ;;  %v2331_v13 = vmax.f32 %v7332_v8, %v2207_v30 }
 0x1d1   : > { %1599 = vrot.lane.b32.xlu2 %v7508_v28, %s6556_s19  ;;  %1506 = vrot.lane.b32.xlu1 %v7513_v62, %s6553_s17  ;;  %v2688_v22 = vmax.f32 %v7529_v45, %v5868_v55  ;;  %v2689_v37 = vmax.f32 %v2398_v9, %v5869_v25 }
 0x1d2   : > { %849 = vrot.lane.b32.xlu0 %v7352_v41, %s6549_s29  ;;  %3441 = vmatpush.msra.mxu3 %v2839_v18  ;;  %v2313_v18 = vsel %vm576_vm0, %v2206_v23, 0.0 }
 0x1d3   : > { %v7531_v41 = vpop.permute.xlu2 %1498  ;;  %v2332_v55 = vmax.f32 %v7347_v40, %v2313_v18 }
 0x1d4   : > { %v1497_v44 = vpop.permute.xlu0 %1496  ;;  %v1308_v48 = vpop.permute.xlu1 %1307 }
 0x1d5   : > { %v1800_v61 = vsel %vm1786_vm8, %v1767_v50, %v1308_v48  ;;  %v1670_v48 = vsel %vm1656_vm4, %v7081_v54, %v7470_v46  ;;  %v2752_v50 = vmax.f32 %v2688_v22, %v2398_v9  ;;  %v962_v54 = vrot.slane %v698_v38, 2 }
 0x1d6   : > { %v1833_v15 = vsel %vm1819_vm9, %v1800_v61, %v7456_v5  ;;  %v2753_v46 = vmax.f32 %v2689_v37, %v2399_v59 }
 0x1d7   : > { %v1866_v6 = vsel %vm1852_vm10, %v1833_v15, %v1497_v44  ;;  %v2917_v23 = vperm.slane %v2752_v50, 0  ;;  %v7590_v40 = vsel %vm9491_vm2, %v960_v34, %v962_v54 }
 0x1d9   : > { %1116 = vrot.lane.b32.xlu2 %v7379_v12, %s6552_s7  ;;  %1020 = vrot.lane.b32.xlu1 %v7340_v11, %s6550_s22  ;;  %v7559_v11 = vsel %vm9488_vm1, %v789_v52, %v791_v24  ;;  %v2751_v52 = vmax.f32 %v2687_v3, %v7529_v45  ;;  %v2690_v45 = vmax.f32 %v2399_v59, %v5870_v33  ;;  %v529_v3 = vld [vmem:[%s6753_s28 + $0xb0] sm:$0xff] }
 0x1da   : > { %1218 = vrot.lane.b32.xlu0 %v7445_v42, %s6555_s15  ;;  %v2060_v49 = vpop.f32.mrf.mxu0 }
 0x1db   : > { %v2061_v4 = vadd.f32 %v7214_v17, %v2060_v49  ;;  %v7553_v26 = vpop.permute.xlu2 %1012 }
 0x1dc   : > { %v1011_v56 = vpop.permute.xlu0 %1010  ;;  %v1590_v5 = vpop.permute.xlu1 %1589 }
 0x1dd   : > { %v2142_v57 = vmax.f32 %v2061_v4, 0.0  ;;  %v1899_v29 = vsel %vm1885_vm11, %v1866_v6, %v1590_v5  ;;  %v1702_v61 = vsel %vm1688_vm5, %v1670_v48, %v1011_v56  ;;  %v2916_v56 = vperm.slane %v2751_v52, 0 }
 0x1de   : > { %5840 = vmatmul.msk.f32.gmra.mxu0 %vm1921_vm12, %v1899_v29  ;;  %v2918_v4 = vperm.slane %v2753_v46, 0  ;;  %v610_v52 = vrot.slane %v529_v3, 7 }
 0x1df   : > { %v2209_v7 = vrot.slane %v2142_v57, 7  ;;  %v7594_v57 = vld [vmem:[%s6753_s28 + $0xb8] sm:$0xff] }
 0x1e0   : > { %v611_v54 = vrot.slane %v7594_v57, 7 }
 0x1e1   : > { %v7572_v44 = vsel %vm576_vm0, %v7483_v53, %v2209_v7  ;;  %1415 = vrot.lane.b32.xlu2 %v7481_v19, %s6551_s26  ;;  %1319 = vrot.lane.b32.xlu1 %v7442_v58, %s6554_s24  ;;  %v7582_v53 = vsel %vm576_vm0, %v2209_v7, 0.0 }
 0x1e2   : > { %1508 = vrot.lane.b32.xlu0 %v7559_v11, %s6553_s17  ;;  %v2355_v9 = vmax.f32 %v2331_v13, %v7572_v44  ;;  %v2356_v29 = vmax.f32 %v2332_v55, %v7582_v53 }
 0x1e3   : > { %v7584_v63 = vpop.permute.xlu2 %1311 }
 0x1e4   : > { %v1310_v8 = vpop.permute.xlu0 %1309  ;;  %v2400_v38 = vrot.slane %v2355_v9, 2  ;;  %v2402_v15 = vrot.slane %v2355_v9, 6  ;;  %v5871_v24 = vrot.slane %v2355_v9, 9  ;;  %v1107_v25 = vpop.permute.xlu1 %1106  ;;  %v2401_v49 = vrot.slane %v2355_v9, 4 }
 0x1e5   : > { %v1735_v22 = vsel %vm9486_vm6, %v1702_v61, %v1107_v25  ;;  %v2754_v59 = vmax.f32 %v2690_v45, %v2355_v9  ;;  %vm9509_vm6 = vcmask 1042434  }
 0x1e6   : > { %v5874_v30 = vrot.slane %v2402_v15, 9  ;;  %v5872_v5 = vrot.slane %v2400_v38, 9  ;;  %v5873_v6 = vrot.slane %v2401_v49, 9  ;;  %v1768_v37 = vsel %vm1753_vm7, %v1735_v22, %v7494_v20 }
 0x1e7   : > { %v2691_v48 = vmax.f32 %v2355_v9, %v5871_v24  ;;  %v2984_v33 = vsel %vm9509_vm6, %v2917_v23, %v2916_v56  ;;  %v2919_v18 = vperm.slane %v2754_v59, 0  ;;  %vm9510_vm6 = vcmask 1043459  }
 0x1e8   : > { %v2694_v50 = vmax.f32 %v2402_v15, %v5874_v30  ;;  %v2692_v34 = vmax.f32 %v2400_v38, %v5872_v5  ;;  %v2693_v7 = vmax.f32 %v2401_v49, %v5873_v6  ;;  %v2985_v23 = vsel %vm9510_vm6, %v2918_v4, %v2984_v33 }
 0x1e9   : > { %851 = vrot.lane.b32.xlu2 %v7402_v35, %s6549_s29  ;;  %v2755_v13 = vmax.f32 %v2691_v48, %v2400_v38  ;;  %1601 = vrot.lane.b32.xlu1 %v7590_v40, %s6556_s19  ;;  %v2986_v56 = vsel %vm2976_vm15, %v2919_v18, %v2985_v23  ;;  %v7624_v30 = vsel %vm576_vm0, 0.0, %v610_v52  ;;  %vm9487_vm6 = vcmask 261120  }
 0x1ea   : > { %1022 = vrot.lane.b32.xlu0 %v7419_v39, %s6550_s22  ;;  %v2758_v46 = vmax.f32 %v2694_v50, %v2356_v29  ;;  %v2756_v9 = vmax.f32 %v2692_v34, %v2401_v49  ;;  %v2757_v61 = vmax.f32 %v2693_v7, %v2402_v15  ;;  %v1801_v39 = vsel %vm1786_vm8, %v1768_v37, %v1310_v8 }
 0x1eb   : > { %v1594_v55 = vpop.permute.xlu2 %1593  ;;  %v2920_v45 = vperm.slane %v2755_v13, 0  ;;  %v7615_v15 = vsel %vm576_vm0, %v610_v52, %v611_v54  ;;  %v964_v37 = vrot.slane %v7624_v30, 2  ;;  %v793_v50 = vrot.slane %v7624_v30, 1 }
 0x1ec   : > { %v1592_v20 = vpop.permute.xlu0 %1591  ;;  %v2923_v24 = vperm.slane %v2758_v46, 0  ;;  %v1406_v25 = vpop.permute.xlu1 %1405  ;;  %v2921_v35 = vperm.slane %v2756_v9, 0  ;;  %v2922_v38 = vperm.slane %v2757_v61, 0  ;;  %v965_v48 = vrot.slane %v7615_v15, 2 }
 0x1ed   : > { %v1834_v22 = vsel %vm1819_vm9, %v1801_v39, %v1406_v25  ;;  %v2987_v59 = vsel %vm2978_vm3, %v2920_v45, %v2986_v56  ;;  %v794_v34 = vrot.slane %v7615_v15, 1 }
 0x1ee   : > { %v1867_v8 = vsel %vm1852_vm10, %v1834_v22, %v7531_v41  ;;  %v2988_v49 = vsel %vm2980_vm14, %v2921_v35, %v2987_v59  ;;  %v7621_v4 = vsel %vm576_vm0, %v2923_v24, 0.0  ;;  %v7650_v52 = vsel %vm9491_vm2, %v964_v37, %v965_v48 }
 0x1ef   : > { %v1900_v5 = vsel %vm1885_vm11, %v1867_v8, %v1592_v20  ;;  %v2989_v6 = vsel %vm2982_vm13, %v2922_v38, %v2988_v49  ;;  %v3121_v29 = vrot.slane %v7621_v4, 2  ;;  %v7653_v46 = vsel %vm9488_vm1, %v793_v50, %v794_v34 }
 0x1f0   : > { %5841 = vmatmul.msk.f32.gmra.mxu0 %vm1921_vm12, %v1900_v5  ;;  %v7632_v3 = vsel %vm576_vm0, 0.0, %v2989_v6 }
 0x1f1   : > { %1220 = vrot.lane.b32.xlu2 %v7513_v62, %s6555_s15  ;;  %v3120_v41 = vrot.slane %v7632_v3, 2  ;;  %1118 = vrot.lane.b32.xlu1 %v7476_v14, %s6552_s7 }
 0x1f2   : > { %1321 = vrot.lane.b32.xlu0 %v7508_v28, %s6554_s24 }
 0x1f3   : > { %v1111_v7 = vpop.permute.xlu2 %1110  ;;  %v7645_v18 = vsel %vm9491_vm2, %v3120_v41, %v3121_v29  ;;  %v531_v41 = vld [vmem:[%s6753_s28 + $0xc0] sm:$0xff]  ;;  %v7701_v29 = vld [vmem:[%s6753_s28 + $0xc8] sm:$0xff] }
 0x1f4   : > { %v1109_v33 = vpop.permute.xlu0 %1108  ;;  %v842_v13 = vpop.permute.xlu1 %841  ;;  %5923 = vmatmul.msk.f32.vlgmr.msra.gmra.mxu3 %vm9487_vm6, %v7645_v18  ;;  %vm9511_vm6 = vcmask 72704   ;;  %v614_v50 = vrot.slane %v7701_v29, 7 }
 0x1f5   : > { %v1671_v20 = vsel %vm1656_vm4, %v7078_v31, %v842_v13 }
 0x1f6   : > { %v1703_v9 = vsel %vm1688_vm5, %v1671_v20, %v7553_v26 }
 0x1f7   : > { %v1736_v23 = vsel %vm9511_vm6, %v1703_v9, %v1109_v33  ;;  %v613_v33 = vrot.slane %v531_v41, 7 }
 0x1f9   : > { %1510 = vrot.lane.b32.xlu2 %v7653_v46, %s6553_s17  ;;  %1417 = vrot.lane.b32.xlu1 %v7624_v30, %s6551_s26 }
 0x1fa   : > { %1603 = vrot.lane.b32.xlu0 %v7650_v52, %s6556_s19 }
 0x1fb   : > { %v1410_v39 = vpop.permute.xlu2 %1409 }
 0x1fc   : > { %v1408_v61 = vpop.permute.xlu0 %1407  ;;  %v1211_v45 = vpop.permute.xlu1 %1210 }
 0x1fd   : > { %v1769_v24 = vsel %vm1753_vm7, %v1736_v23, %v1211_v45  ;;  %v7722_v45 = vsel %vm576_vm0, 0.0, %v613_v33 }
 0x1fe   : > { %v1802_v31 = vsel %vm1786_vm8, %v1769_v24, %v7584_v63  ;;  %v798_v24 = vrot.slane %v7722_v45, 1 }
 0x1ff   : > { %v1835_v35 = vsel %vm1819_vm9, %v1802_v31, %v1408_v61 }
 0x201   : > { %1024 = vrot.lane.b32.xlu2 %v7442_v58, %s6550_s22  ;;  %853 = vrot.lane.b32.xlu1 %v7445_v42, %s6549_s29  ;;  %v699_v58 = vsel %vm576_vm0, %v611_v54, 0.0 }
 0x202   : > { %1120 = vrot.lane.b32.xlu0 %v7481_v19, %s6552_s7  ;;  %v967_v63 = vrot.slane %v699_v58, 2  ;;  %v796_v8 = vrot.slane %v699_v58, 1 }
 0x203   : > { %v846_v25 = vpop.permute.xlu2 %845 }
 0x204   : > { %v844_v26 = vpop.permute.xlu0 %843  ;;  %v1501_v38 = vpop.permute.xlu1 %1500  ;;  %v7693_v54 = vsel %vm9491_vm2, %v965_v48, %v967_v63  ;;  %v7697_v6 = vsel %vm9488_vm1, %v794_v34, %v796_v8 }
 0x205   : > { %v1868_v56 = vsel %vm1852_vm10, %v1835_v35, %v1501_v38  ;;  %v1672_v57 = vsel %vm1656_vm4, %v7162_v36, %v844_v26 }
 0x206   : > { %v1901_v22 = vsel %vm1885_vm11, %v1868_v56, %v1594_v55  ;;  %v2063_v55 = vpop.f32.mrf.mxu0 }
 0x207   : > { %5842 = vmatmul.msk.f32.gmra.mxu0 %vm1921_vm12, %v1901_v22  ;;  %v2064_v36 = vadd.f32 %v7214_v17, %v2063_v55 }
 0x209   : > { %1323 = vrot.lane.b32.xlu2 %v7590_v40, %s6554_s24  ;;  %1222 = vrot.lane.b32.xlu1 %v7559_v11, %s6555_s15  ;;  %v2143_v9 = vmax.f32 %v2064_v36, 0.0 }
 0x20a   : > { %1419 = vrot.lane.b32.xlu0 %v7615_v15, %s6551_s26 }
 0x20b   : > { %v7688_v59 = vpop.permute.xlu2 %1214  ;;  %v2211_v26 = vrot.slane %v2143_v9, 7 }
 0x20c   : > { %v1213_v42 = vpop.permute.xlu0 %1212  ;;  %v1015_v49 = vpop.permute.xlu1 %1014 }
 0x20d   : > { %v1704_v5 = vsel %vm1688_vm5, %v1672_v57, %v1015_v49  ;;  %v2299_v55 = vsel %vm576_vm0, 0.0, %v2211_v26 }
 0x20e   : > { %v1737_v37 = vsel %vm9511_vm6, %v1704_v5, %v1111_v7  ;;  %v2066_v34 = vpop.f32.mrf.mxu0  ;;  %v7719_v7 = vsel %vm576_vm0, %v613_v33, %v614_v50  ;;  %v2333_v49 = vmax.f32 %v7502_v32, %v2299_v55 }
 0x20f   : > { %v799_v31 = vrot.slane %v7719_v7, 1  ;;  %v970_v32 = vrot.slane %v7719_v7, 2 }
 0x211   : > { %1605 = vrot.lane.b32.xlu2 %v7693_v54, %s6556_s19  ;;  %1512 = vrot.lane.b32.xlu1 %v7697_v6, %s6553_s17  ;;  %v7741_v63 = vsel %vm9488_vm1, %v798_v24, %v799_v31 }
 0x212   : > { %855 = vrot.lane.b32.xlu0 %v7513_v62, %s6549_s29  ;;  %v1770_v62 = vsel %vm1753_vm7, %v1737_v37, %v1213_v42  ;;  %v969_v37 = vrot.slane %v7722_v45, 2 }
 0x213   : > { %v7712_v13 = vpop.permute.xlu2 %1504 }
 0x214   : > { %v1503_v48 = vpop.permute.xlu0 %1502  ;;  %v1314_v20 = vpop.permute.xlu1 %1313 }
 0x215   : > { %v1803_v61 = vsel %vm1786_vm8, %v1770_v62, %v1314_v20 }
 0x216   : > { %v1836_v23 = vsel %vm1819_vm9, %v1803_v61, %v1410_v39 }
 0x217   : > { %v1869_v39 = vsel %vm1852_vm10, %v1836_v23, %v1503_v48  ;;  %v2067_v48 = vadd.f32 %v7214_v17, %v2066_v34  ;;  %v7766_v23 = vsel %vm9491_vm2, %v969_v37, %v970_v32  ;;  %v7783_v37 = vld [vmem:[#allocation5] ss:$0 sm:$0xff] }
 0x219   : > { %1122 = vrot.lane.b32.xlu2 %v7624_v30, %s6552_s7  ;;  %1026 = vrot.lane.b32.xlu1 %v7508_v28, %s6550_s22  ;;  %v1673_v28 = vsel %vm1656_vm4, %v7166_v47, %v846_v25  ;;  %v2144_v24 = vmax.f32 %v2067_v48, 0.0 }
 0x21a   : > { %1224 = vrot.lane.b32.xlu0 %v7653_v46, %s6555_s15 }
 0x21b   : > { %v2069_v38 = vpop.f32.mrf.mxu0  ;;  %v7733_v56 = vpop.permute.xlu2 %1018 }
 0x21c   : > { %v1017_v35 = vpop.permute.xlu0 %1016  ;;  %v2070_v22 = vadd.f32 %v7214_v17, %v2069_v38  ;;  %v1596_v58 = vpop.permute.xlu1 %1595 }
 0x21d   : > { %v1902_v42 = vsel %vm1885_vm11, %v1869_v39, %v1596_v58  ;;  %v1705_v47 = vsel %vm1688_vm5, %v1673_v28, %v1017_v35  ;;  %v2212_v39 = vrot.slane %v2144_v24, 7 }
 0x21e   : > { %v2145_v8 = vmax.f32 %v2070_v22, 0.0  ;;  %5843 = vmatmul.msk.f32.gmra.mxu0 %vm1921_vm12, %v1902_v42 }
 0x220   : > { %v2214_v57 = vrot.slane %v2145_v8, 7 }
 0x221   : > { %1421 = vrot.lane.b32.xlu2 %v7722_v45, %s6551_s26  ;;  %1325 = vrot.lane.b32.xlu1 %v7650_v52, %s6554_s24 }
 0x222   : > { %1514 = vrot.lane.b32.xlu0 %v7741_v63, %s6553_s17  ;;  %v7753_v5 = vsel %vm576_vm0, 0.0, %v2214_v57 }
 0x223   : > { %v2357_v36 = vmax.f32 %v2333_v49, %v7753_v5  ;;  %v7759_v25 = vpop.permute.xlu2 %1317 }
 0x224   : > { %v1316_v41 = vpop.permute.xlu0 %1315  ;;  %v1113_v33 = vpop.permute.xlu1 %1112 }
 0x225   : > { %v2403_v20 = vrot.slane %v2357_v36, 2  ;;  %v2404_v62 = vrot.slane %v2357_v36, 4  ;;  %v1738_v9 = vsel %vm9511_vm6, %v1705_v47, %v1113_v33  ;;  %v5875_v38 = vrot.slane %v2357_v36, 9 }
 0x226   : > { %v1771_v35 = vsel %vm1753_vm7, %v1738_v9, %v7688_v59  ;;  %vm9512_vm6 = vcmask 1042434  }
 0x227   : > { %v5876_v61 = vrot.slane %v2403_v20, 9  ;;  %v5877_v17 = vrot.slane %v2404_v62, 9  ;;  %v2695_v42 = vmax.f32 %v2357_v36, %v5875_v38  ;;  %v1804_v55 = vsel %vm1786_vm8, %v1771_v35, %v1316_v41 }
 0x229   : > { %857 = vrot.lane.b32.xlu2 %v7559_v11, %s6549_s29  ;;  %v2696_v34 = vmax.f32 %v2403_v20, %v5876_v61  ;;  %1607 = vrot.lane.b32.xlu1 %v7766_v23, %s6556_s19  ;;  %v700_v11 = vsel %vm576_vm0, %v614_v50, 0.0  ;;  %v2697_v49 = vmax.f32 %v2404_v62, %v5877_v17  ;;  %v2759_v9 = vmax.f32 %v2695_v42, %v2403_v20 }
 0x22a   : > { %1028 = vrot.lane.b32.xlu0 %v7590_v40, %s6550_s22  ;;  %v2405_v40 = vrot.slane %v2357_v36, 6  ;;  %v2213_v36 = vsel %vm576_vm0, %v2211_v26, %v2212_v39  ;;  %v972_v29 = vrot.slane %v700_v11, 2  ;;  %v801_v50 = vrot.slane %v700_v11, 1 }
 0x22b   : > { %v7776_v58 = vpop.permute.xlu2 %1599  ;;  %v2760_v47 = vmax.f32 %v2696_v34, %v2404_v62  ;;  %v2334_v20 = vmax.f32 %v7572_v44, %v2213_v36  ;;  %v2924_v17 = vperm.slane %v2759_v9, 0  ;;  %v2315_v42 = vsel %vm576_vm0, %v2212_v39, 0.0 }
 0x22c   : > { %v1598_v22 = vpop.permute.xlu0 %1597  ;;  %v1412_v8 = vpop.permute.xlu1 %1411  ;;  %v5878_v62 = vrot.slane %v2405_v40, 9  ;;  %v2761_v24 = vmax.f32 %v2697_v49, %v2405_v40  ;;  %v7811_v44 = vsel %vm9488_vm1, %v799_v31, %v801_v50  ;;  %vm9514_vm1 = vcmask 72704  }
 0x22d   : > { %v1837_v28 = vsel %vm1819_vm9, %v1804_v55, %v1412_v8  ;;  %v2072_v59 = vpop.f32.mrf.mxu0  ;;  %v2925_v38 = vperm.slane %v2760_v47, 0  ;;  %v7806_v8 = vsel %vm9491_vm2, %v970_v32, %v972_v29 }
 0x22e   : > { %v2073_v48 = vadd.f32 %v7783_v37, %v2072_v59  ;;  %v1870_v33 = vsel %vm1852_vm10, %v1837_v28, %v7712_v13  ;;  %v2698_v28 = vmax.f32 %v2405_v40, %v5878_v62  ;;  %v2926_v59 = vperm.slane %v2761_v24, 0 }
 0x22f   : > { %v1903_v41 = vsel %vm1885_vm11, %v1870_v33, %v1598_v22  ;;  %v2990_v11 = vsel %vm9512_vm6, %v2925_v38, %v2924_v17  ;;  %v2335_v33 = vmax.f32 %v7582_v53, %v2315_v42  ;;  %vm9513_vm6 = vcmask 1043459  }
 0x230   : > { %v2146_v61 = vmax.f32 %v2073_v48, 0.0  ;;  %5844 = vmatmul.msk.f32.gmra.mxu0 %vm1921_vm12, %v1903_v41  ;;  %v2991_v50 = vsel %vm9513_vm6, %v2926_v59, %v2990_v11  ;;  %v533_v11 = vld [vmem:[%s6753_s28 + $0xd0] sm:$0xff]  ;;  %vm9516_vm6 = vcmask 1046528  }
 0x231   : > { %1226 = vrot.lane.b32.xlu2 %v7697_v6, %s6555_s15  ;;  %1124 = vrot.lane.b32.xlu1 %v7615_v15, %s6552_s7 }
 0x232   : > { %1327 = vrot.lane.b32.xlu0 %v7693_v54, %s6554_s24  ;;  %v2215_v13 = vrot.slane %v2146_v61, 7 }
 0x233   : > { %v7798_v35 = vpop.permute.xlu2 %1116 }
 0x234   : > { %v1115_v26 = vpop.permute.xlu0 %1114  ;;  %v7801_v34 = vsel %vm576_vm0, %v2214_v57, %v2215_v13  ;;  %v848_v22 = vpop.permute.xlu1 %847  ;;  %v7817_v48 = vsel %vm576_vm0, %v2215_v13, 0.0 }
 0x235   : > { %v2358_v55 = vmax.f32 %v2334_v20, %v7801_v34  ;;  %v1674_v39 = vsel %vm1656_vm4, %v7251_v43, %v848_v22  ;;  %v2359_v53 = vmax.f32 %v2335_v33, %v7817_v48 }
 0x236   : > { %v1706_v9 = vsel %vm1688_vm5, %v1674_v39, %v7733_v56 }
 0x237   : > { %v2406_v49 = vrot.slane %v2358_v55, 2  ;;  %v2408_v57 = vrot.slane %v2358_v55, 6  ;;  %v5879_v47 = vrot.slane %v2358_v55, 9  ;;  %v2407_v32 = vrot.slane %v2358_v55, 4 }
 0x238   : > { %v2762_v40 = vmax.f32 %v2698_v28, %v2358_v55  ;;  %v1739_v42 = vsel %vm9514_vm1, %v1706_v9, %v1115_v26  ;;  %vm9515_vm1 = vcmask 261120  }
 0x239   : > { %v5882_v31 = vrot.slane %v2408_v57, 9  ;;  %1516 = vrot.lane.b32.xlu2 %v7811_v44, %s6553_s17  ;;  %v5880_v41 = vrot.slane %v2406_v49, 9  ;;  %v2699_v36 = vmax.f32 %v2358_v55, %v5879_v47  ;;  %1423 = vrot.lane.b32.xlu1 %v7719_v7, %s6551_s26  ;;  %v5881_v61 = vrot.slane %v2407_v32, 9 }
 0x23a   : > { %1609 = vrot.lane.b32.xlu0 %v7806_v8, %s6556_s19  ;;  %v2927_v29 = vperm.slane %v2762_v40, 0 }
 0x23b   : > { %v2702_v62 = vmax.f32 %v2408_v57, %v5882_v31  ;;  %v7830_v24 = vpop.permute.xlu2 %1415  ;;  %v2700_v38 = vmax.f32 %v2406_v49, %v5880_v41  ;;  %v2763_v13 = vmax.f32 %v2699_v36, %v2406_v49  ;;  %v2701_v17 = vmax.f32 %v2407_v32, %v5881_v61  ;;  %v534_v31 = vld [vmem:[%s6753_s28 + $0xd8] sm:$0xff] }
 0x23c   : > { %v1414_v43 = vpop.permute.xlu0 %1413  ;;  %v1217_v20 = vpop.permute.xlu1 %1216  ;;  %v2992_v56 = vsel %vm2976_vm15, %v2927_v29, %v2991_v50 }
 0x23d   : > { %v2766_v22 = vmax.f32 %v2702_v62, %v2359_v53  ;;  %v2764_v55 = vmax.f32 %v2700_v38, %v2407_v32  ;;  %v2928_v28 = vperm.slane %v2763_v13, 0  ;;  %v1772_v47 = vsel %vm1753_vm7, %v1739_v42, %v1217_v20 }
 0x23e   : > { %v2765_v59 = vmax.f32 %v2701_v17, %v2408_v57  ;;  %v1805_v41 = vsel %vm1786_vm8, %v1772_v47, %v7759_v25  ;;  %v616_v32 = vrot.slane %v533_v11, 7  ;;  %v617_v25 = vrot.slane %v534_v31, 7 }
 0x23f   : > { %v2931_v39 = vperm.slane %v2766_v22, 0  ;;  %v2929_v40 = vperm.slane %v2764_v55, 0  ;;  %v2993_v33 = vsel %vm2978_vm3, %v2928_v28, %v2992_v56  ;;  %v1838_v50 = vsel %vm1819_vm9, %v1805_v41, %v1414_v43 }
 0x240   : > { %v2930_v49 = vperm.slane %v2765_v59, 0  ;;  %v7859_v13 = vsel %vm576_vm0, 0.0, %v616_v32  ;;  %v7870_v43 = vsel %vm576_vm0, %v616_v32, %v617_v25 }
 0x241   : > { %1030 = vrot.lane.b32.xlu2 %v7650_v52, %s6550_s22  ;;  %v2994_v26 = vsel %vm2980_vm14, %v2929_v40, %v2993_v33  ;;  %v7846_v57 = vsel %vm576_vm0, %v2931_v39, 0.0  ;;  %859 = vrot.lane.b32.xlu1 %v7653_v46, %s6549_s29  ;;  %v974_v17 = vrot.slane %v7859_v13, 2  ;;  %v975_v56 = vrot.slane %v7870_v43, 2 }
 0x242   : > { %1126 = vrot.lane.b32.xlu0 %v7722_v45, %s6552_s7  ;;  %v2995_v9 = vsel %vm2982_vm13, %v2930_v49, %v2994_v26  ;;  %v3124_v62 = vrot.slane %v7846_v57, 2  ;;  %v803_v42 = vrot.slane %v7859_v13, 1  ;;  %v804_v55 = vrot.slane %v7870_v43, 1 }
 0x243   : > { %v852_v61 = vpop.permute.xlu2 %851  ;;  %v7852_v29 = vsel %vm576_vm0, 0.0, %v2995_v9  ;;  %v7885_v59 = vsel %vm9491_vm2, %v974_v17, %v975_v56  ;;  %v701_v26 = vsel %vm576_vm0, %v617_v25, 0.0 }
 0x244   : > { %v850_v36 = vpop.permute.xlu0 %849  ;;  %v1507_v52 = vpop.permute.xlu1 %1506  ;;  %v3123_v53 = vrot.slane %v7852_v29, 2  ;;  %v7889_v39 = vsel %vm9516_vm6, %v803_v42, %v804_v55 }
 0x245   : > { %v1871_v38 = vsel %vm1852_vm10, %v1838_v50, %v1507_v52  ;;  %v1675_v28 = vsel %vm1656_vm4, %v7255_v51, %v850_v36  ;;  %v2075_v25 = vpop.f32.mrf.mxu0 }
 0x246   : > { %v1904_v46 = vsel %vm1885_vm11, %v1871_v38, %v7776_v58  ;;  %v7864_v20 = vsel %vm9491_vm2, %v3123_v53, %v3124_v62 }
 0x247   : > { %5845 = vmatmul.msk.f32.gmra.mxu0 %vm1921_vm12, %v1904_v46  ;;  %5924 = vmatmul.msk.f32.gmra.mxu3 %vm9515_vm1, %v7864_v20  ;;  %vm9517_vm1 = vcmask 72704   ;;  %v977_v46 = vrot.slane %v701_v26, 2 }
 0x249   : > { %1329 = vrot.lane.b32.xlu2 %v7766_v23, %s6554_s24  ;;  %1228 = vrot.lane.b32.xlu1 %v7741_v63, %s6555_s15 }
 0x24a   : > { %1425 = vrot.lane.b32.xlu0 %v7859_v13, %s6551_s26 }
 0x24b   : > { %v1221_v22 = vpop.permute.xlu2 %1220 }
 0x24c   : > { %v1219_v58 = vpop.permute.xlu0 %1218  ;;  %v1021_v47 = vpop.permute.xlu1 %1020 }
 0x24d   : > { %v1707_v11 = vsel %vm1688_vm5, %v1675_v28, %v1021_v47  ;;  %v7936_v28 = vld [vmem:[%s6753_s28 + $0xe8] sm:$0xff] }
 0x24e   : > { %v1740_v40 = vsel %vm9517_vm1, %v1707_v11, %v7798_v35  ;;  %v806_v35 = vrot.slane %v701_v26, 1 }
 0x24f   : > { %v1773_v31 = vsel %vm1753_vm7, %v1740_v40, %v1219_v58  ;;  %v2076_v58 = vadd.f32 %v7783_v37, %v2075_v25 }
 0x250   : > { %v7915_v53 = vsel %vm9516_vm6, %v804_v55, %v806_v35  ;;  %v535_v55 = vld [vmem:[%s6753_s28 + $0xe0] sm:$0xff] }
 0x251   : > { %1611 = vrot.lane.b32.xlu2 %v7885_v59, %s6556_s19  ;;  %1518 = vrot.lane.b32.xlu1 %v7889_v39, %s6553_s17  ;;  %v2147_v47 = vmax.f32 %v2076_v58, 0.0 }
 0x252   : > { %861 = vrot.lane.b32.xlu0 %v7697_v6, %s6549_s29 }
 0x253   : > { %v1511_v33 = vpop.permute.xlu2 %1510 }
 0x254   : > { %v1509_v51 = vpop.permute.xlu0 %1508  ;;  %v1320_v49 = vpop.permute.xlu1 %1319 }
 0x255   : > { %v1806_v41 = vsel %vm1786_vm8, %v1773_v31, %v1320_v49  ;;  %v7948_v31 = vrot.slane %v2147_v47, 7 }
 0x256   : > { %v1839_v6 = vsel %vm1819_vm9, %v1806_v41, %v7830_v24  ;;  %v1676_v24 = vsel %vm1656_vm4, %v7382_v27, %v852_v61  ;;  %v7932_v61 = vsel %vm9491_vm2, %v975_v56, %v977_v46  ;;  %v620_v56 = vrot.slane %v7936_v28, 7 }
 0x257   : > { %v1872_v50 = vsel %vm1852_vm10, %v1839_v6, %v1509_v51  ;;  %v619_v51 = vrot.slane %v535_v55, 7 }
 0x259   : > { %1128 = vrot.lane.b32.xlu2 %v7719_v7, %s6552_s7  ;;  %1032 = vrot.lane.b32.xlu1 %v7693_v54, %s6550_s22  ;;  %v7955_v35 = vsel %vm576_vm0, %v619_v51, %v620_v56 }
 0x25a   : > { %1230 = vrot.lane.b32.xlu0 %v7811_v44, %s6555_s15  ;;  %v809_v46 = vrot.slane %v7955_v35, 1 }
 0x25b   : > { %v7910_v36 = vpop.permute.xlu2 %1024  ;;  %v2078_v42 = vpop.f32.mrf.mxu0 }
 0x25c   : > { %v1023_v32 = vpop.permute.xlu0 %1022  ;;  %v1602_v9 = vpop.permute.xlu1 %1601 }
 0x25d   : > { %v1905_v52 = vsel %vm1885_vm11, %v1872_v50, %v1602_v9  ;;  %v1708_v62 = vsel %vm1688_vm5, %v1676_v24, %v1023_v32  ;;  %v7958_v32 = vsel %vm576_vm0, 0.0, %v619_v51  ;;  %v2301_v50 = vsel %vm576_vm0, 0.0, %v7948_v31 }
 0x25e   : > { %5846 = vmatmul.msk.f32.gmra.mxu0 %vm1921_vm12, %v1905_v52  ;;  %v980_v52 = vrot.slane %v7955_v35, 2  ;;  %v2336_v58 = vmax.f32 %v7753_v5, %v2301_v50 }
 0x261   : > { %1427 = vrot.lane.b32.xlu2 %v7870_v43, %s6551_s26  ;;  %1331 = vrot.lane.b32.xlu1 %v7806_v8, %s6554_s24 }
 0x262   : > { %1520 = vrot.lane.b32.xlu0 %v7915_v53, %s6553_s17 }
 0x263   : > { %v7927_v38 = vpop.permute.xlu2 %1323 }
 0x264   : > { %v1322_v54 = vpop.permute.xlu0 %1321  ;;  %v1119_v17 = vpop.permute.xlu1 %1118 }
 0x265   : > { %v1741_v27 = vsel %vm9517_vm1, %v1708_v62, %v1119_v17  ;;  %v808_v62 = vrot.slane %v7958_v32, 1 }
 0x266   : > { %v1774_v11 = vsel %vm1753_vm7, %v1741_v27, %v1221_v22 }
 0x267   : > { %v1807_v41 = vsel %vm1786_vm8, %v1774_v11, %v1322_v54  ;;  %v7992_v11 = vsel %vm9516_vm6, %v808_v62, %v809_v46  ;;  %vm9518_vm6 = vcmask 1042434  }
 0x269   : > { %863 = vrot.lane.b32.xlu2 %v7741_v63, %s6549_s29  ;;  %1613 = vrot.lane.b32.xlu1 %v7932_v61, %s6556_s19 }
 0x26a   : > { %1034 = vrot.lane.b32.xlu0 %v7766_v23, %s6550_s22 }
 0x26b   : > { %v7946_v49 = vpop.permute.xlu2 %1605 }
 0x26c   : > { %v1604_v40 = vpop.permute.xlu0 %1603  ;;  %v1418_v26 = vpop.permute.xlu1 %1417 }
 0x26d   : > { %v1840_v23 = vsel %vm1819_vm9, %v1807_v41, %v1418_v26  ;;  %v2081_v22 = vpop.f32.mrf.mxu0  ;;  %v2079_v26 = vadd.f32 %v7783_v37, %v2078_v42 }
 0x26e   : > { %v2082_v6 = vadd.f32 %v7783_v37, %v2081_v22  ;;  %v1873_v63 = vsel %vm1852_vm10, %v1840_v23, %v1511_v33  ;;  %v979_v33 = vrot.slane %v7958_v32, 2 }
 0x26f   : > { %v1906_v9 = vsel %vm1885_vm11, %v1873_v63, %v1604_v40  ;;  %v2148_v50 = vmax.f32 %v2079_v26, 0.0 }
 0x270   : > { %v2149_v25 = vmax.f32 %v2082_v6, 0.0  ;;  %5847 = vmatmul.msk.f32.gmra.mxu0 %vm1921_vm12, %v1906_v9  ;;  %v7987_v47 = vsel %vm9491_vm2, %v979_v33, %v980_v52 }
 0x271   : > { %1232 = vrot.lane.b32.xlu2 %v7889_v39, %s6555_s15  ;;  %1130 = vrot.lane.b32.xlu1 %v7859_v13, %s6552_s7 }
 0x272   : > { %1333 = vrot.lane.b32.xlu0 %v7885_v59, %s6554_s24  ;;  %v7970_v24 = vrot.slane %v2149_v25, 7 }
 0x273   : > { %v7977_v17 = vpop.permute.xlu2 %1122 }
 0x274   : > { %v1121_v54 = vpop.permute.xlu0 %1120  ;;  %v7981_v27 = vsel %vm576_vm0, 0.0, %v7970_v24  ;;  %v854_v55 = vpop.permute.xlu1 %853 }
 0x275   : > { %v2360_v28 = vmax.f32 %v2336_v58, %v7981_v27  ;;  %v1677_v5 = vsel %vm1656_vm4, %v7379_v12, %v854_v55 }
 0x276   : > { %v1709_v51 = vsel %vm1688_vm5, %v1677_v5, %v7910_v36 }
 0x277   : > { %v2409_v40 = vrot.slane %v2360_v28, 2  ;;  %v2410_v12 = vrot.slane %v2360_v28, 4  ;;  %v1742_v63 = vsel %vm9517_vm1, %v1709_v51, %v1121_v54  ;;  %v5883_v25 = vrot.slane %v2360_v28, 9 }
 0x278   : > { %v2218_v54 = vrot.slane %v2148_v50, 7  ;;  %v2411_v5 = vrot.slane %v2360_v28, 6  ;;  %vm9519_vm1 = vcmask 1046528  }
 0x279   : > { %1522 = vrot.lane.b32.xlu2 %v7992_v11, %s6553_s17  ;;  %1429 = vrot.lane.b32.xlu1 %v7958_v32, %s6551_s26  ;;  %v5884_v6 = vrot.slane %v2409_v40, 9  ;;  %v5885_v36 = vrot.slane %v2410_v12, 9  ;;  %v2703_v58 = vmax.f32 %v2360_v28, %v5883_v25 }
 0x27a   : > { %1615 = vrot.lane.b32.xlu0 %v7987_v47, %s6556_s19  ;;  %v2219_v50 = vsel %vm576_vm0, %v7948_v31, %v2218_v54 }
 0x27b   : > { %v8005_v23 = vpop.permute.xlu2 %1421  ;;  %v2704_v33 = vmax.f32 %v2409_v40, %v5884_v6  ;;  %v702_v6 = vsel %vm576_vm0, %v620_v56, 0.0  ;;  %v2767_v25 = vmax.f32 %v2703_v58, %v2409_v40 }
 0x27c   : > { %v1420_v41 = vpop.permute.xlu0 %1419  ;;  %v1223_v22 = vpop.permute.xlu1 %1222  ;;  %v982_v56 = vrot.slane %v702_v6, 2 }
 0x27d   : > { %v1775_v9 = vsel %vm1753_vm7, %v1742_v63, %v1223_v22  ;;  %v2705_v63 = vmax.f32 %v2410_v12, %v5885_v36  ;;  %v2932_v40 = vperm.slane %v2767_v25, 0 }
 0x27e   : > { %v1808_v62 = vsel %vm1786_vm8, %v1775_v9, %v7927_v38  ;;  %v2768_v38 = vmax.f32 %v2704_v33, %v2410_v12  ;;  %v5886_v12 = vrot.slane %v2411_v5, 9 }
 0x27f   : > { %v1841_v26 = vsel %vm1819_vm9, %v1808_v62, %v1420_v41  ;;  %v2317_v41 = vsel %vm576_vm0, %v2218_v54, 0.0  ;;  %v2769_v36 = vmax.f32 %v2705_v63, %v2411_v5 }
 0x280   : > { %v2933_v33 = vperm.slane %v2768_v38, 0  ;;  %v8049_v38 = vsel %vm9491_vm2, %v980_v52, %v982_v56 }
 0x281   : > { %1036 = vrot.lane.b32.xlu2 %v7806_v8, %s6550_s22  ;;  %865 = vrot.lane.b32.xlu1 %v7811_v44, %s6549_s29 }
 0x282   : > { %1132 = vrot.lane.b32.xlu0 %v7870_v43, %s6552_s7 }
 0x283   : > { %v8017_v55 = vpop.permute.xlu2 %857 }
 0x284   : > { %v856_v42 = vpop.permute.xlu0 %855  ;;  %v2084_v51 = vpop.f32.mrf.mxu0 }
 0x285   : > { %v1513_v22 = vpop.permute.xlu1 %1512  ;;  %v2085_v9 = vadd.f32 %v7783_v37, %v2084_v51  ;;  %v811_v51 = vrot.slane %v702_v6, 1  ;;  %v2996_v6 = vsel %vm9518_vm6, %v2933_v33, %v2932_v40  ;;  %vm9520_vm6 = vcmask 1043459  }
 0x286   : > { %v1874_v8 = vsel %vm1852_vm10, %v1841_v26, %v1513_v22  ;;  %v2338_v26 = vmax.f32 %v7817_v48, %v2317_v41  ;;  %v1678_v22 = vsel %vm1656_vm4, %v7476_v14, %v856_v42  ;;  %v8057_v48 = vld [vmem:[%s6753_s28 + $0xf8] sm:$0xff] }
 0x287   : > { %v1907_v44 = vsel %vm1885_vm11, %v1874_v8, %v7946_v49  ;;  %v2150_v28 = vmax.f32 %v2085_v9, 0.0  ;;  %v2337_v49 = vmax.f32 %v7801_v34, %v2219_v50  ;;  %v537_v9 = vld [vmem:[%s6753_s28 + $0xf0] sm:$0xff]  ;;  %v2706_v8 = vmax.f32 %v2411_v5, %v5886_v12 }
 0x288   : > { %5848 = vmatmul.msk.f32.gmra.mxu0 %vm1921_vm12, %v1907_v44  ;;  %v8063_v52 = vsel %vm9519_vm1, %v809_v46, %v811_v51  ;;  %v622_v5 = vrot.slane %v537_v9, 7  ;;  %vm9521_vm1 = vcmask 72704  }
 0x289   : > { %v2221_v62 = vrot.slane %v2150_v28, 7  ;;  %1335 = vrot.lane.b32.xlu2 %v7932_v61, %s6554_s24  ;;  %1234 = vrot.lane.b32.xlu1 %v7915_v53, %s6555_s15 }
 0x28a   : > { %1431 = vrot.lane.b32.xlu0 %v7955_v35, %s6551_s26 }
 0x28b   : > { %v8038_v54 = vsel %vm576_vm0, %v7970_v24, %v2221_v62  ;;  %v8040_v58 = vpop.permute.xlu2 %1226  ;;  %v2934_v24 = vperm.slane %v2769_v36, 0  ;;  %v8053_v44 = vsel %vm576_vm0, %v2221_v62, 0.0 }
 0x28c   : > { %v1225_v31 = vpop.permute.xlu0 %1224  ;;  %v2361_v34 = vmax.f32 %v2337_v49, %v8038_v54  ;;  %v2362_v62 = vmax.f32 %v2338_v26, %v8053_v44 }
 0x28d   : > { %v1027_v63 = vpop.permute.xlu1 %1026 }
 0x28e   : > { %v2412_v50 = vrot.slane %v2361_v34, 2  ;;  %v2413_v14 = vrot.slane %v2361_v34, 4  ;;  %v2414_v42 = vrot.slane %v2361_v34, 6  ;;  %v5887_v25 = vrot.slane %v2361_v34, 9 }
 0x28f   : > { %v2770_v28 = vmax.f32 %v2706_v8, %v2361_v34  ;;  %v1710_v41 = vsel %vm1688_vm5, %v1678_v22, %v1027_v63  ;;  %v2997_v22 = vsel %vm9520_vm6, %v2934_v24, %v2996_v6  ;;  %vm9523_vm6 = vcmask 1046528  }
 0x290   : > { %v5889_v56 = vrot.slane %v2413_v14, 9  ;;  %v5890_v12 = vrot.slane %v2414_v42, 9  ;;  %v5888_v36 = vrot.slane %v2412_v50, 9  ;;  %v2707_v49 = vmax.f32 %v2361_v34, %v5887_v25 }
 0x291   : > { %1617 = vrot.lane.b32.xlu2 %v8049_v38, %s6556_s19  ;;  %v2935_v40 = vperm.slane %v2770_v28, 0  ;;  %v1743_v63 = vsel %vm9521_vm1, %v1710_v41, %v7977_v17  ;;  %1524 = vrot.lane.b32.xlu1 %v8063_v52, %s6553_s17  ;;  %v9522_v28 = vrot.slane %v8057_v48, 7  ;;  %v8084_v41 = vsel %vm576_vm0, 0.0, %v622_v5 }
 0x292   : > { %867 = vrot.lane.b32.xlu0 %v7889_v39, %s6549_s29  ;;  %v2709_v46 = vmax.f32 %v2413_v14, %v5889_v56  ;;  %v2710_v51 = vmax.f32 %v2414_v42, %v5890_v12  ;;  %v2708_v9 = vmax.f32 %v2412_v50, %v5888_v36  ;;  %v2771_v21 = vmax.f32 %v2707_v49, %v2412_v50 }
 0x293   : > { %v1517_v8 = vpop.permute.xlu2 %1516  ;;  %v2998_v26 = vsel %vm2976_vm15, %v2935_v40, %v2997_v22  ;;  %v1776_v24 = vsel %vm1753_vm7, %v1743_v63, %v1225_v31  ;;  %v8081_v17 = vsel %vm576_vm0, %v622_v5, %v9522_v28  ;;  %vm9524_vm1 = vcmask 261120  }
 0x294   : > { %v1515_v39 = vpop.permute.xlu0 %1514  ;;  %v2773_v0 = vmax.f32 %v2709_v46, %v2414_v42  ;;  %v2774_v33 = vmax.f32 %v2710_v51, %v2362_v62  ;;  %v2772_v25 = vmax.f32 %v2708_v9, %v2413_v14  ;;  %v2936_v6 = vperm.slane %v2771_v21, 0 }
 0x295   : > { %v1326_v34 = vpop.permute.xlu1 %1325 }
 0x296   : > { %v2939_v56 = vperm.slane %v2774_v33, 0  ;;  %v1809_v50 = vsel %vm1786_vm8, %v1776_v24, %v1326_v34  ;;  %v2937_v12 = vperm.slane %v2772_v25, 0  ;;  %v2938_v36 = vperm.slane %v2773_v0, 0 }
 0x297   : > { %v2999_v42 = vsel %vm2978_vm3, %v2936_v6, %v2998_v26  ;;  %v1842_v14 = vsel %vm1819_vm9, %v1809_v50, %v8005_v23  ;;  %v1175_v0 = vrot.slane %v8084_v41, 1  ;;  %v1176_v33 = vrot.slane %v8081_v17, 1 }
 0x298   : > { %v3000_v21 = vsel %vm2980_vm14, %v2937_v12, %v2999_v42  ;;  %v8092_v31 = vsel %vm576_vm0, %v2939_v56, 0.0  ;;  %v1875_v51 = vsel %vm1852_vm10, %v1842_v14, %v1515_v39  ;;  %v1276_v24 = vrot.slane %v8084_v41, 2 }
 0x299   : > { %1134 = vrot.lane.b32.xlu2 %v7958_v32, %s6552_s7  ;;  %v3001_v5 = vsel %vm2982_vm13, %v2938_v36, %v3000_v21  ;;  %1038 = vrot.lane.b32.xlu1 %v7885_v59, %s6550_s22  ;;  %v3127_v23 = vrot.slane %v8092_v31, 2  ;;  %v8114_v26 = vsel %vm9523_vm6, %v1175_v0, %v1176_v33  ;;  %v1679_v59 = vsel %vm1656_vm4, %v7481_v19, %v8017_v55 }
 0x29a   : > { %1236 = vrot.lane.b32.xlu0 %v7992_v11, %s6555_s15  ;;  %v8104_v49 = vsel %vm576_vm0, 0.0, %v3001_v5  ;;  %v1277_v6 = vrot.slane %v8081_v17, 2  ;;  %vm9525_vm6 = vcmask 72704   ;;  %v9526_v5 = vrot.slane %v8057_v48, 7 }
 0x29b   : > { %v1031_v40 = vpop.permute.xlu2 %1030  ;;  %v3126_v22 = vrot.slane %v8104_v49, 2  ;;  %v2087_v48 = vpop.f32.mrf.mxu0 }
 0x29c   : > { %v1029_v62 = vpop.permute.xlu0 %1028  ;;  %v1278_v55 = vsel %vm9491_vm2, %v1276_v24, %v1277_v6 }
 0x29d   : > { %v1608_v46 = vpop.permute.xlu1 %1607  ;;  %v8111_v9 = vsel %vm9491_vm2, %v3126_v22, %v3127_v23  ;;  %v1711_v34 = vsel %vm1688_vm5, %v1679_v59, %v1029_v62 }
 0x29e   : > { %v1908_v63 = vsel %vm1885_vm11, %v1875_v51, %v1608_v46  ;;  %5925 = vmatmul.msk.f32.gmra.mxu3 %vm9524_vm1, %v8111_v9  ;;  %vm9527_vm1 = vcmask 1046528  }
 0x29f   : > { %5849 = vmatmul.msk.f32.gmra.mxu0 %vm1921_vm12, %v1908_v63 }
 0x2a1   : > { %1433 = vrot.lane.b32.xlu2 %v8084_v41, %s6551_s26  ;;  %1337 = vrot.lane.b32.xlu1 %v7987_v47, %s6554_s24 }
 0x2a2   : > { %1526 = vrot.lane.b32.xlu0 %v8114_v26, %s6553_s17 }
 0x2a3   : > { %v1330_v25 = vpop.permute.xlu2 %1329 }
 0x2a4   : > { %v1328_v39 = vpop.permute.xlu0 %1327 }
 0x2a5   : > { %v1125_v28 = vpop.permute.xlu1 %1124 }
 0x2a6   : > { %v1744_v19 = vsel %vm9525_vm6, %v1711_v34, %v1125_v28 }
 0x2a7   : > { %v1777_v56 = vsel %vm1753_vm7, %v1744_v19, %v8040_v58 }
 0x2a8   : > { %v1810_v36 = vsel %vm1786_vm8, %v1777_v56, %v1328_v39  ;;  %v2088_v39 = vadd.f32 %v7783_v37, %v2087_v48 }
 0x2a9   : > { %869 = vrot.lane.b32.xlu2 %v7915_v53, %s6549_s29  ;;  %1619 = vrot.lane.b32.xlu1 %v1278_v55, %s6556_s19 }
 0x2aa   : > { %1040 = vrot.lane.b32.xlu0 %v7932_v61, %s6550_s22  ;;  %v703_v61 = vsel %vm576_vm0, %v9526_v5, 0.0  ;;  %v2151_v28 = vmax.f32 %v2088_v39, 0.0 }
 0x2ab   : > { %v1612_v12 = vpop.permute.xlu2 %1611  ;;  %v1279_v53 = vrot.slane %v703_v61, 2 }
 0x2ac   : > { %v1610_v50 = vpop.permute.xlu0 %1609  ;;  %v8179_v56 = vrot.slane %v2151_v28, 7 }
 0x2ad   : > { %v1424_v42 = vpop.permute.xlu1 %1423  ;;  %v8155_v23 = vsel %vm9491_vm2, %v1277_v6, %v1279_v53 }
 0x2ae   : > { %v1843_v21 = vsel %vm1819_vm9, %v1810_v36, %v1424_v42 }
 0x2af   : > { %v1876_v14 = vsel %vm1852_vm10, %v1843_v21, %v1517_v8  ;;  %v1178_v8 = vrot.slane %v703_v61, 1 }
 0x2b0   : > { %v1909_v58 = vsel %vm1885_vm11, %v1876_v14, %v1610_v50 }
 0x2b1   : > { %5850 = vmatmul.msk.f32.gmra.mxu0 %vm1921_vm12, %v1909_v58  ;;  %1238 = vrot.lane.b32.xlu2 %v8063_v52, %s6555_s15  ;;  %v8158_v46 = vsel %vm9527_vm1, %v1176_v33, %v1178_v8  ;;  %v2090_v33 = vpop.f32.mrf.mxu0  ;;  %vm9530_vm1 = vmmov %vm9525_vm6 }
 0x2b2   : > { %1339 = vrot.lane.b32.xlu0 %v8049_v38, %s6554_s24  ;;  %1136 = vrot.lane.b32.xlu1 %v7955_v35, %s6552_s7 }
 0x2b3   : > { %v1129_v62 = vpop.permute.xlu2 %1128 }
 0x2b4   : > { %v1127_v0 = vpop.permute.xlu0 %1126 }
 0x2b5   : > { %v860_v22 = vpop.permute.xlu1 %859 }
 0x2b6   : > { %v1680_v51 = vsel %vm1656_vm4, %v7624_v30, %v860_v22 }
 0x2b7   : > { %v1712_v63 = vsel %vm1688_vm5, %v1680_v51, %v1031_v40 }
 0x2b8   : > { %v1745_v6 = vsel %vm9525_vm6, %v1712_v63, %v1127_v0  ;;  %v2091_v63 = vadd.f32 %v7783_v37, %v2090_v33  ;;  %vm9531_vm6 = vcmask 1046528  }
 0x2b9   : > { %1528 = vrot.lane.b32.xlu2 %v8158_v46, %s6553_s17 }
 0x2ba   : > { %1621 = vrot.lane.b32.xlu0 %v8155_v23, %s6556_s19  ;;  %1435 = vrot.lane.b32.xlu1 %v8081_v17, %s6551_s26  ;;  %v2152_v33 = vmax.f32 %v2091_v63, 0.0 }
 0x2bb   : > { %v1428_v34 = vpop.permute.xlu2 %1427 }
 0x2bc   : > { %v1426_v59 = vpop.permute.xlu0 %1425 }
 0x2bd   : > { %v1229_v24 = vpop.permute.xlu1 %1228 }
 0x2be   : > { %v1778_v30 = vsel %vm1753_vm7, %v1745_v6, %v1229_v24 }
 0x2bf   : > { %v1811_v19 = vsel %vm1786_vm8, %v1778_v30, %v1330_v25 }
 0x2c0   : > { %v1844_v42 = vsel %vm1819_vm9, %v1811_v19, %v1426_v59 }
 0x2c1   : > { %1042 = vrot.lane.b32.xlu2 %v7987_v47, %s6550_s22  ;;  %v2303_v47 = vsel %vm576_vm0, 0.0, %v8179_v56 }
 0x2c2   : > { %1138 = vrot.lane.b32.xlu0 %v8084_v41, %s6552_s7  ;;  %871 = vrot.lane.b32.xlu1 %v7992_v11, %s6549_s29  ;;  %v9528_v11 = vmov 0.0   ;;  %v2339_v58 = vmax.f32 %v7981_v27, %v2303_v47  ;;  %v9529_v27 = vmax.f32 %v7366_v60, %v7364_v10 }
 0x2c3   : > { %v8181_v50 = vpop.permute.xlu2 %863 }
 0x2c4   : > { %v862_v40 = vpop.permute.xlu0 %861  ;;  %v2093_v36 = vpop.f32.mrf.mxu0 }
 0x2c5   : > { %v1519_v21 = vpop.permute.xlu1 %1518  ;;  %v2094_v14 = vadd.f32 %v7783_v37, %v2093_v36  ;;  %v1681_v8 = vsel %vm1656_vm4, %v7615_v15, %v862_v40 }
 0x2c6   : > { %v1877_v41 = vsel %vm1852_vm10, %v1844_v42, %v1519_v21  ;;  %v2224_v21 = vrot.slane %v2152_v33, 7 }
 0x2c7   : > { %v1910_v25 = vsel %vm1885_vm11, %v1877_v41, %v1612_v12  ;;  %v2153_v5 = vmax.f32 %v2094_v14, 0.0 }
 0x2c8   : > { %5851 = vmatmul.msk.f32.gmra.mxu0 %vm1921_vm12, %v1910_v25  ;;  %v3075_v25 = vrot.slane %v7632_v3, 1 }
 0x2c9   : > { %v8192_v61 = vrot.slane %v2153_v5, 7  ;;  %1341 = vrot.lane.b32.xlu2 %v1278_v55, %s6554_s24 }
 0x2ca   : > { %1437 = vrot.lane.b32.xlu0 %v9528_v11, %s6551_s26  ;;  %1240 = vrot.lane.b32.xlu1 %v8114_v26, %s6555_s15  ;;  %v2915_v26 = vperm.slane %v9529_v27, 0 }
 0x2cb   : > { %v8200_v12 = vsel %vm576_vm0, 0.0, %v8192_v61  ;;  %v8202_v0 = vpop.permute.xlu2 %1232 }
 0x2cc   : > { %v1231_v53 = vpop.permute.xlu0 %1230  ;;  %v2363_v48 = vmax.f32 %v2339_v58, %v8200_v12  ;;  %v3050_v60 = vsel %vm576_vm0, %v2915_v26, 0.0 }
 0x2cd   : > { %v1033_v22 = vpop.permute.xlu1 %1032 }
 0x2ce   : > { %v1713_v55 = vsel %vm1688_vm5, %v1681_v8, %v1033_v22  ;;  %v2415_v51 = vrot.slane %v2363_v48, 2  ;;  %v2416_v24 = vrot.slane %v2363_v48, 4  ;;  %v5891_v28 = vrot.slane %v2363_v48, 9 }
 0x2cf   : > { %v1746_v15 = vsel %vm9530_vm1, %v1713_v55, %v1129_v62  ;;  %v2417_v47 = vrot.slane %v2363_v48, 6  ;;  %vm9532_vm1 = vmmov %vm9531_vm6 }
 0x2d0   : > { %v5892_v6 = vrot.slane %v2415_v51, 9  ;;  %v1779_v10 = vsel %vm1753_vm7, %v1746_v15, %v1231_v53  ;;  %v5893_v40 = vrot.slane %v2416_v24, 9  ;;  %v2711_v14 = vmax.f32 %v2363_v48, %v5891_v28 }
 0x2d1   : > { %1623 = vrot.lane.b32.xlu2 %v6756_v2, %s6556_s19  ;;  %v2225_v48 = vsel %vm576_vm0, %v8179_v56, %v2224_v21  ;;  %v6097_v15 = vpack.i.bf16 %v6756_v2, %v7632_v3 }
 0x2d2   : > { %873 = vrot.lane.b32.xlu0 %v8063_v52, %s6549_s29  ;;  %1530 = vrot.lane.b32.xlu1 %v6744_v1, %s6553_s17  ;;  %v8223_v52 = vsel %vm576_vm0, 0.0, %v7391_v16  ;;  %v2712_v36 = vmax.f32 %v2415_v51, %v5892_v6  ;;  %v3118_v16 = vrot.slane %v3050_v60, 2  ;;  %v2713_v53 = vmax.f32 %v2416_v24, %v5893_v40  ;;  %s6557_s29 = smov 64  }
 0x2d3   : > { %v8219_v39 = vpop.permute.xlu2 %1522  ;;  %v3117_v19 = vrot.slane %v8223_v52, 2  ;;  %v3072_v55 = vrot.slane %v8223_v52, 1  ;;  %v2775_v26 = vmax.f32 %v2711_v14, %v2415_v51  ;;  %v5894_v6 = vrot.slane %v2417_v47, 9 }
 0x2d4   : > { %v1521_v59 = vpop.permute.xlu0 %1520  ;;  %v2776_v8 = vmax.f32 %v2712_v36, %v2416_v24 }
 0x2d5   : > { %v1332_v30 = vpop.permute.xlu1 %1331 }
 0x2d6   : > { %v1812_v62 = vsel %vm1786_vm8, %v1779_v10, %v1332_v30  ;;  %v2777_v30 = vmax.f32 %v2713_v53, %v2417_v47  ;;  %v2941_v56 = vperm.slane %v2776_v8, 0 }
 0x2d7   : > { %v1845_v42 = vsel %vm1819_vm9, %v1812_v62, %v1428_v34  ;;  %v2319_v62 = vsel %vm576_vm0, %v2224_v21, 0.0 }
 0x2d8   : > { %v2341_v8 = vmax.f32 %v8053_v44, %v2319_v62 }
 0x2d9   : > { %1140 = vrot.lane.b32.xlu2 %v8081_v17, %s6552_s7  ;;  %v1878_v17 = vsel %vm1852_vm10, %v1845_v42, %v1521_v59  ;;  %v2942_v42 = vperm.slane %v2777_v30, 0 }
 0x2da   : > { %1242 = vrot.lane.b32.xlu0 %v8158_v46, %s6555_s15  ;;  %1044 = vrot.lane.b32.xlu1 %v8049_v38, %s6550_s22  ;;  %v3119_v46 = vsel %vm9491_vm2, %v3117_v19, %v3118_v16  ;;  %v3076_v38 = vrot.slane %v7621_v4, 1  ;;  %v1682_v4 = vsel %vm1656_vm4, %v7722_v45, %v8181_v50  ;;  %v2940_v50 = vperm.slane %v2775_v26, 0  ;;  %s500_s15 = sand.u32 1, %s6526_s18  }
 0x2db   : > { %v2096_v5 = vpop.f32.mrf.mxu0  ;;  %v8237_v58 = vpop.permute.xlu2 %1036  ;;  %v6092_v24 = vpack.i.bf16 %v6744_v1, %v3119_v46  ;;  %v2714_v16 = vmax.f32 %v2417_v47, %v5894_v6  ;;  %v3078_v47 = vrot.slane %v7852_v29, 1  ;;  %s501_s30 = scalar_lea.vmem [#allocation16], %s500_s15  ;;  %s5658_s14 = scalar_lea.sflag [#allocation4], %s500_s15 }
 0x2dc   : > { %v1035_v41 = vpop.permute.xlu0 %1034  ;;  %v2097_v34 = vadd.f32 %v7783_v37, %v2096_v5  ;;  %v3073_v37 = vrot.slane %v3050_v60, 1  ;;  %v8251_v59 = vsel %vm9531_vm6, %v3075_v25, %v3076_v38  ;;  %v2340_v60 = vmax.f32 %v8038_v54, %v2225_v48  ;;  %s5668_s2 = sshll.u32 %s501_s30, 4  ;;  %s5669_s2 = int_to_ptr.vmem [resolvable:$true] %s5668_s2 }
 0x2dd   : > { %v1614_v22 = vpop.permute.xlu1 %1613  ;;  %v1714_v54 = vsel %vm1688_vm5, %v1682_v4, %v1035_v41  ;;  %v6102_v36 = vpack.i.bf16 %v8223_v52, %v8251_v59  ;;  %vm9533_vm6 = vcmask 1042434   ;;  %v3079_v4 = vrot.slane %v7846_v57, 1 }
 0x2de   : > { %v1911_v27 = vsel %vm1885_vm11, %v1878_v17, %v1614_v22  ;;  %v2154_v63 = vmax.f32 %v2097_v34, 0.0  ;;  %v8259_v10 = vsel %vm9532_vm1, %v3072_v55, %v3073_v37  ;;  %vm9534_vm1 = vcmask 72704  }
 0x2df   : > { %5852 = vmatmul.msk.f32.gmra.mxu0 %vm1921_vm12, %v1911_v27  ;;  %v6107_v45 = vpack.i.bf16 %v8259_v10, %v7645_v18  ;;  %v6112_v17 = vpack.i.bf16 %v3119_v46, %v7852_v29 }
 0x2e0   : > { %v2227_v51 = vrot.slane %v2154_v63, 7 }
 0x2e1   : > { %6093 = vrot.lane.b32.xlu2 %v6092_v24, %s6558_s12 }
 0x2e2   : > { %6098 = vrot.lane.b32.xlu0 %v6097_v15, %s6557_s29  ;;  %v8267_v33 = vsel %vm576_vm0, %v8192_v61, %v2227_v51  ;;  %1343 = vrot.lane.b32.xlu1 %v8155_v23, %s6554_s24  ;;  %v3002_v61 = vsel %vm9533_vm6, %v2941_v56, %v2940_v50  ;;  %v8280_v14 = vsel %vm576_vm0, %v2227_v51, 0.0  ;;  %vm9535_vm6 = vcmask 1043459  }
 0x2e3   : > { %v2364_v19 = vmax.f32 %v2340_v60, %v8267_v33  ;;  %v8274_v40 = vpop.permute.xlu2 %1335  ;;  %v2365_v27 = vmax.f32 %v2341_v8, %v8280_v14  ;;  %v3003_v63 = vsel %vm9535_vm6, %v2942_v42, %v3002_v61  ;;  %v6127_v61 = vpack.i.bf16 %v7645_v18, %v8104_v49 }
 0x2e4   : > { %v1334_v28 = vpop.permute.xlu0 %1333  ;;  %v3081_v8 = vrot.slane %v8104_v49, 1 }
 0x2e5   : > { %v1131_v23 = vpop.permute.xlu1 %1130  ;;  %v2418_v25 = vrot.slane %v2364_v19, 2  ;;  %v2419_v5 = vrot.slane %v2364_v19, 4  ;;  %v2420_v21 = vrot.slane %v2364_v19, 6  ;;  %v5895_v53 = vrot.slane %v2364_v19, 9 }
 0x2e6   : > { %v2778_v41 = vmax.f32 %v2714_v16, %v2364_v19  ;;  %v1747_v34 = vsel %vm9534_vm1, %v1714_v54, %v1131_v23  ;;  %vm9536_vm1 = vcmask 1046528  }
 0x2e7   : > { %v5897_v22 = vrot.slane %v2419_v5, 9  ;;  %v5898_v55 = vrot.slane %v2420_v21, 9  ;;  %v5896_v38 = vrot.slane %v2418_v25, 9  ;;  %v2715_v48 = vmax.f32 %v2364_v19, %v5895_v53  ;;  %vm9537_vm6 = vmmov %vm9536_vm1 }
 0x2e8   : > { %v2943_v26 = vperm.slane %v2778_v41, 0  ;;  %v1780_v37 = vsel %vm1753_vm7, %v1747_v34, %v8202_v0  ;;  %v8296_v50 = vsel %vm9536_vm1, %v3078_v47, %v3079_v4  ;;  %v3082_v47 = vrot.slane %v8092_v31, 1 }
 0x2e9   : > { %v2717_v15 = vmax.f32 %v2419_v5, %v5897_v22  ;;  %v2718_v44 = vmax.f32 %v2420_v21, %v5898_v55  ;;  %6108 = vrot.lane.b32.xlu2 %v6107_v45, %s6558_s12  ;;  %v2716_v46 = vmax.f32 %v2418_v25, %v5896_v38  ;;  %v2779_v6 = vmax.f32 %v2715_v48, %v2418_v25 }
 0x2ea   : > { %6113 = vrot.lane.b32.xlu0 %v6112_v17, %s6557_s29  ;;  %6103 = vrot.lane.b32.xlu1 %v6102_v36, %s6559_s5  ;;  %v3004_v30 = vsel %vm2976_vm15, %v2943_v26, %v3003_v63  ;;  %v1813_v0 = vsel %vm1786_vm8, %v1780_v37, %v1334_v28  ;;  %v6122_v25 = vpack.i.bf16 %v8251_v59, %v7864_v20  ;;  %vm9538_vm1 = vcmask 261120  }
 0x2eb   : > { %v2781_v56 = vmax.f32 %v2717_v15, %v2420_v21  ;;  %v2782_v51 = vmax.f32 %v2718_v44, %v2365_v27  ;;  %v2780_v60 = vmax.f32 %v2716_v46, %v2419_v5  ;;  %v2944_v45 = vperm.slane %v2779_v6, 0  ;;  %v1618_v54 = vpop.permute.xlu2 %1617 }
 0x2ec   : > { %v1616_v24 = vpop.permute.xlu0 %1615  ;;  %v6117_v53 = vpack.i.bf16 %v7632_v3, %v8296_v50  ;;  %v8327_v38 = vsel %vm9537_vm6, %v3081_v8, %v3082_v47  ;;  %v6137_v48 = vpack.i.bf16 %v8296_v50, %v8111_v9  ;;  %vm9539_vm6 = vcmask 72704  }
 0x2ed   : > { %v1430_v62 = vpop.permute.xlu1 %1429  ;;  %v2947_v19 = vperm.slane %v2782_v51, 0  ;;  %v2945_v16 = vperm.slane %v2780_v60, 0  ;;  %v2946_v36 = vperm.slane %v2781_v56, 0  ;;  %v3005_v23 = vsel %vm2978_vm3, %v2944_v45, %v3004_v30 }
 0x2ee   : > { %v1846_v57 = vsel %vm1819_vm9, %v1813_v0, %v1430_v62  ;;  %v6132_v63 = vpack.i.bf16 %v7852_v29, %v8327_v38 }
 0x2ef   : > { %v1879_v42 = vsel %vm1852_vm10, %v1846_v57, %v8219_v39  ;;  %v3006_v5 = vsel %vm2980_vm14, %v2945_v16, %v3005_v23  ;;  %v3054_v21 = vsel %vm576_vm0, %v2947_v19, 0.0  ;;  %v2099_v57 = vpop.f32.mrf.mxu0 }
 0x2f0   : > { %v1912_v28 = vsel %vm1885_vm11, %v1879_v42, %v1616_v24  ;;  %v3007_v18 = vsel %vm2982_vm13, %v2946_v36, %v3006_v5  ;;  %v3130_v17 = vrot.slane %v3054_v21, 2  ;;  %v3085_v37 = vrot.slane %v3054_v21, 1 }
 0x2f1   : > { %5853 = vmatmul.msk.f32.gmra.mxu0 %vm1921_vm12, %v1912_v28  ;;  %6123 = vrot.lane.b32.xlu2 %v6122_v25, %s6558_s12  ;;  %v8317_v39 = vsel %vm576_vm0, 0.0, %v3007_v18 }
 0x2f2   : > { %6128 = vrot.lane.b32.xlu0 %v6127_v61, %s6557_s29  ;;  %6118 = vrot.lane.b32.xlu1 %v6117_v53, %s6559_s5  ;;  %v3129_v34 = vrot.slane %v8317_v39, 2  ;;  %v6142_v27 = vpack.i.bf16 %v7864_v20, %v8317_v39  ;;  %v3084_v15 = vrot.slane %v8317_v39, 1  ;;  %v8365_v61 = vld [vmem:[#allocation5] ss:$0 sm:$0xff] }
 0x2f3   : > { %v1135_v26 = vpop.permute.xlu2 %1134  ;;  %v2100_v23 = vadd.f32 %v8365_v61, %v2099_v57 }
 0x2f4   : > { %v1133_v41 = vpop.permute.xlu0 %1132  ;;  %v8324_v55 = vsel %vm9491_vm2, %v3129_v34, %v3130_v17 }
 0x2f5   : > { %v866_v22 = vpop.permute.xlu1 %865  ;;  %5926 = vmatmul.msk.f32.gmra.mxu3 %vm9538_vm1, %v8324_v55  ;;  %vm9540_vm1 = vcmask 1046528   ;;  %v6152_v6 = vpack.i.bf16 %v8327_v38, %v8324_v55  ;;  %v2155_v18 = vmax.f32 %v2100_v23, 0.0  ;;  %v2819_v23 = vld [vmem:[%s9470_s3 + $0x60] sm:$0xff] }
 0x2f6   : > { %v1683_v31 = vsel %vm1656_vm4, %v7719_v7, %v866_v22  ;;  %v8347_v7 = vsel %vm9540_vm1, %v3084_v15, %v3085_v37  ;;  %v2822_v15 = vld [vmem:[%s9470_s3 + $0x78] sm:$0xff]  ;;  %vm9541_vm1 = vmmov %vm9539_vm6 }
 0x2f7   : > { %v1715_v44 = vsel %vm1688_vm5, %v1683_v31, %v8237_v58  ;;  %v6147_v30 = vpack.i.bf16 %v8104_v49, %v8347_v7  ;;  %3344 = vmatpush.msra.mxu1 %v2822_v15 }
 0x2f8   : > { %v1748_v4 = vsel %vm9539_vm6, %v1715_v44, %v1133_v41  ;;  %v8372_v41 = vrot.slane %v2155_v18, 7  ;;  %v2838_v44 = vld [vmem:[%s9470_s3 + $0xf8] sm:$0xff] }
 0x2f9   : > { %6138 = vrot.lane.b32.xlu2 %v6137_v48, %s6558_s12  ;;  %3385 = vmatpush.msra.mxu2 %v2838_v44  ;;  %v2816_v44 = vld [vmem:[%s9470_s3 + $0x48] sm:$0xff] }
 0x2fa   : > { %6143 = vrot.lane.b32.xlu0 %v6142_v27, %s6557_s29  ;;  %6133 = vrot.lane.b32.xlu1 %v6132_v63, %s6559_s5 }
 0x2fb   : > { %v1434_v56 = vpop.permute.xlu2 %1433 }
 0x2fc   : > { %v1432_v20 = vpop.permute.xlu0 %1431 }
 0x2fd   : > { %v1235_v46 = vpop.permute.xlu1 %1234 }
 0x2fe   : > { %v1781_v24 = vsel %vm1753_vm7, %v1748_v4, %v1235_v46  ;;  %v2837_v4 = vld [vmem:[%s9470_s3 + $0xf0] sm:$0xff] }
 0x2ff   : > { %v1814_v58 = vsel %vm1786_vm8, %v1781_v24, %v8274_v40  ;;  %3386 = vmatpush.msra.mxu2 %v2837_v4  ;;  %v2815_v4 = vld [vmem:[%s9470_s3 + $0x40] sm:$0xff] }
 0x300   : > { %v1847_v60 = vsel %vm1819_vm9, %v1814_v58, %v1432_v20  ;;  %v2821_v20 = vld [vmem:[%s9470_s3 + $0x70] sm:$0xff] }
 0x301   : > { %6153 = vrot.lane.b32.xlu2 %v6152_v6, %s6558_s12  ;;  %3345 = vmatpush.msra.mxu1 %v2821_v20  ;;  %v2832_v20 = vld [vmem:[%s9470_s3 + $0xc8] sm:$0xff] }
 0x302   : > { %6148 = vrot.lane.b32.xlu1 %v6147_v30, %s6559_s5 }
 0x303   : > { %v870_v16 = vpop.permute.xlu2 %869 }
 0x304   : > { %v868_v51 = vpop.permute.xlu0 %867  ;;  %v1685_v37 = vsel %vm1656_vm4, %v7870_v43, %v870_v16 }
 0x305   : > { %v1525_v0 = vpop.permute.xlu1 %1524  ;;  %v1684_v40 = vsel %vm1656_vm4, %v7859_v13, %v868_v51  ;;  %v2102_v5 = vpop.f32.mrf.mxu0 }
 0x306   : > { %v1880_v62 = vsel %vm1852_vm10, %v1847_v60, %v1525_v0  ;;  %v2103_v58 = vadd.f32 %v8365_v61, %v2102_v5 }
 0x307   : > { %v1913_v45 = vsel %vm1885_vm11, %v1880_v62, %v1618_v54 }
 0x308   : > { %5854 = vmatmul.msk.f32.gmra.mxu0 %vm1921_vm12, %v1913_v45  ;;  %v2156_v57 = vmax.f32 %v2103_v58, 0.0  ;;  %v2814_v58 = vld [vmem:[%s9470_s3 + $0x38] sm:$0xff] }
 0x30b   : > { %v1239_v21 = vpop.permute.xlu2 %1238 }
 0x30c   : > { %v1237_v19 = vpop.permute.xlu0 %1236 }
 0x30d   : > { %v1039_v36 = vpop.permute.xlu1 %1038 }
 0x30e   : > { %v1716_v42 = vsel %vm1688_vm5, %v1684_v40, %v1039_v36 }
 0x30f   : > { %v1749_v25 = vsel %vm9539_vm6, %v1716_v42, %v1135_v26  ;;  %v2305_v26 = vsel %vm576_vm0, 0.0, %v8372_v41  ;;  %vm9542_vm6 = vcmask 1042434  }
 0x310   : > { %v1782_v53 = vsel %vm1753_vm7, %v1749_v25, %v1237_v19  ;;  %v2342_v24 = vmax.f32 %v8200_v12, %v2305_v26  ;;  %v2820_v12 = vld [vmem:[%s9470_s3 + $0x68] sm:$0xff]  ;;  %v2835_v25 = vld [vmem:[%s9470_s3 + $0xe0] sm:$0xff] }
 0x311   : > { %v2836_v19 = vld [vmem:[%s9470_s3 + $0xe8] sm:$0xff]  ;;  %3346 = vmatpush.msra.mxu1 %v2820_v12 }
 0x312   : > { %3387 = vmatpush.msra.mxu2 %v2836_v19  ;;  %v2813_v19 = vld [vmem:[%s9470_s3 + $0x30] sm:$0xff] }
 0x313   : > { %v1529_v63 = vpop.permute.xlu2 %1528  ;;  %3347 = vmatpush.msra.mxu1 %v2819_v23 }
 0x314   : > { %v1527_v28 = vpop.permute.xlu0 %1526  ;;  %3388 = vmatpush.msra.mxu2 %v2835_v25 }
 0x315   : > { %v1338_v54 = vpop.permute.xlu1 %1337 }
 0x316   : > { %v1815_v8 = vsel %vm1786_vm8, %v1782_v53, %v1338_v54  ;;  %v2818_v54 = vld [vmem:[%s9470_s3 + $0x58] sm:$0xff]  ;;  %v2230_v53 = vrot.slane %v2156_v57, 7 }
 0x317   : > { %v1848_v13 = vsel %vm1819_vm9, %v1815_v8, %v1434_v56  ;;  %3348 = vmatpush.msra.mxu1 %v2818_v54 }
 0x318   : > { %v1881_v22 = vsel %vm1852_vm10, %v1848_v13, %v1527_v28 }
 0x31b   : > { %v8411_v36 = vpop.permute.xlu2 %1042 }
 0x31c   : > { %v1041_v34 = vpop.permute.xlu0 %1040  ;;  %v2105_v17 = vpop.f32.mrf.mxu0 }
 0x31d   : > { %v2106_v47 = vadd.f32 %v8365_v61, %v2105_v17  ;;  %v1620_v27 = vpop.permute.xlu1 %1619  ;;  %v1717_v43 = vsel %vm1688_vm5, %v1685_v37, %v1041_v34  ;;  %v2817_v34 = vld [vmem:[%s9470_s3 + $0x50] sm:$0xff] }
 0x31e   : > { %v1914_v48 = vsel %vm1885_vm11, %v1881_v22, %v1620_v27  ;;  %v2833_v17 = vld [vmem:[%s9470_s3 + $0xd0] sm:$0xff]  ;;  %3349 = vmatpush.msra.mxu1 %v2817_v34 }
 0x31f   : > { %v2157_v31 = vmax.f32 %v2106_v47, 0.0  ;;  %5855 = vmatmul.msk.f32.gmra.mxu0 %vm1921_vm12, %v1914_v48 }
 0x320   : > { %3350 = vmatpush.msra.mxu1 %v2816_v44 }
 0x321   : > { %v8391_v46 = vrot.slane %v2157_v31, 7 }
 0x322   : > { %3351 = vmatpush.msra.mxu1 %v2815_v4 }
 0x323   : > { %v8399_v6 = vsel %vm576_vm0, 0.0, %v8391_v46  ;;  %v8459_v12 = vpop.permute.xlu2 %1341 }
 0x324   : > { %v1340_v30 = vpop.permute.xlu0 %1339  ;;  %v2366_v56 = vmax.f32 %v2342_v24, %v8399_v6  ;;  %3352 = vmatpush.msra.mxu1 %v2814_v58 }
 0x325   : > { %v1137_v51 = vpop.permute.xlu1 %1136 }
 0x326   : > { %v2421_v60 = vrot.slane %v2366_v56, 2  ;;  %v2422_v0 = vrot.slane %v2366_v56, 4  ;;  %v1750_v62 = vsel %vm9541_vm1, %v1717_v43, %v1137_v51  ;;  %v5899_v16 = vrot.slane %v2366_v56, 9  ;;  %3353 = vmatpush.msra.mxu1 %v2813_v19  ;;  %v2809_v19 = vld [vmem:[%s9470_s3 + $0x10] sm:$0xff] }
 0x327   : > { %v1783_v42 = vsel %vm1753_vm7, %v1750_v62, %v1239_v21  ;;  %v2834_v21 = vld [vmem:[%s9470_s3 + $0xd8] sm:$0xff]  ;;  %v2423_v47 = vrot.slane %v2366_v56, 6  ;;  %vm9543_vm1 = vcmask 1043459  }
 0x328   : > { %v5900_v45 = vrot.slane %v2421_v60, 9  ;;  %v5901_v40 = vrot.slane %v2422_v0, 9  ;;  %v2719_v18 = vmax.f32 %v2366_v56, %v5899_v16  ;;  %v1816_v8 = vsel %vm1786_vm8, %v1783_v42, %v1340_v30  ;;  %3389 = vmatpush.msra.mxu2 %v2834_v21  ;;  %v2831_v56 = vld [vmem:[%s9470_s3 + $0xc0] sm:$0xff]  ;;  %v2829_v42 = vld [vmem:[%s9470_s3 + $0xb0] sm:$0xff]  ;;  %v2812_v21 = vld [vmem:[%s9470_s3 + $0x28] sm:$0xff] }
 0x329   : > { %v5902_v43 = vrot.slane %v2423_v47, 9  ;;  %3354 = vmatpush.msra.mxu1 %v2812_v21 }
 0x32a   : > { %v2720_v28 = vmax.f32 %v2421_v60, %v5900_v45  ;;  %v2721_v22 = vmax.f32 %v2422_v0, %v5901_v40  ;;  %3390 = vmatpush.msra.mxu2 %v2833_v17  ;;  %v2783_v24 = vmax.f32 %v2719_v18, %v2421_v60  ;;  %v2811_v17 = vld [vmem:[%s9470_s3 + $0x20] sm:$0xff] }
 0x32b   : > { %v2722_v23 = vmax.f32 %v2423_v47, %v5902_v43  ;;  %3355 = vmatpush.msra.mxu1 %v2811_v17 }
 0x32c   : > { %v1622_v5 = vpop.permute.xlu0 %1621  ;;  %v2784_v26 = vmax.f32 %v2720_v28, %v2422_v0  ;;  %3391 = vmatpush.msra.mxu2 %v2832_v20  ;;  %v2785_v51 = vmax.f32 %v2721_v22, %v2423_v47  ;;  %v2948_v57 = vperm.slane %v2783_v24, 0  ;;  %v2827_v22 = vld [vmem:[%s9470_s3 + $0xa0] sm:$0xff] }
 0x32d   : > { %v1436_v13 = vpop.permute.xlu1 %1435 }
 0x32e   : > { %v1849_v27 = vsel %vm1819_vm9, %v1816_v8, %v1436_v13  ;;  %v2108_v48 = vpop.f32.mrf.mxu0  ;;  %v2949_v0 = vperm.slane %v2784_v26, 0  ;;  %3392 = vmatpush.msra.mxu2 %v2831_v56  ;;  %v2950_v28 = vperm.slane %v2785_v51, 0 }
 0x32f   : > { %v1882_v31 = vsel %vm1852_vm10, %v1849_v27, %v1529_v63  ;;  %v2109_v15 = vadd.f32 %v8365_v61, %v2108_v48  ;;  %v2231_v63 = vsel %vm576_vm0, %v8372_v41, %v2230_v53  ;;  %v2830_v41 = vld [vmem:[%s9470_s3 + $0xb8] sm:$0xff] }
 0x330   : > { %v1915_v37 = vsel %vm1885_vm11, %v1882_v31, %v1622_v5  ;;  %v2343_v60 = vmax.f32 %v8267_v33, %v2231_v63  ;;  %v2321_v33 = vsel %vm576_vm0, %v2230_v53, 0.0  ;;  %3393 = vmatpush.msra.mxu2 %v2830_v41  ;;  %v3008_v5 = vsel %vm9542_vm6, %v2949_v0, %v2948_v57  ;;  %v2828_v53 = vld [vmem:[%s9470_s3 + $0xa8] sm:$0xff]  ;;  %v2826_v63 = vld [vmem:[%s9470_s3 + $0x98] sm:$0xff]  ;;  %v1624_v0 = vpop.permute.xlu2 %1623  ;;  %v2825_v57 = vld [vmem:[%s9470_s3 + $0x90] sm:$0xff] }
 0x331   : > { %v2158_v30 = vmax.f32 %v2109_v15, 0.0  ;;  %5856 = vmatmul.msk.f32.gmra.mxu0 %vm1921_vm12, %v1915_v37  ;;  %v2810_v15 = vld [vmem:[%s9470_s3 + $0x18] sm:$0xff]  ;;  %v3009_v4 = vsel %vm9543_vm1, %v2950_v28, %v3008_v5  ;;  %vm9544_vm6 = vcmask 72704   ;;  %v2824_v28 = vld [vmem:[%s9470_s3 + $0x88] sm:$0xff]  ;;  %vm9545_vm1 = vcmask 261120  }
 0x332   : > { %3394 = vmatpush.msra.mxu2 %v2829_v42  ;;  %3356 = vmatpush.msra.mxu1 %v2810_v15 }
 0x333   : > { %v2233_v62 = vrot.slane %v2158_v30, 7 }
 0x334   : > { %v1139_v45 = vpop.permute.xlu0 %1138  ;;  %3395 = vmatpush.msra.mxu2 %v2828_v53  ;;  %3357 = vmatpush.msra.mxu1 %v2809_v19 }
 0x335   : > { %v8466_v16 = vsel %vm576_vm0, %v8391_v46, %v2233_v62  ;;  %v872_v40 = vpop.permute.xlu1 %871  ;;  %v8475_v54 = vsel %vm576_vm0, %v2233_v62, 0.0 }
 0x336   : > { %v2367_v25 = vmax.f32 %v2343_v60, %v8466_v16  ;;  %v1686_v46 = vsel %vm1656_vm4, %v7958_v32, %v872_v40  ;;  %v2344_v32 = vmax.f32 %v8280_v14, %v2321_v33  ;;  %3396 = vmatpush.msra.mxu2 %v2827_v22 }
 0x337   : > { %v1718_v14 = vsel %vm1688_vm5, %v1686_v46, %v8411_v36 }
 0x338   : > { %v2424_v18 = vrot.slane %v2367_v25, 2  ;;  %v2425_v8 = vrot.slane %v2367_v25, 4  ;;  %v2426_v13 = vrot.slane %v2367_v25, 6  ;;  %v5903_v34 = vrot.slane %v2367_v25, 9  ;;  %3397 = vmatpush.msra.mxu2 %v2826_v63 }
 0x339   : > { %v2786_v47 = vmax.f32 %v2722_v23, %v2367_v25  ;;  %v2368_v44 = vmax.f32 %v2344_v32, %v8475_v54  ;;  %v1751_v41 = vsel %vm9544_vm6, %v1718_v14, %v1139_v45  ;;  %v2808_v45 = vld [vmem:[%s9470_s3 + $0x8] sm:$0xff]  ;;  %vm9546_vm6 = vcmask 1046528  }
 0x33a   : > { %v5905_v27 = vrot.slane %v2425_v8, 9  ;;  %v5906_v48 = vrot.slane %v2426_v13, 9  ;;  %v2723_v26 = vmax.f32 %v2367_v25, %v5903_v34  ;;  %v5904_v31 = vrot.slane %v2424_v18, 9  ;;  %3398 = vmatpush.msra.mxu2 %v2825_v57  ;;  %3358 = vmatpush.msra.mxu1 %v2808_v45 }
 0x33b   : > { %v2951_v20 = vperm.slane %v2786_v47, 0 }
 0x33c   : > { %v8498_v37 = vpop.permute.xlu0 %1437  ;;  %v2725_v24 = vmax.f32 %v2425_v8, %v5905_v27  ;;  %v2726_v30 = vmax.f32 %v2426_v13, %v5906_v48  ;;  %v2724_v56 = vmax.f32 %v2424_v18, %v5904_v31  ;;  %v2787_v43 = vmax.f32 %v2723_v26, %v2424_v18  ;;  %3399 = vmatpush.msra.mxu2 %v2824_v28  ;;  %v2807_v18 = vld [vmem:[%s9470_s3] sm:$0xff] }
 0x33d   : > { %v1241_v58 = vpop.permute.xlu1 %1240  ;;  %v3010_v51 = vsel %vm2976_vm15, %v2951_v20, %v3009_v4  ;;  %3359 = vmatpush.msra.mxu1 %v2807_v18  ;;  %v1141_v20 = vpop.permute.xlu2 %1140 }
 0x33e   : > { %v2789_v36 = vmax.f32 %v2725_v24, %v2426_v13  ;;  %v2790_v62 = vmax.f32 %v2726_v30, %v2368_v44  ;;  %v2788_v60 = vmax.f32 %v2724_v56, %v2425_v8  ;;  %v1784_v40 = vsel %vm1753_vm7, %v1751_v41, %v1241_v58  ;;  %v2823_v8 = vld [vmem:[%s9470_s3 + $0x80] sm:$0xff] }
 0x33f   : > { %v2952_v42 = vperm.slane %v2787_v43, 0  ;;  %v1817_v46 = vsel %vm1786_vm8, %v1784_v40, %v8459_v12  ;;  %3400 = vmatpush.msra.mxu2 %v2823_v8 }
 0x340   : > { %v2954_v33 = vperm.slane %v2789_v36, 0  ;;  %v2955_v23 = vperm.slane %v2790_v62, 0  ;;  %v2953_v25 = vperm.slane %v2788_v60, 0  ;;  %v1850_v12 = vsel %vm1819_vm9, %v1817_v46, %v8498_v37 }
 0x341   : > { %v3011_v5 = vsel %vm2978_vm3, %v2952_v42, %v3010_v51 }
 0x342   : > { %v3012_v21 = vsel %vm2980_vm14, %v2953_v25, %v3011_v5  ;;  %v3055_v53 = vsel %vm576_vm0, %v2955_v23, 0.0 }
 0x343   : > { %v3013_v34 = vsel %vm2982_vm13, %v2954_v33, %v3012_v21  ;;  %v3133_v27 = vrot.slane %v3055_v53, 2  ;;  %v3088_v26 = vrot.slane %v3055_v53, 1 }
 0x344   : > { %v874_v13 = vpop.permute.xlu0 %873  ;;  %v8532_v17 = vsel %vm576_vm0, 0.0, %v3013_v34 }
 0x345   : > { %v1531_v32 = vpop.permute.xlu1 %1530  ;;  %v6157_v47 = vpack.i.bf16 %v8111_v9, %v8532_v17  ;;  %v3132_v22 = vrot.slane %v8532_v17, 2  ;;  %v3087_v31 = vrot.slane %v8532_v17, 1  ;;  %v1687_v24 = vsel %vm1656_vm4, %v7955_v35, %v874_v13  ;;  %v6094_v43 = vpop.permute.xlu2 %6093 }
 0x346   : > { %v1883_v48 = vsel %vm1852_vm10, %v1850_v12, %v1531_v32  ;;  %v6096_v35 = vunpack.i.h.bf16 %v6094_v43  ;;  %v6095_v40 = vunpack.i.l.bf16 %v6094_v43  ;;  %vm3292_vm4 = vcmask 785408   ;;  %v2111_v5 = vpop.f32.mrf.mxu0 }
 0x347   : > { %6158 = vrot.lane.b32.xlu0 %v6157_v47, %s6557_s29  ;;  %v1916_v15 = vsel %vm1885_vm11, %v1883_v48, %v1624_v0  ;;  %v8544_v44 = vsel %vm9491_vm2, %v3132_v22, %v3133_v27  ;;  %v8552_v14 = vsel %vm9546_vm6, %v3087_v31, %v3088_v26  ;;  %vm9547_vm2 = vcmask 72704  }
 0x348   : > { %5857 = vmatmul.msk.f32.gmra.mxu0 %vm1921_vm12, %v1916_v15  ;;  %v6167_v9 = vpack.i.bf16 %v8347_v7, %v8544_v44  ;;  %5927 = vmatmul.msk.f32.gmra.mxu3 %vm9545_vm1, %v8544_v44  ;;  %v6162_v4 = vpack.i.bf16 %v8317_v39, %v8552_v14  ;;  %v2112_v47 = vadd.f32 %v8365_v61, %v2111_v5  ;;  %vm9555_vm6 = vcmask 1042434  }
 0x34a   : > { %6168 = vrot.lane.b32.xlu2 %v6167_v9, %s6558_s12  ;;  %6163 = vrot.lane.b32.xlu1 %v6162_v4, %s6559_s5 }
 0x34c   : > { %v1243_v63 = vpop.permute.xlu0 %1242 }
 0x34d   : > { %v1045_v30 = vpop.permute.xlu1 %1044  ;;  %v6109_v23 = vpop.permute.xlu2 %6108 }
 0x34e   : > { %v1719_v56 = vsel %vm1688_vm5, %v1687_v24, %v1045_v30  ;;  %vm9548_vm5 = vmmov %vm9545_vm1  ;;  %v6111_v13 = vunpack.i.h.bf16 %v6109_v23  ;;  %v6110_v34 = vunpack.i.l.bf16 %v6109_v23  ;;  %v2159_v30 = vmax.f32 %v2112_v47, 0.0 }
 0x34f   : > { %v1752_v58 = vsel %vm9547_vm2, %v1719_v56, %v1141_v20  ;;  %vm3283_vm2 = vcmask 523264   ;;  %v3275_v28 = vsel %vm9548_vm5, 0.0, %v6096_v35  ;;  %vm9556_vm5 = vcmask 1043459  }
 0x350   : > { %v1785_v36 = vsel %vm1753_vm7, %v1752_v58, %v1243_v63  ;;  %vm9549_vm7 = vmmov %vm9545_vm1 }
 0x351   : > { %v3301_v21 = vsel %vm9549_vm7, %v8259_v10, %v6095_v40  ;;  %vm9557_vm7 = vcmask 1045504  }
 0x354   : > { %v6099_v51 = vpop.permute.xlu0 %6098 }
 0x355   : > { %v1344_v62 = vpop.permute.xlu1 %1343  ;;  %v6101_v42 = vunpack.i.h.bf16 %v6099_v51  ;;  %v6100_v33 = vunpack.i.l.bf16 %v6099_v51  ;;  %v6124_v27 = vpop.permute.xlu2 %6123 }
 0x356   : > { %v1818_v41 = vsel %vm1786_vm8, %v1785_v36, %v1344_v62  ;;  %vm9550_vm8 = vmmov %vm9545_vm1  ;;  %v6126_v56 = vunpack.i.h.bf16 %v6124_v27  ;;  %v6125_v43 = vunpack.i.l.bf16 %v6124_v27 }
 0x357   : > { %v1851_v60 = vsel %vm1819_vm9, %v1818_v41, %v8498_v37  ;;  %v3309_v53 = vsel %vm3283_vm2, %v3301_v21, %v6100_v33  ;;  %v3276_v31 = vsel %vm9550_vm8, %v8223_v52, %v6111_v13  ;;  %vm9551_vm9 = vmmov %vm9545_vm1  ;;  %v2235_v52 = vrot.slane %v2159_v30, 7 }
 0x358   : > { %v1884_v19 = vsel %vm1852_vm10, %v1851_v60, %v1531_v32  ;;  %v3302_v15 = vsel %vm9551_vm9, %v8251_v59, %v6110_v34  ;;  %vm9552_vm10 = vmmov %vm9545_vm1  ;;  %vm9558_vm8 = vcmask 1046528  }
 0x359   : > { %v1917_v57 = vsel %vm1885_vm11, %v1884_v19, %v1624_v0  ;;  %v3284_v0 = vsel %vm3283_vm2, %v3275_v28, %v6101_v42  ;;  %v3277_v60 = vsel %vm9552_vm10, %v7632_v3, %v6126_v56  ;;  %vm9553_vm11 = vmmov %vm9545_vm1 }
 0x35a   : > { %5858 = vmatmul.msk.f32.gmra.mxu0 %vm1921_vm12, %v1917_v57  ;;  %v3303_v19 = vsel %vm9553_vm11, %v8296_v50, %v6125_v43  ;;  %vm9554_vm12 = vmmov %vm9545_vm1 }
 0x35b   : > { %vm9559_vm9 = vmmov %vm9545_vm1 }
 0x35c   : > { %v6114_v25 = vpop.permute.xlu0 %6113  ;;  %v2114_v48 = vpop.f32.mrf.mxu0  ;;  %vm9560_vm10 = vmmov %vm9545_vm1 }
 0x35d   : > { %v6104_v45 = vpop.permute.xlu1 %6103  ;;  %v6116_v12 = vunpack.i.h.bf16 %v6114_v25  ;;  %v6115_v32 = vunpack.i.l.bf16 %v6114_v25  ;;  %v6139_v42 = vpop.permute.xlu2 %6138  ;;  %v2307_v25 = vsel %vm576_vm0, 0.0, %v2235_v52  ;;  %vm9561_vm11 = vmmov %vm9545_vm1 }
 0x35e   : > { %v6106_v46 = vunpack.i.h.bf16 %v6104_v45  ;;  %v6105_v37 = vunpack.i.l.bf16 %v6104_v45  ;;  %v6141_v3 = vunpack.i.h.bf16 %v6139_v42  ;;  %v6140_v5 = vunpack.i.l.bf16 %v6139_v42 }
 0x35f   : > { %v3285_v9 = vsel %vm3283_vm2, %v3276_v31, %v6116_v12  ;;  %v3310_v4 = vsel %vm3283_vm2, %v3302_v15, %v6115_v32 }
 0x360   : > { %v3293_v18 = vsel %vm3292_vm4, %v3284_v0, %v6106_v46  ;;  %v3317_v8 = vsel %vm3292_vm4, %v3309_v53, %v6105_v37  ;;  %v2345_v46 = vmax.f32 %v8399_v6, %v2307_v25  ;;  %v3278_v34 = vsel %vm9554_vm12, %v7852_v29, %v6141_v3  ;;  %vm9562_vm12 = vmmov %vm9555_vm6 }
 0x361   : > { %3360 = vmatmul.f32.vlgmr.msra.gmra.mxu1 %v3293_v18  ;;  %3401 = vmatmul.f32.vlgmr.msra.gmra.mxu2 %v3317_v8  ;;  %v3304_v12 = vsel %vm9545_vm1, %v8327_v38, %v6140_v5  ;;  %vm9563_vm1 = vmmov %vm9556_vm5 }
 0x364   : > { %v6129_v20 = vpop.permute.xlu0 %6128 }
 0x365   : > { %v6119_v22 = vpop.permute.xlu1 %6118  ;;  %v6131_v58 = vunpack.i.h.bf16 %v6129_v20  ;;  %v6130_v51 = vunpack.i.l.bf16 %v6129_v20 }
 0x366   : > { %v6121_v10 = vunpack.i.h.bf16 %v6119_v22  ;;  %v6120_v26 = vunpack.i.l.bf16 %v6119_v22 }
 0x367   : > { %v3286_v35 = vsel %vm3283_vm2, %v3277_v60, %v6131_v58  ;;  %v3311_v40 = vsel %vm3283_vm2, %v3303_v19, %v6130_v51 }
 0x368   : > { %v3294_v63 = vsel %vm3292_vm4, %v3285_v9, %v6121_v10  ;;  %v3318_v24 = vsel %vm3292_vm4, %v3310_v4, %v6120_v26  ;;  %v2115_v10 = vadd.f32 %v8365_v61, %v2114_v48 }
 0x369   : > { %3363 = vmatmul.f32.gmra.mxu1 %v3294_v63  ;;  %3404 = vmatmul.f32.gmra.mxu2 %v3318_v24 }
 0x36a   : > { %v2160_v15 = vmax.f32 %v2115_v10, 0.0 }
 0x36c   : > { %v6144_v45 = vpop.permute.xlu0 %6143  ;;  %v2236_v38 = vrot.slane %v2160_v15, 7 }
 0x36d   : > { %v6134_v36 = vpop.permute.xlu1 %6133  ;;  %v6146_v37 = vunpack.i.h.bf16 %v6144_v45  ;;  %v6145_v21 = vunpack.i.l.bf16 %v6144_v45 }
 0x36e   : > { %v6136_v62 = vunpack.i.h.bf16 %v6134_v36  ;;  %v6135_v59 = vunpack.i.l.bf16 %v6134_v36  ;;  %v2117_v41 = vpop.f32.mrf.mxu0  ;;  %v2237_v58 = vsel %vm576_vm0, %v2235_v52, %v2236_v38 }
 0x36f   : > { %v2118_v57 = vadd.f32 %v8365_v61, %v2117_v41  ;;  %v3287_v32 = vsel %vm3283_vm2, %v3278_v34, %v6146_v37  ;;  %v3312_v6 = vsel %vm3283_vm2, %v3304_v12, %v6145_v21  ;;  %v2346_v60 = vmax.f32 %v8466_v16, %v2237_v58 }
 0x370   : > { %v3295_v33 = vsel %vm3292_vm4, %v3286_v35, %v6136_v62  ;;  %v3319_v23 = vsel %vm3292_vm4, %v3311_v40, %v6135_v59  ;;  %v2323_v35 = vsel %vm576_vm0, %v2236_v38, 0.0 }
 0x371   : > { %v2161_v28 = vmax.f32 %v2118_v57, 0.0  ;;  %3366 = vmatmul.f32.gmra.mxu1 %v3295_v33  ;;  %3407 = vmatmul.f32.gmra.mxu2 %v3319_v23  ;;  %v2347_v16 = vmax.f32 %v8475_v54, %v2323_v35 }
 0x373   : > { %v2238_v50 = vrot.slane %v2161_v28, 7 }
 0x375   : > { %v8597_v0 = vsel %vm576_vm0, 0.0, %v2238_v50  ;;  %v6149_v53 = vpop.permute.xlu1 %6148 }
 0x376   : > { %v2369_v18 = vmax.f32 %v2345_v46, %v8597_v0  ;;  %v6151_v8 = vunpack.i.h.bf16 %v6149_v53  ;;  %v6150_v13 = vunpack.i.l.bf16 %v6149_v53 }
 0x378   : > { %v3296_v47 = vsel %vm3292_vm4, %v3287_v32, %v6151_v8  ;;  %v3320_v22 = vsel %vm3292_vm4, %v3312_v6, %v6150_v13  ;;  %v2427_v27 = vrot.slane %v2369_v18, 2  ;;  %v2428_v26 = vrot.slane %v2369_v18, 4 }
 0x379   : > { %3369 = vmatmul.f32.gmra.mxu1 %v3296_v47  ;;  %3410 = vmatmul.f32.gmra.mxu2 %v3320_v22  ;;  %v5907_v29 = vrot.slane %v2369_v18, 9  ;;  %v2429_v24 = vrot.slane %v2369_v18, 6 }
 0x37a   : > { %v5908_v31 = vrot.slane %v2427_v27, 9  ;;  %v5909_v20 = vrot.slane %v2428_v26, 9 }
 0x37b   : > { %v2727_v4 = vmax.f32 %v2369_v18, %v5907_v29  ;;  %v5910_v62 = vrot.slane %v2429_v24, 9 }
 0x37c   : > { %v2728_v9 = vmax.f32 %v2427_v27, %v5908_v31  ;;  %v2729_v30 = vmax.f32 %v2428_v26, %v5909_v20 }
 0x37d   : > { %v2791_v51 = vmax.f32 %v2727_v4, %v2427_v27  ;;  %v2730_v42 = vmax.f32 %v2429_v24, %v5910_v62  ;;  %v6154_v62 = vpop.permute.xlu2 %6153 }
 0x37e   : > { %v2792_v56 = vmax.f32 %v2728_v9, %v2428_v26  ;;  %v2793_v48 = vmax.f32 %v2729_v30, %v2429_v24 }
 0x37f   : > { %v2956_v19 = vperm.slane %v2791_v51, 0 }
 0x380   : > { %v2957_v59 = vperm.slane %v2792_v56, 0  ;;  %v2958_v33 = vperm.slane %v2793_v48, 0 }
 0x382   : > { %v3014_v52 = vsel %vm9555_vm6, %v2957_v59, %v2956_v19  ;;  %v6156_v59 = vunpack.i.h.bf16 %v6154_v62  ;;  %vm9566_vm6 = vmmov %vm9558_vm8 }
 0x383   : > { %v3015_v8 = vsel %vm9556_vm5, %v2958_v33, %v3014_v52  ;;  %vm9567_vm5 = vmmov %vm9559_vm9 }
 0x385   : > { %v2120_v63 = vpop.f32.mrf.mxu0 }
 0x386   : > { %v2121_v43 = vadd.f32 %v8365_v61, %v2120_v63 }
 0x388   : > { %v2162_v36 = vmax.f32 %v2121_v43, 0.0 }
 0x38a   : > { %v2239_v41 = vrot.slane %v2162_v36, 7 }
 0x38c   : > { %v8613_v57 = vsel %vm576_vm0, %v2238_v50, %v2239_v41  ;;  %v8619_v23 = vsel %vm576_vm0, %v2239_v41, 0.0  ;;  %v6155_v41 = vunpack.i.l.bf16 %v6154_v62 }
 0x38d   : > { %v2370_v40 = vmax.f32 %v2346_v60, %v8613_v57  ;;  %v2371_v53 = vmax.f32 %v2347_v16, %v8619_v23 }
 0x38f   : > { %v2430_v25 = vrot.slane %v2370_v40, 2  ;;  %v2431_v45 = vrot.slane %v2370_v40, 4  ;;  %v2432_v28 = vrot.slane %v2370_v40, 6  ;;  %v5911_v3 = vrot.slane %v2370_v40, 9 }
 0x390   : > { %v2794_v5 = vmax.f32 %v2730_v42, %v2370_v40 }
 0x391   : > { %v5913_v50 = vrot.slane %v2431_v45, 9  ;;  %v5914_v46 = vrot.slane %v2432_v28, 9  ;;  %v2731_v37 = vmax.f32 %v2370_v40, %v5911_v3  ;;  %v5912_v21 = vrot.slane %v2430_v25, 9 }
 0x392   : > { %v2959_v18 = vperm.slane %v2794_v5, 0 }
 0x393   : > { %v2733_v13 = vmax.f32 %v2431_v45, %v5913_v50  ;;  %v2734_v34 = vmax.f32 %v2432_v28, %v5914_v46  ;;  %v2732_v12 = vmax.f32 %v2430_v25, %v5912_v21  ;;  %v2795_v32 = vmax.f32 %v2731_v37, %v2430_v25 }
 0x394   : > { %v3016_v6 = vsel %vm2976_vm15, %v2959_v18, %v3015_v8  ;;  %v3279_v25 = vsel %vm9560_vm10, %v8104_v49, %v6156_v59  ;;  %vm9570_vm10 = vmmov %vm9567_vm5 }
 0x395   : > { %v2797_v47 = vmax.f32 %v2733_v13, %v2432_v28  ;;  %v2798_v22 = vmax.f32 %v2734_v34, %v2371_v53  ;;  %v2796_v27 = vmax.f32 %v2732_v12, %v2431_v45  ;;  %v2960_v54 = vperm.slane %v2795_v32, 0 }
 0x396   : > { %v3305_v45 = vsel %vm9561_vm11, %v8347_v7, %v6155_v41 }
 0x397   : > { %v2962_v10 = vperm.slane %v2797_v47, 0  ;;  %v2963_v26 = vperm.slane %v2798_v22, 0  ;;  %v2961_v31 = vperm.slane %v2796_v27, 0  ;;  %v3017_v15 = vsel %vm2978_vm3, %v2960_v54, %v3016_v6 }
 0x399   : > { %v3018_v29 = vsel %vm2980_vm14, %v2961_v31, %v3017_v15  ;;  %v3056_v20 = vsel %vm576_vm0, %v2963_v26, 0.0 }
 0x39a   : > { %v3019_v9 = vsel %vm2982_vm13, %v2962_v10, %v3018_v29  ;;  %v3091_v4 = vrot.slane %v3056_v20, 1  ;;  %v3136_v30 = vrot.slane %v3056_v20, 2 }
 0x39b   : > { %v8630_v38 = vsel %vm576_vm0, 0.0, %v3019_v9 }
 0x39c   : > { %v6172_v63 = vpack.i.bf16 %v8324_v55, %v8630_v38  ;;  %v3135_v24 = vrot.slane %v8630_v38, 2  ;;  %v3090_v56 = vrot.slane %v8630_v38, 1  ;;  %v2123_v36 = vpop.f32.mrf.mxu0 }
 0x39d   : > { %v2124_v35 = vadd.f32 %v8365_v61, %v2123_v36 }
 0x39e   : > { %6173 = vrot.lane.b32.xlu0 %v6172_v63, %s6557_s29  ;;  %v8638_v43 = vsel %vm9557_vm7, %v3135_v24, %v3136_v30  ;;  %v8641_v58 = vsel %vm9558_vm8, %v3090_v56, %v3091_v4  ;;  %vm9569_vm8 = vmmov %vm9563_vm1 }
 0x39f   : > { %v6182_v51 = vpack.i.bf16 %v8552_v14, %v8638_v43  ;;  %5928 = vmatmul.msk.f32.gmra.mxu3 %vm9559_vm9, %v8638_v43  ;;  %v6177_v55 = vpack.i.bf16 %v8532_v17, %v8641_v58  ;;  %v2163_v16 = vmax.f32 %v2124_v35, 0.0 }
 0x3a1   : > { %6183 = vrot.lane.b32.xlu2 %v6182_v51, %s6558_s12  ;;  %6178 = vrot.lane.b32.xlu1 %v6177_v55, %s6559_s5  ;;  %v2241_v46 = vrot.slane %v2163_v16, 7 }
 0x3a3   : > { %v2309_v49 = vsel %vm576_vm0, 0.0, %v2241_v46 }
 0x3a4   : > { %v2348_v7 = vmax.f32 %v8597_v0, %v2309_v49 }
 0x3ae   : > { %v2126_v40 = vpop.f32.mrf.mxu0 }
 0x3af   : > { %v2127_v34 = vadd.f32 %v8365_v61, %v2126_v40 }
 0x3b1   : > { %v2164_v47 = vmax.f32 %v2127_v34, 0.0 }
 0x3b3   : > { %v2242_v10 = vrot.slane %v2164_v47, 7 }
 0x3b5   : > { %v2243_v9 = vsel %vm576_vm0, %v2241_v46, %v2242_v10  ;;  %v2325_v41 = vsel %vm576_vm0, %v2242_v10, 0.0 }
 0x3b6   : > { %v2349_v55 = vmax.f32 %v8613_v57, %v2243_v9  ;;  %v2350_v57 = vmax.f32 %v8619_v23, %v2325_v41 }
 0x3b9   : > { %v6159_v48 = vpop.permute.xlu0 %6158 }
 0x3ba   : > { %v6161_v60 = vunpack.i.h.bf16 %v6159_v48  ;;  %v6160_v19 = vunpack.i.l.bf16 %v6159_v48  ;;  %v8669_v48 = vld [vmem:[#allocation7] ss:$0 sm:$0xff] }
 0x3bc   : > { %v6164_v42 = vpop.permute.xlu1 %6163  ;;  %v3288_v28 = vsel %vm3283_vm2, %v3279_v25, %v6161_v60  ;;  %v3313_v3 = vsel %vm3283_vm2, %v3305_v45, %v6160_v19 }
 0x3bd   : > { %v6166_v33 = vunpack.i.h.bf16 %v6164_v42  ;;  %v6165_v52 = vunpack.i.l.bf16 %v6164_v42 }
 0x3bf   : > { %v3297_v5 = vsel %vm3292_vm4, %v3288_v28, %v6166_v33  ;;  %v3321_v50 = vsel %vm3292_vm4, %v3313_v3, %v6165_v52 }
 0x3c0   : > { %3372 = vmatmul.f32.gmra.mxu1 %v3297_v5  ;;  %3413 = vmatmul.f32.gmra.mxu2 %v3321_v50 }
 0x3c5   : > { %v2129_v37 = vpop.f32.mrf.mxu0 }
 0x3c6   : > { %v2130_v21 = vadd.f32 %v8365_v61, %v2129_v37 }
 0x3c8   : > { %v2165_v53 = vmax.f32 %v2130_v21, 0.0 }
 0x3ca   : > { %v2244_v18 = vrot.slane %v2165_v53, 7 }
 0x3cc   : > { %v2310_v8 = vsel %vm576_vm0, 0.0, %v2244_v18 }
 0x3cd   : > { %v2372_v13 = vmax.f32 %v2348_v7, %v2310_v8 }
 0x3cf   : > { %v2433_v12 = vrot.slane %v2372_v13, 2  ;;  %v2434_v32 = vrot.slane %v2372_v13, 4  ;;  %v5915_v22 = vrot.slane %v2372_v13, 9  ;;  %v2435_v15 = vrot.slane %v2372_v13, 6 }
 0x3d1   : > { %v5916_v6 = vrot.slane %v2433_v12, 9  ;;  %v5917_v27 = vrot.slane %v2434_v32, 9  ;;  %v2735_v26 = vmax.f32 %v2372_v13, %v5915_v22  ;;  %v5918_v24 = vrot.slane %v2435_v15, 9  ;;  %v3443_v13 = vpop.f32.mrf.mxu3 }
 0x3d3   : > { %v2736_v54 = vmax.f32 %v2433_v12, %v5916_v6  ;;  %v2737_v29 = vmax.f32 %v2434_v32, %v5917_v27  ;;  %v2799_v4 = vmax.f32 %v2735_v26, %v2433_v12 }
 0x3d5   : > { %v2800_v20 = vmax.f32 %v2736_v54, %v2434_v32  ;;  %v2801_v30 = vmax.f32 %v2737_v29, %v2435_v15  ;;  %v2964_v36 = vperm.slane %v2799_v4, 0 }
 0x3d7   : > { %v2132_v31 = vpop.f32.mrf.mxu0  ;;  %v2965_v56 = vperm.slane %v2800_v20, 0  ;;  %v2966_v19 = vperm.slane %v2801_v30, 0 }
 0x3d8   : > { %v2133_v0 = vadd.f32 %v8365_v61, %v2132_v31  ;;  %v2738_v61 = vmax.f32 %v2435_v15, %v5918_v24 }
 0x3d9   : > { %v3020_v40 = vsel %vm9562_vm12, %v2965_v56, %v2964_v36  ;;  %v3446_v56 = vpop.f32.mrf.mxu3 }
 0x3da   : > { %v2166_v63 = vmax.f32 %v2133_v0, 0.0  ;;  %v3021_v49 = vsel %vm9563_vm1, %v2966_v19, %v3020_v40 }
 0x3dc   : > { %v2245_v51 = vrot.slane %v2166_v63, 7 }
 0x3de   : > { %v2246_v62 = vsel %vm576_vm0, %v2244_v18, %v2245_v51  ;;  %v3361_v59 = vpop.f32.mrf.mxu1  ;;  %v2326_v35 = vsel %vm576_vm0, %v2245_v51, 0.0 }
 0x3df   : > { %v2373_v60 = vmax.f32 %v2349_v55, %v2246_v62  ;;  %v3362_v45 = vadd.f32 %v8669_v48, %v3361_v59  ;;  %v2374_v46 = vmax.f32 %v2350_v57, %v2326_v35 }
 0x3e1   : > { %v2436_v42 = vrot.slane %v2373_v60, 2  ;;  %v2438_v33 = vrot.slane %v2373_v60, 6  ;;  %v5919_v52 = vrot.slane %v2373_v60, 9  ;;  %v2437_v25 = vrot.slane %v2373_v60, 4 }
 0x3e2   : > { %v2802_v28 = vmax.f32 %v2738_v61, %v2373_v60 }
 0x3e3   : > { %v5922_v3 = vrot.slane %v2438_v33, 9  ;;  %v5920_v16 = vrot.slane %v2436_v42, 9  ;;  %v5921_v5 = vrot.slane %v2437_v25, 9  ;;  %v2739_v50 = vmax.f32 %v2373_v60, %v5919_v52 }
 0x3e4   : > { %v3402_v37 = vpop.f32.mrf.mxu2  ;;  %v2967_v21 = vperm.slane %v2802_v28, 0 }
 0x3e5   : > { %v2742_v53 = vmax.f32 %v2438_v33, %v5922_v3  ;;  %v3403_v18 = vadd.f32 %v3402_v37, %v3362_v45  ;;  %v2740_v7 = vmax.f32 %v2436_v42, %v5920_v16  ;;  %v2741_v8 = vmax.f32 %v2437_v25, %v5921_v5  ;;  %v3449_v3 = vpop.f32.mrf.mxu3 }
 0x3e6   : > { %v3364_v34 = vpop.f32.mrf.mxu1  ;;  %v2803_v12 = vmax.f32 %v2739_v50, %v2436_v42  ;;  %v3022_v23 = vsel %vm2976_vm15, %v2967_v21, %v3021_v49  ;;  %v6202_v16 = vpack.i.bf16 %v8638_v43, %v9528_v11 }
 0x3e7   : > { %v2806_v32 = vmax.f32 %v2742_v53, %v2374_v46  ;;  %v3444_v6 = vadd.f32 %v3443_v13, %v3403_v18  ;;  %v2804_v47 = vmax.f32 %v2740_v7, %v2437_v25  ;;  %v2805_v22 = vmax.f32 %v2741_v8, %v2438_v33 }
 0x3e8   : > { %v2968_v27 = vperm.slane %v2803_v12, 0  ;;  %v3365_v29 = vadd.f32 %v8669_v48, %v3364_v34 }
 0x3e9   : > { %v2971_v54 = vperm.slane %v2806_v32, 0  ;;  %v3467_v10 = vmax.f32 %v3444_v6, 0.0  ;;  %v2969_v26 = vperm.slane %v2804_v47, 0  ;;  %v2970_v31 = vperm.slane %v2805_v22, 0 }
 0x3ea   : > { %v3023_v15 = vsel %vm2978_vm3, %v2968_v27, %v3022_v23  ;;  %vm9564_vm3 = vmmov %vm9557_vm7 }
 0x3eb   : > { %v3024_v20 = vsel %vm2980_vm14, %v2969_v26, %v3023_v15  ;;  %v3057_v0 = vsel %vm576_vm0, %v2971_v54, 0.0  ;;  %v3483_v63 = vrot.slane %v3467_v10, 7  ;;  %vm9568_vm7 = vmmov %vm9562_vm12 }
 0x3ec   : > { %v3405_v9 = vpop.f32.mrf.mxu2  ;;  %v3025_v4 = vsel %vm2982_vm13, %v2970_v31, %v3024_v20  ;;  %v3200_v36 = vrot.slane %v3057_v0, 2  ;;  %v3189_v41 = vrot.slane %v3057_v0, 1  ;;  %vm9565_vm13 = vmmov %vm9559_vm9  ;;  %vm3764_vm9 = vcmask 1044480  }
 0x3ed   : > { %v3406_v24 = vadd.f32 %v3405_v9, %v3365_v29  ;;  %v3049_v30 = vsel %vm576_vm0, 0.0, %v3025_v4  ;;  %v3499_v19 = vsel %vm576_vm0, 0.0, %v3483_v63  ;;  %v3507_v46 = vsel %vm576_vm0, %v3483_v63, 0.0  ;;  %v3452_v31 = vpop.f32.mrf.mxu3  ;;  %vm9571_vm11 = vmmov %vm9568_vm7 }
 0x3ee   : > { %v6187_v51 = vpack.i.bf16 %v8544_v44, %v3049_v30  ;;  %v3199_v55 = vrot.slane %v3049_v30, 2  ;;  %v3367_v59 = vpop.f32.mrf.mxu1  ;;  %v3188_v60 = vrot.slane %v3049_v30, 1  ;;  %v3515_v25 = vmax.f32 %v3499_v19, 0.0  ;;  %vm9572_vm12 = vmmov %vm9567_vm5 }
 0x3ef   : > { %v3447_v62 = vadd.f32 %v3446_v56, %v3406_v24  ;;  %v3368_v52 = vadd.f32 %v8669_v48, %v3367_v59  ;;  %v3516_v43 = vmax.f32 %v3507_v46, 0.0 }
 0x3f0   : > { %6188 = vrot.lane.b32.xlu0 %v6187_v51, %s6557_s29  ;;  %v3201_v61 = vsel %vm9564_vm3, %v3199_v55, %v3200_v36  ;;  %v8691_v42 = vsel %vm9566_vm6, %v3188_v60, %v3189_v41  ;;  %vm9573_vm3 = vmmov %vm9567_vm5 }
 0x3f1   : > { %v3468_v35 = vmax.f32 %v3447_v62, 0.0  ;;  %v6197_v40 = vpack.i.bf16 %v8641_v58, %v3201_v61  ;;  %5929 = vmatmul.msk.f32.gmra.mxu3 %vm9565_vm13, %v3201_v61  ;;  %v6192_v44 = vpack.i.bf16 %v8630_v38, %v8691_v42  ;;  %vm9574_vm13 = vmmov %vm9573_vm3 }
 0x3f2   : > { %vm9575_vm6 = vmmov %vm9573_vm3 }
 0x3f3   : > { %v3484_v33 = vrot.slane %v3468_v35, 7  ;;  %6198 = vrot.lane.b32.xlu2 %v6197_v40, %s6558_s12  ;;  %6193 = vrot.lane.b32.xlu1 %v6192_v44, %s6559_s5  ;;  %s6472_s12 = scalar_lea.hbm %s9478_s11, 2 }
 0x3f4   : > { %v3408_v57 = vpop.f32.mrf.mxu2  ;;  %p6474_p4 = scmp.lt.s32.totalorder %s6472_s12, %s6468_s25 }
 0x3f5   : > { %v3500_v45 = vsel %vm576_vm0, 0.0, %v3484_v33  ;;  %v3409_v28 = vadd.f32 %v3408_v57, %v3368_v52  ;;  %v3508_v53 = vsel %vm576_vm0, %v3484_v33, 0.0 }
 0x3f6   : > { %v3523_v5 = vmax.f32 %v3515_v25, %v3500_v45  ;;  %v3370_v18 = vpop.f32.mrf.mxu1  ;;  %v3524_v47 = vmax.f32 %v3516_v43, %v3508_v53  ;;  %p6475_p7 = por %p6474_p4, %p6473_p3 }
 0x3f7   : > { %v3450_v50 = vadd.f32 %v3449_v3, %v3409_v28  ;;  %v3371_v32 = vadd.f32 %v8669_v48, %v3370_v18 }
 0x3f8   : > { %v3535_v37 = vrot.slane %v3523_v5, 2  ;;  %v3536_v21 = vrot.slane %v3523_v5, 4  ;;  %v3537_v49 = vrot.slane %v3523_v5, 6  ;;  %6203 = vrot.lane.b32.xlu0 %v6202_v16, %s6557_s29  ;;  %v5931_v7 = vrot.slane %v3523_v5, 9  ;;  %v6169_v16 = vpop.permute.xlu2 %6168  ;;  %p6476_p8 = pnand %p6475_p7, %p6471_p2 }
 0x3f9   : > { %5930 = vmatmul.msk.f32.gmra.mxu3 %vm9567_vm5, %v6756_v2  ;;  %v3469_v13 = vmax.f32 %v3450_v50, 0.0  ;;  %v6171_v18 = vunpack.i.h.bf16 %v6169_v16  ;;  %vm9576_vm5 = vmmov %vm9573_vm3 }
 0x3fa   : > { %v5934_v8 = vrot.slane %v3537_v49, 9  ;;  %v5932_v34 = vrot.slane %v3535_v37, 9  ;;  %v5933_v11 = vrot.slane %v3536_v21, 9  ;;  %v3607_v12 = vmax.f32 %v3523_v5, %v5931_v7 }
 0x3fb   : > { %3177 = vrot.lane.b32.xlu2 %v3049_v30, %s6559_s5  ;;  %3264 = vrot.lane.b32.xlu1 %v6744_v1, %s6559_s5  ;;  %v3485_v10 = vrot.slane %v3469_v13, 7 }
 0x3fc   : > { %v3610_v23 = vmax.f32 %v3537_v49, %v5934_v8  ;;  %v3608_v6 = vmax.f32 %v3535_v37, %v5932_v34  ;;  %v3411_v22 = vpop.f32.mrf.mxu2  ;;  %v3609_v27 = vmax.f32 %v3536_v21, %v5933_v11  ;;  %v3623_v54 = vmax.f32 %v3607_v12, %v3535_v37 }
 0x3fd   : > { %v3412_v26 = vadd.f32 %v3411_v22, %v3371_v32  ;;  %v3501_v24 = vsel %vm576_vm0, 0.0, %v3485_v10  ;;  %v3509_v61 = vsel %vm576_vm0, %v3485_v10, 0.0  ;;  %v6170_v34 = vunpack.i.l.bf16 %v6169_v16  ;;  %v3647_v16 = vld [vmem:[#allocation8 + $0x40] sm:$0xff] }
 0x3fe   : > { %v3626_v15 = vmax.f32 %v3610_v23, %v3524_v47  ;;  %v3624_v29 = vmax.f32 %v3608_v6, %v3536_v21  ;;  %v3625_v20 = vmax.f32 %v3609_v27, %v3537_v49  ;;  %v3728_v9 = vperm.slane %v3623_v54, 0 }
 0x3ff   : > { %v3453_v0 = vadd.f32 %v3452_v31, %v3412_v26  ;;  %v3517_v62 = vmax.f32 %v3500_v45, %v3501_v24  ;;  %v3518_v25 = vmax.f32 %v3508_v53, %v3509_v61  ;;  %v3280_v22 = vsel %vm9570_vm10, %v8317_v39, %v6171_v18  ;;  %v3654_v24 = vld [vmem:[#allocation8 + $0x78] sm:$0xff]  ;;  %vm9578_vm10 = vmmov %vm9568_vm7 }
 0x400   : > { %v3729_v4 = vperm.slane %v3624_v29, 0  ;;  %v3730_v63 = vperm.slane %v3625_v20, 0  ;;  %v3731_v56 = vperm.slane %v3626_v15, 0  ;;  %v3306_v26 = vsel %vm9572_vm12, %v8552_v14, %v6170_v34  ;;  %3915 = vmatpush.msrb.mxu3 %v3654_v24  ;;  %v3650_v61 = vld [vmem:[#allocation8 + $0x58] sm:$0xff]  ;;  %v3641_v24 = vld [vmem:[#allocation8 + $0x10] sm:$0xff]  ;;  %vm9580_vm12 = vmmov %vm9568_vm7 }
 0x401   : > { %v3470_v30 = vmax.f32 %v3453_v0, 0.0  ;;  %v3646_v34 = vld [vmem:[#allocation8 + $0x38] sm:$0xff] }
 0x402   : > { %v3744_v51 = vsel %vm9568_vm7, %v3729_v4, %v3728_v9 }
 0x403   : > { %3775 = vrot.lane.b32.xlu2 %v6744_v1, %s6557_s29  ;;  %v3486_v55 = vrot.slane %v3470_v30, 7  ;;  %v3745_v36 = vsel %vm9569_vm8, %v3730_v63, %v3744_v51  ;;  %v3670_v30 = vld [vmem:[#allocation8 + $0xf8] sm:$0xff]  ;;  %v3669_v51 = vld [vmem:[#allocation8 + $0xf0] sm:$0xff]  ;;  %vm9577_vm8 = vmmov %vm9563_vm1 }
 0x404   : > { %v3746_v59 = vsel %vm2976_vm15, %v3731_v56, %v3745_v36  ;;  %v3653_v56 = vld [vmem:[#allocation8 + $0x70] sm:$0xff]  ;;  %3938 = vmatpush.msrb.mxu1 %v3670_v30  ;;  %v3668_v36 = vld [vmem:[#allocation8 + $0xe8] sm:$0xff] }
 0x405   : > { %v8717_v41 = vsel %vm576_vm0, 0.0, %v3486_v55  ;;  %v3760_v60 = vsel %vm576_vm0, 0.0, %v3746_v59  ;;  %v8726_v1 = vsel %vm576_vm0, %v3486_v55, 0.0  ;;  %3916 = vmatpush.msrb.mxu3 %v3653_v56  ;;  %v3652_v55 = vld [vmem:[#allocation8 + $0x68] sm:$0xff]  ;;  %v3651_v59 = vld [vmem:[#allocation8 + $0x60] sm:$0xff]  ;;  %v3657_v30 = vld [vmem:[#allocation8 + $0x90] sm:$0xff] }
 0x406   : > { %v3525_v19 = vmax.f32 %v3517_v62, %v8717_v41  ;;  %v8723_v35 = vsel %vm3764_vm9, %v3760_v60, 0.0  ;;  %v3526_v5 = vmax.f32 %v3518_v25, %v8726_v1  ;;  %3939 = vmatpush.msrb.mxu1 %v3669_v51  ;;  %v6184_v62 = vpop.permute.xlu2 %6183  ;;  %v3667_v60 = vld [vmem:[#allocation8 + $0xe0] sm:$0xff]  ;;  %v3640_v56 = vld [vmem:[#allocation8 + $0x8] sm:$0xff] }
 0x407   : > { %3795 = vrot.lane.b32.xlu0 %v8723_v35, %s6557_s29  ;;  %v3772_v49 = vrot.slane %v8723_v35, 1  ;;  %3917 = vmatpush.msrb.mxu3 %v3652_v55  ;;  %v6185_v25 = vunpack.i.l.bf16 %v6184_v62  ;;  %v3656_v51 = vld [vmem:[#allocation8 + $0x88] sm:$0xff]  ;;  %v3639_v55 = vld [vmem:[#allocation8] sm:$0xff] }
 0x408   : > { %v3538_v40 = vrot.slane %v3525_v19, 2  ;;  %v3539_v44 = vrot.slane %v3525_v19, 4  ;;  %v3540_v33 = vrot.slane %v3525_v19, 6  ;;  %v5935_v52 = vrot.slane %v3525_v19, 9  ;;  %3940 = vmatpush.msrb.mxu1 %v3668_v36  ;;  %v3655_v36 = vld [vmem:[#allocation8 + $0x80] sm:$0xff] }
 0x409   : > { %3918 = vmatpush.msrb.mxu3 %v3651_v59 }
 0x40a   : > { %v5938_v57 = vrot.slane %v3540_v33, 9  ;;  %v5936_v45 = vrot.slane %v3538_v40, 9  ;;  %v5937_v28 = vrot.slane %v3539_v44, 9  ;;  %v3611_v3 = vmax.f32 %v3525_v19, %v5935_v52  ;;  %3941 = vmatpush.msrb.mxu1 %v3667_v60  ;;  %v3666_v19 = vld [vmem:[#allocation8 + $0xd8] sm:$0xff] }
 0x40b   : > { %3919 = vmatpush.msrb.mxu3 %v3650_v61  ;;  %v6186_v52 = vunpack.i.h.bf16 %v6184_v62 }
 0x40c   : > { %v3614_v50 = vmax.f32 %v3540_v33, %v5938_v57  ;;  %v3612_v46 = vmax.f32 %v3538_v40, %v5936_v45  ;;  %v3613_v37 = vmax.f32 %v3539_v44, %v5937_v28  ;;  %v3627_v21 = vmax.f32 %v3611_v3, %v3538_v40  ;;  %v3649_v40 = vld [vmem:[#allocation8 + $0x50] sm:$0xff]  ;;  %3942 = vmatpush.msrb.mxu1 %v3666_v19  ;;  %v3648_v57 = vld [vmem:[#allocation8 + $0x48] sm:$0xff] }
 0x40d   : > { %v3664_v45 = vld [vmem:[#allocation8 + $0xc8] sm:$0xff]  ;;  %3920 = vmatpush.msrb.mxu3 %v3649_v40  ;;  %v3281_v18 = vsel %vm9573_vm3, %v8532_v17, %v6186_v52 }
 0x40e   : > { %v3630_v7 = vmax.f32 %v3614_v50, %v3526_v5  ;;  %v3628_v8 = vmax.f32 %v3612_v46, %v3539_v44  ;;  %v3629_v13 = vmax.f32 %v3613_v37, %v3540_v33  ;;  %v3732_v12 = vperm.slane %v3627_v21, 0  ;;  %v3665_v44 = vld [vmem:[#allocation8 + $0xd0] sm:$0xff]  ;;  %v3663_v5 = vld [vmem:[#allocation8 + $0xc0] sm:$0xff] }
 0x40f   : > { %3777 = vrot.lane.b32.xlu0 %v3772_v49, %s6557_s29  ;;  %3943 = vmatpush.msrb.mxu1 %v3665_v44 }
 0x410   : > { %v6174_v53 = vpop.permute.xlu0 %6173  ;;  %v3733_v23 = vperm.slane %v3628_v8, 0  ;;  %v3734_v32 = vperm.slane %v3629_v13, 0  ;;  %v3735_v6 = vperm.slane %v3630_v7, 0  ;;  %3921 = vmatpush.msrb.mxu3 %v3648_v57  ;;  %v3307_v7 = vsel %vm9574_vm13, %v8641_v58, %v6185_v25 }
 0x411   : > { %v6176_v11 = vunpack.i.h.bf16 %v6174_v53  ;;  %v6175_v43 = vunpack.i.l.bf16 %v6174_v53  ;;  %3944 = vmatpush.msrb.mxu1 %v3664_v45  ;;  %v3662_v53 = vld [vmem:[#allocation8 + $0xb8] sm:$0xff] }
 0x412   : > { %v3747_v27 = vsel %vm9571_vm11, %v3733_v23, %v3732_v12  ;;  %3922 = vmatpush.msrb.mxu3 %v3647_v16  ;;  %vm9579_vm11 = vmmov %vm9563_vm1 }
 0x413   : > { %v6179_v47 = vpop.permute.xlu1 %6178  ;;  %v3748_v31 = vsel %vm9563_vm1, %v3734_v32, %v3747_v27  ;;  %v3289_v15 = vsel %vm3283_vm2, %v3280_v22, %v6176_v11  ;;  %v3314_v29 = vsel %vm3283_vm2, %v3306_v26, %v6175_v43  ;;  %3945 = vmatpush.msrb.mxu1 %v3663_v5  ;;  %v3645_v32 = vld [vmem:[#allocation8 + $0x30] sm:$0xff]  ;;  %vm9581_vm1 = vmmov %vm9568_vm7 }
 0x414   : > { %v6181_v54 = vunpack.i.h.bf16 %v6179_v47  ;;  %v6180_v10 = vunpack.i.l.bf16 %v6179_v47  ;;  %v3749_v20 = vsel %vm2976_vm15, %v3735_v6, %v3748_v31  ;;  %v3661_v6 = vld [vmem:[#allocation8 + $0xb0] sm:$0xff]  ;;  %3923 = vmatpush.msrb.mxu3 %v3646_v34  ;;  %vm9582_vm3 = vmmov %vm9581_vm1 }
 0x415   : > { %v3761_v39 = vsel %vm576_vm0, 0.0, %v3749_v20  ;;  %3946 = vmatpush.msrb.mxu1 %v3662_v53  ;;  %v3659_v20 = vld [vmem:[#allocation8 + $0xa0] sm:$0xff]  ;;  %vm9583_vm13 = vmmov %vm9581_vm1 }
 0x416   : > { %v3298_v0 = vsel %vm3292_vm4, %v3289_v15, %v6181_v54  ;;  %v3322_v9 = vsel %vm3292_vm4, %v3314_v29, %v6180_v10  ;;  %v8748_v4 = vsel %vm3764_vm9, %v3761_v39, 0.0  ;;  %3924 = vmatpush.msrb.mxu3 %v3645_v32  ;;  %v3644_v54 = vld [vmem:[#allocation8 + $0x28] sm:$0xff]  ;;  %v3643_v29 = vld [vmem:[#allocation8 + $0x20] sm:$0xff]  ;;  %v3658_v39 = vld [vmem:[#allocation8 + $0x98] sm:$0xff] }
 0x417   : > { %3375 = vmatmul.f32.gmra.mxu1 %v3298_v0  ;;  %3416 = vmatmul.f32.gmra.mxu2 %v3322_v9  ;;  %v3773_v14 = vrot.slane %v8748_v4, 1  ;;  %v8754_v63 = vrot.slane %v8748_v4, 2  ;;  %v3660_v10 = vld [vmem:[#allocation8 + $0xa8] sm:$0xff]  ;;  %v3642_v9 = vld [vmem:[#allocation8 + $0x18] sm:$0xff] }
 0x418   : > { %3797 = vrot.lane.b32.xlu1 %v8748_v4, %s6557_s29  ;;  %3947 = vmatpush.msrb.mxu1 %v3661_v6 }
 0x419   : > { %3779 = vrot.lane.b32.xlu0 %v3773_v14, %s6557_s29  ;;  %3882 = vst [vmem:[#allocation1 + $0x20] ss:$2 sm:$0xff] %v8754_v63  ;;  %3925 = vmatpush.msrb.mxu3 %v3644_v54 }
 0x41a   : > { %3948 = vmatpush.msrb.mxu1 %v3660_v10 }
 0x41b   : > { %3926 = vmatpush.msrb.mxu3 %v3643_v29 }
 0x41c   : > { %3949 = vmatpush.msrb.mxu1 %v3659_v20 }
 0x41d   : > { %3927 = vmatpush.msrb.mxu3 %v3642_v9 }
 0x41e   : > { %3950 = vmatpush.msrb.mxu1 %v3658_v39 }
 0x41f   : > { %3928 = vmatpush.msrb.mxu3 %v3641_v24 }
 0x420   : > { %3951 = vmatpush.msrb.mxu1 %v3657_v30 }
 0x421   : > { %3815 = vrot.lane.b32.xlu0 %v8754_v63, %s6557_s29  ;;  %3929 = vmatpush.msrb.mxu3 %v3640_v56 }
 0x422   : > { %3952 = vmatpush.msrb.mxu1 %v3656_v51 }
 0x423   : > { %3930 = vmatpush.msrb.mxu3 %v3639_v55 }
 0x424   : > { %3953 = vmatpush.msrb.mxu1 %v3655_v36 }
 0x43d   : > { %v3373_v44 = vpop.f32.mrf.mxu1 }
 0x443   : > { %v3414_v45 = vpop.f32.mrf.mxu2 }
 0x44d   : > { %v6199_v50 = vpop.permute.xlu2 %6198 }
 0x44e   : > { %v6201_v11 = vunpack.i.h.bf16 %v6199_v50  ;;  %v6200_v43 = vunpack.i.l.bf16 %v6199_v50 }
 0x450   : > { %v3282_v22 = vsel %vm9575_vm6, %v8630_v38, %v6201_v11  ;;  %v3308_v27 = vsel %vm9576_vm5, %v8691_v42, %v6200_v43 }
 0x455   : > { %v3178_v0 = vpop.permute.xlu2 %3177 }
 0x45d   : > { %v3776_v62 = vpop.permute.xlu2 %3775 }
 0x45e   : > { %v8781_v61 = vsel %vm3283_vm2, 0.0, %v3776_v62 }
 0x462   : > { %v6189_v33 = vpop.permute.xlu0 %6188 }
 0x463   : > { %v6191_v28 = vunpack.i.h.bf16 %v6189_v33  ;;  %v6190_v3 = vunpack.i.l.bf16 %v6189_v33  ;;  %v3787_v33 = vrot.slane %v8723_v35, 2 }
 0x465   : > { %v6194_v46 = vpop.permute.xlu1 %6193  ;;  %v3290_v8 = vsel %vm3283_vm2, %v3281_v18, %v6191_v28  ;;  %v3315_v13 = vsel %vm3283_vm2, %v3307_v7, %v6190_v3  ;;  %v3374_v3 = vadd.f32 %v8669_v48, %v3373_v44 }
 0x466   : > { %v6196_v37 = vunpack.i.h.bf16 %v6194_v46  ;;  %v6195_v21 = vunpack.i.l.bf16 %v6194_v46  ;;  %v3455_v46 = vpop.f32.mrf.mxu3 }
 0x467   : > { %v3415_v50 = vadd.f32 %v3414_v45, %v3374_v3 }
 0x468   : > { %v3299_v12 = vsel %vm3292_vm4, %v3290_v8, %v6196_v37  ;;  %v3323_v23 = vsel %vm3292_vm4, %v3315_v13, %v6195_v21 }
 0x469   : > { %3378 = vmatmul.f32.gmra.mxu1 %v3299_v12  ;;  %3419 = vmatmul.f32.gmra.mxu2 %v3323_v23  ;;  %v3456_v37 = vadd.f32 %v3455_v46, %v3415_v50 }
 0x46a   : > { %v6204_v17 = vpop.permute.xlu0 %6203 }
 0x46b   : > { %v6206_v58 = vunpack.i.h.bf16 %v6204_v17  ;;  %v6205_v47 = vunpack.i.l.bf16 %v6204_v17  ;;  %v3471_v8 = vmax.f32 %v3456_v37, 0.0 }
 0x46d   : > { %v3265_v26 = vpop.permute.xlu1 %3264  ;;  %v3291_v31 = vsel %vm3283_vm2, %v3282_v22, %v6206_v58  ;;  %v3316_v15 = vsel %vm3283_vm2, %v3308_v27, %v6205_v47  ;;  %v3487_v53 = vrot.slane %v3471_v8, 7 }
 0x46e   : > { %v3300_v38 = vsel %vm3292_vm4, %v3291_v31, %v3178_v0  ;;  %v3324_v42 = vsel %vm3292_vm4, %v3316_v15, %v3265_v26  ;;  %vm3862_vm4 = vcmask 1043456   ;;  %v3458_v43 = vpop.f32.mrf.mxu3 }
 0x46f   : > { %v3503_v23 = vsel %vm576_vm0, 0.0, %v3487_v53  ;;  %v3511_v47 = vsel %vm576_vm0, %v3487_v53, 0.0 }
 0x470   : > { %v3519_v6 = vmax.f32 %v8717_v41, %v3503_v23  ;;  %v3520_v15 = vmax.f32 %v8726_v1, %v3511_v47 }
 0x471   : > { %3381 = vmatmul.f32.gmra.mxu1 %v3300_v38  ;;  %3422 = vmatmul.f32.gmra.mxu2 %v3324_v42 }
 0x479   : > { %v3796_v59 = vpop.permute.xlu0 %3795 }
 0x47a   : > { %v3832_v60 = vsel %vm3283_vm2, %v6756_v2, %v3796_v59 }
 0x47b   : > { %v3854_v19 = vrot.slane %v3832_v60, 4 }
 0x47d   : > { %v3863_v40 = vsel %vm3862_vm4, %v8781_v61, %v3854_v19 }
 0x47e   : > { %3874 = vst [vmem:[#allocation1] ss:$2 sm:$0xff] %v3863_v40 }
 0x481   : > { %v3778_v52 = vpop.permute.xlu0 %3777 }
 0x482   : > { %v3829_v16 = vsel %vm3283_vm2, %v8723_v35, %v3778_v52  ;;  %v4193_v35 = vld [vmem:[#allocation11 + $0x300] sm:$0xff] }
 0x48a   : > { %v3798_v25 = vpop.permute.xlu1 %3797 }
 0x48b   : > { %v3833_v57 = vsel %vm3283_vm2, %v3787_v33, %v3798_v25 }
 0x48c   : > { %v3856_v28 = vrot.slane %v3833_v57, 4 }
 0x48e   : > { %v3865_v5 = vsel %vm3862_vm4, %v3829_v16, %v3856_v28  ;;  %v3461_v28 = vpop.f32.mrf.mxu3 }
 0x48f   : > { %3876 = vst [vmem:[#allocation1 + $0x1] ss:$2 sm:$0xff] %v3865_v5 }
 0x494   : > { %v3376_v21 = vpop.f32.mrf.mxu1 }
 0x495   : > { %v3377_v13 = vadd.f32 %v8669_v48, %v3376_v21 }
 0x496   : > { %v3889_v18 = vld.sshfl [vmem:[#allocation1] sm:$0xff pattern:$0x75316420]  ;;  %v3890_v7 = vld.sshfl [vmem:[#allocation1 + $0x8] sm:$0xff pattern:$0x75316420] }
 0x497   : > { %3931 = vmatmul.f32.vlgmr.msrb.gmra.mxu3 %v3889_v18  ;;  %3954 = vmatmul.f32.vlgmr.msrb.gmra.mxu1 %v3890_v7  ;;  %v3464_v18 = vpop.f32.mrf.mxu3 }
 0x49a   : > { %v3417_v34 = vpop.f32.mrf.mxu2 }
 0x49b   : > { %v3418_v11 = vadd.f32 %v3417_v34, %v3377_v13 }
 0x49d   : > { %v3459_v12 = vadd.f32 %v3458_v43, %v3418_v11 }
 0x49f   : > { %v3472_v17 = vmax.f32 %v3459_v12, 0.0 }
 0x4a1   : > { %v3488_v32 = vrot.slane %v3472_v17, 7 }
 0x4a3   : > { %v3504_v58 = vsel %vm576_vm0, 0.0, %v3488_v32  ;;  %v8799_v27 = vsel %vm576_vm0, %v3488_v32, 0.0 }
 0x4a4   : > { %v3527_v22 = vmax.f32 %v3519_v6, %v3504_v58  ;;  %v3528_v41 = vmax.f32 %v3520_v15, %v8799_v27 }
 0x4a6   : > { %v3541_v54 = vrot.slane %v3527_v22, 2  ;;  %v3542_v10 = vrot.slane %v3527_v22, 4  ;;  %v3543_v26 = vrot.slane %v3527_v22, 6  ;;  %v5939_v31 = vrot.slane %v3527_v22, 9 }
 0x4a8   : > { %v5942_v29 = vrot.slane %v3543_v26, 9  ;;  %v5940_v20 = vrot.slane %v3541_v54, 9  ;;  %v5941_v0 = vrot.slane %v3542_v10, 9  ;;  %v3615_v9 = vmax.f32 %v3527_v22, %v5939_v31 }
 0x4aa   : > { %v3618_v39 = vmax.f32 %v3543_v26, %v5942_v29  ;;  %v3616_v38 = vmax.f32 %v3541_v54, %v5940_v20  ;;  %v3617_v42 = vmax.f32 %v3542_v10, %v5941_v0  ;;  %v3631_v24 = vmax.f32 %v3615_v9, %v3541_v54 }
 0x4ac   : > { %v3634_v30 = vmax.f32 %v3618_v39, %v3528_v41  ;;  %v3632_v56 = vmax.f32 %v3616_v38, %v3542_v10  ;;  %v3633_v51 = vmax.f32 %v3617_v42, %v3543_v26  ;;  %v3736_v55 = vperm.slane %v3631_v24, 0 }
 0x4ae   : > { %v3737_v36 = vperm.slane %v3632_v56, 0  ;;  %v3738_v62 = vperm.slane %v3633_v51, 0  ;;  %v3739_v59 = vperm.slane %v3634_v30, 0 }
 0x4b0   : > { %v3750_v60 = vsel %vm9568_vm7, %v3737_v36, %v3736_v55 }
 0x4b1   : > { %v3751_v1 = vsel %vm9577_vm8, %v3738_v62, %v3750_v60 }
 0x4b2   : > { %v3752_v19 = vsel %vm2976_vm15, %v3739_v59, %v3751_v1  ;;  %v3686_v1 = vld [vmem:[#allocation8 + $0x178] sm:$0xff] }
 0x4b3   : > { %v3762_v40 = vsel %vm576_vm0, 0.0, %v3752_v19  ;;  %v3685_v19 = vld [vmem:[#allocation8 + $0x170] sm:$0xff]  ;;  %3961 = vmatpush.msrb.mxu2 %v3686_v1 }
 0x4b4   : > { %v8808_v44 = vsel %vm3764_vm9, %v3762_v40, 0.0  ;;  %v3702_v40 = vld [vmem:[#allocation8 + $0x1f8] sm:$0xff] }
 0x4b5   : > { %3799 = vrot.lane.b32.xlu1 %v8808_v44, %s6557_s29  ;;  %v8813_v52 = vrot.slane %v8808_v44, 2  ;;  %v3774_v25 = vrot.slane %v8808_v44, 1  ;;  %3984 = vmatpush.msra.mxu3 %v3702_v40  ;;  %v4350_v40 = vld [vmem:[#allocation11 + $0x7e8] sm:$0xff] }
 0x4b6   : > { %3962 = vmatpush.msrb.mxu2 %v3685_v19  ;;  %4896 = vmatpush.msrb.mxu0 %v4350_v40  ;;  %v4138_v40 = vld [vmem:[#allocation11 + $0x148] sm:$0xff] }
 0x4b7   : > { %3884 = vst [vmem:[#allocation1 + $0x21] ss:$2 sm:$0xff] %v8813_v52 }
 0x4bd   : > { %3781 = vrot.lane.b32.xlu1 %v3774_v25, %s6557_s29 }
 0x4e6   : > { %v3379_v57 = vpop.f32.mrf.mxu1 }
 0x4e7   : > { %v3380_v45 = vadd.f32 %v8669_v48, %v3379_v57  ;;  %v3701_v57 = vld [vmem:[#allocation8 + $0x1f0] sm:$0xff] }
 0x4e8   : > { %3985 = vmatpush.msra.mxu3 %v3701_v57  ;;  %v4342_v57 = vld [vmem:[#allocation11 + $0x7a8] sm:$0xff] }
 0x4e9   : > { %4897 = vmatpush.msrb.mxu0 %v4342_v57  ;;  %v4139_v57 = vld [vmem:[#allocation11 + $0x150] sm:$0xff] }
 0x4ec   : > { %v3420_v3 = vpop.f32.mrf.mxu2 }
 0x4ed   : > { %v3421_v16 = vadd.f32 %v3420_v3, %v3380_v45  ;;  %v3684_v45 = vld [vmem:[#allocation8 + $0x168] sm:$0xff]  ;;  %v3683_v3 = vld [vmem:[#allocation8 + $0x160] sm:$0xff] }
 0x4ee   : > { %v3382_v50 = vpop.f32.mrf.mxu1  ;;  %3963 = vmatpush.msrb.mxu2 %v3684_v45  ;;  %v4334_v45 = vld [vmem:[#allocation11 + $0x768] sm:$0xff] }
 0x4ef   : > { %v3462_v5 = vadd.f32 %v3461_v28, %v3421_v16  ;;  %v3383_v37 = vadd.f32 %v8669_v48, %v3382_v50  ;;  %v3700_v28 = vld [vmem:[#allocation8 + $0x1e8] sm:$0xff]  ;;  %v3699_v16 = vld [vmem:[#allocation8 + $0x1e0] sm:$0xff]  ;;  %v3698_v50 = vld [vmem:[#allocation8 + $0x1d8] sm:$0xff]  ;;  %4898 = vmatpush.msrb.mxu0 %v4334_v45 }
 0x4f0   : > { %3986 = vmatpush.msra.mxu3 %v3700_v28  ;;  %3964 = vmatpush.msrb.mxu2 %v3683_v3  ;;  %v4130_v45 = vld [vmem:[#allocation11 + $0x108] sm:$0xff] }
 0x4f1   : > { %v3473_v46 = vmax.f32 %v3462_v5, 0.0  ;;  %v3682_v5 = vld [vmem:[#allocation8 + $0x158] sm:$0xff] }
 0x4f2   : > { %3987 = vmatpush.msra.mxu3 %v3699_v16  ;;  %3965 = vmatpush.msrb.mxu2 %v3682_v5  ;;  %v4217_v16 = vld [vmem:[#allocation11 + $0x3c0] sm:$0xff]  ;;  %v4218_v5 = vld [vmem:[#allocation11 + $0x3c8] sm:$0xff] }
 0x4f3   : > { %v3489_v7 = vrot.slane %v3473_v46, 7  ;;  %v3681_v46 = vld [vmem:[#allocation8 + $0x150] sm:$0xff] }
 0x4f4   : > { %v3423_v21 = vpop.f32.mrf.mxu2  ;;  %3988 = vmatpush.msra.mxu3 %v3698_v50  ;;  %3966 = vmatpush.msrb.mxu2 %v3681_v46  ;;  %v4219_v50 = vld [vmem:[#allocation11 + $0x3d0] sm:$0xff] }
 0x4f5   : > { %v3424_v8 = vadd.f32 %v3423_v21, %v3383_v37  ;;  %v3505_v34 = vsel %vm576_vm0, 0.0, %v3489_v7  ;;  %v3513_v23 = vsel %vm576_vm0, %v3489_v7, 0.0  ;;  %v3697_v37 = vld [vmem:[#allocation8 + $0x1d0] sm:$0xff]  ;;  %v3680_v21 = vld [vmem:[#allocation8 + $0x148] sm:$0xff] }
 0x4f6   : > { %v3521_v43 = vmax.f32 %v3504_v58, %v3505_v34  ;;  %v3522_v54 = vmax.f32 %v8799_v27, %v3513_v23  ;;  %3989 = vmatpush.msra.mxu3 %v3697_v37  ;;  %3967 = vmatpush.msrb.mxu2 %v3680_v21  ;;  %v4210_v37 = vld [vmem:[#allocation11 + $0x388] sm:$0xff]  ;;  %v4211_v21 = vld [vmem:[#allocation11 + $0x390] sm:$0xff] }
 0x4f7   : > { %v3465_v13 = vadd.f32 %v3464_v18, %v3424_v8 }
 0x4f9   : > { %v3474_v53 = vmax.f32 %v3465_v13, 0.0 }
 0x4fb   : > { %v3490_v11 = vrot.slane %v3474_v53, 7 }
 0x4fd   : > { %v3506_v12 = vsel %vm576_vm0, 0.0, %v3490_v11  ;;  %v3514_v32 = vsel %vm576_vm0, %v3490_v11, 0.0 }
 0x4fe   : > { %v3529_v17 = vmax.f32 %v3521_v43, %v3506_v12  ;;  %v3530_v29 = vmax.f32 %v3522_v54, %v3514_v32  ;;  %v3696_v32 = vld [vmem:[#allocation8 + $0x1c8] sm:$0xff]  ;;  %v3710_v54 = vld [vmem:[#allocation8 + $0x238] sm:$0xff] }
 0x4ff   : > { %3990 = vmatpush.msra.mxu3 %v3696_v32  ;;  %4015 = vmatpush.msra.mxu1 %v3710_v54  ;;  %v4178_v32 = vld [vmem:[#allocation11 + $0x288] sm:$0xff]  ;;  %v4169_v54 = vld [vmem:[#allocation11 + $0x240] sm:$0xff] }
 0x500   : > { %v3544_v6 = vrot.slane %v3529_v17, 2  ;;  %v3545_v47 = vrot.slane %v3529_v17, 4  ;;  %v3546_v48 = vrot.slane %v3529_v17, 6  ;;  %v5943_v22 = vrot.slane %v3529_v17, 9 }
 0x502   : > { %v5946_v10 = vrot.slane %v3546_v48, 9  ;;  %v5944_v26 = vrot.slane %v3544_v6, 9  ;;  %v5945_v31 = vrot.slane %v3545_v47, 9  ;;  %v3619_v15 = vmax.f32 %v3529_v17, %v5943_v22  ;;  %v3679_v17 = vld [vmem:[#allocation8 + $0x140] sm:$0xff]  ;;  %v3694_v22 = vld [vmem:[#allocation8 + $0x1b8] sm:$0xff] }
 0x503   : > { %3968 = vmatpush.msrb.mxu2 %v3679_v17  ;;  %v4177_v17 = vld [vmem:[#allocation11 + $0x280] sm:$0xff] }
 0x504   : > { %v3622_v20 = vmax.f32 %v3546_v48, %v5946_v10  ;;  %v3620_v58 = vmax.f32 %v3544_v6, %v5944_v26  ;;  %v3621_v0 = vmax.f32 %v3545_v47, %v5945_v31  ;;  %v3635_v9 = vmax.f32 %v3619_v15, %v3544_v6  ;;  %v3678_v6 = vld [vmem:[#allocation8 + $0x138] sm:$0xff]  ;;  %v3676_v10 = vld [vmem:[#allocation8 + $0x128] sm:$0xff]  ;;  %v3693_v26 = vld [vmem:[#allocation8 + $0x1b0] sm:$0xff] }
 0x505   : > { %3969 = vmatpush.msrb.mxu2 %v3678_v6  ;;  %v3692_v31 = vld [vmem:[#allocation8 + $0x1a8] sm:$0xff] }
 0x506   : > { %v3638_v41 = vmax.f32 %v3622_v20, %v3530_v29  ;;  %v3636_v39 = vmax.f32 %v3620_v58, %v3545_v47  ;;  %v3637_v38 = vmax.f32 %v3621_v0, %v3546_v48  ;;  %v3740_v42 = vperm.slane %v3635_v9, 0  ;;  %v3695_v47 = vld [vmem:[#allocation8 + $0x1c0] sm:$0xff]  ;;  %v3677_v48 = vld [vmem:[#allocation8 + $0x130] sm:$0xff]  ;;  %v3708_v15 = vld [vmem:[#allocation8 + $0x228] sm:$0xff] }
 0x507   : > { %3991 = vmatpush.msra.mxu3 %v3695_v47  ;;  %3970 = vmatpush.msrb.mxu2 %v3677_v48  ;;  %v3674_v29 = vld [vmem:[#allocation8 + $0x118] sm:$0xff]  ;;  %v3691_v20 = vld [vmem:[#allocation8 + $0x1a0] sm:$0xff]  ;;  %v3673_v0 = vld [vmem:[#allocation8 + $0x110] sm:$0xff] }
 0x508   : > { %v3741_v24 = vperm.slane %v3636_v39, 0  ;;  %v3742_v30 = vperm.slane %v3637_v38, 0  ;;  %v3743_v56 = vperm.slane %v3638_v41, 0  ;;  %v3707_v58 = vld [vmem:[#allocation8 + $0x220] sm:$0xff]  ;;  %v3690_v9 = vld [vmem:[#allocation8 + $0x198] sm:$0xff]  ;;  %v3672_v39 = vld [vmem:[#allocation8 + $0x108] sm:$0xff] }
 0x509   : > { %3992 = vmatpush.msra.mxu3 %v3694_v22  ;;  %3971 = vmatpush.msrb.mxu2 %v3676_v10  ;;  %v3706_v41 = vld [vmem:[#allocation8 + $0x218] sm:$0xff]  ;;  %v3689_v38 = vld [vmem:[#allocation8 + $0x190] sm:$0xff] }
 0x50a   : > { %v3753_v51 = vsel %vm9578_vm10, %v3741_v24, %v3740_v42  ;;  %v3705_v42 = vld [vmem:[#allocation8 + $0x210] sm:$0xff]  ;;  %v3671_v24 = vld [vmem:[#allocation8 + $0x100] sm:$0xff] }
 0x50b   : > { %v3754_v27 = vsel %vm9579_vm11, %v3742_v30, %v3753_v51  ;;  %3993 = vmatpush.msra.mxu3 %v3693_v26  ;;  %v3688_v30 = vld [vmem:[#allocation8 + $0x188] sm:$0xff]  ;;  %v3687_v51 = vld [vmem:[#allocation8 + $0x180] sm:$0xff]  ;;  %v3893_v48 = vld.sshfl [vmem:[#allocation1 + $0x20] sm:$0xff pattern:$0x75316420] }
 0x50c   : > { %v3755_v55 = vsel %vm2976_vm15, %v3743_v56, %v3754_v27  ;;  %v3704_v56 = vld [vmem:[#allocation8 + $0x208] sm:$0xff]  ;;  %v3703_v27 = vld [vmem:[#allocation8 + $0x200] sm:$0xff]  ;;  %v4179_v22 = vld [vmem:[#allocation11 + $0x290] sm:$0xff] }
 0x50d   : > { %v3763_v36 = vsel %vm576_vm0, 0.0, %v3755_v55  ;;  %3994 = vmatpush.msra.mxu3 %v3692_v31  ;;  %v4170_v10 = vld [vmem:[#allocation11 + $0x248] sm:$0xff] }
 0x50e   : > { %v8832_v62 = vsel %vm3764_vm9, %v3763_v36, 0.0  ;;  %v4310_v26 = vld [vmem:[#allocation11 + $0x6a8] sm:$0xff] }
 0x50f   : > { %3801 = vrot.lane.b32.xlu2 %v8832_v62, %s6557_s29  ;;  %v3807_v59 = vrot.slane %v8832_v62, 1  ;;  %v3812_v60 = vrot.slane %v8832_v62, 2  ;;  %3995 = vmatpush.msra.mxu3 %v3691_v20  ;;  %v4162_v31 = vld [vmem:[#allocation11 + $0x208] sm:$0xff] }
 0x510   : > { %v4294_v20 = vld [vmem:[#allocation11 + $0x628] sm:$0xff] }
 0x511   : > { %3825 = vrot.lane.b32.xlu1 %v3807_v59, %s6557_s29  ;;  %3819 = vrot.lane.b32.xlu0 %v3812_v60, %s6557_s29 }
 0x512   : > { %3996 = vmatpush.msra.mxu3 %v3690_v9  ;;  %v4145_v9 = vld [vmem:[#allocation11 + $0x180] sm:$0xff] }
 0x514   : > { %3997 = vmatpush.msra.mxu3 %v3689_v38 }
 0x516   : > { %3998 = vmatpush.msra.mxu3 %v3688_v30 }
 0x517   : > { %3813 = vrot.lane.b32.xlu2 %v3787_v33, %s6557_s29  ;;  %v3780_v33 = vpop.permute.xlu0 %3779 }
 0x518   : > { %v8853_v13 = vsel %vm3283_vm2, %v8748_v4, %v3780_v33  ;;  %v3709_v4 = vld [vmem:[#allocation8 + $0x230] sm:$0xff]  ;;  %3999 = vmatpush.msra.mxu3 %v3687_v51 }
 0x519   : > { %4016 = vmatpush.msra.mxu1 %v3709_v4  ;;  %v3855_v28 = vrot.slane %v8853_v13, 4  ;;  %v4171_v4 = vld [vmem:[#allocation11 + $0x250] sm:$0xff]  ;;  %v4286_v51 = vld [vmem:[#allocation11 + $0x5e8] sm:$0xff] }
 0x51a   : > { %4630 = vmatpush.msrb.mxu3 %v4218_v5  ;;  %v4122_v5 = vld [vmem:[#allocation11 + $0xc8] sm:$0xff] }
 0x51b   : > { %4017 = vmatpush.msra.mxu1 %v3708_v15  ;;  %v4302_v15 = vld [vmem:[#allocation11 + $0x668] sm:$0xff] }
 0x51c   : > { %4631 = vmatpush.msrb.mxu3 %v4210_v37  ;;  %v4114_v37 = vld [vmem:[#allocation11 + $0x88] sm:$0xff] }
 0x51d   : > { %4018 = vmatpush.msra.mxu1 %v3707_v58 }
 0x51f   : > { %3817 = vrot.lane.b32.xlu2 %v8813_v52, %s6557_s29  ;;  %v3816_v53 = vpop.permute.xlu0 %3815  ;;  %4019 = vmatpush.msra.mxu1 %v3706_v41  ;;  %v3861_v41 = vrot.slane %v8781_v61, 4 }
 0x521   : > { %4020 = vmatpush.msra.mxu1 %v3705_v42  ;;  %v4146_v42 = vld [vmem:[#allocation11 + $0x188] sm:$0xff] }
 0x523   : > { %4021 = vmatpush.msra.mxu1 %v3704_v56  ;;  %v4147_v56 = vld [vmem:[#allocation11 + $0x190] sm:$0xff] }
 0x525   : > { %4022 = vmatpush.msra.mxu1 %v3703_v27 }
 0x527   : > { %v3800_v18 = vpop.permute.xlu1 %3799  ;;  %4650 = vmatpush.msrb.mxu1 %v4219_v50  ;;  %v4123_v50 = vld [vmem:[#allocation11 + $0xd0] sm:$0xff] }
 0x528   : > { %v3834_v7 = vsel %vm3283_vm2, %v8754_v63, %v3800_v18  ;;  %v3837_v63 = vsel %vm3283_vm2, %v3773_v14, %v3816_v53  ;;  %v3675_v14 = vld [vmem:[#allocation8 + $0x120] sm:$0xff]  ;;  %v4195_v53 = vld [vmem:[#allocation11 + $0x310] sm:$0xff] }
 0x529   : > { %v3858_v8 = vrot.slane %v3834_v7, 4  ;;  %3972 = vmatpush.msrb.mxu2 %v3675_v14  ;;  %v4201_v18 = vld [vmem:[#allocation11 + $0x340] sm:$0xff]  ;;  %v4202_v7 = vld [vmem:[#allocation11 + $0x348] sm:$0xff]  ;;  %4651 = vmatpush.msrb.mxu1 %v4211_v21  ;;  %v4115_v21 = vld [vmem:[#allocation11 + $0x90] sm:$0xff] }
 0x52a   : > { %4632 = vmatpush.msrb.mxu3 %v4202_v7  ;;  %v4161_v14 = vld [vmem:[#allocation11 + $0x200] sm:$0xff]  ;;  %v4106_v7 = vld [vmem:[#allocation11 + $0x48] sm:$0xff] }
 0x52b   : > { %v3867_v34 = vsel %vm3862_vm4, %v8853_v13, %v3858_v8  ;;  %3973 = vmatpush.msrb.mxu2 %v3674_v29  ;;  %v4203_v8 = vld [vmem:[#allocation11 + $0x350] sm:$0xff]  ;;  %v4153_v29 = vld [vmem:[#allocation11 + $0x1c0] sm:$0xff] }
 0x52c   : > { %3886 = vst [vmem:[#allocation1 + $0x30] ss:$2 sm:$0xff] %v3867_v34  ;;  %4652 = vmatpush.msrb.mxu1 %v4203_v8  ;;  %v4107_v8 = vld [vmem:[#allocation11 + $0x50] sm:$0xff] }
 0x52d   : > { %3974 = vmatpush.msrb.mxu2 %v3673_v0  ;;  %v4155_v0 = vld [vmem:[#allocation11 + $0x1d0] sm:$0xff] }
 0x52e   : > { %4653 = vmatpush.msrb.mxu1 %v4195_v53  ;;  %v4238_v53 = vld [vmem:[#allocation11 + $0x468] sm:$0xff] }
 0x52f   : > { %v3782_v11 = vpop.permute.xlu1 %3781  ;;  %3975 = vmatpush.msrb.mxu2 %v3672_v39 }
 0x530   : > { %v8859_v43 = vsel %vm3283_vm2, %v8808_v44, %v3782_v11  ;;  %v4326_v11 = vld [vmem:[#allocation11 + $0x728] sm:$0xff] }
 0x531   : > { %v3857_v12 = vrot.slane %v8859_v43, 4  ;;  %3976 = vmatpush.msrb.mxu2 %v3671_v24  ;;  %4899 = vmatpush.msrb.mxu0 %v4326_v11  ;;  %v4278_v44 = vld [vmem:[#allocation11 + $0x5a8] sm:$0xff]  ;;  %v4220_v11 = vld [vmem:[#allocation11 + $0x3d8] sm:$0xff] }
 0x533   : > { %v3866_v23 = vsel %vm3862_vm4, %v3837_v63, %v3857_v12  ;;  %4610 = vmatpush.msra.mxu2 %v4217_v16  ;;  %v4186_v12 = vld [vmem:[#allocation11 + $0x2c8] sm:$0xff]  ;;  %v4121_v16 = vld [vmem:[#allocation11 + $0xc0] sm:$0xff] }
 0x534   : > { %3880 = vst [vmem:[#allocation1 + $0x11] ss:$2 sm:$0xff] %v3866_v23  ;;  %v4318_v63 = vld [vmem:[#allocation11 + $0x6e8] sm:$0xff]  ;;  %v4187_v23 = vld [vmem:[#allocation11 + $0x2d0] sm:$0xff] }
 0x535   : > { %4900 = vmatpush.msrb.mxu0 %v4318_v63  ;;  %4654 = vmatpush.msrb.mxu1 %v4187_v23  ;;  %v4230_v63 = vld [vmem:[#allocation11 + $0x428] sm:$0xff]  ;;  %v4212_v23 = vld [vmem:[#allocation11 + $0x398] sm:$0xff] }
 0x537   : > { %4655 = vmatpush.msrb.mxu1 %v4179_v22  ;;  %4901 = vmatpush.msrb.mxu0 %v4310_v26  ;;  %v4206_v22 = vld [vmem:[#allocation11 + $0x368] sm:$0xff]  ;;  %v4197_v26 = vld [vmem:[#allocation11 + $0x320] sm:$0xff] }
 0x539   : > { %4656 = vmatpush.msrb.mxu1 %v4171_v4  ;;  %4902 = vmatpush.msrb.mxu0 %v4302_v15  ;;  %v4198_v4 = vld [vmem:[#allocation11 + $0x328] sm:$0xff]  ;;  %v4189_v15 = vld [vmem:[#allocation11 + $0x2e0] sm:$0xff] }
 0x53b   : > { %4903 = vmatpush.msrb.mxu0 %v4294_v20  ;;  %v4181_v20 = vld [vmem:[#allocation11 + $0x2a0] sm:$0xff] }
 0x53d   : > { %4904 = vmatpush.msrb.mxu0 %v4286_v51  ;;  %v4156_v51 = vld [vmem:[#allocation11 + $0x1d8] sm:$0xff] }
 0x53f   : > { %4905 = vmatpush.msrb.mxu0 %v4278_v44  ;;  %v4141_v44 = vld [vmem:[#allocation11 + $0x160] sm:$0xff] }
 0x569   : > { %v3802_v55 = vpop.permute.xlu2 %3801 }
 0x56a   : > { %v3835_v36 = vsel %vm3283_vm2, %v8813_v52, %v3802_v55  ;;  %v4209_v52 = vld [vmem:[#allocation11 + $0x380] sm:$0xff] }
 0x56b   : > { %v3860_v1 = vrot.slane %v3835_v36, 4  ;;  %4611 = vmatpush.msra.mxu2 %v4209_v52  ;;  %v4113_v52 = vld [vmem:[#allocation11 + $0x80] sm:$0xff] }
 0x56d   : > { %v3869_v19 = vsel %vm3862_vm4, %v8859_v43, %v3860_v1  ;;  %4612 = vmatpush.msra.mxu2 %v4201_v18  ;;  %v4185_v43 = vld [vmem:[#allocation11 + $0x2c0] sm:$0xff] }
 0x56e   : > { %3888 = vst [vmem:[#allocation1 + $0x31] ss:$2 sm:$0xff] %v3869_v19  ;;  %v4137_v19 = vld [vmem:[#allocation11 + $0x140] sm:$0xff] }
 0x56f   : > { %4613 = vmatpush.msra.mxu2 %v4193_v35  ;;  %v4105_v18 = vld [vmem:[#allocation11 + $0x40] sm:$0xff]  ;;  %v4098_v35 = vld [vmem:[#allocation11 + $0x8] sm:$0xff] }
 0x571   : > { %v3814_v3 = vpop.permute.xlu2 %3813  ;;  %4614 = vmatpush.msra.mxu2 %v4185_v43  ;;  %v4221_v43 = vld [vmem:[#allocation11 + $0x3e0] sm:$0xff] }
 0x572   : > { %v3836_v46 = vsel %vm3283_vm2, %v3772_v49, %v3814_v3  ;;  %v4194_v49 = vld [vmem:[#allocation11 + $0x308] sm:$0xff] }
 0x573   : > { %v3864_v33 = vsel %vm3862_vm4, %v3836_v46, %v3855_v28  ;;  %4633 = vmatpush.msrb.mxu3 %v4194_v49  ;;  %4615 = vmatpush.msra.mxu2 %v4177_v17  ;;  %v4131_v28 = vld [vmem:[#allocation11 + $0x110] sm:$0xff]  ;;  %v4270_v3 = vld [vmem:[#allocation11 + $0x568] sm:$0xff]  ;;  %v4213_v17 = vld [vmem:[#allocation11 + $0x3a0] sm:$0xff] }
 0x574   : > { %3878 = vst [vmem:[#allocation1 + $0x10] ss:$2 sm:$0xff] %v3864_v33  ;;  %v4262_v46 = vld [vmem:[#allocation11 + $0x528] sm:$0xff]  ;;  %4906 = vmatpush.msrb.mxu0 %v4270_v3  ;;  %v4099_v49 = vld [vmem:[#allocation11 + $0x10] sm:$0xff]  ;;  %v4132_v3 = vld [vmem:[#allocation11 + $0x118] sm:$0xff] }
 0x575   : > { %v3894_v13 = vld.sshfl [vmem:[#allocation1 + $0x30] sm:$0xff pattern:$0x75316420]  ;;  %v3895_v34 = vld.sshfl [vmem:[#allocation1 + $0x38] sm:$0xff pattern:$0x75316420]  ;;  %4634 = vmatpush.msrb.mxu3 %v4186_v12  ;;  %4616 = vmatpush.msra.mxu2 %v4169_v54 }
 0x576   : > { %3934 = vmatmul.f32.gmra.mxu3 %v3894_v13  ;;  %3957 = vmatmul.f32.gmra.mxu1 %v3895_v34  ;;  %v4254_v33 = vld [vmem:[#allocation11 + $0x4e8] sm:$0xff]  ;;  %v4097_v34 = vld [vmem:[#allocation11] sm:$0xff] }
 0x577   : > { %4635 = vmatpush.msrb.mxu3 %v4178_v32  ;;  %4617 = vmatpush.msra.mxu2 %v4161_v14  ;;  %v4246_v13 = vld [vmem:[#allocation11 + $0x4a8] sm:$0xff] }
 0x578   : > { %4907 = vmatpush.msrb.mxu0 %v4262_v46  ;;  %v4222_v12 = vld [vmem:[#allocation11 + $0x3e8] sm:$0xff]  ;;  %v4124_v46 = vld [vmem:[#allocation11 + $0xd8] sm:$0xff] }
 0x579   : > { %4636 = vmatpush.msrb.mxu3 %v4170_v10  ;;  %v3818_v58 = vpop.permute.xlu2 %3817  ;;  %4618 = vmatpush.msra.mxu2 %v4153_v29  ;;  %v4214_v32 = vld [vmem:[#allocation11 + $0x3a8] sm:$0xff]  ;;  %v4196_v10 = vld [vmem:[#allocation11 + $0x318] sm:$0xff] }
 0x57a   : > { %v3838_v36 = vsel %vm3283_vm2, %v3774_v25, %v3818_v58  ;;  %v4129_v25 = vld [vmem:[#allocation11 + $0x100] sm:$0xff]  ;;  %4908 = vmatpush.msrb.mxu0 %v4254_v33  ;;  %v4466_v54 = vld [vmem:[#allocation11 + $0xb88] sm:$0xff] }
 0x57b   : > { %v3891_v6 = vld.sshfl [vmem:[#allocation1 + $0x10] sm:$0xff pattern:$0x75316420]  ;;  %v3892_v47 = vld.sshfl [vmem:[#allocation1 + $0x18] sm:$0xff pattern:$0x75316420]  ;;  %4637 = vmatpush.msrb.mxu3 %v4162_v31  ;;  %4619 = vmatpush.msra.mxu2 %v4145_v9 }
 0x57c   : > { %3977 = vmatmul.f32.vlgmr.msrb.gmra.mxu2 %v3891_v6  ;;  %3898 = vst [vmem:[#allocation1 + $0x10] ss:$2 sm:$0xff] %v3812_v60  ;;  %v4163_v60 = vld [vmem:[#allocation11 + $0x210] sm:$0xff]  ;;  %4909 = vmatpush.msrb.mxu0 %v4246_v13  ;;  %v4474_v6 = vld [vmem:[#allocation11 + $0xbc8] sm:$0xff]  ;;  %v4188_v31 = vld [vmem:[#allocation11 + $0x2d8] sm:$0xff] }
 0x57d   : > { %3899 = vst [vmem:[#allocation1 + $0x11] ss:$2 sm:$0xff] %v6756_v2  ;;  %v4154_v2 = vld [vmem:[#allocation11 + $0x1c8] sm:$0xff]  ;;  %4657 = vmatpush.msrb.mxu1 %v4163_v60  ;;  %4620 = vmatpush.msra.mxu2 %v4137_v19  ;;  %v4172_v9 = vld [vmem:[#allocation11 + $0x258] sm:$0xff]  ;;  %v4117_v13 = vld [vmem:[#allocation11 + $0xa0] sm:$0xff] }
 0x57e   : > { %4000 = vmatmul.f32.vlgmr.msra.gmra.mxu3 %v3892_v47  ;;  %5947 = vmatmul.msk.f32.vlgmr.msra.gmra.mxu1 %vm3283_vm2, %v3893_v48  ;;  %v4204_v47 = vld [vmem:[#allocation11 + $0x358] sm:$0xff]  ;;  %v4205_v48 = vld [vmem:[#allocation11 + $0x360] sm:$0xff]  ;;  %v4458_v14 = vld [vmem:[#allocation11 + $0xb48] sm:$0xff] }
 0x57f   : > { %4638 = vmatpush.msrb.mxu3 %v4154_v2  ;;  %4658 = vmatpush.msrb.mxu1 %v4155_v0  ;;  %v4190_v60 = vld [vmem:[#allocation11 + $0x2e8] sm:$0xff]  ;;  %v4180_v2 = vld [vmem:[#allocation11 + $0x298] sm:$0xff] }
 0x580   : > { %4621 = vmatpush.msra.mxu2 %v4129_v25  ;;  %4910 = vmatpush.msrb.mxu0 %v4238_v53  ;;  %v4450_v29 = vld [vmem:[#allocation11 + $0xb08] sm:$0xff]  ;;  %v4109_v53 = vld [vmem:[#allocation11 + $0x60] sm:$0xff] }
 0x581   : > { %4639 = vmatpush.msrb.mxu3 %v4146_v42  ;;  %4659 = vmatpush.msrb.mxu1 %v4147_v56  ;;  %v4182_v58 = vld [vmem:[#allocation11 + $0x2a8] sm:$0xff]  ;;  %v4164_v42 = vld [vmem:[#allocation11 + $0x218] sm:$0xff] }
 0x582   : > { %4622 = vmatpush.msra.mxu2 %v4121_v16  ;;  %4911 = vmatpush.msrb.mxu0 %v4230_v63  ;;  %v4442_v0 = vld [vmem:[#allocation11 + $0xac8] sm:$0xff]  ;;  %v4133_v16 = vld [vmem:[#allocation11 + $0x120] sm:$0xff]  ;;  %v4100_v63 = vld [vmem:[#allocation11 + $0x18] sm:$0xff] }
 0x583   : > { %v3826_v39 = vpop.permute.xlu1 %3825  ;;  %v3820_v38 = vpop.permute.xlu0 %3819  ;;  %4640 = vmatpush.msrb.mxu3 %v4138_v40  ;;  %4660 = vmatpush.msrb.mxu1 %v4139_v57  ;;  %v4426_v56 = vld [vmem:[#allocation11 + $0xa48] sm:$0xff]  ;;  %v4140_v57 = vld [vmem:[#allocation11 + $0x158] sm:$0xff] }
 0x584   : > { %v3840_v24 = vsel %vm3283_vm2, %v8832_v62, %v3826_v39  ;;  %v3839_v30 = vsel %vm3283_vm2, %v3807_v59, %v3820_v38  ;;  %v3902_v61 = vld.sshfl [vmem:[#allocation1 + $0x10] sm:$0xff pattern:$0x75316420]  ;;  %4623 = vmatpush.msra.mxu2 %v4113_v52  ;;  %5000 = vmatpush.msra.mxu0 %v4474_v6 }
 0x585   : > { %v3859_v27 = vrot.slane %v3840_v24, 4  ;;  %v3870_v55 = vsel %vm3862_vm4, %v3839_v30, %v3861_v41  ;;  %4641 = vmatpush.msrb.mxu3 %v4130_v45  ;;  %4661 = vmatpush.msrb.mxu1 %v4131_v28  ;;  %v4173_v41 = vld [vmem:[#allocation11 + $0x260] sm:$0xff]  ;;  %v4174_v39 = vld [vmem:[#allocation11 + $0x268] sm:$0xff]  ;;  %v6209_v45 = vld [vmem:[#allocation10] ss:$0 sm:$0xff] }
 0x586   : > { %3897 = vst [vmem:[#allocation1 + $0x1] ss:$2 sm:$0xff] %v3870_v55  ;;  %5948 = vmatmul.msk.f32.gmra.mxu1 %vm3283_vm2, %v3902_v61  ;;  %4624 = vmatpush.msra.mxu2 %v4105_v18  ;;  %v4434_v38 = vld [vmem:[#allocation11 + $0xa88] sm:$0xff]  ;;  %v4165_v24 = vld [vmem:[#allocation11 + $0x220] sm:$0xff]  ;;  %vm4787_vm2 = vcmask 1041408  }
 0x587   : > { %v3868_v62 = vsel %vm3862_vm4, %v3838_v36, %v3859_v27  ;;  %4642 = vmatpush.msrb.mxu3 %v4122_v5  ;;  %4662 = vmatpush.msrb.mxu1 %v4123_v50  ;;  %v4166_v30 = vld [vmem:[#allocation11 + $0x228] sm:$0xff]  ;;  %v4157_v27 = vld [vmem:[#allocation11 + $0x1e0] sm:$0xff]  ;;  %v4148_v36 = vld [vmem:[#allocation11 + $0x198] sm:$0xff] }
 0x588   : > { %3896 = vst [vmem:[#allocation1] ss:$2 sm:$0xff] %v3868_v62  ;;  %4625 = vmatpush.msra.mxu2 %v4097_v34  ;;  %5001 = vmatpush.msra.mxu0 %v4466_v54  ;;  %v4158_v55 = vld [vmem:[#allocation11 + $0x1e8] sm:$0xff]  ;;  %v4149_v62 = vld [vmem:[#allocation11 + $0x1a0] sm:$0xff] }
 0x589   : > { %4643 = vmatpush.msrb.mxu3 %v4114_v37  ;;  %4663 = vmatpush.msrb.mxu1 %v4115_v21  ;;  %v4418_v61 = vld [vmem:[#allocation11 + $0xa08] sm:$0xff]  ;;  %v4125_v52 = vld [vmem:[#allocation11 + $0xe0] sm:$0xff] }
 0x58a   : > { %4670 = vmatpush.msrb.mxu2 %v4220_v11  ;;  %5002 = vmatpush.msra.mxu0 %v4458_v14  ;;  %v4150_v19 = vld [vmem:[#allocation11 + $0x1a8] sm:$0xff] }
 0x58b   : > { %4644 = vmatpush.msrb.mxu3 %v4106_v7  ;;  %4664 = vmatpush.msrb.mxu1 %v4107_v8  ;;  %v4410_v40 = vld [vmem:[#allocation11 + $0x9c8] sm:$0xff]  ;;  %v4116_v8 = vld [vmem:[#allocation11 + $0x98] sm:$0xff] }
 0x58c   : > { %4671 = vmatpush.msrb.mxu2 %v4212_v23  ;;  %5003 = vmatpush.msra.mxu0 %v4450_v29  ;;  %v4142_v25 = vld [vmem:[#allocation11 + $0x168] sm:$0xff]  ;;  %v4101_v23 = vld [vmem:[#allocation11 + $0x20] sm:$0xff] }
 0x58d   : > { %4645 = vmatpush.msrb.mxu3 %v4098_v35  ;;  %4665 = vmatpush.msrb.mxu1 %v4099_v49  ;;  %v4402_v28 = vld [vmem:[#allocation11 + $0x988] sm:$0xff]  ;;  %v4108_v49 = vld [vmem:[#allocation11 + $0x58] sm:$0xff] }
 0x58e   : > { %4672 = vmatpush.msrb.mxu2 %v4204_v47  ;;  %5004 = vmatpush.msra.mxu0 %v4442_v0  ;;  %v4134_v5 = vld [vmem:[#allocation11 + $0x128] sm:$0xff] }
 0x58f   : > { %v3900_v59 = vld.sshfl [vmem:[#allocation1] sm:$0xff pattern:$0x75316420]  ;;  %v3901_v1 = vld.sshfl [vmem:[#allocation1 + $0x8] sm:$0xff pattern:$0x75316420]  ;;  %4690 = vmatpush.msra.mxu3 %v4221_v43  ;;  %4710 = vmatpush.msra.mxu1 %v4222_v12 }
 0x590   : > { %3980 = vmatmul.f32.gmra.mxu2 %v3900_v59  ;;  %4003 = vmatmul.f32.gmra.mxu3 %v3901_v1  ;;  %v3955_v59 = vpop.f32.mrf.mxu1  ;;  %v3932_v1 = vpop.f32.mrf.mxu3  ;;  %v4394_v50 = vld [vmem:[#allocation11 + $0x948] sm:$0xff] }
 0x591   : > { %4691 = vmatpush.msra.mxu3 %v4213_v17  ;;  %4711 = vmatpush.msra.mxu1 %v4214_v32  ;;  %v4126_v37 = vld [vmem:[#allocation11 + $0xe8] sm:$0xff]  ;;  %v3933_v7 = vadd.f32 %v6209_v45, %v3932_v1 }
 0x592   : > { %4673 = vmatpush.msrb.mxu2 %v4196_v10  ;;  %5005 = vmatpush.msra.mxu0 %v4434_v38  ;;  %v4386_v18 = vld [vmem:[#allocation11 + $0x908] sm:$0xff] }
 0x593   : > { %4692 = vmatpush.msra.mxu3 %v4205_v48  ;;  %4712 = vmatpush.msra.mxu1 %v4206_v22  ;;  %v4118_v34 = vld [vmem:[#allocation11 + $0xa8] sm:$0xff]  ;;  %v3956_v12 = vadd.f32 %v3955_v59, %v3933_v7  ;;  %v4200_v7 = vld [vmem:[#allocation11 + $0x338] sm:$0xff] }
 0x594   : > { %4674 = vmatpush.msrb.mxu2 %v4188_v31  ;;  %5006 = vmatpush.msra.mxu0 %v4426_v56  ;;  %v4378_v35 = vld [vmem:[#allocation11 + $0x8c8] sm:$0xff] }
 0x595   : > { %4693 = vmatpush.msra.mxu3 %v4197_v26  ;;  %4713 = vmatpush.msra.mxu1 %v4198_v4  ;;  %v4110_v11 = vld [vmem:[#allocation11 + $0x68] sm:$0xff] }
 0x596   : > { %4675 = vmatpush.msrb.mxu2 %v4180_v2  ;;  %5007 = vmatpush.msra.mxu0 %v4418_v61  ;;  %v4370_v43 = vld [vmem:[#allocation11 + $0x888] sm:$0xff] }
 0x597   : > { %4694 = vmatpush.msra.mxu3 %v4189_v15  ;;  %4714 = vmatpush.msra.mxu1 %v4190_v60  ;;  %v4102_v17 = vld [vmem:[#allocation11 + $0x28] sm:$0xff] }
 0x598   : > { %4676 = vmatpush.msrb.mxu2 %v4172_v9  ;;  %5008 = vmatpush.msra.mxu0 %v4410_v40  ;;  %v4362_v6 = vld [vmem:[#allocation11 + $0x848] sm:$0xff]  ;;  %v4223_v40 = vld [vmem:[#allocation11 + $0x3f0] sm:$0xff] }
 0x599   : > { %4695 = vmatpush.msra.mxu3 %v4181_v20  ;;  %4715 = vmatpush.msra.mxu1 %v4182_v58  ;;  %v4354_v48 = vld [vmem:[#allocation11 + $0x808] sm:$0xff] }
 0x59a   : > { %4677 = vmatpush.msrb.mxu2 %v4164_v42  ;;  %5009 = vmatpush.msra.mxu0 %v4402_v28  ;;  %v4215_v28 = vld [vmem:[#allocation11 + $0x3b0] sm:$0xff] }
 0x59b   : > { %4696 = vmatpush.msra.mxu3 %v4173_v41  ;;  %4716 = vmatpush.msra.mxu1 %v4174_v39 }
 0x59c   : > { %4678 = vmatpush.msrb.mxu2 %v4156_v51  ;;  %5010 = vmatpush.msra.mxu0 %v4394_v50  ;;  %v4478_v50 = vld [vmem:[#allocation11 + $0xbe8] sm:$0xff] }
 0x59d   : > { %4697 = vmatpush.msra.mxu3 %v4165_v24  ;;  %4717 = vmatpush.msra.mxu1 %v4166_v30 }
 0x59e   : > { %4679 = vmatpush.msrb.mxu2 %v4148_v36  ;;  %5011 = vmatpush.msra.mxu0 %v4386_v18 }
 0x59f   : > { %4698 = vmatpush.msra.mxu3 %v4157_v27  ;;  %4718 = vmatpush.msra.mxu1 %v4158_v55 }
 0x5a0   : > { %4680 = vmatpush.msrb.mxu2 %v4140_v57  ;;  %5012 = vmatpush.msra.mxu0 %v4378_v35 }
 0x5a1   : > { %4699 = vmatpush.msra.mxu3 %v4149_v62  ;;  %4719 = vmatpush.msra.mxu1 %v4150_v19 }
 0x5a2   : > { %4681 = vmatpush.msrb.mxu2 %v4132_v3  ;;  %5013 = vmatpush.msra.mxu0 %v4370_v43 }
 0x5a3   : > { %4700 = vmatpush.msra.mxu3 %v4141_v44  ;;  %4720 = vmatpush.msra.mxu1 %v4142_v25  ;;  %v4224_v25 = vld [vmem:[#allocation11 + $0x3f8] sm:$0xff] }
 0x5a4   : > { %4682 = vmatpush.msrb.mxu2 %v4124_v46  ;;  %5014 = vmatpush.msra.mxu0 %v4362_v6  ;;  %v4207_v46 = vld [vmem:[#allocation11 + $0x370] sm:$0xff] }
 0x5a5   : > { %4701 = vmatpush.msra.mxu3 %v4133_v16  ;;  %4721 = vmatpush.msra.mxu1 %v4134_v5  ;;  %v4216_v16 = vld [vmem:[#allocation11 + $0x3b8] sm:$0xff]  ;;  %v4337_v5 = vld [vmem:[#allocation11 + $0x780] sm:$0xff] }
 0x5a6   : > { %4683 = vmatpush.msrb.mxu2 %v4116_v8  ;;  %5015 = vmatpush.msra.mxu0 %v4354_v48  ;;  %v4321_v8 = vld [vmem:[#allocation11 + $0x700] sm:$0xff] }
 0x5a7   : > { %4702 = vmatpush.msra.mxu3 %v4125_v52  ;;  %4722 = vmatpush.msra.mxu1 %v4126_v37  ;;  %v4208_v52 = vld [vmem:[#allocation11 + $0x378] sm:$0xff]  ;;  %v4329_v37 = vld [vmem:[#allocation11 + $0x740] sm:$0xff] }
 0x5a8   : > { %4684 = vmatpush.msrb.mxu2 %v4108_v49  ;;  %v4305_v48 = vld [vmem:[#allocation11 + $0x680] sm:$0xff] }
 0x5a9   : > { %4703 = vmatpush.msra.mxu3 %v4117_v13  ;;  %4723 = vmatpush.msra.mxu1 %v4118_v34  ;;  %v4462_v34 = vld [vmem:[#allocation11 + $0xb68] sm:$0xff] }
 0x5aa   : > { %4685 = vmatpush.msrb.mxu2 %v4100_v63  ;;  %v4454_v63 = vld [vmem:[#allocation11 + $0xb28] sm:$0xff] }
 0x5ab   : > { %4704 = vmatpush.msra.mxu3 %v4109_v53  ;;  %4724 = vmatpush.msra.mxu1 %v4110_v11  ;;  %v4191_v53 = vld [vmem:[#allocation11 + $0x2f0] sm:$0xff]  ;;  %v4192_v11 = vld [vmem:[#allocation11 + $0x2f8] sm:$0xff] }
 0x5ad   : > { %4705 = vmatpush.msra.mxu3 %v4101_v23  ;;  %4725 = vmatpush.msra.mxu1 %v4102_v17  ;;  %v4183_v17 = vld [vmem:[#allocation11 + $0x2b0] sm:$0xff] }
 0x5f3   : > { %v3958_v21 = vpop.f32.mrf.mxu1 }
 0x5f9   : > { %v3935_v33 = vpop.f32.mrf.mxu3 }
 0x5fa   : > { %v3936_v31 = vadd.f32 %v6209_v45, %v3935_v33  ;;  %v4345_v45 = vld [vmem:[#allocation11 + $0x7c0] sm:$0xff]  ;;  %v4199_v33 = vld [vmem:[#allocation11 + $0x330] sm:$0xff] }
 0x5fb   : > { %v4024_v10 = vpop.f32.mrf.mxu1 }
 0x5fc   : > { %v3959_v2 = vadd.f32 %v3958_v21, %v3936_v31  ;;  %v4470_v21 = vld [vmem:[#allocation11 + $0xba8] sm:$0xff] }
 0x5fd   : > { %v4438_v31 = vld [vmem:[#allocation11 + $0xaa8] sm:$0xff] }
 0x5ff   : > { %v3978_v32 = vpop.f32.mrf.mxu2 }
 0x600   : > { %v3979_v47 = vadd.f32 %v3978_v32, %v3956_v12  ;;  %v4313_v12 = vld [vmem:[#allocation11 + $0x6c0] sm:$0xff]  ;;  %v4184_v32 = vld [vmem:[#allocation11 + $0x2b8] sm:$0xff] }
 0x601   : > { %v4001_v22 = vpop.f32.mrf.mxu3 }
 0x602   : > { %v4002_v54 = vadd.f32 %v4001_v22, %v3979_v47  ;;  %v4446_v22 = vld [vmem:[#allocation11 + $0xae8] sm:$0xff] }
 0x603   : > { %v4027_v51 = vpop.f32.mrf.mxu1 }
 0x604   : > { %v4025_v26 = vadd.f32 %v4024_v10, %v4002_v54  ;;  %v4175_v10 = vld [vmem:[#allocation11 + $0x270] sm:$0xff] }
 0x606   : > { %v4030_v4 = vmax.f32 %v4025_v26, 0.0  ;;  %v4176_v26 = vld [vmem:[#allocation11 + $0x278] sm:$0xff] }
 0x608   : > { %v4034_v14 = vrot.slane %v4030_v4, 4  ;;  %4036 = vst [vmem:[#allocation1] ss:$2 sm:$0xff] %v4030_v4 }
 0x60a   : > { %4039 = vst [vmem:[#allocation1 + $0x10] ss:$2 sm:$0xff] %v4034_v14  ;;  %v4297_v14 = vld [vmem:[#allocation11 + $0x640] sm:$0xff] }
 0x60f   : > { %v4037_v15 = vld.sshfl [vmem:[#allocation1] sm:$0xff pattern:$0x75316420] }
 0x610   : > { %v4047_v60 = vrot.slane %v4037_v15, 7  ;;  %v4167_v15 = vld [vmem:[#allocation11 + $0x230] sm:$0xff] }
 0x611   : > { %v4040_v29 = vld.sshfl [vmem:[#allocation1 + $0x10] sm:$0xff pattern:$0x75316420] }
 0x612   : > { %v4048_v20 = vrot.slane %v4040_v29, 7  ;;  %v4055_v58 = vsel %vm576_vm0, 0.0, %v4047_v60  ;;  %v4168_v60 = vld [vmem:[#allocation11 + $0x238] sm:$0xff] }
 0x613   : > { %v3981_v0 = vpop.f32.mrf.mxu2  ;;  %v4059_v9 = vsel %vm3764_vm9, %v4055_v58, 0.0  ;;  %v4004_v42 = vpop.f32.mrf.mxu3  ;;  %v4159_v58 = vld [vmem:[#allocation11 + $0x1f0] sm:$0xff] }
 0x614   : > { %v3982_v41 = vadd.f32 %v3981_v0, %v3959_v2  ;;  %v4056_v39 = vsel %vm576_vm0, 0.0, %v4048_v20  ;;  %v4063_v38 = vmax.f32 %v4059_v9, 0.0  ;;  %v4289_v2 = vld [vmem:[#allocation11 + $0x600] sm:$0xff]  ;;  %v4430_v20 = vld [vmem:[#allocation11 + $0xa68] sm:$0xff]  ;;  %v4160_v0 = vld [vmem:[#allocation11 + $0x1f8] sm:$0xff] }
 0x615   : > { %v8895_v24 = vsel %vm3764_vm9, %v4056_v39, 0.0  ;;  %v4422_v39 = vld [vmem:[#allocation11 + $0xa28] sm:$0xff] }
 0x616   : > { %v4005_v30 = vadd.f32 %v4004_v42, %v3982_v41  ;;  %v4065_v56 = vmax.f32 %v4063_v38, %v8895_v24  ;;  %v4281_v41 = vld [vmem:[#allocation11 + $0x5c0] sm:$0xff]  ;;  %v4151_v38 = vld [vmem:[#allocation11 + $0x1b0] sm:$0xff]  ;;  %v4152_v42 = vld [vmem:[#allocation11 + $0x1b8] sm:$0xff] }
 0x618   : > { %v4028_v27 = vadd.f32 %v4027_v51, %v4005_v30  ;;  %v4069_v55 = vrot.slane %v4065_v56, 2  ;;  %v5949_v61 = vrot.slane %v4065_v56, 9  ;;  %v4070_v57 = vrot.slane %v4065_v56, 4  ;;  %v4273_v30 = vld [vmem:[#allocation11 + $0x580] sm:$0xff]  ;;  %v4143_v51 = vld [vmem:[#allocation11 + $0x170] sm:$0xff] }
 0x61a   : > { %v4031_v36 = vmax.f32 %v4028_v27, 0.0  ;;  %v4089_v62 = vmax.f32 %v4065_v56, %v5949_v61  ;;  %v5950_v59 = vrot.slane %v4069_v55, 9  ;;  %v4414_v56 = vld [vmem:[#allocation11 + $0x9e8] sm:$0xff]  ;;  %v4144_v27 = vld [vmem:[#allocation11 + $0x178] sm:$0xff]  ;;  %v4265_v61 = vld [vmem:[#allocation11 + $0x540] sm:$0xff] }
 0x61c   : > { %v4035_v1 = vrot.slane %v4031_v36, 4  ;;  %4042 = vst [vmem:[#allocation1 + $0x20] ss:$2 sm:$0xff] %v4031_v36  ;;  %v8898_v19 = vmax.f32 %v4089_v62, %v4069_v55  ;;  %v4090_v44 = vmax.f32 %v4069_v55, %v5950_v59  ;;  %v4406_v36 = vld [vmem:[#allocation11 + $0x9a8] sm:$0xff]  ;;  %v4135_v62 = vld [vmem:[#allocation11 + $0x130] sm:$0xff]  ;;  %v4136_v59 = vld [vmem:[#allocation11 + $0x138] sm:$0xff] }
 0x61e   : > { %4045 = vst [vmem:[#allocation1 + $0x30] ss:$2 sm:$0xff] %v4035_v1  ;;  %4626 = vmatmul.f32.vlgmr.msra.gmra.mxu2 %v8898_v19  ;;  %4646 = vmatmul.f32.vlgmr.msrb.gmra.mxu3 %v8898_v19  ;;  %v8902_v3 = vmax.f32 %v4090_v44, %v4070_v57  ;;  %v4257_v1 = vld [vmem:[#allocation11 + $0x500] sm:$0xff]  ;;  %v4127_v57 = vld [vmem:[#allocation11 + $0xf0] sm:$0xff]  ;;  %v4128_v44 = vld [vmem:[#allocation11 + $0xf8] sm:$0xff] }
 0x61f   : > { %4666 = vmatmul.f32.vlgmr.msrb.gmra.mxu1 %v8898_v19  ;;  %4730 = vmatpush.msra.mxu2 %v4223_v40  ;;  %v4398_v40 = vld [vmem:[#allocation11 + $0x968] sm:$0xff] }
 0x620   : > { %4750 = vmatpush.msrb.mxu3 %v4224_v25  ;;  %4796 = vmatpush.msrb.mxu1 %v4345_v45  ;;  %v4249_v25 = vld [vmem:[#allocation11 + $0x4c0] sm:$0xff]  ;;  %v4390_v45 = vld [vmem:[#allocation11 + $0x928] sm:$0xff] }
 0x621   : > { %4731 = vmatpush.msra.mxu2 %v4215_v28  ;;  %4912 = vmatmul.f32.vlgmr.msrb.gmra.mxu0 %v8902_v3  ;;  %v4119_v28 = vld [vmem:[#allocation11 + $0xb0] sm:$0xff] }
 0x622   : > { %4751 = vmatpush.msrb.mxu3 %v4216_v16  ;;  %4797 = vmatpush.msrb.mxu1 %v4337_v5  ;;  %v4120_v16 = vld [vmem:[#allocation11 + $0xb8] sm:$0xff]  ;;  %v4241_v5 = vld [vmem:[#allocation11 + $0x480] sm:$0xff] }
 0x623   : > { %v4043_v18 = vld.sshfl [vmem:[#allocation1 + $0x20] sm:$0xff pattern:$0x75316420]  ;;  %5080 = vmatpush.msrb.mxu0 %v4478_v50  ;;  %4732 = vmatpush.msra.mxu2 %v4207_v46  ;;  %v4382_v50 = vld [vmem:[#allocation11 + $0x8e8] sm:$0xff] }
 0x624   : > { %v4049_v13 = vrot.slane %v4043_v18, 7  ;;  %4752 = vmatpush.msrb.mxu3 %v4208_v52  ;;  %4798 = vmatpush.msrb.mxu1 %v4329_v37  ;;  %v4111_v46 = vld [vmem:[#allocation11 + $0x70] sm:$0xff]  ;;  %v4112_v52 = vld [vmem:[#allocation11 + $0x78] sm:$0xff]  ;;  %v4233_v37 = vld [vmem:[#allocation11 + $0x440] sm:$0xff] }
 0x625   : > { %5081 = vmatpush.msrb.mxu0 %v4470_v21  ;;  %4733 = vmatpush.msra.mxu2 %v4199_v33  ;;  %v4046_v35 = vld.sshfl [vmem:[#allocation1 + $0x30] sm:$0xff pattern:$0x75316420]  ;;  %v4103_v33 = vld [vmem:[#allocation11 + $0x30] sm:$0xff]  ;;  %v4104_v18 = vld [vmem:[#allocation11 + $0x38] sm:$0xff] }
 0x626   : > { %v4057_v49 = vsel %vm576_vm0, 0.0, %v4049_v13  ;;  %4753 = vmatpush.msrb.mxu3 %v4200_v7  ;;  %4799 = vmatpush.msrb.mxu1 %v4321_v8  ;;  %v4050_v43 = vrot.slane %v4046_v35, 7  ;;  %v4374_v21 = vld [vmem:[#allocation11 + $0x8a8] sm:$0xff]  ;;  %v4225_v7 = vld [vmem:[#allocation11 + $0x400] sm:$0xff]  ;;  %v4348_v35 = vld [vmem:[#allocation11 + $0x7d8] sm:$0xff] }
 0x627   : > { %5082 = vmatpush.msrb.mxu0 %v4462_v34  ;;  %4686 = vmatmul.f32.vlgmr.msrb.gmra.mxu2 %v8898_v19  ;;  %v4061_v23 = vsel %vm3764_vm9, %v4057_v49, 0.0  ;;  %v4366_v8 = vld [vmem:[#allocation11 + $0x868] sm:$0xff]  ;;  %v4347_v34 = vld [vmem:[#allocation11 + $0x7d0] sm:$0xff] }
 0x628   : > { %4706 = vmatmul.f32.vlgmr.msra.gmra.mxu3 %v8898_v19  ;;  %4726 = vmatmul.f32.vlgmr.msra.gmra.mxu1 %v8898_v19  ;;  %v4058_v6 = vsel %vm576_vm0, 0.0, %v4050_v43  ;;  %v4064_v47 = vmax.f32 %v8895_v24, %v4061_v23  ;;  %v4346_v13 = vld [vmem:[#allocation11 + $0x7c8] sm:$0xff]  ;;  %v4340_v43 = vld [vmem:[#allocation11 + $0x798] sm:$0xff]  ;;  %v4331_v23 = vld [vmem:[#allocation11 + $0x750] sm:$0xff] }
 0x629   : > { %4734 = vmatpush.msra.mxu2 %v4191_v53  ;;  %4754 = vmatpush.msrb.mxu3 %v4192_v11  ;;  %v4062_v54 = vsel %vm3764_vm9, %v4058_v6, 0.0  ;;  %v4358_v49 = vld [vmem:[#allocation11 + $0x828] sm:$0xff]  ;;  %v4339_v11 = vld [vmem:[#allocation11 + $0x790] sm:$0xff]  ;;  %vm4791_vm9 = vcmask 1045508  }
 0x62a   : > { %4800 = vmatpush.msrb.mxu1 %v4313_v12  ;;  %5083 = vmatpush.msrb.mxu0 %v4454_v63  ;;  %v8914_v4 = vmax.f32 %v4064_v47, %v4062_v54  ;;  %v4338_v53 = vld [vmem:[#allocation11 + $0x788] sm:$0xff]  ;;  %v4323_v6 = vld [vmem:[#allocation11 + $0x710] sm:$0xff]  ;;  %v4324_v47 = vld [vmem:[#allocation11 + $0x718] sm:$0xff] }
 0x62b   : > { %4735 = vmatpush.msra.mxu2 %v4183_v17  ;;  %4755 = vmatpush.msrb.mxu3 %v4184_v32  ;;  %v4602_v12 = vld [vmem:[#allocation11 + $0xfc8] sm:$0xff]  ;;  %v4332_v17 = vld [vmem:[#allocation11 + $0x758] sm:$0xff]  ;;  %v4315_v54 = vld [vmem:[#allocation11 + $0x6d0] sm:$0xff] }
 0x62c   : > { %4801 = vmatpush.msrb.mxu1 %v4305_v48  ;;  %5084 = vmatpush.msrb.mxu0 %v4446_v22  ;;  %v5951_v29 = vrot.slane %v8914_v4, 9  ;;  %v8919_v24 = vrot.slane %v8914_v4, 2  ;;  %v4330_v63 = vld [vmem:[#allocation11 + $0x748] sm:$0xff] }
 0x62d   : > { %4736 = vmatpush.msra.mxu2 %v4175_v10  ;;  %4756 = vmatpush.msrb.mxu3 %v4176_v26  ;;  %v4594_v32 = vld [vmem:[#allocation11 + $0xf88] sm:$0xff]  ;;  %v4316_v10 = vld [vmem:[#allocation11 + $0x6d8] sm:$0xff] }
 0x62e   : > { %4802 = vmatpush.msrb.mxu1 %v4297_v14  ;;  %5085 = vmatpush.msrb.mxu0 %v4438_v31  ;;  %v4091_v9 = vmax.f32 %v8914_v4, %v5951_v29  ;;  %v4586_v48 = vld [vmem:[#allocation11 + $0xf48] sm:$0xff]  ;;  %v4307_v31 = vld [vmem:[#allocation11 + $0x690] sm:$0xff] }
 0x62f   : > { %4737 = vmatpush.msra.mxu2 %v4167_v15  ;;  %4757 = vmatpush.msrb.mxu3 %v4168_v60  ;;  %v4314_v22 = vld [vmem:[#allocation11 + $0x6c8] sm:$0xff]  ;;  %v4308_v15 = vld [vmem:[#allocation11 + $0x698] sm:$0xff] }
 0x630   : > { %4803 = vmatpush.msrb.mxu1 %v4289_v2  ;;  %5086 = vmatpush.msrb.mxu0 %v4430_v20  ;;  %v8922_v55 = vmax.f32 %v4091_v9, %v8919_v24  ;;  %v4578_v26 = vld [vmem:[#allocation11 + $0xf08] sm:$0xff]  ;;  %v4299_v2 = vld [vmem:[#allocation11 + $0x650] sm:$0xff]  ;;  %v4300_v20 = vld [vmem:[#allocation11 + $0x658] sm:$0xff] }
 0x631   : > { %4738 = vmatpush.msra.mxu2 %v4159_v58  ;;  %4758 = vmatpush.msrb.mxu3 %v4160_v0  ;;  %v4306_v14 = vld [vmem:[#allocation11 + $0x688] sm:$0xff]  ;;  %v4291_v9 = vld [vmem:[#allocation11 + $0x610] sm:$0xff] }
 0x632   : > { %4804 = vmatpush.msrb.mxu1 %v4281_v41  ;;  %5087 = vmatpush.msrb.mxu0 %v4422_v39  ;;  %v4570_v60 = vld [vmem:[#allocation11 + $0xec8] sm:$0xff]  ;;  %v4292_v41 = vld [vmem:[#allocation11 + $0x618] sm:$0xff] }
 0x633   : > { %4739 = vmatpush.msra.mxu2 %v4151_v38  ;;  %4759 = vmatpush.msrb.mxu3 %v4152_v42  ;;  %v4298_v29 = vld [vmem:[#allocation11 + $0x648] sm:$0xff]  ;;  %v4283_v42 = vld [vmem:[#allocation11 + $0x5d0] sm:$0xff] }
 0x634   : > { %4805 = vmatpush.msrb.mxu1 %v4273_v30  ;;  %5088 = vmatpush.msrb.mxu0 %v4414_v56  ;;  %v4562_v58 = vld [vmem:[#allocation11 + $0xe88] sm:$0xff]  ;;  %v4284_v30 = vld [vmem:[#allocation11 + $0x5d8] sm:$0xff] }
 0x635   : > { %4740 = vmatpush.msra.mxu2 %v4143_v51  ;;  %4760 = vmatpush.msrb.mxu3 %v4144_v27  ;;  %v4290_v0 = vld [vmem:[#allocation11 + $0x608] sm:$0xff]  ;;  %v4275_v27 = vld [vmem:[#allocation11 + $0x590] sm:$0xff] }
 0x636   : > { %4806 = vmatpush.msrb.mxu1 %v4265_v61  ;;  %5016 = vmatmul.f32.vlgmr.msra.gmra.mxu0 %v8922_v55  ;;  %v4554_v39 = vld [vmem:[#allocation11 + $0xe48] sm:$0xff]  ;;  %v4276_v61 = vld [vmem:[#allocation11 + $0x598] sm:$0xff] }
 0x637   : > { %5089 = vmatpush.msrb.mxu0 %v4406_v36  ;;  %4741 = vmatpush.msra.mxu2 %v4135_v62  ;;  %v4282_v38 = vld [vmem:[#allocation11 + $0x5c8] sm:$0xff] }
 0x638   : > { %4761 = vmatpush.msrb.mxu3 %v4136_v59  ;;  %4807 = vmatpush.msrb.mxu1 %v4257_v1  ;;  %v4546_v56 = vld [vmem:[#allocation11 + $0xe08] sm:$0xff]  ;;  %v4267_v59 = vld [vmem:[#allocation11 + $0x550] sm:$0xff]  ;;  %v4268_v1 = vld [vmem:[#allocation11 + $0x558] sm:$0xff] }
 0x639   : > { %5090 = vmatpush.msrb.mxu0 %v4398_v40  ;;  %4742 = vmatpush.msra.mxu2 %v4127_v57  ;;  %v4274_v51 = vld [vmem:[#allocation11 + $0x588] sm:$0xff] }
 0x63a   : > { %4762 = vmatpush.msrb.mxu3 %v4128_v44  ;;  %4808 = vmatpush.msrb.mxu1 %v4249_v25  ;;  %v4538_v36 = vld [vmem:[#allocation11 + $0xdc8] sm:$0xff]  ;;  %v4259_v44 = vld [vmem:[#allocation11 + $0x510] sm:$0xff]  ;;  %v4260_v25 = vld [vmem:[#allocation11 + $0x518] sm:$0xff] }
 0x63b   : > { %5091 = vmatpush.msrb.mxu0 %v4390_v45  ;;  %4743 = vmatpush.msra.mxu2 %v4119_v28  ;;  %v4266_v62 = vld [vmem:[#allocation11 + $0x548] sm:$0xff] }
 0x63c   : > { %4763 = vmatpush.msrb.mxu3 %v4120_v16  ;;  %4809 = vmatpush.msrb.mxu1 %v4241_v5  ;;  %v4530_v40 = vld [vmem:[#allocation11 + $0xd88] sm:$0xff]  ;;  %v4251_v16 = vld [vmem:[#allocation11 + $0x4d0] sm:$0xff]  ;;  %v4252_v5 = vld [vmem:[#allocation11 + $0x4d8] sm:$0xff] }
 0x63d   : > { %5092 = vmatpush.msrb.mxu0 %v4382_v50  ;;  %4744 = vmatpush.msra.mxu2 %v4111_v46  ;;  %v4258_v57 = vld [vmem:[#allocation11 + $0x508] sm:$0xff] }
 0x63e   : > { %4764 = vmatpush.msrb.mxu3 %v4112_v52  ;;  %4810 = vmatpush.msrb.mxu1 %v4233_v37  ;;  %v4522_v45 = vld [vmem:[#allocation11 + $0xd48] sm:$0xff]  ;;  %v4243_v52 = vld [vmem:[#allocation11 + $0x490] sm:$0xff]  ;;  %v4244_v37 = vld [vmem:[#allocation11 + $0x498] sm:$0xff] }
 0x63f   : > { %5093 = vmatpush.msrb.mxu0 %v4374_v21  ;;  %4745 = vmatpush.msra.mxu2 %v4103_v33  ;;  %v4250_v28 = vld [vmem:[#allocation11 + $0x4c8] sm:$0xff] }
 0x640   : > { %4765 = vmatpush.msrb.mxu3 %v4104_v18  ;;  %4811 = vmatpush.msrb.mxu1 %v4225_v7  ;;  %v4514_v50 = vld [vmem:[#allocation11 + $0xd08] sm:$0xff]  ;;  %v4235_v18 = vld [vmem:[#allocation11 + $0x450] sm:$0xff]  ;;  %v4236_v7 = vld [vmem:[#allocation11 + $0x458] sm:$0xff] }
 0x641   : > { %5094 = vmatpush.msrb.mxu0 %v4366_v8  ;;  %4746 = vmatmul.f32.vlgmr.msra.gmra.mxu2 %v8898_v19  ;;  %v4242_v46 = vld [vmem:[#allocation11 + $0x488] sm:$0xff] }
 0x642   : > { %4766 = vmatmul.f32.vlgmr.msrb.gmra.mxu3 %v8898_v19  ;;  %4812 = vmatmul.f32.vlgmr.msrb.gmra.mxu1 %v8902_v3  ;;  %v4322_v19 = vld [vmem:[#allocation11 + $0x708] sm:$0xff] }
 0x643   : > { %4816 = vmatpush.msrb.mxu2 %v4346_v13  ;;  %4836 = vmatpush.msra.mxu3 %v4347_v34  ;;  %v4506_v21 = vld [vmem:[#allocation11 + $0xcc8] sm:$0xff]  ;;  %v5952_v34 = vrot.slane %v8919_v24, 9 }
 0x644   : > { %4856 = vmatpush.msra.mxu1 %v4348_v35  ;;  %5095 = vmatpush.msrb.mxu0 %v4358_v49  ;;  %v4234_v33 = vld [vmem:[#allocation11 + $0x448] sm:$0xff]  ;;  %v4227_v35 = vld [vmem:[#allocation11 + $0x410] sm:$0xff]  ;;  %v4228_v49 = vld [vmem:[#allocation11 + $0x418] sm:$0xff] }
 0x645   : > { %4817 = vmatpush.msrb.mxu2 %v4338_v53  ;;  %4837 = vmatpush.msra.mxu3 %v4339_v11  ;;  %v4498_v8 = vld [vmem:[#allocation11 + $0xc88] sm:$0xff]  ;;  %v4349_v11 = vld [vmem:[#allocation11 + $0x7e0] sm:$0xff] }
 0x646   : > { %4857 = vmatpush.msra.mxu1 %v4340_v43  ;;  %5096 = vmatmul.f32.vlgmr.msrb.gmra.mxu0 %v8922_v55  ;;  %v4226_v13 = vld [vmem:[#allocation11 + $0x408] sm:$0xff]  ;;  %v4351_v43 = vld [vmem:[#allocation11 + $0x7f0] sm:$0xff] }
 0x647   : > { %5184 = vmatpush.msra.mxu0 %v4602_v12  ;;  %4818 = vmatpush.msrb.mxu2 %v4330_v63  ;;  %v4490_v53 = vld [vmem:[#allocation11 + $0xc48] sm:$0xff]  ;;  %v4092_v12 = vmax.f32 %v8919_v24, %v5952_v34  ;;  %v4352_v63 = vld [vmem:[#allocation11 + $0x7f8] sm:$0xff] }
 0x648   : > { %4838 = vmatpush.msra.mxu3 %v4331_v23  ;;  %4858 = vmatpush.msra.mxu1 %v4332_v17  ;;  %v4482_v23 = vld [vmem:[#allocation11 + $0xc08] sm:$0xff]  ;;  %v4341_v17 = vld [vmem:[#allocation11 + $0x7a0] sm:$0xff] }
 0x649   : > { %5185 = vmatpush.msra.mxu0 %v4594_v32  ;;  %4819 = vmatpush.msrb.mxu2 %v4322_v19  ;;  %v4343_v32 = vld [vmem:[#allocation11 + $0x7b0] sm:$0xff]  ;;  %v4072_v19 = vrot.slane %v8914_v4, 4  ;;  %v4606_v24 = vld [vmem:[#allocation11 + $0xfe8] sm:$0xff] }
 0x64a   : > { %4839 = vmatpush.msra.mxu3 %v4323_v6  ;;  %4859 = vmatpush.msra.mxu1 %v4324_v47  ;;  %v4344_v6 = vld [vmem:[#allocation11 + $0x7b8] sm:$0xff]  ;;  %v4327_v4 = vld [vmem:[#allocation11 + $0x730] sm:$0xff]  ;;  %v4510_v34 = vld [vmem:[#allocation11 + $0xce8] sm:$0xff] }
 0x64b   : > { %5186 = vmatpush.msra.mxu0 %v4586_v48  ;;  %4820 = vmatpush.msrb.mxu2 %v4314_v22  ;;  %v8935_v47 = vmax.f32 %v4092_v12, %v4072_v19  ;;  %v4333_v48 = vld [vmem:[#allocation11 + $0x760] sm:$0xff]  ;;  %v4335_v22 = vld [vmem:[#allocation11 + $0x770] sm:$0xff]  ;;  %v4476_v19 = vld [vmem:[#allocation11 + $0xbd8] sm:$0xff] }
 0x64c   : > { %4840 = vmatpush.msra.mxu3 %v4315_v54  ;;  %4860 = vmatpush.msra.mxu1 %v4316_v10  ;;  %v4336_v54 = vld [vmem:[#allocation11 + $0x778] sm:$0xff]  ;;  %v4598_v10 = vld [vmem:[#allocation11 + $0xfa8] sm:$0xff]  ;;  %v4231_v12 = vld [vmem:[#allocation11 + $0x430] sm:$0xff] }
 0x64d   : > { %5187 = vmatpush.msra.mxu0 %v4578_v26  ;;  %4821 = vmatpush.msrb.mxu2 %v4306_v14  ;;  %v4325_v26 = vld [vmem:[#allocation11 + $0x720] sm:$0xff]  ;;  %v4328_v14 = vld [vmem:[#allocation11 + $0x738] sm:$0xff] }
 0x64e   : > { %4841 = vmatpush.msra.mxu3 %v4307_v31  ;;  %4861 = vmatpush.msra.mxu1 %v4308_v15  ;;  %v4590_v31 = vld [vmem:[#allocation11 + $0xf68] sm:$0xff]  ;;  %v4317_v15 = vld [vmem:[#allocation11 + $0x6e0] sm:$0xff] }
 0x64f   : > { %5188 = vmatpush.msra.mxu0 %v4570_v60  ;;  %4822 = vmatpush.msrb.mxu2 %v4298_v29  ;;  %v4319_v60 = vld [vmem:[#allocation11 + $0x6f0] sm:$0xff]  ;;  %v4320_v29 = vld [vmem:[#allocation11 + $0x6f8] sm:$0xff] }
 0x650   : > { %4842 = vmatpush.msra.mxu3 %v4299_v2  ;;  %4862 = vmatpush.msra.mxu1 %v4300_v20  ;;  %v4582_v2 = vld [vmem:[#allocation11 + $0xf28] sm:$0xff]  ;;  %v4309_v20 = vld [vmem:[#allocation11 + $0x6a0] sm:$0xff] }
 0x651   : > { %5189 = vmatpush.msra.mxu0 %v4562_v58  ;;  %4823 = vmatpush.msrb.mxu2 %v4290_v0  ;;  %v4311_v58 = vld [vmem:[#allocation11 + $0x6b0] sm:$0xff]  ;;  %v4312_v0 = vld [vmem:[#allocation11 + $0x6b8] sm:$0xff] }
 0x652   : > { %4843 = vmatpush.msra.mxu3 %v4291_v9  ;;  %4863 = vmatpush.msra.mxu1 %v4292_v41  ;;  %v4574_v9 = vld [vmem:[#allocation11 + $0xee8] sm:$0xff]  ;;  %v4301_v41 = vld [vmem:[#allocation11 + $0x660] sm:$0xff] }
 0x653   : > { %5190 = vmatpush.msra.mxu0 %v4554_v39  ;;  %4824 = vmatpush.msrb.mxu2 %v4282_v38  ;;  %v4303_v39 = vld [vmem:[#allocation11 + $0x670] sm:$0xff]  ;;  %v4304_v38 = vld [vmem:[#allocation11 + $0x678] sm:$0xff] }
 0x654   : > { %4844 = vmatpush.msra.mxu3 %v4283_v42  ;;  %4864 = vmatpush.msra.mxu1 %v4284_v30  ;;  %v4566_v42 = vld [vmem:[#allocation11 + $0xea8] sm:$0xff]  ;;  %v4293_v30 = vld [vmem:[#allocation11 + $0x620] sm:$0xff] }
 0x655   : > { %5191 = vmatpush.msra.mxu0 %v4546_v56  ;;  %4825 = vmatpush.msrb.mxu2 %v4274_v51  ;;  %v4295_v56 = vld [vmem:[#allocation11 + $0x630] sm:$0xff]  ;;  %v4296_v51 = vld [vmem:[#allocation11 + $0x638] sm:$0xff] }
 0x656   : > { %4845 = vmatpush.msra.mxu3 %v4275_v27  ;;  %4865 = vmatpush.msra.mxu1 %v4276_v61  ;;  %v4558_v27 = vld [vmem:[#allocation11 + $0xe68] sm:$0xff]  ;;  %v4285_v61 = vld [vmem:[#allocation11 + $0x5e0] sm:$0xff] }
 0x657   : > { %5192 = vmatpush.msra.mxu0 %v4538_v36  ;;  %4826 = vmatpush.msrb.mxu2 %v4266_v62  ;;  %v4287_v36 = vld [vmem:[#allocation11 + $0x5f0] sm:$0xff]  ;;  %v4288_v62 = vld [vmem:[#allocation11 + $0x5f8] sm:$0xff] }
 0x658   : > { %4846 = vmatpush.msra.mxu3 %v4267_v59  ;;  %4866 = vmatpush.msra.mxu1 %v4268_v1  ;;  %v4550_v59 = vld [vmem:[#allocation11 + $0xe28] sm:$0xff]  ;;  %v4277_v1 = vld [vmem:[#allocation11 + $0x5a0] sm:$0xff] }
 0x659   : > { %5193 = vmatpush.msra.mxu0 %v4530_v40  ;;  %4827 = vmatpush.msrb.mxu2 %v4258_v57  ;;  %v4279_v40 = vld [vmem:[#allocation11 + $0x5b0] sm:$0xff]  ;;  %v4280_v57 = vld [vmem:[#allocation11 + $0x5b8] sm:$0xff] }
 0x65a   : > { %4847 = vmatpush.msra.mxu3 %v4259_v44  ;;  %4867 = vmatpush.msra.mxu1 %v4260_v25  ;;  %v4542_v44 = vld [vmem:[#allocation11 + $0xde8] sm:$0xff]  ;;  %v4269_v25 = vld [vmem:[#allocation11 + $0x560] sm:$0xff] }
 0x65b   : > { %5194 = vmatpush.msra.mxu0 %v4522_v45  ;;  %4828 = vmatpush.msrb.mxu2 %v4250_v28  ;;  %v4271_v45 = vld [vmem:[#allocation11 + $0x570] sm:$0xff]  ;;  %v4272_v28 = vld [vmem:[#allocation11 + $0x578] sm:$0xff] }
 0x65c   : > { %4848 = vmatpush.msra.mxu3 %v4251_v16  ;;  %4868 = vmatpush.msra.mxu1 %v4252_v5  ;;  %v4534_v16 = vld [vmem:[#allocation11 + $0xda8] sm:$0xff]  ;;  %v4261_v5 = vld [vmem:[#allocation11 + $0x520] sm:$0xff] }
 0x65d   : > { %5195 = vmatpush.msra.mxu0 %v4514_v50  ;;  %4829 = vmatpush.msrb.mxu2 %v4242_v46  ;;  %v4263_v50 = vld [vmem:[#allocation11 + $0x530] sm:$0xff]  ;;  %v4264_v46 = vld [vmem:[#allocation11 + $0x538] sm:$0xff] }
 0x65e   : > { %4849 = vmatpush.msra.mxu3 %v4243_v52  ;;  %4869 = vmatpush.msra.mxu1 %v4244_v37  ;;  %v4526_v52 = vld [vmem:[#allocation11 + $0xd68] sm:$0xff]  ;;  %v4253_v37 = vld [vmem:[#allocation11 + $0x4e0] sm:$0xff] }
 0x65f   : > { %5196 = vmatpush.msra.mxu0 %v4506_v21  ;;  %4830 = vmatpush.msrb.mxu2 %v4234_v33  ;;  %v4255_v21 = vld [vmem:[#allocation11 + $0x4f0] sm:$0xff]  ;;  %v4256_v33 = vld [vmem:[#allocation11 + $0x4f8] sm:$0xff] }
 0x660   : > { %4850 = vmatpush.msra.mxu3 %v4235_v18  ;;  %4870 = vmatpush.msra.mxu1 %v4236_v7  ;;  %v4518_v18 = vld [vmem:[#allocation11 + $0xd28] sm:$0xff]  ;;  %v4245_v7 = vld [vmem:[#allocation11 + $0x4a0] sm:$0xff] }
 0x661   : > { %5197 = vmatpush.msra.mxu0 %v4498_v8  ;;  %4831 = vmatpush.msrb.mxu2 %v4226_v13  ;;  %v4247_v8 = vld [vmem:[#allocation11 + $0x4b0] sm:$0xff]  ;;  %v4248_v13 = vld [vmem:[#allocation11 + $0x4b8] sm:$0xff] }
 0x662   : > { %4851 = vmatpush.msra.mxu3 %v4227_v35  ;;  %4871 = vmatpush.msra.mxu1 %v4228_v49  ;;  %v4237_v35 = vld [vmem:[#allocation11 + $0x460] sm:$0xff]  ;;  %v4239_v49 = vld [vmem:[#allocation11 + $0x470] sm:$0xff] }
 0x663   : > { %5198 = vmatpush.msra.mxu0 %v4490_v53  ;;  %4832 = vmatmul.f32.vlgmr.msrb.gmra.mxu2 %v8902_v3  ;;  %v4240_v53 = vld [vmem:[#allocation11 + $0x478] sm:$0xff] }
 0x664   : > { %4852 = vmatmul.f32.vlgmr.msra.gmra.mxu3 %v8902_v3  ;;  %4872 = vmatmul.f32.vlgmr.msra.gmra.mxu1 %v8902_v3 }
 0x665   : > { %4876 = vmatpush.msra.mxu2 %v4349_v11  ;;  %4916 = vmatpush.msrb.mxu3 %v4351_v43  ;;  %v4502_v11 = vld [vmem:[#allocation11 + $0xca8] sm:$0xff]  ;;  %v4229_v43 = vld [vmem:[#allocation11 + $0x420] sm:$0xff] }
 0x666   : > { %4936 = vmatpush.msrb.mxu1 %v4352_v63  ;;  %5199 = vmatpush.msra.mxu0 %v4482_v23  ;;  %v4232_v63 = vld [vmem:[#allocation11 + $0x438] sm:$0xff]  ;;  %v4494_v23 = vld [vmem:[#allocation11 + $0xc68] sm:$0xff] }
 0x667   : > { %4877 = vmatpush.msra.mxu2 %v4341_v17  ;;  %4917 = vmatpush.msrb.mxu3 %v4343_v32  ;;  %v4473_v17 = vld [vmem:[#allocation11 + $0xbc0] sm:$0xff]  ;;  %v4475_v32 = vld [vmem:[#allocation11 + $0xbd0] sm:$0xff] }
 0x668   : > { %4937 = vmatpush.msrb.mxu1 %v4344_v6  ;;  %5200 = vmatmul.f32.vlgmr.msra.gmra.mxu0 %v8935_v47  ;;  %v4486_v6 = vld [vmem:[#allocation11 + $0xc28] sm:$0xff] }
 0x669   : > { %5264 = vmatpush.msrb.mxu0 %v4606_v24  ;;  %4878 = vmatpush.msra.mxu2 %v4333_v48  ;;  %v4465_v24 = vld [vmem:[#allocation11 + $0xb80] sm:$0xff]  ;;  %v4467_v48 = vld [vmem:[#allocation11 + $0xb90] sm:$0xff] }
 0x66a   : > { %4918 = vmatpush.msrb.mxu3 %v4335_v22  ;;  %4938 = vmatpush.msrb.mxu1 %v4336_v54  ;;  %v4468_v22 = vld [vmem:[#allocation11 + $0xb98] sm:$0xff]  ;;  %v4457_v54 = vld [vmem:[#allocation11 + $0xb40] sm:$0xff] }
 0x66b   : > { %5265 = vmatpush.msrb.mxu0 %v4598_v10  ;;  %4879 = vmatpush.msra.mxu2 %v4325_v26  ;;  %v4459_v10 = vld [vmem:[#allocation11 + $0xb50] sm:$0xff]  ;;  %v4460_v26 = vld [vmem:[#allocation11 + $0xb58] sm:$0xff] }
 0x66c   : > { %4919 = vmatpush.msrb.mxu3 %v4327_v4  ;;  %4939 = vmatpush.msrb.mxu1 %v4328_v14  ;;  %v4449_v4 = vld [vmem:[#allocation11 + $0xb00] sm:$0xff]  ;;  %v4451_v14 = vld [vmem:[#allocation11 + $0xb10] sm:$0xff] }
 0x66d   : > { %5266 = vmatpush.msrb.mxu0 %v4590_v31  ;;  %4880 = vmatpush.msra.mxu2 %v4317_v15  ;;  %v4441_v31 = vld [vmem:[#allocation11 + $0xac0] sm:$0xff]  ;;  %v4443_v15 = vld [vmem:[#allocation11 + $0xad0] sm:$0xff] }
 0x66e   : > { %4920 = vmatpush.msrb.mxu3 %v4319_v60  ;;  %4940 = vmatpush.msrb.mxu1 %v4320_v29  ;;  %v4444_v60 = vld [vmem:[#allocation11 + $0xad8] sm:$0xff]  ;;  %v4433_v29 = vld [vmem:[#allocation11 + $0xa80] sm:$0xff] }
 0x66f   : > { %5267 = vmatpush.msrb.mxu0 %v4582_v2  ;;  %4881 = vmatpush.msra.mxu2 %v4309_v20  ;;  %v4435_v2 = vld [vmem:[#allocation11 + $0xa90] sm:$0xff]  ;;  %v4436_v20 = vld [vmem:[#allocation11 + $0xa98] sm:$0xff] }
 0x670   : > { %4921 = vmatpush.msrb.mxu3 %v4311_v58  ;;  %4941 = vmatpush.msrb.mxu1 %v4312_v0  ;;  %v4425_v58 = vld [vmem:[#allocation11 + $0xa40] sm:$0xff]  ;;  %v4427_v0 = vld [vmem:[#allocation11 + $0xa50] sm:$0xff] }
 0x671   : > { %5268 = vmatpush.msrb.mxu0 %v4574_v9  ;;  %4882 = vmatpush.msra.mxu2 %v4301_v41  ;;  %v4428_v9 = vld [vmem:[#allocation11 + $0xa58] sm:$0xff]  ;;  %v4417_v41 = vld [vmem:[#allocation11 + $0xa00] sm:$0xff] }
 0x672   : > { %4922 = vmatpush.msrb.mxu3 %v4303_v39  ;;  %4942 = vmatpush.msrb.mxu1 %v4304_v38  ;;  %v4419_v39 = vld [vmem:[#allocation11 + $0xa10] sm:$0xff]  ;;  %v4420_v38 = vld [vmem:[#allocation11 + $0xa18] sm:$0xff] }
 0x673   : > { %5269 = vmatpush.msrb.mxu0 %v4566_v42  ;;  %4883 = vmatpush.msra.mxu2 %v4293_v30  ;;  %v4409_v42 = vld [vmem:[#allocation11 + $0x9c0] sm:$0xff]  ;;  %v4411_v30 = vld [vmem:[#allocation11 + $0x9d0] sm:$0xff] }
 0x674   : > { %4923 = vmatpush.msrb.mxu3 %v4295_v56  ;;  %4943 = vmatpush.msrb.mxu1 %v4296_v51  ;;  %v4412_v56 = vld [vmem:[#allocation11 + $0x9d8] sm:$0xff]  ;;  %v4401_v51 = vld [vmem:[#allocation11 + $0x980] sm:$0xff] }
 0x675   : > { %5270 = vmatpush.msrb.mxu0 %v4558_v27  ;;  %4884 = vmatpush.msra.mxu2 %v4285_v61  ;;  %v4403_v27 = vld [vmem:[#allocation11 + $0x990] sm:$0xff]  ;;  %v4404_v61 = vld [vmem:[#allocation11 + $0x998] sm:$0xff] }
 0x676   : > { %4924 = vmatpush.msrb.mxu3 %v4287_v36  ;;  %4944 = vmatpush.msrb.mxu1 %v4288_v62  ;;  %v4393_v36 = vld [vmem:[#allocation11 + $0x940] sm:$0xff]  ;;  %v4395_v62 = vld [vmem:[#allocation11 + $0x950] sm:$0xff] }
 0x677   : > { %5271 = vmatpush.msrb.mxu0 %v4550_v59  ;;  %4885 = vmatpush.msra.mxu2 %v4277_v1  ;;  %v4396_v59 = vld [vmem:[#allocation11 + $0x958] sm:$0xff]  ;;  %v4385_v1 = vld [vmem:[#allocation11 + $0x900] sm:$0xff] }
 0x678   : > { %4925 = vmatpush.msrb.mxu3 %v4279_v40  ;;  %4945 = vmatpush.msrb.mxu1 %v4280_v57  ;;  %v4387_v40 = vld [vmem:[#allocation11 + $0x910] sm:$0xff]  ;;  %v4388_v57 = vld [vmem:[#allocation11 + $0x918] sm:$0xff] }
 0x679   : > { %5272 = vmatpush.msrb.mxu0 %v4542_v44  ;;  %4886 = vmatpush.msra.mxu2 %v4269_v25  ;;  %v4377_v44 = vld [vmem:[#allocation11 + $0x8c0] sm:$0xff]  ;;  %v4379_v25 = vld [vmem:[#allocation11 + $0x8d0] sm:$0xff] }
 0x67a   : > { %4926 = vmatpush.msrb.mxu3 %v4271_v45  ;;  %4946 = vmatpush.msrb.mxu1 %v4272_v28  ;;  %v4380_v45 = vld [vmem:[#allocation11 + $0x8d8] sm:$0xff]  ;;  %v4369_v28 = vld [vmem:[#allocation11 + $0x880] sm:$0xff] }
 0x67b   : > { %5273 = vmatpush.msrb.mxu0 %v4534_v16  ;;  %4887 = vmatpush.msra.mxu2 %v4261_v5  ;;  %v4371_v16 = vld [vmem:[#allocation11 + $0x890] sm:$0xff]  ;;  %v4372_v5 = vld [vmem:[#allocation11 + $0x898] sm:$0xff] }
 0x67c   : > { %4927 = vmatpush.msrb.mxu3 %v4263_v50  ;;  %4947 = vmatpush.msrb.mxu1 %v4264_v46  ;;  %v4361_v50 = vld [vmem:[#allocation11 + $0x840] sm:$0xff]  ;;  %v4363_v46 = vld [vmem:[#allocation11 + $0x850] sm:$0xff] }
 0x67d   : > { %5274 = vmatpush.msrb.mxu0 %v4526_v52  ;;  %4888 = vmatpush.msra.mxu2 %v4253_v37  ;;  %v4364_v52 = vld [vmem:[#allocation11 + $0x858] sm:$0xff]  ;;  %v4353_v37 = vld [vmem:[#allocation11 + $0x800] sm:$0xff] }
 0x67e   : > { %4928 = vmatpush.msrb.mxu3 %v4255_v21  ;;  %4948 = vmatpush.msrb.mxu1 %v4256_v33  ;;  %v4355_v21 = vld [vmem:[#allocation11 + $0x810] sm:$0xff]  ;;  %v4356_v33 = vld [vmem:[#allocation11 + $0x818] sm:$0xff] }
 0x67f   : > { %5275 = vmatpush.msrb.mxu0 %v4518_v18  ;;  %4889 = vmatpush.msra.mxu2 %v4245_v7  ;;  %v4477_v18 = vld [vmem:[#allocation11 + $0xbe0] sm:$0xff]  ;;  %v4479_v7 = vld [vmem:[#allocation11 + $0xbf0] sm:$0xff] }
 0x680   : > { %4929 = vmatpush.msrb.mxu3 %v4247_v8  ;;  %4949 = vmatpush.msrb.mxu1 %v4248_v13  ;;  %v4480_v8 = vld [vmem:[#allocation11 + $0xbf8] sm:$0xff]  ;;  %v4469_v13 = vld [vmem:[#allocation11 + $0xba0] sm:$0xff] }
 0x681   : > { %5276 = vmatpush.msrb.mxu0 %v4510_v34  ;;  %4890 = vmatpush.msra.mxu2 %v4237_v35  ;;  %v4471_v34 = vld [vmem:[#allocation11 + $0xbb0] sm:$0xff]  ;;  %v4472_v35 = vld [vmem:[#allocation11 + $0xbb8] sm:$0xff] }
 0x682   : > { %4930 = vmatpush.msrb.mxu3 %v4239_v49  ;;  %4950 = vmatpush.msrb.mxu1 %v4240_v53  ;;  %v4461_v49 = vld [vmem:[#allocation11 + $0xb60] sm:$0xff]  ;;  %v4463_v53 = vld [vmem:[#allocation11 + $0xb70] sm:$0xff] }
 0x683   : > { %5277 = vmatpush.msrb.mxu0 %v4502_v11  ;;  %4891 = vmatpush.msra.mxu2 %v4229_v43  ;;  %v4464_v11 = vld [vmem:[#allocation11 + $0xb78] sm:$0xff]  ;;  %v4453_v43 = vld [vmem:[#allocation11 + $0xb20] sm:$0xff] }
 0x684   : > { %4931 = vmatpush.msrb.mxu3 %v4231_v12  ;;  %4951 = vmatpush.msrb.mxu1 %v4232_v63  ;;  %v4455_v12 = vld [vmem:[#allocation11 + $0xb30] sm:$0xff]  ;;  %v4456_v63 = vld [vmem:[#allocation11 + $0xb38] sm:$0xff] }
 0x685   : > { %5278 = vmatpush.msrb.mxu0 %v4494_v23  ;;  %4892 = vmatmul.f32.vlgmr.msra.gmra.mxu2 %v8902_v3  ;;  %v4445_v23 = vld [vmem:[#allocation11 + $0xae0] sm:$0xff] }
 0x686   : > { %4932 = vmatmul.f32.vlgmr.msrb.gmra.mxu3 %v8902_v3  ;;  %4952 = vmatmul.f32.vlgmr.msrb.gmra.mxu1 %v8902_v3  ;;  %v4452_v3 = vld [vmem:[#allocation11 + $0xb18] sm:$0xff] }
 0x687   : > { %4980 = vmatpush.msrb.mxu2 %v4473_v17  ;;  %5020 = vmatpush.msra.mxu3 %v4475_v32  ;;  %v4447_v17 = vld [vmem:[#allocation11 + $0xaf0] sm:$0xff]  ;;  %v4448_v32 = vld [vmem:[#allocation11 + $0xaf8] sm:$0xff] }
 0x688   : > { %5040 = vmatpush.msra.mxu1 %v4476_v19  ;;  %5279 = vmatpush.msrb.mxu0 %v4486_v6  ;;  %v4437_v19 = vld [vmem:[#allocation11 + $0xaa0] sm:$0xff]  ;;  %v4439_v6 = vld [vmem:[#allocation11 + $0xab0] sm:$0xff] }
 0x689   : > { %4981 = vmatpush.msrb.mxu2 %v4465_v24  ;;  %5021 = vmatpush.msra.mxu3 %v4467_v48  ;;  %v4440_v24 = vld [vmem:[#allocation11 + $0xab8] sm:$0xff]  ;;  %v4429_v48 = vld [vmem:[#allocation11 + $0xa60] sm:$0xff] }
 0x68a   : > { %5041 = vmatpush.msra.mxu1 %v4468_v22  ;;  %5280 = vmatmul.f32.vlgmr.msrb.gmra.mxu0 %v8935_v47  ;;  %v4431_v22 = vld [vmem:[#allocation11 + $0xa70] sm:$0xff] }
 0x68b   : > { %4982 = vmatpush.msrb.mxu2 %v4457_v54  ;;  %5022 = vmatpush.msra.mxu3 %v4459_v10  ;;  %v4432_v54 = vld [vmem:[#allocation11 + $0xa78] sm:$0xff]  ;;  %v4421_v10 = vld [vmem:[#allocation11 + $0xa20] sm:$0xff] }
 0x68c   : > { %5042 = vmatpush.msra.mxu1 %v4460_v26  ;;  %v4423_v26 = vld [vmem:[#allocation11 + $0xa30] sm:$0xff] }
 0x68d   : > { %4983 = vmatpush.msrb.mxu2 %v4449_v4  ;;  %5023 = vmatpush.msra.mxu3 %v4451_v14  ;;  %v4424_v4 = vld [vmem:[#allocation11 + $0xa38] sm:$0xff]  ;;  %v4413_v14 = vld [vmem:[#allocation11 + $0x9e0] sm:$0xff] }
 0x68e   : > { %5043 = vmatpush.msra.mxu1 %v4452_v3  ;;  %v4415_v3 = vld [vmem:[#allocation11 + $0x9f0] sm:$0xff] }
 0x68f   : > { %4984 = vmatpush.msrb.mxu2 %v4441_v31  ;;  %5024 = vmatpush.msra.mxu3 %v4443_v15  ;;  %v4416_v31 = vld [vmem:[#allocation11 + $0x9f8] sm:$0xff]  ;;  %v4405_v15 = vld [vmem:[#allocation11 + $0x9a0] sm:$0xff] }
 0x690   : > { %5044 = vmatpush.msra.mxu1 %v4444_v60  ;;  %v4407_v60 = vld [vmem:[#allocation11 + $0x9b0] sm:$0xff] }
 0x691   : > { %4985 = vmatpush.msrb.mxu2 %v4433_v29  ;;  %5025 = vmatpush.msra.mxu3 %v4435_v2  ;;  %v4408_v29 = vld [vmem:[#allocation11 + $0x9b8] sm:$0xff]  ;;  %v4397_v2 = vld [vmem:[#allocation11 + $0x960] sm:$0xff] }
 0x692   : > { %5045 = vmatpush.msra.mxu1 %v4436_v20  ;;  %v4399_v20 = vld [vmem:[#allocation11 + $0x970] sm:$0xff] }
 0x693   : > { %4986 = vmatpush.msrb.mxu2 %v4425_v58  ;;  %5026 = vmatpush.msra.mxu3 %v4427_v0  ;;  %v4400_v58 = vld [vmem:[#allocation11 + $0x978] sm:$0xff]  ;;  %v4389_v0 = vld [vmem:[#allocation11 + $0x920] sm:$0xff] }
 0x694   : > { %5046 = vmatpush.msra.mxu1 %v4428_v9  ;;  %v4391_v9 = vld [vmem:[#allocation11 + $0x930] sm:$0xff] }
 0x695   : > { %4987 = vmatpush.msrb.mxu2 %v4417_v41  ;;  %5027 = vmatpush.msra.mxu3 %v4419_v39  ;;  %v4392_v41 = vld [vmem:[#allocation11 + $0x938] sm:$0xff]  ;;  %v4381_v39 = vld [vmem:[#allocation11 + $0x8e0] sm:$0xff] }
 0x696   : > { %5047 = vmatpush.msra.mxu1 %v4420_v38  ;;  %v4383_v38 = vld [vmem:[#allocation11 + $0x8f0] sm:$0xff] }
 0x697   : > { %4988 = vmatpush.msrb.mxu2 %v4409_v42  ;;  %5028 = vmatpush.msra.mxu3 %v4411_v30  ;;  %v4384_v42 = vld [vmem:[#allocation11 + $0x8f8] sm:$0xff]  ;;  %v4373_v30 = vld [vmem:[#allocation11 + $0x8a0] sm:$0xff] }
 0x698   : > { %5048 = vmatpush.msra.mxu1 %v4412_v56  ;;  %v4375_v56 = vld [vmem:[#allocation11 + $0x8b0] sm:$0xff] }
 0x699   : > { %4989 = vmatpush.msrb.mxu2 %v4401_v51  ;;  %5029 = vmatpush.msra.mxu3 %v4403_v27  ;;  %v4376_v51 = vld [vmem:[#allocation11 + $0x8b8] sm:$0xff]  ;;  %v4365_v27 = vld [vmem:[#allocation11 + $0x860] sm:$0xff] }
 0x69a   : > { %5049 = vmatpush.msra.mxu1 %v4404_v61  ;;  %v4367_v61 = vld [vmem:[#allocation11 + $0x870] sm:$0xff] }
 0x69b   : > { %4990 = vmatpush.msrb.mxu2 %v4393_v36  ;;  %5030 = vmatpush.msra.mxu3 %v4395_v62  ;;  %v4368_v36 = vld [vmem:[#allocation11 + $0x878] sm:$0xff]  ;;  %v4357_v62 = vld [vmem:[#allocation11 + $0x820] sm:$0xff] }
 0x69c   : > { %5050 = vmatpush.msra.mxu1 %v4396_v59  ;;  %v4359_v59 = vld [vmem:[#allocation11 + $0x830] sm:$0xff] }
 0x69d   : > { %4991 = vmatpush.msrb.mxu2 %v4385_v1  ;;  %5031 = vmatpush.msra.mxu3 %v4387_v40  ;;  %v4360_v1 = vld [vmem:[#allocation11 + $0x838] sm:$0xff]  ;;  %v4601_v40 = vld [vmem:[#allocation11 + $0xfc0] sm:$0xff] }
 0x69e   : > { %5051 = vmatpush.msra.mxu1 %v4388_v57  ;;  %v4603_v57 = vld [vmem:[#allocation11 + $0xfd0] sm:$0xff] }
 0x69f   : > { %4992 = vmatpush.msrb.mxu2 %v4377_v44  ;;  %5032 = vmatpush.msra.mxu3 %v4379_v25  ;;  %v4604_v44 = vld [vmem:[#allocation11 + $0xfd8] sm:$0xff]  ;;  %v4593_v25 = vld [vmem:[#allocation11 + $0xf80] sm:$0xff] }
 0x6a0   : > { %5052 = vmatpush.msra.mxu1 %v4380_v45  ;;  %v4595_v45 = vld [vmem:[#allocation11 + $0xf90] sm:$0xff] }
 0x6a1   : > { %4993 = vmatpush.msrb.mxu2 %v4369_v28  ;;  %5033 = vmatpush.msra.mxu3 %v4371_v16  ;;  %v4596_v28 = vld [vmem:[#allocation11 + $0xf98] sm:$0xff]  ;;  %v4585_v16 = vld [vmem:[#allocation11 + $0xf40] sm:$0xff] }
 0x6a2   : > { %5053 = vmatpush.msra.mxu1 %v4372_v5  ;;  %v4587_v5 = vld [vmem:[#allocation11 + $0xf50] sm:$0xff] }
 0x6a3   : > { %4994 = vmatpush.msrb.mxu2 %v4361_v50  ;;  %5034 = vmatpush.msra.mxu3 %v4363_v46  ;;  %v4588_v50 = vld [vmem:[#allocation11 + $0xf58] sm:$0xff]  ;;  %v4577_v46 = vld [vmem:[#allocation11 + $0xf00] sm:$0xff] }
 0x6a4   : > { %5054 = vmatpush.msra.mxu1 %v4364_v52  ;;  %v4579_v52 = vld [vmem:[#allocation11 + $0xf10] sm:$0xff] }
 0x6a5   : > { %4995 = vmatpush.msrb.mxu2 %v4353_v37  ;;  %5035 = vmatpush.msra.mxu3 %v4355_v21  ;;  %v4580_v37 = vld [vmem:[#allocation11 + $0xf18] sm:$0xff]  ;;  %v4569_v21 = vld [vmem:[#allocation11 + $0xec0] sm:$0xff] }
 0x6a6   : > { %5055 = vmatpush.msra.mxu1 %v4356_v33  ;;  %4996 = vmatmul.f32.vlgmr.msrb.gmra.mxu2 %v8922_v55  ;;  %v4572_v33 = vld [vmem:[#allocation11 + $0xed8] sm:$0xff] }
 0x6a7   : > { %5036 = vmatmul.f32.vlgmr.msra.gmra.mxu3 %v8922_v55  ;;  %5056 = vmatmul.f32.vlgmr.msra.gmra.mxu1 %v8922_v55 }
 0x6a8   : > { %5060 = vmatpush.msra.mxu2 %v4477_v18  ;;  %5100 = vmatpush.msrb.mxu3 %v4479_v7  ;;  %v4561_v18 = vld [vmem:[#allocation11 + $0xe80] sm:$0xff]  ;;  %v4563_v7 = vld [vmem:[#allocation11 + $0xe90] sm:$0xff] }
 0x6a9   : > { %5120 = vmatpush.msrb.mxu1 %v4480_v8  ;;  %v4564_v8 = vld [vmem:[#allocation11 + $0xe98] sm:$0xff] }
 0x6aa   : > { %5061 = vmatpush.msra.mxu2 %v4469_v13  ;;  %5101 = vmatpush.msrb.mxu3 %v4471_v34  ;;  %v4553_v13 = vld [vmem:[#allocation11 + $0xe40] sm:$0xff]  ;;  %v4555_v34 = vld [vmem:[#allocation11 + $0xe50] sm:$0xff] }
 0x6ab   : > { %5121 = vmatpush.msrb.mxu1 %v4472_v35  ;;  %v4556_v35 = vld [vmem:[#allocation11 + $0xe58] sm:$0xff] }
 0x6ac   : > { %5062 = vmatpush.msra.mxu2 %v4461_v49  ;;  %5102 = vmatpush.msrb.mxu3 %v4463_v53  ;;  %v4545_v49 = vld [vmem:[#allocation11 + $0xe00] sm:$0xff]  ;;  %v4547_v53 = vld [vmem:[#allocation11 + $0xe10] sm:$0xff] }
 0x6ad   : > { %5122 = vmatpush.msrb.mxu1 %v4464_v11  ;;  %v4548_v11 = vld [vmem:[#allocation11 + $0xe18] sm:$0xff] }
 0x6ae   : > { %5063 = vmatpush.msra.mxu2 %v4453_v43  ;;  %5103 = vmatpush.msrb.mxu3 %v4455_v12  ;;  %v4537_v43 = vld [vmem:[#allocation11 + $0xdc0] sm:$0xff]  ;;  %v4539_v12 = vld [vmem:[#allocation11 + $0xdd0] sm:$0xff] }
 0x6af   : > { %5123 = vmatpush.msrb.mxu1 %v4456_v63  ;;  %v4540_v63 = vld [vmem:[#allocation11 + $0xdd8] sm:$0xff] }
 0x6b0   : > { %5064 = vmatpush.msra.mxu2 %v4445_v23  ;;  %5104 = vmatpush.msrb.mxu3 %v4447_v17  ;;  %v4529_v23 = vld [vmem:[#allocation11 + $0xd80] sm:$0xff]  ;;  %v4531_v17 = vld [vmem:[#allocation11 + $0xd90] sm:$0xff] }
 0x6b1   : > { %5124 = vmatpush.msrb.mxu1 %v4448_v32  ;;  %v4532_v32 = vld [vmem:[#allocation11 + $0xd98] sm:$0xff] }
 0x6b2   : > { %5065 = vmatpush.msra.mxu2 %v4437_v19  ;;  %5105 = vmatpush.msrb.mxu3 %v4439_v6  ;;  %v4521_v19 = vld [vmem:[#allocation11 + $0xd40] sm:$0xff]  ;;  %v4523_v6 = vld [vmem:[#allocation11 + $0xd50] sm:$0xff] }
 0x6b3   : > { %5125 = vmatpush.msrb.mxu1 %v4440_v24  ;;  %v4524_v24 = vld [vmem:[#allocation11 + $0xd58] sm:$0xff] }
 0x6b4   : > { %5066 = vmatpush.msra.mxu2 %v4429_v48  ;;  %5106 = vmatpush.msrb.mxu3 %v4431_v22  ;;  %v4513_v48 = vld [vmem:[#allocation11 + $0xd00] sm:$0xff]  ;;  %v4515_v22 = vld [vmem:[#allocation11 + $0xd10] sm:$0xff] }
 0x6b5   : > { %5126 = vmatpush.msrb.mxu1 %v4432_v54  ;;  %v4516_v54 = vld [vmem:[#allocation11 + $0xd18] sm:$0xff] }
 0x6b6   : > { %5067 = vmatpush.msra.mxu2 %v4421_v10  ;;  %5107 = vmatpush.msrb.mxu3 %v4423_v26  ;;  %v4505_v10 = vld [vmem:[#allocation11 + $0xcc0] sm:$0xff]  ;;  %v4507_v26 = vld [vmem:[#allocation11 + $0xcd0] sm:$0xff] }
 0x6b7   : > { %5127 = vmatpush.msrb.mxu1 %v4424_v4  ;;  %v4508_v4 = vld [vmem:[#allocation11 + $0xcd8] sm:$0xff] }
 0x6b8   : > { %5068 = vmatpush.msra.mxu2 %v4413_v14  ;;  %5108 = vmatpush.msrb.mxu3 %v4415_v3  ;;  %v4497_v14 = vld [vmem:[#allocation11 + $0xc80] sm:$0xff]  ;;  %v4499_v3 = vld [vmem:[#allocation11 + $0xc90] sm:$0xff] }
 0x6b9   : > { %5128 = vmatpush.msrb.mxu1 %v4416_v31  ;;  %v4500_v31 = vld [vmem:[#allocation11 + $0xc98] sm:$0xff] }
 0x6ba   : > { %5069 = vmatpush.msra.mxu2 %v4405_v15  ;;  %5109 = vmatpush.msrb.mxu3 %v4407_v60  ;;  %v4489_v15 = vld [vmem:[#allocation11 + $0xc40] sm:$0xff]  ;;  %v4491_v60 = vld [vmem:[#allocation11 + $0xc50] sm:$0xff] }
 0x6bb   : > { %5129 = vmatpush.msrb.mxu1 %v4408_v29  ;;  %v4492_v29 = vld [vmem:[#allocation11 + $0xc58] sm:$0xff] }
 0x6bc   : > { %5070 = vmatpush.msra.mxu2 %v4397_v2  ;;  %5110 = vmatpush.msrb.mxu3 %v4399_v20  ;;  %v4481_v2 = vld [vmem:[#allocation11 + $0xc00] sm:$0xff]  ;;  %v4483_v20 = vld [vmem:[#allocation11 + $0xc10] sm:$0xff] }
 0x6bd   : > { %5130 = vmatpush.msrb.mxu1 %v4400_v58  ;;  %v4484_v58 = vld [vmem:[#allocation11 + $0xc18] sm:$0xff] }
 0x6be   : > { %5071 = vmatpush.msra.mxu2 %v4389_v0  ;;  %5111 = vmatpush.msrb.mxu3 %v4391_v9  ;;  %v4605_v0 = vld [vmem:[#allocation11 + $0xfe0] sm:$0xff]  ;;  %v4607_v9 = vld [vmem:[#allocation11 + $0xff0] sm:$0xff] }
 0x6bf   : > { %5131 = vmatpush.msrb.mxu1 %v4392_v41  ;;  %v4608_v41 = vld [vmem:[#allocation11 + $0xff8] sm:$0xff] }
 0x6c0   : > { %5072 = vmatpush.msra.mxu2 %v4381_v39  ;;  %5112 = vmatpush.msrb.mxu3 %v4383_v38  ;;  %v4597_v39 = vld [vmem:[#allocation11 + $0xfa0] sm:$0xff]  ;;  %v4599_v38 = vld [vmem:[#allocation11 + $0xfb0] sm:$0xff] }
 0x6c1   : > { %5132 = vmatpush.msrb.mxu1 %v4384_v42  ;;  %v4600_v42 = vld [vmem:[#allocation11 + $0xfb8] sm:$0xff] }
 0x6c2   : > { %5073 = vmatpush.msra.mxu2 %v4373_v30  ;;  %5113 = vmatpush.msrb.mxu3 %v4375_v56  ;;  %v4589_v30 = vld [vmem:[#allocation11 + $0xf60] sm:$0xff]  ;;  %v4591_v56 = vld [vmem:[#allocation11 + $0xf70] sm:$0xff] }
 0x6c3   : > { %5133 = vmatpush.msrb.mxu1 %v4376_v51  ;;  %v4592_v51 = vld [vmem:[#allocation11 + $0xf78] sm:$0xff] }
 0x6c4   : > { %5074 = vmatpush.msra.mxu2 %v4365_v27  ;;  %5114 = vmatpush.msrb.mxu3 %v4367_v61  ;;  %v4581_v27 = vld [vmem:[#allocation11 + $0xf20] sm:$0xff]  ;;  %v4583_v61 = vld [vmem:[#allocation11 + $0xf30] sm:$0xff] }
 0x6c5   : > { %5134 = vmatpush.msrb.mxu1 %v4368_v36  ;;  %v4584_v36 = vld [vmem:[#allocation11 + $0xf38] sm:$0xff] }
 0x6c6   : > { %5075 = vmatpush.msra.mxu2 %v4357_v62  ;;  %5115 = vmatpush.msrb.mxu3 %v4359_v59  ;;  %v4573_v62 = vld [vmem:[#allocation11 + $0xee0] sm:$0xff]  ;;  %v4575_v59 = vld [vmem:[#allocation11 + $0xef0] sm:$0xff] }
 0x6c7   : > { %5135 = vmatpush.msrb.mxu1 %v4360_v1  ;;  %5076 = vmatmul.f32.vlgmr.msra.gmra.mxu2 %v8922_v55  ;;  %v4576_v1 = vld [vmem:[#allocation11 + $0xef8] sm:$0xff] }
 0x6c8   : > { %5116 = vmatmul.f32.vlgmr.msrb.gmra.mxu3 %v8922_v55  ;;  %5136 = vmatmul.f32.vlgmr.msrb.gmra.mxu1 %v8922_v55  ;;  %v4571_v55 = vld [vmem:[#allocation11 + $0xed0] sm:$0xff] }
 0x6c9   : > { %5164 = vmatpush.msrb.mxu2 %v4601_v40  ;;  %5204 = vmatpush.msra.mxu3 %v4603_v57  ;;  %v4565_v40 = vld [vmem:[#allocation11 + $0xea0] sm:$0xff]  ;;  %v4567_v57 = vld [vmem:[#allocation11 + $0xeb0] sm:$0xff] }
 0x6ca   : > { %5224 = vmatpush.msra.mxu1 %v4604_v44  ;;  %v4568_v44 = vld [vmem:[#allocation11 + $0xeb8] sm:$0xff] }
 0x6cb   : > { %5165 = vmatpush.msrb.mxu2 %v4593_v25  ;;  %5205 = vmatpush.msra.mxu3 %v4595_v45  ;;  %v4557_v25 = vld [vmem:[#allocation11 + $0xe60] sm:$0xff]  ;;  %v4559_v45 = vld [vmem:[#allocation11 + $0xe70] sm:$0xff] }
 0x6cc   : > { %5225 = vmatpush.msra.mxu1 %v4596_v28  ;;  %v4560_v28 = vld [vmem:[#allocation11 + $0xe78] sm:$0xff] }
 0x6cd   : > { %5166 = vmatpush.msrb.mxu2 %v4585_v16  ;;  %5206 = vmatpush.msra.mxu3 %v4587_v5  ;;  %v4549_v16 = vld [vmem:[#allocation11 + $0xe20] sm:$0xff]  ;;  %v4551_v5 = vld [vmem:[#allocation11 + $0xe30] sm:$0xff] }
 0x6ce   : > { %5226 = vmatpush.msra.mxu1 %v4588_v50  ;;  %v4552_v50 = vld [vmem:[#allocation11 + $0xe38] sm:$0xff] }
 0x6cf   : > { %5167 = vmatpush.msrb.mxu2 %v4577_v46  ;;  %5207 = vmatpush.msra.mxu3 %v4579_v52  ;;  %v4541_v46 = vld [vmem:[#allocation11 + $0xde0] sm:$0xff]  ;;  %v4543_v52 = vld [vmem:[#allocation11 + $0xdf0] sm:$0xff] }
 0x6d0   : > { %5227 = vmatpush.msra.mxu1 %v4580_v37  ;;  %v4544_v37 = vld [vmem:[#allocation11 + $0xdf8] sm:$0xff] }
 0x6d1   : > { %5168 = vmatpush.msrb.mxu2 %v4569_v21  ;;  %5208 = vmatpush.msra.mxu3 %v4571_v55  ;;  %v4533_v21 = vld [vmem:[#allocation11 + $0xda0] sm:$0xff]  ;;  %v4535_v55 = vld [vmem:[#allocation11 + $0xdb0] sm:$0xff] }
 0x6d2   : > { %5228 = vmatpush.msra.mxu1 %v4572_v33  ;;  %v4536_v33 = vld [vmem:[#allocation11 + $0xdb8] sm:$0xff] }
 0x6d3   : > { %5169 = vmatpush.msrb.mxu2 %v4561_v18  ;;  %5209 = vmatpush.msra.mxu3 %v4563_v7  ;;  %v4525_v18 = vld [vmem:[#allocation11 + $0xd60] sm:$0xff]  ;;  %v4527_v7 = vld [vmem:[#allocation11 + $0xd70] sm:$0xff] }
 0x6d4   : > { %5229 = vmatpush.msra.mxu1 %v4564_v8  ;;  %v4528_v8 = vld [vmem:[#allocation11 + $0xd78] sm:$0xff] }
 0x6d5   : > { %5170 = vmatpush.msrb.mxu2 %v4553_v13  ;;  %5210 = vmatpush.msra.mxu3 %v4555_v34  ;;  %v4517_v13 = vld [vmem:[#allocation11 + $0xd20] sm:$0xff]  ;;  %v4519_v34 = vld [vmem:[#allocation11 + $0xd30] sm:$0xff] }
 0x6d6   : > { %5230 = vmatpush.msra.mxu1 %v4556_v35  ;;  %v4520_v35 = vld [vmem:[#allocation11 + $0xd38] sm:$0xff] }
 0x6d7   : > { %5171 = vmatpush.msrb.mxu2 %v4545_v49  ;;  %5211 = vmatpush.msra.mxu3 %v4547_v53  ;;  %v4509_v49 = vld [vmem:[#allocation11 + $0xce0] sm:$0xff]  ;;  %v4511_v53 = vld [vmem:[#allocation11 + $0xcf0] sm:$0xff] }
 0x6d8   : > { %5231 = vmatpush.msra.mxu1 %v4548_v11  ;;  %v4512_v11 = vld [vmem:[#allocation11 + $0xcf8] sm:$0xff] }
 0x6d9   : > { %5172 = vmatpush.msrb.mxu2 %v4537_v43  ;;  %5212 = vmatpush.msra.mxu3 %v4539_v12  ;;  %v4501_v43 = vld [vmem:[#allocation11 + $0xca0] sm:$0xff]  ;;  %v4503_v12 = vld [vmem:[#allocation11 + $0xcb0] sm:$0xff] }
 0x6da   : > { %5232 = vmatpush.msra.mxu1 %v4540_v63  ;;  %v4504_v63 = vld [vmem:[#allocation11 + $0xcb8] sm:$0xff] }
 0x6db   : > { %5173 = vmatpush.msrb.mxu2 %v4529_v23  ;;  %5213 = vmatpush.msra.mxu3 %v4531_v17  ;;  %v4493_v23 = vld [vmem:[#allocation11 + $0xc60] sm:$0xff]  ;;  %v4495_v17 = vld [vmem:[#allocation11 + $0xc70] sm:$0xff] }
 0x6dc   : > { %5233 = vmatpush.msra.mxu1 %v4532_v32  ;;  %v4496_v32 = vld [vmem:[#allocation11 + $0xc78] sm:$0xff] }
 0x6dd   : > { %5174 = vmatpush.msrb.mxu2 %v4521_v19  ;;  %5214 = vmatpush.msra.mxu3 %v4523_v6  ;;  %v4485_v19 = vld [vmem:[#allocation11 + $0xc20] sm:$0xff]  ;;  %v4487_v6 = vld [vmem:[#allocation11 + $0xc30] sm:$0xff] }
 0x6de   : > { %5234 = vmatpush.msra.mxu1 %v4524_v24  ;;  %v4488_v24 = vld [vmem:[#allocation11 + $0xc38] sm:$0xff] }
 0x6df   : > { %5175 = vmatpush.msrb.mxu2 %v4513_v48  ;;  %5215 = vmatpush.msra.mxu3 %v4515_v22  ;;  %v5364_v48 = vld [vmem:[%s9476_s9 + $0x78] sm:$0xff] }
 0x6e0   : > { %5235 = vmatpush.msra.mxu1 %v4516_v54  ;;  %v5380_v22 = vld [vmem:[%s9476_s9 + $0xf8] sm:$0xff] }
 0x6e1   : > { %5176 = vmatpush.msrb.mxu2 %v4505_v10  ;;  %5216 = vmatpush.msra.mxu3 %v4507_v26  ;;  %v5396_v54 = vld [vmem:[%s9476_s9 + $0x178] sm:$0xff]  ;;  %v5379_v26 = vld [vmem:[%s9476_s9 + $0xf0] sm:$0xff] }
 0x6e2   : > { %5236 = vmatpush.msra.mxu1 %v4508_v4  ;;  %5515 = vmatpush.msra.mxu0 %v5380_v22  ;;  %v5412_v10 = vld [vmem:[%s9476_s9 + $0x1f8] sm:$0xff]  ;;  %v5395_v4 = vld [vmem:[%s9476_s9 + $0x170] sm:$0xff]  ;;  %v5366_v22 = vld [vmem:[%s9476_s9 + $0x88] sm:$0xff] }
 0x6e3   : > { %5177 = vmatpush.msrb.mxu2 %v4497_v14  ;;  %5217 = vmatpush.msra.mxu3 %v4499_v3  ;;  %v5411_v14 = vld [vmem:[%s9476_s9 + $0x1f0] sm:$0xff]  ;;  %v5362_v3 = vld [vmem:[%s9476_s9 + $0x68] sm:$0xff] }
 0x6e4   : > { %5237 = vmatpush.msra.mxu1 %v4500_v31  ;;  %5516 = vmatpush.msra.mxu0 %v5379_v26  ;;  %v5378_v31 = vld [vmem:[%s9476_s9 + $0xe8] sm:$0xff]  ;;  %v5349_v26 = vld [vmem:[%s9476_s9] sm:$0xff] }
 0x6e5   : > { %5178 = vmatpush.msrb.mxu2 %v4489_v15  ;;  %5218 = vmatpush.msra.mxu3 %v4491_v60  ;;  %v5394_v15 = vld [vmem:[%s9476_s9 + $0x168] sm:$0xff] }
 0x6e6   : > { %5238 = vmatpush.msra.mxu1 %v4492_v29  ;;  %v5410_v60 = vld [vmem:[%s9476_s9 + $0x1e8] sm:$0xff]  ;;  %5517 = vmatpush.msra.mxu0 %v5378_v31  ;;  %v5361_v29 = vld [vmem:[%s9476_s9 + $0x60] sm:$0xff]  ;;  %v5428_v31 = vld [vmem:[%s9476_s9 + $0x278] sm:$0xff] }
 0x6e7   : > { %5179 = vmatpush.msrb.mxu2 %v4481_v2  ;;  %5219 = vmatpush.msra.mxu3 %v4483_v20  ;;  %v5377_v2 = vld [vmem:[%s9476_s9 + $0xe0] sm:$0xff] }
 0x6e8   : > { %5239 = vmatpush.msra.mxu1 %v4484_v58  ;;  %5180 = vmatmul.f32.vlgmr.msrb.gmra.mxu2 %v8935_v47  ;;  %v5393_v20 = vld [vmem:[%s9476_s9 + $0x160] sm:$0xff] }
 0x6e9   : > { %5220 = vmatmul.f32.vlgmr.msra.gmra.mxu3 %v8935_v47  ;;  %5240 = vmatmul.f32.vlgmr.msra.gmra.mxu1 %v8935_v47  ;;  %v5409_v58 = vld [vmem:[%s9476_s9 + $0x1e0] sm:$0xff] }
 0x6ea   : > { %5244 = vmatpush.msra.mxu2 %v4605_v0  ;;  %5284 = vmatpush.msrb.mxu3 %v4607_v9  ;;  %v5360_v0 = vld [vmem:[%s9476_s9 + $0x58] sm:$0xff] }
 0x6eb   : > { %5304 = vmatpush.msrb.mxu1 %v4608_v41  ;;  %5518 = vmatpush.msra.mxu0 %v5377_v2  ;;  %v5376_v9 = vld [vmem:[%s9476_s9 + $0xd8] sm:$0xff]  ;;  %v9008_v41 = vpop.f32.mrf.mxu1  ;;  %v5427_v2 = vld [vmem:[%s9476_s9 + $0x270] sm:$0xff] }
 0x6ec   : > { %5245 = vmatpush.msra.mxu2 %v4597_v39  ;;  %5285 = vmatpush.msrb.mxu3 %v4599_v38  ;;  %v5392_v39 = vld [vmem:[%s9476_s9 + $0x158] sm:$0xff] }
 0x6ed   : > { %5305 = vmatpush.msrb.mxu1 %v4600_v42  ;;  %v5408_v38 = vld [vmem:[%s9476_s9 + $0x1d8] sm:$0xff]  ;;  %v5359_v42 = vld [vmem:[%s9476_s9 + $0x50] sm:$0xff]  ;;  %5519 = vmatpush.msra.mxu0 %v5376_v9 }
 0x6ee   : > { %5246 = vmatpush.msra.mxu2 %v4589_v30  ;;  %5286 = vmatpush.msrb.mxu3 %v4591_v56  ;;  %v9019_v30 = vpop.f32.mrf.mxu2  ;;  %v5375_v56 = vld [vmem:[%s9476_s9 + $0xd0] sm:$0xff] }
 0x6ef   : > { %5306 = vmatpush.msrb.mxu1 %v4592_v51  ;;  %v5391_v51 = vld [vmem:[%s9476_s9 + $0x150] sm:$0xff]  ;;  %5520 = vmatpush.msra.mxu0 %v5375_v56 }
 0x6f0   : > { %5247 = vmatpush.msra.mxu2 %v4581_v27  ;;  %5287 = vmatpush.msrb.mxu3 %v4583_v61  ;;  %v5407_v27 = vld [vmem:[%s9476_s9 + $0x1d0] sm:$0xff]  ;;  %v9030_v61 = vpop.f32.mrf.mxu3 }
 0x6f1   : > { %5307 = vmatpush.msrb.mxu1 %v4584_v36  ;;  %v5358_v36 = vld [vmem:[%s9476_s9 + $0x48] sm:$0xff]  ;;  %v5475_v9 = vld [vmem:[%s9476_s9 + $0x3f0] sm:$0xff] }
 0x6f2   : > { %5248 = vmatpush.msra.mxu2 %v4573_v62  ;;  %5288 = vmatpush.msrb.mxu3 %v4575_v59  ;;  %v5374_v62 = vld [vmem:[%s9476_s9 + $0xc8] sm:$0xff] }
 0x6f3   : > { %5308 = vmatpush.msrb.mxu1 %v4576_v1  ;;  %v5390_v59 = vld [vmem:[%s9476_s9 + $0x148] sm:$0xff]  ;;  %5521 = vmatpush.msra.mxu0 %v5374_v62  ;;  %v5441_v62 = vld [vmem:[%s9476_s9 + $0x2e0] sm:$0xff] }
 0x6f4   : > { %5249 = vmatpush.msra.mxu2 %v4565_v40  ;;  %5289 = vmatpush.msrb.mxu3 %v4567_v57  ;;  %v5406_v1 = vld [vmem:[%s9476_s9 + $0x1c8] sm:$0xff]  ;;  %v5357_v40 = vld [vmem:[%s9476_s9 + $0x40] sm:$0xff] }
 0x6f5   : > { %5309 = vmatpush.msrb.mxu1 %v4568_v44  ;;  %v5373_v57 = vld [vmem:[%s9476_s9 + $0xc0] sm:$0xff] }
 0x6f6   : > { %5250 = vmatpush.msra.mxu2 %v4557_v25  ;;  %5290 = vmatpush.msrb.mxu3 %v4559_v45  ;;  %v5389_v44 = vld [vmem:[%s9476_s9 + $0x140] sm:$0xff]  ;;  %v5356_v45 = vld [vmem:[%s9476_s9 + $0x38] sm:$0xff] }
 0x6f7   : > { %5310 = vmatpush.msrb.mxu1 %v4560_v28  ;;  %5522 = vmatpush.msra.mxu0 %v5373_v57  ;;  %v5405_v25 = vld [vmem:[%s9476_s9 + $0x1c0] sm:$0xff]  ;;  %v5372_v28 = vld [vmem:[%s9476_s9 + $0xb8] sm:$0xff] }
 0x6f8   : > { %5251 = vmatpush.msra.mxu2 %v4549_v16  ;;  %5291 = vmatpush.msrb.mxu3 %v4551_v5  ;;  %v5388_v16 = vld [vmem:[%s9476_s9 + $0x138] sm:$0xff] }
 0x6f9   : > { %5311 = vmatpush.msrb.mxu1 %v4552_v50  ;;  %v5404_v5 = vld [vmem:[%s9476_s9 + $0x1b8] sm:$0xff]  ;;  %v5355_v50 = vld [vmem:[%s9476_s9 + $0x30] sm:$0xff]  ;;  %5523 = vmatpush.msra.mxu0 %v5372_v28 }
 0x6fa   : > { %5252 = vmatpush.msra.mxu2 %v4541_v46  ;;  %5292 = vmatpush.msrb.mxu3 %v4543_v52  ;;  %v9071_v46 = vpop.f32.mrf.mxu1  ;;  %v5371_v52 = vld [vmem:[%s9476_s9 + $0xb0] sm:$0xff]  ;;  %v5440_v57 = vld [vmem:[%s9476_s9 + $0x2d8] sm:$0xff] }
 0x6fb   : > { %5312 = vmatpush.msrb.mxu1 %v4544_v37  ;;  %v5387_v37 = vld [vmem:[%s9476_s9 + $0x130] sm:$0xff]  ;;  %5524 = vmatpush.msra.mxu0 %v5371_v52 }
 0x6fc   : > { %5253 = vmatpush.msra.mxu2 %v4533_v21  ;;  %5293 = vmatpush.msrb.mxu3 %v4535_v55  ;;  %v5403_v21 = vld [vmem:[%s9476_s9 + $0x1b0] sm:$0xff]  ;;  %v9082_v55 = vpop.f32.mrf.mxu2 }
 0x6fd   : > { %5313 = vmatpush.msrb.mxu1 %v4536_v33  ;;  %v5354_v33 = vld [vmem:[%s9476_s9 + $0x28] sm:$0xff]  ;;  %v5423_v28 = vld [vmem:[%s9476_s9 + $0x250] sm:$0xff] }
 0x6fe   : > { %5254 = vmatpush.msra.mxu2 %v4525_v18  ;;  %5294 = vmatpush.msrb.mxu3 %v4527_v7  ;;  %v5370_v18 = vld [vmem:[%s9476_s9 + $0xa8] sm:$0xff]  ;;  %v9090_v7 = vpop.f32.mrf.mxu3  ;;  %v5471_v52 = vld [vmem:[%s9476_s9 + $0x3d0] sm:$0xff] }
 0x6ff   : > { %5314 = vmatpush.msrb.mxu1 %v4528_v8  ;;  %v5386_v8 = vld [vmem:[%s9476_s9 + $0x128] sm:$0xff]  ;;  %5525 = vmatpush.msra.mxu0 %v5370_v18 }
 0x700   : > { %5255 = vmatpush.msra.mxu2 %v4517_v13  ;;  %5295 = vmatpush.msrb.mxu3 %v4519_v34  ;;  %v5402_v13 = vld [vmem:[%s9476_s9 + $0x1a8] sm:$0xff]  ;;  %v5353_v34 = vld [vmem:[%s9476_s9 + $0x20] sm:$0xff] }
 0x701   : > { %5315 = vmatpush.msrb.mxu1 %v4520_v35  ;;  %v5369_v35 = vld [vmem:[%s9476_s9 + $0xa0] sm:$0xff]  ;;  %v5438_v18 = vld [vmem:[%s9476_s9 + $0x2c8] sm:$0xff] }
 0x702   : > { %5256 = vmatpush.msra.mxu2 %v4509_v49  ;;  %5296 = vmatpush.msrb.mxu3 %v4511_v53  ;;  %v5385_v49 = vld [vmem:[%s9476_s9 + $0x120] sm:$0xff] }
 0x703   : > { %5316 = vmatpush.msrb.mxu1 %v4512_v11  ;;  %v5401_v53 = vld [vmem:[%s9476_s9 + $0x1a0] sm:$0xff]  ;;  %v5352_v11 = vld [vmem:[%s9476_s9 + $0x18] sm:$0xff]  ;;  %5526 = vmatpush.msra.mxu0 %v5369_v35 }
 0x704   : > { %5257 = vmatpush.msra.mxu2 %v4501_v43  ;;  %5297 = vmatpush.msrb.mxu3 %v4503_v12  ;;  %v5368_v43 = vld [vmem:[%s9476_s9 + $0x98] sm:$0xff]  ;;  %v5437_v35 = vld [vmem:[%s9476_s9 + $0x2c0] sm:$0xff] }
 0x705   : > { %5317 = vmatpush.msrb.mxu1 %v4504_v63  ;;  %v5384_v12 = vld [vmem:[%s9476_s9 + $0x118] sm:$0xff]  ;;  %5527 = vmatpush.msra.mxu0 %v5368_v43 }
 0x706   : > { %5258 = vmatpush.msra.mxu2 %v4493_v23  ;;  %5298 = vmatpush.msrb.mxu3 %v4495_v17  ;;  %v5400_v63 = vld [vmem:[%s9476_s9 + $0x198] sm:$0xff]  ;;  %v5351_v23 = vld [vmem:[%s9476_s9 + $0x10] sm:$0xff] }
 0x707   : > { %5318 = vmatpush.msrb.mxu1 %v4496_v32  ;;  %v5367_v17 = vld [vmem:[%s9476_s9 + $0x90] sm:$0xff]  ;;  %v9128_v32 = vpop.f32.mrf.mxu1  ;;  %v5436_v43 = vld [vmem:[%s9476_s9 + $0x2b8] sm:$0xff] }
 0x708   : > { %5259 = vmatpush.msra.mxu2 %v4485_v19  ;;  %5299 = vmatpush.msrb.mxu3 %v4487_v6  ;;  %v5383_v19 = vld [vmem:[%s9476_s9 + $0x110] sm:$0xff] }
 0x709   : > { %5319 = vmatpush.msrb.mxu1 %v4488_v24  ;;  %5260 = vmatmul.f32.vlgmr.msra.gmra.mxu2 %v8935_v47  ;;  %v5399_v6 = vld [vmem:[%s9476_s9 + $0x190] sm:$0xff]  ;;  %v9136_v24 = vpop.f32.mrf.mxu2 }
 0x70a   : > { %5300 = vmatmul.f32.vlgmr.msrb.gmra.mxu3 %v8935_v47  ;;  %5320 = vmatmul.f32.vlgmr.msrb.gmra.mxu1 %v8935_v47  ;;  %v5363_v47 = vld [vmem:[%s9476_s9 + $0x70] sm:$0xff] }
 0x70b   : > { %5495 = vmatpush.msrb.mxu2 %v5364_v48  ;;  %5535 = vmatpush.msra.mxu3 %v5396_v54  ;;  %v5350_v48 = vld [vmem:[%s9476_s9 + $0x8] sm:$0xff]  ;;  %v9144_v54 = vpop.f32.mrf.mxu3 }
 0x70c   : > { %5555 = vmatpush.msra.mxu1 %v5412_v10  ;;  %5528 = vmatpush.msra.mxu0 %v5367_v17  ;;  %v5382_v10 = vld [vmem:[%s9476_s9 + $0x108] sm:$0xff] }
 0x70d   : > { %5496 = vmatpush.msrb.mxu2 %v5363_v47  ;;  %5536 = vmatpush.msra.mxu3 %v5395_v4  ;;  %v5398_v47 = vld [vmem:[%s9476_s9 + $0x188] sm:$0xff]  ;;  %v5365_v4 = vld [vmem:[%s9476_s9 + $0x80] sm:$0xff] }
 0x70e   : > { %5556 = vmatpush.msra.mxu1 %v5411_v14  ;;  %5529 = vmatpush.msra.mxu0 %v5366_v22  ;;  %v5381_v14 = vld [vmem:[%s9476_s9 + $0x100] sm:$0xff] }
 0x70f   : > { %5497 = vmatpush.msrb.mxu2 %v5362_v3  ;;  %5537 = vmatpush.msra.mxu3 %v5394_v15  ;;  %v5397_v3 = vld [vmem:[%s9476_s9 + $0x180] sm:$0xff]  ;;  %v5444_v15 = vld [vmem:[%s9476_s9 + $0x2f8] sm:$0xff] }
 0x710   : > { %5557 = vmatpush.msra.mxu1 %v5410_v60  ;;  %5530 = vmatpush.msra.mxu0 %v5365_v4  ;;  %v5460_v60 = vld [vmem:[%s9476_s9 + $0x378] sm:$0xff]  ;;  %v5434_v4 = vld [vmem:[%s9476_s9 + $0x2a8] sm:$0xff] }
 0x711   : > { %5498 = vmatpush.msrb.mxu2 %v5361_v29  ;;  %5538 = vmatpush.msra.mxu3 %v5393_v20  ;;  %v5476_v29 = vld [vmem:[%s9476_s9 + $0x3f8] sm:$0xff]  ;;  %v5443_v20 = vld [vmem:[%s9476_s9 + $0x2f0] sm:$0xff] }
 0x712   : > { %5558 = vmatpush.msra.mxu1 %v5409_v58  ;;  %v9182_v58 = vpop.f32.mrf.mxu1  ;;  %5595 = vmatpush.msrb.mxu0 %v5444_v15  ;;  %v5433_v15 = vld [vmem:[%s9476_s9 + $0x2a0] sm:$0xff] }
 0x713   : > { %5499 = vmatpush.msrb.mxu2 %v5360_v0  ;;  %5539 = vmatpush.msra.mxu3 %v5392_v39  ;;  %v5459_v0 = vld [vmem:[%s9476_s9 + $0x370] sm:$0xff]  ;;  %v9190_v39 = vpop.f32.mrf.mxu2  ;;  %v9198_v56 = vpop.f32.mrf.mxu3 }
 0x714   : > { %5559 = vmatpush.msra.mxu1 %v5408_v38  ;;  %v5426_v38 = vld [vmem:[%s9476_s9 + $0x268] sm:$0xff]  ;;  %5596 = vmatpush.msrb.mxu0 %v5443_v20  ;;  %v5416_v20 = vld [vmem:[%s9476_s9 + $0x218] sm:$0xff] }
 0x715   : > { %5500 = vmatpush.msrb.mxu2 %v5359_v42  ;;  %5540 = vmatpush.msra.mxu3 %v5391_v51  ;;  %v5442_v42 = vld [vmem:[%s9476_s9 + $0x2e8] sm:$0xff] }
 0x716   : > { %5560 = vmatpush.msra.mxu1 %v5407_v27  ;;  %v5458_v51 = vld [vmem:[%s9476_s9 + $0x368] sm:$0xff]  ;;  %5597 = vmatpush.msrb.mxu0 %v5442_v42  ;;  %v5464_v42 = vld [vmem:[%s9476_s9 + $0x398] sm:$0xff] }
 0x717   : > { %5501 = vmatpush.msrb.mxu2 %v5358_v36  ;;  %5541 = vmatpush.msra.mxu3 %v5390_v59  ;;  %v5474_v27 = vld [vmem:[%s9476_s9 + $0x3e8] sm:$0xff]  ;;  %v5425_v36 = vld [vmem:[%s9476_s9 + $0x260] sm:$0xff] }
 0x718   : > { %5561 = vmatpush.msra.mxu1 %v5406_v1  ;;  %v5457_v59 = vld [vmem:[%s9476_s9 + $0x360] sm:$0xff]  ;;  %5598 = vmatpush.msrb.mxu0 %v5441_v62  ;;  %v5447_v62 = vld [vmem:[%s9476_s9 + $0x310] sm:$0xff] }
 0x719   : > { %5502 = vmatpush.msrb.mxu2 %v5357_v40  ;;  %5542 = vmatpush.msra.mxu3 %v5389_v44  ;;  %v5473_v1 = vld [vmem:[%s9476_s9 + $0x3e0] sm:$0xff]  ;;  %v5424_v40 = vld [vmem:[%s9476_s9 + $0x258] sm:$0xff] }
 0x71a   : > { %5562 = vmatpush.msra.mxu1 %v5405_v25  ;;  %v5456_v44 = vld [vmem:[%s9476_s9 + $0x358] sm:$0xff]  ;;  %5599 = vmatpush.msrb.mxu0 %v5440_v57  ;;  %v5430_v57 = vld [vmem:[%s9476_s9 + $0x288] sm:$0xff] }
 0x71b   : > { %5503 = vmatpush.msrb.mxu2 %v5356_v45  ;;  %5543 = vmatpush.msra.mxu3 %v5388_v16  ;;  %v5472_v25 = vld [vmem:[%s9476_s9 + $0x3d8] sm:$0xff]  ;;  %v9230_v45 = vpop.f32.mrf.mxu0  ;;  %v5439_v16 = vld [vmem:[%s9476_s9 + $0x2d0] sm:$0xff] }
 0x71c   : > { %5563 = vmatpush.msra.mxu1 %v5404_v5  ;;  %v9238_v5 = vpop.f32.mrf.mxu1  ;;  %5600 = vmatpush.msrb.mxu0 %v5439_v16  ;;  %v4784_v16 = vrot.slane %v9144_v54, 1  ;;  %v5461_v54 = vld [vmem:[%s9476_s9 + $0x380] sm:$0xff] }
 0x71d   : > { %5504 = vmatpush.msrb.mxu2 %v5355_v50  ;;  %5544 = vmatpush.msra.mxu3 %v5387_v37  ;;  %v5455_v50 = vld [vmem:[%s9476_s9 + $0x350] sm:$0xff]  ;;  %v9246_v37 = vpop.f32.mrf.mxu2 }
 0x71e   : > { %5564 = vmatpush.msra.mxu1 %v5403_v21  ;;  %v9248_v21 = vpop.f32.mrf.mxu3  ;;  %5601 = vmatpush.msrb.mxu0 %v5438_v18  ;;  %v4781_v18 = vrot.slane %v9090_v7, 4 }
 0x71f   : > { %5505 = vmatpush.msrb.mxu2 %v5354_v33  ;;  %5545 = vmatpush.msra.mxu3 %v5386_v8  ;;  %v5422_v33 = vld [vmem:[%s9476_s9 + $0x248] sm:$0xff] }
 0x720   : > { %5565 = vmatpush.msra.mxu1 %v5402_v13  ;;  %v5454_v8 = vld [vmem:[%s9476_s9 + $0x348] sm:$0xff]  ;;  %5602 = vmatpush.msrb.mxu0 %v5437_v35  ;;  %v4967_v35 = vrot.slane %v9246_v37, 4 }
 0x721   : > { %5506 = vmatpush.msrb.mxu2 %v5353_v34  ;;  %5546 = vmatpush.msra.mxu3 %v5385_v49  ;;  %v5470_v13 = vld [vmem:[%s9476_s9 + $0x3c8] sm:$0xff]  ;;  %v5421_v34 = vld [vmem:[%s9476_s9 + $0x240] sm:$0xff] }
 0x722   : > { %5566 = vmatpush.msra.mxu1 %v5401_v53  ;;  %v5453_v49 = vld [vmem:[%s9476_s9 + $0x340] sm:$0xff]  ;;  %5603 = vmatpush.msrb.mxu0 %v5436_v43  ;;  %v4965_v43 = vrot.slane %v9198_v56, 6 }
 0x723   : > { %5507 = vmatpush.msrb.mxu2 %v5352_v11  ;;  %5547 = vmatpush.msra.mxu3 %v5384_v12  ;;  %v5469_v53 = vld [vmem:[%s9476_s9 + $0x3c0] sm:$0xff]  ;;  %v5420_v11 = vld [vmem:[%s9476_s9 + $0x238] sm:$0xff] }
 0x724   : > { %5567 = vmatpush.msra.mxu1 %v5400_v63  ;;  %v5452_v12 = vld [vmem:[%s9476_s9 + $0x338] sm:$0xff]  ;;  %v9283_v63 = vpop.f32.mrf.mxu0  ;;  %v9288_v17 = vpop.f32.mrf.mxu1 }
 0x725   : > { %5508 = vmatpush.msrb.mxu2 %v5351_v23  ;;  %5548 = vmatpush.msra.mxu3 %v5383_v19  ;;  %v5468_v23 = vld [vmem:[%s9476_s9 + $0x3b8] sm:$0xff]  ;;  %v5419_v19 = vld [vmem:[%s9476_s9 + $0x230] sm:$0xff] }
 0x726   : > { %5568 = vmatpush.msra.mxu1 %v5399_v6  ;;  %v5435_v6 = vld [vmem:[%s9476_s9 + $0x2b0] sm:$0xff] }
 0x727   : > { %5509 = vmatpush.msrb.mxu2 %v5350_v48  ;;  %5549 = vmatpush.msra.mxu3 %v5382_v10  ;;  %v5451_v48 = vld [vmem:[%s9476_s9 + $0x330] sm:$0xff] }
 0x728   : > { %5569 = vmatpush.msra.mxu1 %v5398_v47  ;;  %v5467_v10 = vld [vmem:[%s9476_s9 + $0x3b0] sm:$0xff]  ;;  %5604 = vmatpush.msrb.mxu0 %v5435_v6 }
 0x729   : > { %5510 = vmatpush.msrb.mxu2 %v5349_v26  ;;  %5550 = vmatpush.msra.mxu3 %v5381_v14  ;;  %v9299_v22 = vpop.f32.mrf.mxu2  ;;  %v5418_v26 = vld [vmem:[%s9476_s9 + $0x228] sm:$0xff] }
 0x72a   : > { %5570 = vmatpush.msra.mxu1 %v5397_v3  ;;  %v9304_v47 = vpop.f32.mrf.mxu3  ;;  %v5450_v14 = vld [vmem:[%s9476_s9 + $0x328] sm:$0xff]  ;;  %5605 = vmatpush.msrb.mxu0 %v5434_v4 }
 0x72b   : > { %5575 = vmatpush.msra.mxu2 %v5428_v31  ;;  %5615 = vmatpush.msrb.mxu3 %v5460_v60  ;;  %v5466_v3 = vld [vmem:[%s9476_s9 + $0x3a8] sm:$0xff]  ;;  %v5417_v31 = vld [vmem:[%s9476_s9 + $0x220] sm:$0xff] }
 0x72c   : > { %5635 = vmatpush.msrb.mxu1 %v5476_v29  ;;  %v5449_v60 = vld [vmem:[%s9476_s9 + $0x320] sm:$0xff]  ;;  %5606 = vmatpush.msrb.mxu0 %v5433_v15  ;;  %v4609_v15 = vld [vmem:[#allocation13] sm:$0xff] }
 0x72d   : > { %5576 = vmatpush.msra.mxu2 %v5427_v2  ;;  %5616 = vmatpush.msrb.mxu3 %v5459_v0  ;;  %v5465_v29 = vld [vmem:[%s9476_s9 + $0x3a0] sm:$0xff]  ;;  %v9330_v2 = vpop.f32.mrf.mxu0  ;;  %v5432_v0 = vld [vmem:[%s9476_s9 + $0x298] sm:$0xff] }
 0x72e   : > { %5636 = vmatpush.msrb.mxu1 %v5475_v9  ;;  %v5448_v9 = vld [vmem:[%s9476_s9 + $0x318] sm:$0xff]  ;;  %5607 = vmatpush.msrb.mxu0 %v5432_v0 }
 0x72f   : > { %5577 = vmatpush.msra.mxu2 %v5426_v38  ;;  %5617 = vmatpush.msrb.mxu3 %v5458_v51  ;;  %v5415_v51 = vld [vmem:[%s9476_s9 + $0x210] sm:$0xff] }
 0x730   : > { %5637 = vmatpush.msrb.mxu1 %v5474_v27  ;;  %v5431_v27 = vld [vmem:[%s9476_s9 + $0x290] sm:$0xff] }
 0x731   : > { %5578 = vmatpush.msra.mxu2 %v5425_v36  ;;  %5618 = vmatpush.msrb.mxu3 %v5457_v59  ;;  %v5463_v59 = vld [vmem:[%s9476_s9 + $0x390] sm:$0xff] }
 0x732   : > { %5638 = vmatpush.msrb.mxu1 %v5473_v1  ;;  %v5414_v1 = vld [vmem:[%s9476_s9 + $0x208] sm:$0xff]  ;;  %5608 = vmatpush.msrb.mxu0 %v5431_v27 }
 0x733   : > { %5579 = vmatpush.msra.mxu2 %v5424_v40  ;;  %5619 = vmatpush.msrb.mxu3 %v5456_v44  ;;  %v5446_v44 = vld [vmem:[%s9476_s9 + $0x308] sm:$0xff] }
 0x734   : > { %5639 = vmatpush.msrb.mxu1 %v5472_v25  ;;  %v5462_v25 = vld [vmem:[%s9476_s9 + $0x388] sm:$0xff]  ;;  %5609 = vmatpush.msrb.mxu0 %v5430_v57 }
 0x735   : > { %5580 = vmatpush.msra.mxu2 %v5423_v28  ;;  %5620 = vmatpush.msrb.mxu3 %v5455_v50  ;;  %v4783_v28 = vrot.slane %v9136_v24, 2  ;;  %v5413_v50 = vld [vmem:[%s9476_s9 + $0x200] sm:$0xff] }
 0x736   : > { %5640 = vmatpush.msrb.mxu1 %v5471_v52  ;;  %v5429_v52 = vld [vmem:[%s9476_s9 + $0x280] sm:$0xff] }
 0x737   : > { %5581 = vmatpush.msra.mxu2 %v5422_v33  ;;  %5621 = vmatpush.msrb.mxu3 %v5454_v8  ;;  %v4780_v33 = vrot.slane %v9082_v55, 5  ;;  %v5445_v24 = vld [vmem:[%s9476_s9 + $0x300] sm:$0xff]  ;;  %v4779_v8 = vrot.slane %v9008_v41, 6  ;;  %v4782_v55 = vrot.slane %v9071_v46, 3  ;;  %v4790_v7 = vsel %vm2980_vm14, %v4783_v28, %v4784_v16 }
 0x738   : > { %5641 = vmatpush.msrb.mxu1 %v5470_v13  ;;  %v4778_v13 = vrot.slane %v9030_v61, 7  ;;  %5610 = vmatpush.msrb.mxu0 %v5429_v52  ;;  %v4964_v46 = vrot.slane %v9190_v39, 7 }
 0x739   : > { %5582 = vmatpush.msra.mxu2 %v5421_v34  ;;  %5622 = vmatpush.msrb.mxu3 %v5453_v49  ;;  %v5201_v34 = vpop.f32.mrf.mxu0  ;;  %v4969_v49 = vrot.slane %v9248_v21, 2  ;;  %v4786_v41 = vsel %vm9580_vm12, %v4779_v8, %v4780_v33  ;;  %v4789_v61 = vsel %vm2976_vm15, %v4781_v18, %v4782_v55 }
 0x73a   : > { %5642 = vmatpush.msrb.mxu1 %v5469_v53  ;;  %v4968_v53 = vrot.slane %v9230_v45, 3  ;;  %v4785_v21 = vsel %vm576_vm0, %v9019_v30, %v4778_v13  ;;  %v5152_v45 = vrot.slane %v9330_v2, 3  ;;  %v4792_v6 = vsel %vm4791_vm9, %v4789_v61, %v4790_v7 }
 0x73b   : > { %5583 = vmatpush.msra.mxu2 %v5420_v11  ;;  %5623 = vmatpush.msrb.mxu3 %v5452_v12  ;;  %v4970_v12 = vrot.slane %v9238_v5, 1  ;;  %v5149_v5 = vrot.slane %v9304_v47, 6  ;;  %v4788_v4 = vsel %vm4787_vm2, %v4785_v21, %v4786_v41  ;;  %v4971_v30 = vsel %vm576_vm0, %v9128_v32, %v4964_v46  ;;  %v5477_v46 = vld [vmem:[#allocation14] sm:$0x1] }
 0x73c   : > { %5643 = vmatpush.msrb.mxu1 %v5468_v23  ;;  %v4974_v39 = vsel %vm2976_vm15, %v4967_v35, %v4968_v53 }
 0x73d   : > { %5584 = vmatpush.msra.mxu2 %v5419_v19  ;;  %5624 = vmatpush.msrb.mxu3 %v5451_v48  ;;  %v4966_v48 = vrot.slane %v9182_v58, 5  ;;  %v4975_v56 = vsel %vm2980_vm14, %v4969_v49, %v4970_v12 }
 0x73e   : > { %5644 = vmatpush.msrb.mxu1 %v5467_v10  ;;  %v4976_v47 = vsel %vm4791_vm9, %v4974_v39, %v4975_v56 }
 0x73f   : > { %5585 = vmatpush.msra.mxu2 %v5418_v26  ;;  %5625 = vmatpush.msrb.mxu3 %v5450_v14  ;;  %v4972_v14 = vsel %vm9581_vm1, %v4965_v43, %v4966_v48 }
 0x740   : > { %5645 = vmatpush.msrb.mxu1 %v5466_v3  ;;  %v5150_v3 = vrot.slane %v9288_v17, 5  ;;  %v4973_v32 = vsel %vm4787_vm2, %v4971_v30, %v4972_v14 }
 0x741   : > { %5586 = vmatpush.msra.mxu2 %v5417_v31  ;;  %5626 = vmatpush.msrb.mxu3 %v5449_v60  ;;  %v4793_v60 = vsel %vm3862_vm4, %v4788_v4, %v4792_v6  ;;  %v5281_v2 = vpop.f32.mrf.mxu0 }
 0x742   : > { %5646 = vmatpush.msrb.mxu1 %v5465_v29  ;;  %v5148_v29 = vrot.slane %v9283_v63, 7 }
 0x743   : > { %5587 = vmatpush.msra.mxu2 %v5416_v20  ;;  %5627 = vmatpush.msrb.mxu3 %v5448_v9  ;;  %v5156_v20 = vsel %vm9582_vm3, %v5149_v5, %v5150_v3 }
 0x744   : > { %5647 = vmatpush.msrb.mxu1 %v5464_v42  ;;  %v4977_v42 = vsel %vm3862_vm4, %v4973_v32, %v4976_v47 }
 0x745   : > { %v9341_v38 = vpop.f32.mrf.mxu1  ;;  %5588 = vmatpush.msra.mxu2 %v5415_v51  ;;  %5628 = vmatpush.msrb.mxu3 %v5447_v62  ;;  %v5155_v51 = vsel %vm576_vm0, %v9299_v22, %v5148_v29  ;;  %v5332_v62 = vrot.slane %v5201_v34, 7 }
 0x746   : > { %5648 = vmatpush.msrb.mxu1 %v5463_v59  ;;  %v5154_v26 = vrot.slane %v9341_v38, 1  ;;  %v4795_v38 = vadd.f32 %v4793_v60, %v4609_v15  ;;  %v5336_v59 = vrot.slane %v5281_v2, 3  ;;  %v5157_v63 = vsel %vm4787_vm2, %v5155_v51, %v5156_v20 }
 0x747   : > { %5589 = vmatpush.msra.mxu2 %v5414_v1  ;;  %5629 = vmatpush.msrb.mxu3 %v5446_v44 }
 0x748   : > { %5649 = vmatpush.msrb.mxu1 %v5462_v25  ;;  %v4979_v16 = vadd.f32 %v4977_v42, %v4795_v38 }
 0x749   : > { %5590 = vmatpush.msra.mxu2 %v5413_v50  ;;  %5630 = vmatpush.msrb.mxu3 %v5445_v24 }
 0x74a   : > { %v9352_v36 = vpop.f32.mrf.mxu2  ;;  %5650 = vmatpush.msrb.mxu1 %v5461_v54 }
 0x74b   : > { %v5117_v40 = vpop.f32.mrf.mxu3  ;;  %v5151_v23 = vrot.slane %v9352_v36, 4 }
 0x74c   : > { %v5153_v37 = vrot.slane %v5117_v40, 2 }
 0x74d   : > { %v5158_v58 = vsel %vm2976_vm15, %v5151_v23, %v5152_v45 }
 0x74e   : > { %v5159_v31 = vsel %vm2980_vm14, %v5153_v37, %v5154_v26 }
 0x74f   : > { %v5160_v9 = vsel %vm4791_vm9, %v5158_v58, %v5159_v31 }
 0x750   : > { %v5161_v57 = vsel %vm3862_vm4, %v5157_v63, %v5160_v9 }
 0x751   : > { %v5163_v33 = vadd.f32 %v5161_v57, %v4979_v16 }
 0x766   : > { %v5241_v11 = vpop.f32.mrf.mxu1 }
 0x767   : > { %v5334_v27 = vrot.slane %v5241_v11, 5 }
 0x76b   : > { %v5181_v19 = vpop.f32.mrf.mxu2 }
 0x76c   : > { %v5221_v10 = vpop.f32.mrf.mxu3  ;;  %v5339_v52 = vsel %vm576_vm0, %v5181_v19, %v5332_v62  ;;  %vm5655_vm0 = vcmask 8192  }
 0x76d   : > { %v5333_v0 = vrot.slane %v5221_v10, 6 }
 0x76f   : > { %v5340_v44 = vsel %vm9583_vm13, %v5333_v0, %v5334_v27 }
 0x770   : > { %v5341_v18 = vsel %vm4787_vm2, %v5339_v52, %v5340_v44 }
 0x787   : > { %v5321_v17 = vpop.f32.mrf.mxu1 }
 0x788   : > { %v5338_v25 = vrot.slane %v5321_v17, 1 }
 0x78c   : > { %v5261_v36 = vpop.f32.mrf.mxu2 }
 0x78d   : > { %v5335_v1 = vrot.slane %v5261_v36, 4  ;;  %v5301_v40 = vpop.f32.mrf.mxu3 }
 0x78e   : > { %v5337_v28 = vrot.slane %v5301_v40, 2 }
 0x78f   : > { %v5342_v50 = vsel %vm2976_vm15, %v5335_v1, %v5336_v59 }
 0x790   : > { %v5343_v22 = vsel %vm2980_vm14, %v5337_v28, %v5338_v25 }
 0x791   : > { %v5344_v24 = vsel %vm4791_vm9, %v5342_v50, %v5343_v22 }
 0x792   : > { %v5345_v54 = vsel %vm3862_vm4, %v5341_v18, %v5344_v24 }
 0x793   : > { %v5347_v8 = vadd.f32 %v5345_v54, %v5163_v33 }
 0x795   : > { %v5348_v13 = vmax.f32 %v5347_v8, 0.0 }
 0x797   : > { %v5479_v55 = vperm.slane %v5348_v13, 0  ;;  %v5480_v7 = vperm.slane %v5348_v13, 1  ;;  %v5481_v34 = vperm.slane %v5348_v13, 2  ;;  %v5482_v35 = vperm.slane %v5348_v13, 3 }
 0x798   : > { %v5483_v49 = vperm.slane %v5348_v13, 4  ;;  %v5484_v53 = vperm.slane %v5348_v13, 5  ;;  %v5485_v41 = vperm.slane %v5348_v13, 6  ;;  %v5486_v61 = vperm.slane %v5348_v13, 7 }
 0x799   : > { %5511 = vmatmul.f32.vlgmr.msrb.gmra.mxu2 %v5479_v55  ;;  %5531 = vmatmul.f32.vlgmr.msra.gmra.mxu0 %v5480_v7 }
 0x79a   : > { %5551 = vmatmul.f32.vlgmr.msra.gmra.mxu3 %v5481_v34  ;;  %5571 = vmatmul.f32.vlgmr.msra.gmra.mxu1 %v5482_v35 }
 0x7a1   : > { %5591 = vmatmul.f32.vlgmr.msra.gmra.mxu2 %v5483_v49  ;;  %5611 = vmatmul.f32.vlgmr.msrb.gmra.mxu0 %v5484_v53 }
 0x7a2   : > { %5631 = vmatmul.f32.vlgmr.msrb.gmra.mxu3 %v5485_v41  ;;  %5651 = vmatmul.f32.vlgmr.msrb.gmra.mxu1 %v5486_v61 }
 0x816   : > { %v5532_v11 = vpop.f32.mrf.mxu0 }
 0x817   : > { %v5572_v19 = vpop.f32.mrf.mxu1 }
 0x81c   : > { %v5512_v43 = vpop.f32.mrf.mxu2 }
 0x81d   : > { %v5513_v12 = vadd.f32 %v5512_v43, %v5477_v46  ;;  %v5552_v23 = vpop.f32.mrf.mxu3 }
 0x81e   : > { %v5612_v10 = vpop.f32.mrf.mxu0 }
 0x81f   : > { %v5533_v37 = vadd.f32 %v5532_v11, %v5513_v12  ;;  %v5652_v26 = vpop.f32.mrf.mxu1 }
 0x821   : > { %v5553_v21 = vadd.f32 %v5552_v23, %v5533_v37 }
 0x823   : > { %v5573_v45 = vadd.f32 %v5572_v19, %v5553_v21 }
 0x824   : > { %v5592_v6 = vpop.f32.mrf.mxu2 }
 0x825   : > { %v5593_v48 = vadd.f32 %v5592_v6, %v5573_v45  ;;  %v5632_v56 = vpop.f32.mrf.mxu3 }
 0x827   : > { %v5613_v39 = vadd.f32 %v5612_v10, %v5593_v48 }
 0x829   : > { %v5633_v5 = vadd.f32 %v5632_v56, %v5613_v39 }
 0x82b   : > { %v5653_v4 = vadd.f32 %v5652_v26, %v5633_v5 }
 0x82d   : > { %5656 = vst.msk [vmem:[%s501_s30] sm:$0x1] %vm5655_vm0, %v5653_v4 }
 0x82e   : > { %6479 = shalt.err (!%p6476_p8)
}
 0x82f   : > { %5988 = dma.vmem_to_hbm [thread:$0]  (%p6658_p5), %s5669_s2, 16, %s5671_s1, %s5658_s14  }
 0x830 PF: > { %s9584_s22 = sld [smem:[#allocation23_spill]]  ;;  %p6035_p9 = scmp.ge.s32.totalorder %s6534_s20, 2 }
 0x832   : > { %p6016_p10 = pnand %p6035_p9, %p6662_p6 }
 0x834   : > { %p6017_p11 = pneg %p6016_p10 }
 0x836   : > { %s5682_s7 = sand.u32 1, %s9584_s22  }
 0x837   : > { %s5683_s17 = scalar_lea.sflag [#allocation4], %s5682_s7 }
 0x838   : > { %6517 = dma.done.wait (%p6017_p11), %s5683_s17, 16  }
 0x839   : > { %6519 = vsyncadd (%p6017_p11), %s5683_s17, 4294967280  ;;  %s9586_s20 = sld [smem:[#allocation25_spill]]  ;;  %s9589_s17 = smov %s6526_s18 }
 0x83a   : > { %s9587_s24 = sld [smem:[#allocation24_spill]] }
 0x83b   : > { %s9588_s19 = sld [smem:[#allocation26_spill]] }
 0x83f   : > { %p26_p12 = scmp.ge.s32.totalorder %s9586_s20, 4  }
 0x840   : > { %s9590_s18 = smov %s9587_s24 }
 0x841   :  { %28 = sbr.rel (!%p26_p12) target bundleno = 13 (0xd), region = 142 }
 0x846   :  { %5688 = vsyncpa [#allocation3], 1 }
 0x847   :  { %5690 = vsyncpa [#allocation3 + $0x1], 1 }
 0x848   :  { %5691 = vsyncpa [#allocation6], 1 }
 0x849   :  { %5692 = vsyncpa [#allocation9], 1 }
 0x84a   :  { %5693 = vsyncpa [#allocation12], 1 }
 0x84b   :  { %5694 = vsyncpa [#allocation15], 1 }
 0x84c   :  { %5695 = vsyncpa [#allocation4], 1 }
 0x84d   :  { %5697 = vsyncpa [#allocation4 + $0x1], 1 }

</bundles_post_ra>
